<compile_context>
chip_gen: v6e
topology: v6e:2x2x1
jax: 0.10.0
libtpu: 0.0.40
codegen_flags: <defaults>
</compile_context>

<pallas_src>
import functools

import jax
import jax.numpy as jnp
from jax import lax
from jax.experimental import pallas as pl
from jax.experimental.pallas import tpu as pltpu

# ----------------------------------------------------------------------------
# Small, deterministic configuration consistent with the module
# ----------------------------------------------------------------------------
B = 2          # batch
SEQ = 4        # seq_len (default of CGRU_cell.forward)
H = W = 8      # spatial shape
CIN = 16       # input_channels
F = 16         # num_features (hidden channels)
FS = 3         # filter_size
EPS = 1e-5     # GroupNorm eps (PyTorch default)


# ----------------------------------------------------------------------------
# Fused ConvGRU kernel: all timesteps for one batch element
# ----------------------------------------------------------------------------
def _cgru_kernel(x_ref, h0_ref, w1_ref, b1_ref, g1_ref, be1_ref,
                 w2_ref, b2_ref, g2_ref, be2_ref,
                 out_ref, hlast_ref, xpad_ref, hpad_ref,
                 *, seq_len, hh, ww, cx, ch, fs, eps):
    """x_ref:  (1, seq, H, W, cx)   one batch element, all timesteps (NHWC)
       h0_ref: (1, H, W, ch)        initial hidden state
       out_ref:(1, seq, H, W, ch)   stacked hidden states
       hlast_ref: (1, H, W, ch)     last hidden state
       xpad_ref / hpad_ref: zero-bordered VMEM halo scratch."""
    hw = hh * ww
    pad = (fs - 1) // 2

    # Zero the halo scratch once; only interiors are rewritten per step.
    xpad_ref[...] = jnp.zeros_like(xpad_ref)
    hpad_ref[...] = jnp.zeros_like(hpad_ref)

    def taps(p_ref, c):
        # 9 shifted views of the padded image, each flattened to (H*W, c).
        return [p_ref[kh:kh + hh, kw:kw + ww, :].reshape(hw, c)
                for kh in range(fs) for kw in range(fs)]

    def groupnorm(y, gamma, beta):
        # GroupNorm(1, C): normalize over all (spatial, channel) of the sample.
        mu = jnp.mean(y)
        var = jnp.mean((y - mu) * (y - mu))
        return (y - mu) * lax.rsqrt(var + eps) * gamma + beta

    h = h0_ref[0].astype(jnp.float32)                    # (H, W, ch)

    for t in range(seq_len):                             # static unroll (seq=4)
        x_t = x_ref[0, t].astype(jnp.float32)            # (H, W, cx)
        xpad_ref[pad:pad + hh, pad:pad + ww, :] = x_t
        hpad_ref[pad:pad + hh, pad:pad + ww, :] = h

        x_taps = taps(xpad_ref, cx)                      # 9 x (hw, cx)
        h_taps = taps(hpad_ref, ch)                      # 9 x (hw, ch)

        # --- gate conv: one matmul over K = fs*fs*(cx+ch) --------------------
        patches1 = jnp.concatenate(x_taps + h_taps, axis=1)
        gates = jnp.dot(patches1, w1_ref[...],
                        preferred_element_type=jnp.float32) + b1_ref[...]
        gates = groupnorm(gates, g1_ref[...], be1_ref[...])
        z = jax.nn.sigmoid(gates[:, :ch])                # (hw, ch)
        r = jax.nn.sigmoid(gates[:, ch:])                # (hw, ch)

        h2d = h.reshape(hw, ch)

        # --- candidate conv over [x, r*h] ------------------------------------
        hpad_ref[pad:pad + hh, pad:pad + ww, :] = (r * h2d).reshape(hh, ww, ch)
        rh_taps = taps(hpad_ref, ch)
        patches2 = jnp.concatenate(x_taps + rh_taps, axis=1)
        cand = jnp.dot(patches2, w2_ref[...],
                       preferred_element_type=jnp.float32) + b2_ref[...]
        cand = jnp.tanh(groupnorm(cand, g2_ref[...], be2_ref[...]))

        # --- GRU update -------------------------------------------------------
        h2d = (1.0 - z) * h2d + z * cand                 # (hw, ch)
        h = h2d.reshape(hh, ww, ch)
        out_ref[0, t] = h.astype(out_ref.dtype)

    hlast_ref[0] = h.astype(hlast_ref.dtype)


# ----------------------------------------------------------------------------
# Pallas wrapper (single pallas_call for the whole cell forward)
# ----------------------------------------------------------------------------
@functools.partial(jax.jit,
                   static_argnames=("seq_len", "cin", "feat", "hh", "ww", "fs"))
def _cgru_pallas(x_nhwc, h_nhwc, w1, b1, g1, be1, w2, b2, g2, be2,
                 *, seq_len, cin, feat, hh, ww, fs):
    b = x_nhwc.shape[0]
    pad = (fs - 1) // 2
    k1 = fs * fs * (cin + feat)
    kern = functools.partial(_cgru_kernel, seq_len=seq_len, hh=hh, ww=ww,
                             cx=cin, ch=feat, fs=fs, eps=EPS)
    out_shape = (
        jax.ShapeDtypeStruct((b, seq_len, hh, ww, feat), jnp.float32),
        jax.ShapeDtypeStruct((b, hh, ww, feat), jnp.float32),
    )
    grid_spec = pltpu.PrefetchScalarGridSpec(
        num_scalar_prefetch=0,
        grid=(b,),
        in_specs=[
            pl.BlockSpec((1, seq_len, hh, ww, cin), lambda i: (i, 0, 0, 0, 0)),
            pl.BlockSpec((1, hh, ww, feat), lambda i: (i, 0, 0, 0)),
            pl.BlockSpec((k1, 2 * feat), lambda i: (0, 0)),
            pl.BlockSpec((1, 2 * feat), lambda i: (0, 0)),
            pl.BlockSpec((1, 2 * feat), lambda i: (0, 0)),
            pl.BlockSpec((1, 2 * feat), lambda i: (0, 0)),
            pl.BlockSpec((k1, feat), lambda i: (0, 0)),
            pl.BlockSpec((1, feat), lambda i: (0, 0)),
            pl.BlockSpec((1, feat), lambda i: (0, 0)),
            pl.BlockSpec((1, feat), lambda i: (0, 0)),
        ],
        out_specs=(
            pl.BlockSpec((1, seq_len, hh, ww, feat), lambda i: (i, 0, 0, 0, 0)),
            pl.BlockSpec((1, hh, ww, feat), lambda i: (i, 0, 0, 0)),
        ),
        scratch_shapes=[
            pltpu.VMEM((hh + 2 * pad, ww + 2 * pad, cin), jnp.float32),
            pltpu.VMEM((hh + 2 * pad, ww + 2 * pad, feat), jnp.float32),
        ],
    )
    return pl.pallas_call(
        kern,
        out_shape=out_shape,
        grid_spec=grid_spec,
        compiler_params=pltpu.CompilerParams(
            dimension_semantics=("parallel",)),
    )(x_nhwc, h_nhwc, w1, b1, g1, be1, w2, b2, g2, be2)


def _pack_weights(w, cin, feat):
    """(fs, fs, cin+feat, cout) HWIO -> (fs*fs*cin + fs*fs*feat, cout):
    x-taps first, then h-taps, matching the in-kernel im2col column order."""
    fs = w.shape[0]
    cout = w.shape[-1]
    wx = w[:, :, :cin, :].reshape(fs * fs * cin, cout)
    wh = w[:, :, cin:, :].reshape(fs * fs * feat, cout)
    return jnp.concatenate([wx, wh], axis=0)


def cgru_cell_forward(params, inputs=None, hidden_state=None, *, seq_len=SEQ,
                      shape=(H, W), input_channels=CIN, num_features=F,
                      filter_size=FS):
    """Mirrors CGRU_cell.forward.

    inputs:       (seq_len, B, input_channels, H, W) or None (-> zeros)
    hidden_state: (B, num_features, H, W) or None (-> zeros)
    returns (stacked outputs (seq_len, B, F, H, W), last hidden (B, F, H, W))
    """
    hh, ww = shape
    if hidden_state is None:
        b = inputs.shape[1]
        h0 = jnp.zeros((b, num_features, hh, ww), jnp.float32)
    else:
        h0 = hidden_state
        b = h0.shape[0]
    if inputs is None:
        x_seq = jnp.zeros((seq_len, b, input_channels, hh, ww), jnp.float32)
    else:
        x_seq = inputs

    # PyTorch NCHW -> NHWC (channels on the lane dim for the kernel).
    x_nhwc = jnp.transpose(x_seq, (1, 0, 3, 4, 2))       # (B, S, H, W, Cin)
    h_nhwc = jnp.transpose(h0, (0, 2, 3, 1))             # (B, H, W, F)

    w1p = _pack_weights(params["w1"], input_channels, num_features)
    w2p = _pack_weights(params["w2"], input_channels, num_features)
    row = lambda v: v.reshape(1, -1)

    out_nhwc, hlast_nhwc = _cgru_pallas(
        x_nhwc, h_nhwc,
        w1p, row(params["b1"]), row(params["gn1_g"]), row(params["gn1_b"]),
        w2p, row(params["b2"]), row(params["gn2_g"]), row(params["gn2_b"]),
        seq_len=seq_len, cin=input_channels, feat=num_features,
        hh=hh, ww=ww, fs=filter_size)

    outs = jnp.transpose(out_nhwc, (1, 0, 4, 2, 3))      # (S, B, F, H, W)
    hlast = jnp.transpose(hlast_nhwc, (0, 3, 1, 2))      # (B, F, H, W)
    return outs, hlast


# ----------------------------------------------------------------------------
# Deterministic parameter init (HWIO conv weights, GroupNorm affine params)
# ----------------------------------------------------------------------------
def init_cgru_params(key, cin, feat, fs=3, scale=0.1):
    ks = jax.random.split(key, 8)
    w1 = jax.random.normal(ks[0], (fs, fs, cin + feat, 2 * feat), jnp.float32) * scale
    b1 = jax.random.normal(ks[1], (2 * feat,), jnp.float32) * scale
    w2 = jax.random.normal(ks[2], (fs, fs, cin + feat, feat), jnp.float32) * scale
    b2 = jax.random.normal(ks[3], (feat,), jnp.float32) * scale
    gn1_g = 1.0 + 0.1 * jax.random.normal(ks[4], (2 * feat,), jnp.float32)
    gn1_b = 0.1 * jax.random.normal(ks[5], (2 * feat,), jnp.float32)
    gn2_g = 1.0 + 0.1 * jax.random.normal(ks[6], (feat,), jnp.float32)
    gn2_b = 0.1 * jax.random.normal(ks[7], (feat,), jnp.float32)
    return dict(w1=w1, b1=b1, w2=w2, b2=b2,
                gn1_g=gn1_g, gn1_b=gn1_b, gn2_g=gn2_g, gn2_b=gn2_b)


# ----------------------------------------------------------------------------
# Pure-JAX (XLA) reference for the self-check
# ----------------------------------------------------------------------------
def _conv_gn_ref(x, w, bias, gamma, beta):
    y = lax.conv_general_dilated(x, w, (1, 1), "SAME",
                                 dimension_numbers=("NHWC", "HWIO", "NHWC"))
    y = y + bias.reshape(1, 1, 1, -1)
    mu = jnp.mean(y, axis=(1, 2, 3), keepdims=True)
    var = jnp.mean((y - mu) ** 2, axis=(1, 2, 3), keepdims=True)
    return ((y - mu) * lax.rsqrt(var + EPS) * gamma.reshape(1, 1, 1, -1)
            + beta.reshape(1, 1, 1, -1))


def cgru_cell_ref(params, inputs, hidden_state, seq_len=SEQ):
    x_seq = jnp.transpose(inputs, (0, 1, 3, 4, 2))       # (S, B, H, W, Cin)
    h = jnp.transpose(hidden_state, (0, 2, 3, 1))        # (B, H, W, F)
    feat = h.shape[-1]
    outs = []
    for t in range(seq_len):
        x = x_seq[t]
        gates = _conv_gn_ref(jnp.concatenate([x, h], -1), params["w1"],
                             params["b1"], params["gn1_g"], params["gn1_b"])
        z = jax.nn.sigmoid(gates[..., :feat])
        r = jax.nn.sigmoid(gates[..., feat:])
        cand = jnp.tanh(_conv_gn_ref(jnp.concatenate([x, r * h], -1),
                                     params["w2"], params["b2"],
                                     params["gn2_g"], params["gn2_b"]))
        h = (1.0 - z) * h + z * cand
        outs.append(h)
    outs = jnp.stack(outs, 0)                            # (S, B, H, W, F)
    return jnp.transpose(outs, (0, 1, 4, 2, 3)), jnp.transpose(h, (0, 3, 1, 2))


# ----------------------------------------------------------------------------
if __name__ == "__main__":
    key = jax.random.PRNGKey(0)
    key, kp, kx, kh = jax.random.split(key, 4)
    params = init_cgru_params(kp, CIN, F, FS)

    inputs = jax.random.normal(kx, (SEQ, B, CIN, H, W), jnp.float32)
    h0 = jax.random.normal(kh, (B, F, H, W), jnp.float32)

    # --- fused Pallas forward ------------------------------------------------
    outs, hlast = cgru_cell_forward(params, inputs, h0, seq_len=SEQ)
    outs = jax.block_until_ready(outs)
    hlast = jax.block_until_ready(hlast)
    assert outs.shape == (SEQ, B, F, H, W), outs.shape
    assert hlast.shape == (B, F, H, W), hlast.shape

    # --- check against the pure-XLA reference --------------------------------
    ref_outs, ref_hlast = cgru_cell_ref(params, inputs, h0, seq_len=SEQ)
    err_o = float(jnp.max(jnp.abs(outs - ref_outs)))
    err_h = float(jnp.max(jnp.abs(hlast - ref_hlast)))
    assert jnp.allclose(outs, ref_outs, atol=1e-4, rtol=1e-4), err_o
    assert jnp.allclose(hlast, ref_hlast, atol=1e-4, rtol=1e-4), err_h

    # --- also exercise the inputs=None branch of the original forward() ------
    outs0, hlast0 = cgru_cell_forward(params, None, h0, seq_len=SEQ)
    jax.block_until_ready(outs0)
    assert bool(jnp.all(jnp.isfinite(outs0)))
    assert bool(jnp.all(jnp.isfinite(hlast0)))

    print("KERNEL_OK")
</pallas_src>

<mosaic_0001>
module attributes {stable_mosaic.version = 11 : i64} {
  func.func @_cgru_kernel(%arg0: i32, %arg1: memref<1x4x8x8x16xf32, #tpu.memory_space<vmem>>, %arg2: memref<1x8x8x16xf32, #tpu.memory_space<vmem>>, %arg3: memref<288x32xf32, #tpu.memory_space<vmem>>, %arg4: memref<1x32xf32, #tpu.memory_space<vmem>>, %arg5: memref<1x32xf32, #tpu.memory_space<vmem>>, %arg6: memref<1x32xf32, #tpu.memory_space<vmem>>, %arg7: memref<288x16xf32, #tpu.memory_space<vmem>>, %arg8: memref<1x16xf32, #tpu.memory_space<vmem>>, %arg9: memref<1x16xf32, #tpu.memory_space<vmem>>, %arg10: memref<1x16xf32, #tpu.memory_space<vmem>>, %arg11: memref<1x4x8x8x16xf32, #tpu.memory_space<vmem>>, %arg12: memref<1x8x8x16xf32, #tpu.memory_space<vmem>>, %arg13: memref<10x10x16xf32, #tpu.memory_space<vmem>>, %arg14: memref<10x10x16xf32, #tpu.memory_space<vmem>>) attributes {dimension_semantics = [#tpu.dimension_semantics<parallel>], iteration_bounds = array<i64: 2>, scalar_prefetch = 0 : i64, scratch_operands = 2 : i64, tpu.core_type = #tpu.core_type<tc>, window_params = [{transform_indices = @transform_0, window_bounds = array<i64: 1, 4, 8, 8, 16>}, {transform_indices = @transform_1, window_bounds = array<i64: 1, 8, 8, 16>}, {pipeline_mode = #tpu.pipeline_mode<synchronous>, transform_indices = @transform_2, window_bounds = array<i64: 288, 32>}, {pipeline_mode = #tpu.pipeline_mode<synchronous>, transform_indices = @transform_3, window_bounds = array<i64: 1, 32>}, {pipeline_mode = #tpu.pipeline_mode<synchronous>, transform_indices = @transform_4, window_bounds = array<i64: 1, 32>}, {pipeline_mode = #tpu.pipeline_mode<synchronous>, transform_indices = @transform_5, window_bounds = array<i64: 1, 32>}, {pipeline_mode = #tpu.pipeline_mode<synchronous>, transform_indices = @transform_6, window_bounds = array<i64: 288, 16>}, {pipeline_mode = #tpu.pipeline_mode<synchronous>, transform_indices = @transform_7, window_bounds = array<i64: 1, 16>}, {pipeline_mode = #tpu.pipeline_mode<synchronous>, transform_indices = @transform_8, window_bounds = array<i64: 1, 16>}, {pipeline_mode = #tpu.pipeline_mode<synchronous>, transform_indices = @transform_9, window_bounds = array<i64: 1, 16>}, {transform_indices = @transform_10, window_bounds = array<i64: 1, 4, 8, 8, 16>}, {transform_indices = @transform_11, window_bounds = array<i64: 1, 8, 8, 16>}]} {
    %cst = arith.constant 0.000000e+00 : f32
    %0 = vector.broadcast %cst : f32 to vector<10x10x16xf32>
    %c0 = arith.constant 0 : index
    %c0_0 = arith.constant 0 : index
    %c0_1 = arith.constant 0 : index
    %1 = vector.load %arg13[%c0, %c0_0, %c0_1] : memref<10x10x16xf32, #tpu.memory_space<vmem>>, vector<10x10x16xf32>
    tpu.vector_store %arg13[%c0, %c0_0, %c0_1], %0 {strides = array<i32>} : memref<10x10x16xf32, #tpu.memory_space<vmem>>, vector<10x10x16xf32>,
    %cst_2 = arith.constant 0.000000e+00 : f32
    %2 = vector.broadcast %cst_2 : f32 to vector<10x10x16xf32>
    %c0_3 = arith.constant 0 : index
    %c0_4 = arith.constant 0 : index
    %c0_5 = arith.constant 0 : index
    %3 = vector.load %arg14[%c0_3, %c0_4, %c0_5] : memref<10x10x16xf32, #tpu.memory_space<vmem>>, vector<10x10x16xf32>
    tpu.vector_store %arg14[%c0_3, %c0_4, %c0_5], %2 {strides = array<i32>} : memref<10x10x16xf32, #tpu.memory_space<vmem>>, vector<10x10x16xf32>,
    %c0_6 = arith.constant 0 : index
    %c0_7 = arith.constant 0 : index
    %c0_8 = arith.constant 0 : index
    %c0_9 = arith.constant 0 : index
    %4 = vector.load %arg2[%c0_6, %c0_7, %c0_8, %c0_9] : memref<1x8x8x16xf32, #tpu.memory_space<vmem>>, vector<1x8x8x16xf32>
    %5 = vector.shape_cast %4 : vector<1x8x8x16xf32> to vector<8x8x16xf32>
    %c0_10 = arith.constant 0 : index
    %c0_11 = arith.constant 0 : index
    %c0_12 = arith.constant 0 : index
    %c0_13 = arith.constant 0 : index
    %c0_14 = arith.constant 0 : index
    %6 = vector.load %arg1[%c0_10, %c0_11, %c0_12, %c0_13, %c0_14] : memref<1x4x8x8x16xf32, #tpu.memory_space<vmem>>, vector<1x1x8x8x16xf32>
    %7 = vector.shape_cast %6 : vector<1x1x8x8x16xf32> to vector<8x8x16xf32>
    %c1 = arith.constant 1 : index
    %c1_15 = arith.constant 1 : index
    %c0_16 = arith.constant 0 : index
    %8 = vector.load %arg13[%c1, %c1_15, %c0_16] : memref<10x10x16xf32, #tpu.memory_space<vmem>>, vector<8x8x16xf32>
    tpu.vector_store %arg13[%c1, %c1_15, %c0_16], %7 {strides = array<i32>} : memref<10x10x16xf32, #tpu.memory_space<vmem>>, vector<8x8x16xf32>,
    %c1_17 = arith.constant 1 : index
    %c1_18 = arith.constant 1 : index
    %c0_19 = arith.constant 0 : index
    %9 = vector.load %arg14[%c1_17, %c1_18, %c0_19] : memref<10x10x16xf32, #tpu.memory_space<vmem>>, vector<8x8x16xf32>
    tpu.vector_store %arg14[%c1_17, %c1_18, %c0_19], %5 {strides = array<i32>} : memref<10x10x16xf32, #tpu.memory_space<vmem>>, vector<8x8x16xf32>,
    %c0_20 = arith.constant 0 : index
    %c0_21 = arith.constant 0 : index
    %c0_22 = arith.constant 0 : index
    %10 = vector.load %arg13[%c0_20, %c0_21, %c0_22] : memref<10x10x16xf32, #tpu.memory_space<vmem>>, vector<8x8x16xf32>
    %11 = vector.shape_cast %10 : vector<8x8x16xf32> to vector<64x16xf32>
    %c0_23 = arith.constant 0 : index
    %c1_24 = arith.constant 1 : index
    %c0_25 = arith.constant 0 : index
    %12 = vector.load %arg13[%c0_23, %c1_24, %c0_25] : memref<10x10x16xf32, #tpu.memory_space<vmem>>, vector<8x8x16xf32>
    %13 = vector.shape_cast %12 : vector<8x8x16xf32> to vector<64x16xf32>
    %c0_26 = arith.constant 0 : index
    %c2 = arith.constant 2 : index
    %c0_27 = arith.constant 0 : index
    %14 = vector.load %arg13[%c0_26, %c2, %c0_27] : memref<10x10x16xf32, #tpu.memory_space<vmem>>, vector<8x8x16xf32>
    %15 = vector.shape_cast %14 : vector<8x8x16xf32> to vector<64x16xf32>
    %c1_28 = arith.constant 1 : index
    %c0_29 = arith.constant 0 : index
    %c0_30 = arith.constant 0 : index
    %16 = vector.load %arg13[%c1_28, %c0_29, %c0_30] : memref<10x10x16xf32, #tpu.memory_space<vmem>>, vector<8x8x16xf32>
    %17 = vector.shape_cast %16 : vector<8x8x16xf32> to vector<64x16xf32>
    %c1_31 = arith.constant 1 : index
    %c1_32 = arith.constant 1 : index
    %c0_33 = arith.constant 0 : index
    %18 = vector.load %arg13[%c1_31, %c1_32, %c0_33] : memref<10x10x16xf32, #tpu.memory_space<vmem>>, vector<8x8x16xf32>
    %19 = vector.shape_cast %18 : vector<8x8x16xf32> to vector<64x16xf32>
    %c1_34 = arith.constant 1 : index
    %c2_35 = arith.constant 2 : index
    %c0_36 = arith.constant 0 : index
    %20 = vector.load %arg13[%c1_34, %c2_35, %c0_36] : memref<10x10x16xf32, #tpu.memory_space<vmem>>, vector<8x8x16xf32>
    %21 = vector.shape_cast %20 : vector<8x8x16xf32> to vector<64x16xf32>
    %c2_37 = arith.constant 2 : index
    %c0_38 = arith.constant 0 : index
    %c0_39 = arith.constant 0 : index
    %22 = vector.load %arg13[%c2_37, %c0_38, %c0_39] : memref<10x10x16xf32, #tpu.memory_space<vmem>>, vector<8x8x16xf32>
    %23 = vector.shape_cast %22 : vector<8x8x16xf32> to vector<64x16xf32>
    %c2_40 = arith.constant 2 : index
    %c1_41 = arith.constant 1 : index
    %c0_42 = arith.constant 0 : index
    %24 = vector.load %arg13[%c2_40, %c1_41, %c0_42] : memref<10x10x16xf32, #tpu.memory_space<vmem>>, vector<8x8x16xf32>
    %25 = vector.shape_cast %24 : vector<8x8x16xf32> to vector<64x16xf32>
    %c2_43 = arith.constant 2 : index
    %c2_44 = arith.constant 2 : index
    %c0_45 = arith.constant 0 : index
    %26 = vector.load %arg13[%c2_43, %c2_44, %c0_45] : memref<10x10x16xf32, #tpu.memory_space<vmem>>, vector<8x8x16xf32>
    %27 = vector.shape_cast %26 : vector<8x8x16xf32> to vector<64x16xf32>
    %c0_46 = arith.constant 0 : index
    %c0_47 = arith.constant 0 : index
    %c0_48 = arith.constant 0 : index
    %28 = vector.load %arg14[%c0_46, %c0_47, %c0_48] : memref<10x10x16xf32, #tpu.memory_space<vmem>>, vector<8x8x16xf32>
    %29 = vector.shape_cast %28 : vector<8x8x16xf32> to vector<64x16xf32>
    %c0_49 = arith.constant 0 : index
    %c1_50 = arith.constant 1 : index
    %c0_51 = arith.constant 0 : index
    %30 = vector.load %arg14[%c0_49, %c1_50, %c0_51] : memref<10x10x16xf32, #tpu.memory_space<vmem>>, vector<8x8x16xf32>
    %31 = vector.shape_cast %30 : vector<8x8x16xf32> to vector<64x16xf32>
    %c0_52 = arith.constant 0 : index
    %c2_53 = arith.constant 2 : index
    %c0_54 = arith.constant 0 : index
    %32 = vector.load %arg14[%c0_52, %c2_53, %c0_54] : memref<10x10x16xf32, #tpu.memory_space<vmem>>, vector<8x8x16xf32>
    %33 = vector.shape_cast %32 : vector<8x8x16xf32> to vector<64x16xf32>
    %c1_55 = arith.constant 1 : index
    %c0_56 = arith.constant 0 : index
    %c0_57 = arith.constant 0 : index
    %34 = vector.load %arg14[%c1_55, %c0_56, %c0_57] : memref<10x10x16xf32, #tpu.memory_space<vmem>>, vector<8x8x16xf32>
    %35 = vector.shape_cast %34 : vector<8x8x16xf32> to vector<64x16xf32>
    %c1_58 = arith.constant 1 : index
    %c1_59 = arith.constant 1 : index
    %c0_60 = arith.constant 0 : index
    %36 = vector.load %arg14[%c1_58, %c1_59, %c0_60] : memref<10x10x16xf32, #tpu.memory_space<vmem>>, vector<8x8x16xf32>
    %37 = vector.shape_cast %36 : vector<8x8x16xf32> to vector<64x16xf32>
    %c1_61 = arith.constant 1 : index
    %c2_62 = arith.constant 2 : index
    %c0_63 = arith.constant 0 : index
    %38 = vector.load %arg14[%c1_61, %c2_62, %c0_63] : memref<10x10x16xf32, #tpu.memory_space<vmem>>, vector<8x8x16xf32>
    %39 = vector.shape_cast %38 : vector<8x8x16xf32> to vector<64x16xf32>
    %c2_64 = arith.constant 2 : index
    %c0_65 = arith.constant 0 : index
    %c0_66 = arith.constant 0 : index
    %40 = vector.load %arg14[%c2_64, %c0_65, %c0_66] : memref<10x10x16xf32, #tpu.memory_space<vmem>>, vector<8x8x16xf32>
    %41 = vector.shape_cast %40 : vector<8x8x16xf32> to vector<64x16xf32>
    %c2_67 = arith.constant 2 : index
    %c1_68 = arith.constant 1 : index
    %c0_69 = arith.constant 0 : index
    %42 = vector.load %arg14[%c2_67, %c1_68, %c0_69] : memref<10x10x16xf32, #tpu.memory_space<vmem>>, vector<8x8x16xf32>
    %43 = vector.shape_cast %42 : vector<8x8x16xf32> to vector<64x16xf32>
    %c2_70 = arith.constant 2 : index
    %c2_71 = arith.constant 2 : index
    %c0_72 = arith.constant 0 : index
    %44 = vector.load %arg14[%c2_70, %c2_71, %c0_72] : memref<10x10x16xf32, #tpu.memory_space<vmem>>, vector<8x8x16xf32>
    %45 = vector.shape_cast %44 : vector<8x8x16xf32> to vector<64x16xf32>
    %46 = tpu.concatenate %11, %13, %15, %17, %19, %21, %23, %25, %27, %29, %31, %33, %35, %37, %39, %41 in 1 : vector<64x16xf32>, vector<64x16xf32>, vector<64x16xf32>, vector<64x16xf32>, vector<64x16xf32>, vector<64x16xf32>, vector<64x16xf32>, vector<64x16xf32>, vector<64x16xf32>, vector<64x16xf32>, vector<64x16xf32>, vector<64x16xf32>, vector<64x16xf32>, vector<64x16xf32>, vector<64x16xf32>, vector<64x16xf32> -> vector<64x256xf32>
    %47 = tpu.concatenate %43, %45 in 1 : vector<64x16xf32>, vector<64x16xf32> -> vector<64x32xf32>
    %48 = tpu.concatenate %46, %47 in 1 : vector<64x256xf32>, vector<64x32xf32> -> vector<64x288xf32>
    %c0_73 = arith.constant 0 : index
    %c0_74 = arith.constant 0 : index
    %49 = vector.load %arg3[%c0_73, %c0_74] : memref<288x32xf32, #tpu.memory_space<vmem>>, vector<288x32xf32>
    %cst_75 = arith.constant dense<0.000000e+00> : vector<64x32xf32>
    %50 = tpu.matmul %48, %49, %cst_75 {dimension_numbers = #tpu.dot_dimension_numbers<[1], [0], [0], [1], [0, 0, 1, 1], [], []>} : vector<64x288xf32>, vector<288x32xf32>, vector<64x32xf32> -> vector<64x32xf32>
    %c0_76 = arith.constant 0 : index
    %c0_77 = arith.constant 0 : index
    %51 = vector.load %arg4[%c0_76, %c0_77] : memref<1x32xf32, #tpu.memory_space<vmem>>, vector<1x32xf32>
    %52 = vector.broadcast %51 : vector<1x32xf32> to vector<64x32xf32>
    %53 = arith.addf %50, %52 : vector<64x32xf32>
    %c0_78 = arith.constant 0 : index
    %c0_79 = arith.constant 0 : index
    %54 = vector.load %arg5[%c0_78, %c0_79] : memref<1x32xf32, #tpu.memory_space<vmem>>, vector<1x32xf32>
    %c0_80 = arith.constant 0 : index
    %c0_81 = arith.constant 0 : index
    %55 = vector.load %arg6[%c0_80, %c0_81] : memref<1x32xf32, #tpu.memory_space<vmem>>, vector<1x32xf32>
    %56 = vector.shape_cast %53 : vector<64x32xf32> to vector<1x64x32xf32>
    %cst_82 = arith.constant dense<0.000000e+00> : vector<1xf32>
    %57 = vector.multi_reduction <add>, %56, %cst_82 [1, 2] : vector<1x64x32xf32> to vector<1xf32>
    %58 = vector.shape_cast %57 : vector<1xf32> to vector<1x1x1xf32>
    %59 = vector.extract %58[0, 0, 0] : f32 from vector<1x1x1xf32>
    %cst_83 = arith.constant 2.048000e+03 : f32
    %60 = arith.divf %59, %cst_83 : f32
    %61 = vector.broadcast %60 : f32 to vector<64x32xf32>
    %62 = arith.subf %53, %61 : vector<64x32xf32>
    %63 = vector.broadcast %60 : f32 to vector<64x32xf32>
    %64 = arith.subf %53, %63 : vector<64x32xf32>
    %65 = arith.mulf %62, %64 : vector<64x32xf32>
    %66 = vector.shape_cast %65 : vector<64x32xf32> to vector<1x64x32xf32>
    %cst_84 = arith.constant dense<0.000000e+00> : vector<1xf32>
    %67 = vector.multi_reduction <add>, %66, %cst_84 [1, 2] : vector<1x64x32xf32> to vector<1xf32>
    %68 = vector.shape_cast %67 : vector<1xf32> to vector<1x1x1xf32>
    %69 = vector.extract %68[0, 0, 0] : f32 from vector<1x1x1xf32>
    %cst_85 = arith.constant 2.048000e+03 : f32
    %70 = arith.divf %69, %cst_85 : f32
    %71 = vector.broadcast %60 : f32 to vector<64x32xf32>
    %72 = arith.subf %53, %71 : vector<64x32xf32>
    %cst_86 = arith.constant 9.99999974E-6 : f32
    %73 = arith.addf %70, %cst_86 : f32
    %74 = math.rsqrt %73 : f32
    %75 = vector.broadcast %74 : f32 to vector<64x32xf32>
    %76 = arith.mulf %72, %75 : vector<64x32xf32>
    %77 = vector.broadcast %54 : vector<1x32xf32> to vector<64x32xf32>
    %78 = arith.mulf %76, %77 : vector<64x32xf32>
    %79 = vector.broadcast %55 : vector<1x32xf32> to vector<64x32xf32>
    %80 = arith.addf %78, %79 : vector<64x32xf32>
    %81 = vector.extract_strided_slice %80 {offsets = [0, 0], sizes = [64, 16], strides = [1, 1]} : vector<64x32xf32> to vector<64x16xf32>
    %82 = arith.negf %81 : vector<64x16xf32>
    %83 = math.exp %82 : vector<64x16xf32>
    %cst_87 = arith.constant 1.000000e+00 : f32
    %84 = vector.broadcast %cst_87 : f32 to vector<64x16xf32>
    %85 = arith.addf %84, %83 : vector<64x16xf32>
    %86 = arith.divf %84, %85 : vector<64x16xf32>
    %87 = vector.extract_strided_slice %80 {offsets = [0, 16], sizes = [64, 16], strides = [1, 1]} : vector<64x32xf32> to vector<64x16xf32>
    %88 = arith.negf %87 : vector<64x16xf32>
    %89 = math.exp %88 : vector<64x16xf32>
    %cst_88 = arith.constant 1.000000e+00 : f32
    %90 = vector.broadcast %cst_88 : f32 to vector<64x16xf32>
    %91 = arith.addf %90, %89 : vector<64x16xf32>
    %92 = arith.divf %90, %91 : vector<64x16xf32>
    %93 = vector.shape_cast %5 : vector<8x8x16xf32> to vector<64x16xf32>
    %94 = arith.mulf %92, %93 : vector<64x16xf32>
    %95 = vector.shape_cast %94 : vector<64x16xf32> to vector<8x8x16xf32>
    %c1_89 = arith.constant 1 : index
    %c1_90 = arith.constant 1 : index
    %c0_91 = arith.constant 0 : index
    %96 = vector.load %arg14[%c1_89, %c1_90, %c0_91] : memref<10x10x16xf32, #tpu.memory_space<vmem>>, vector<8x8x16xf32>
    tpu.vector_store %arg14[%c1_89, %c1_90, %c0_91], %95 {strides = array<i32>} : memref<10x10x16xf32, #tpu.memory_space<vmem>>, vector<8x8x16xf32>,
    %c0_92 = arith.constant 0 : index
    %c0_93 = arith.constant 0 : index
    %c0_94 = arith.constant 0 : index
    %97 = vector.load %arg14[%c0_92, %c0_93, %c0_94] : memref<10x10x16xf32, #tpu.memory_space<vmem>>, vector<8x8x16xf32>
    %98 = vector.shape_cast %97 : vector<8x8x16xf32> to vector<64x16xf32>
    %c0_95 = arith.constant 0 : index
    %c1_96 = arith.constant 1 : index
    %c0_97 = arith.constant 0 : index
    %99 = vector.load %arg14[%c0_95, %c1_96, %c0_97] : memref<10x10x16xf32, #tpu.memory_space<vmem>>, vector<8x8x16xf32>
    %100 = vector.shape_cast %99 : vector<8x8x16xf32> to vector<64x16xf32>
    %c0_98 = arith.constant 0 : index
    %c2_99 = arith.constant 2 : index
    %c0_100 = arith.constant 0 : index
    %101 = vector.load %arg14[%c0_98, %c2_99, %c0_100] : memref<10x10x16xf32, #tpu.memory_space<vmem>>, vector<8x8x16xf32>
    %102 = vector.shape_cast %101 : vector<8x8x16xf32> to vector<64x16xf32>
    %c1_101 = arith.constant 1 : index
    %c0_102 = arith.constant 0 : index
    %c0_103 = arith.constant 0 : index
    %103 = vector.load %arg14[%c1_101, %c0_102, %c0_103] : memref<10x10x16xf32, #tpu.memory_space<vmem>>, vector<8x8x16xf32>
    %104 = vector.shape_cast %103 : vector<8x8x16xf32> to vector<64x16xf32>
    %c1_104 = arith.constant 1 : index
    %c1_105 = arith.constant 1 : index
    %c0_106 = arith.constant 0 : index
    %105 = vector.load %arg14[%c1_104, %c1_105, %c0_106] : memref<10x10x16xf32, #tpu.memory_space<vmem>>, vector<8x8x16xf32>
    %106 = vector.shape_cast %105 : vector<8x8x16xf32> to vector<64x16xf32>
    %c1_107 = arith.constant 1 : index
    %c2_108 = arith.constant 2 : index
    %c0_109 = arith.constant 0 : index
    %107 = vector.load %arg14[%c1_107, %c2_108, %c0_109] : memref<10x10x16xf32, #tpu.memory_space<vmem>>, vector<8x8x16xf32>
    %108 = vector.shape_cast %107 : vector<8x8x16xf32> to vector<64x16xf32>
    %c2_110 = arith.constant 2 : index
    %c0_111 = arith.constant 0 : index
    %c0_112 = arith.constant 0 : index
    %109 = vector.load %arg14[%c2_110, %c0_111, %c0_112] : memref<10x10x16xf32, #tpu.memory_space<vmem>>, vector<8x8x16xf32>
    %110 = vector.shape_cast %109 : vector<8x8x16xf32> to vector<64x16xf32>
    %c2_113 = arith.constant 2 : index
    %c1_114 = arith.constant 1 : index
    %c0_115 = arith.constant 0 : index
    %111 = vector.load %arg14[%c2_113, %c1_114, %c0_115] : memref<10x10x16xf32, #tpu.memory_space<vmem>>, vector<8x8x16xf32>
    %112 = vector.shape_cast %111 : vector<8x8x16xf32> to vector<64x16xf32>
    %c2_116 = arith.constant 2 : index
    %c2_117 = arith.constant 2 : index
    %c0_118 = arith.constant 0 : index
    %113 = vector.load %arg14[%c2_116, %c2_117, %c0_118] : memref<10x10x16xf32, #tpu.memory_space<vmem>>, vector<8x8x16xf32>
    %114 = vector.shape_cast %113 : vector<8x8x16xf32> to vector<64x16xf32>
    %115 = tpu.concatenate %11, %13, %15, %17, %19, %21, %23, %25, %27, %98, %100, %102, %104, %106, %108, %110 in 1 : vector<64x16xf32>, vector<64x16xf32>, vector<64x16xf32>, vector<64x16xf32>, vector<64x16xf32>, vector<64x16xf32>, vector<64x16xf32>, vector<64x16xf32>, vector<64x16xf32>, vector<64x16xf32>, vector<64x16xf32>, vector<64x16xf32>, vector<64x16xf32>, vector<64x16xf32>, vector<64x16xf32>, vector<64x16xf32> -> vector<64x256xf32>
    %116 = tpu.concatenate %112, %114 in 1 : vector<64x16xf32>, vector<64x16xf32> -> vector<64x32xf32>
    %117 = tpu.concatenate %115, %116 in 1 : vector<64x256xf32>, vector<64x32xf32> -> vector<64x288xf32>
    %c0_119 = arith.constant 0 : index
    %c0_120 = arith.constant 0 : index
    %118 = vector.load %arg7[%c0_119, %c0_120] : memref<288x16xf32, #tpu.memory_space<vmem>>, vector<288x16xf32>
    %cst_121 = arith.constant dense<0.000000e+00> : vector<64x16xf32>
    %119 = tpu.matmul %117, %118, %cst_121 {dimension_numbers = #tpu.dot_dimension_numbers<[1], [0], [0], [1], [0, 0, 1, 1], [], []>} : vector<64x288xf32>, vector<288x16xf32>, vector<64x16xf32> -> vector<64x16xf32>
    %c0_122 = arith.constant 0 : index
    %c0_123 = arith.constant 0 : index
    %120 = vector.load %arg8[%c0_122, %c0_123] : memref<1x16xf32, #tpu.memory_space<vmem>>, vector<1x16xf32>
    %121 = vector.broadcast %120 : vector<1x16xf32> to vector<64x16xf32>
    %122 = arith.addf %119, %121 : vector<64x16xf32>
    %c0_124 = arith.constant 0 : index
    %c0_125 = arith.constant 0 : index
    %123 = vector.load %arg9[%c0_124, %c0_125] : memref<1x16xf32, #tpu.memory_space<vmem>>, vector<1x16xf32>
    %c0_126 = arith.constant 0 : index
    %c0_127 = arith.constant 0 : index
    %124 = vector.load %arg10[%c0_126, %c0_127] : memref<1x16xf32, #tpu.memory_space<vmem>>, vector<1x16xf32>
    %125 = vector.shape_cast %122 : vector<64x16xf32> to vector<1x64x16xf32>
    %cst_128 = arith.constant dense<0.000000e+00> : vector<1xf32>
    %126 = vector.multi_reduction <add>, %125, %cst_128 [1, 2] : vector<1x64x16xf32> to vector<1xf32>
    %127 = vector.shape_cast %126 : vector<1xf32> to vector<1x1x1xf32>
    %128 = vector.extract %127[0, 0, 0] : f32 from vector<1x1x1xf32>
    %cst_129 = arith.constant 1.024000e+03 : f32
    %129 = arith.divf %128, %cst_129 : f32
    %130 = vector.broadcast %129 : f32 to vector<64x16xf32>
    %131 = arith.subf %122, %130 : vector<64x16xf32>
    %132 = vector.broadcast %129 : f32 to vector<64x16xf32>
    %133 = arith.subf %122, %132 : vector<64x16xf32>
    %134 = arith.mulf %131, %133 : vector<64x16xf32>
    %135 = vector.shape_cast %134 : vector<64x16xf32> to vector<1x64x16xf32>
    %cst_130 = arith.constant dense<0.000000e+00> : vector<1xf32>
    %136 = vector.multi_reduction <add>, %135, %cst_130 [1, 2] : vector<1x64x16xf32> to vector<1xf32>
    %137 = vector.shape_cast %136 : vector<1xf32> to vector<1x1x1xf32>
    %138 = vector.extract %137[0, 0, 0] : f32 from vector<1x1x1xf32>
    %cst_131 = arith.constant 1.024000e+03 : f32
    %139 = arith.divf %138, %cst_131 : f32
    %140 = vector.broadcast %129 : f32 to vector<64x16xf32>
    %141 = arith.subf %122, %140 : vector<64x16xf32>
    %cst_132 = arith.constant 9.99999974E-6 : f32
    %142 = arith.addf %139, %cst_132 : f32
    %143 = math.rsqrt %142 : f32
    %144 = vector.broadcast %143 : f32 to vector<64x16xf32>
    %145 = arith.mulf %141, %144 : vector<64x16xf32>
    %146 = vector.broadcast %123 : vector<1x16xf32> to vector<64x16xf32>
    %147 = arith.mulf %145, %146 : vector<64x16xf32>
    %148 = vector.broadcast %124 : vector<1x16xf32> to vector<64x16xf32>
    %149 = arith.addf %147, %148 : vector<64x16xf32>
    %150 = math.tanh %149 : vector<64x16xf32>
    %cst_133 = arith.constant 1.000000e+00 : f32
    %151 = vector.broadcast %cst_133 : f32 to vector<64x16xf32>
    %152 = arith.subf %151, %86 : vector<64x16xf32>
    %153 = arith.mulf %152, %93 : vector<64x16xf32>
    %154 = arith.mulf %86, %150 : vector<64x16xf32>
    %155 = arith.addf %153, %154 : vector<64x16xf32>
    %156 = vector.shape_cast %155 : vector<64x16xf32> to vector<8x8x16xf32>
    %c0_134 = arith.constant 0 : index
    %c0_135 = arith.constant 0 : index
    %c0_136 = arith.constant 0 : index
    %c0_137 = arith.constant 0 : index
    %c0_138 = arith.constant 0 : index
    %157 = vector.load %arg11[%c0_134, %c0_135, %c0_136, %c0_137, %c0_138] : memref<1x4x8x8x16xf32, #tpu.memory_space<vmem>>, vector<1x1x8x8x16xf32>
    %158 = vector.shape_cast %157 : vector<1x1x8x8x16xf32> to vector<8x8x16xf32>
    %159 = vector.shape_cast %156 : vector<8x8x16xf32> to vector<1x1x8x8x16xf32>
    tpu.vector_store %arg11[%c0_134, %c0_135, %c0_136, %c0_137, %c0_138], %159 {strides = array<i32>} : memref<1x4x8x8x16xf32, #tpu.memory_space<vmem>>, vector<1x1x8x8x16xf32>,
    %c0_139 = arith.constant 0 : index
    %c1_140 = arith.constant 1 : index
    %c0_141 = arith.constant 0 : index
    %c0_142 = arith.constant 0 : index
    %c0_143 = arith.constant 0 : index
    %160 = vector.load %arg1[%c0_139, %c1_140, %c0_141, %c0_142, %c0_143] : memref<1x4x8x8x16xf32, #tpu.memory_space<vmem>>, vector<1x1x8x8x16xf32>
    %161 = vector.shape_cast %160 : vector<1x1x8x8x16xf32> to vector<8x8x16xf32>
    %c1_144 = arith.constant 1 : index
    %c1_145 = arith.constant 1 : index
    %c0_146 = arith.constant 0 : index
    %162 = vector.load %arg13[%c1_144, %c1_145, %c0_146] : memref<10x10x16xf32, #tpu.memory_space<vmem>>, vector<8x8x16xf32>
    tpu.vector_store %arg13[%c1_144, %c1_145, %c0_146], %161 {strides = array<i32>} : memref<10x10x16xf32, #tpu.memory_space<vmem>>, vector<8x8x16xf32>,
    %c1_147 = arith.constant 1 : index
    %c1_148 = arith.constant 1 : index
    %c0_149 = arith.constant 0 : index
    %163 = vector.load %arg14[%c1_147, %c1_148, %c0_149] : memref<10x10x16xf32, #tpu.memory_space<vmem>>, vector<8x8x16xf32>
    tpu.vector_store %arg14[%c1_147, %c1_148, %c0_149], %156 {strides = array<i32>} : memref<10x10x16xf32, #tpu.memory_space<vmem>>, vector<8x8x16xf32>,
    %c0_150 = arith.constant 0 : index
    %c0_151 = arith.constant 0 : index
    %c0_152 = arith.constant 0 : index
    %164 = vector.load %arg13[%c0_150, %c0_151, %c0_152] : memref<10x10x16xf32, #tpu.memory_space<vmem>>, vector<8x8x16xf32>
    %165 = vector.shape_cast %164 : vector<8x8x16xf32> to vector<64x16xf32>
    %c0_153 = arith.constant 0 : index
    %c1_154 = arith.constant 1 : index
    %c0_155 = arith.constant 0 : index
    %166 = vector.load %arg13[%c0_153, %c1_154, %c0_155] : memref<10x10x16xf32, #tpu.memory_space<vmem>>, vector<8x8x16xf32>
    %167 = vector.shape_cast %166 : vector<8x8x16xf32> to vector<64x16xf32>
    %c0_156 = arith.constant 0 : index
    %c2_157 = arith.constant 2 : index
    %c0_158 = arith.constant 0 : index
    %168 = vector.load %arg13[%c0_156, %c2_157, %c0_158] : memref<10x10x16xf32, #tpu.memory_space<vmem>>, vector<8x8x16xf32>
    %169 = vector.shape_cast %168 : vector<8x8x16xf32> to vector<64x16xf32>
    %c1_159 = arith.constant 1 : index
    %c0_160 = arith.constant 0 : index
    %c0_161 = arith.constant 0 : index
    %170 = vector.load %arg13[%c1_159, %c0_160, %c0_161] : memref<10x10x16xf32, #tpu.memory_space<vmem>>, vector<8x8x16xf32>
    %171 = vector.shape_cast %170 : vector<8x8x16xf32> to vector<64x16xf32>
    %c1_162 = arith.constant 1 : index
    %c1_163 = arith.constant 1 : index
    %c0_164 = arith.constant 0 : index
    %172 = vector.load %arg13[%c1_162, %c1_163, %c0_164] : memref<10x10x16xf32, #tpu.memory_space<vmem>>, vector<8x8x16xf32>
    %173 = vector.shape_cast %172 : vector<8x8x16xf32> to vector<64x16xf32>
    %c1_165 = arith.constant 1 : index
    %c2_166 = arith.constant 2 : index
    %c0_167 = arith.constant 0 : index
    %174 = vector.load %arg13[%c1_165, %c2_166, %c0_167] : memref<10x10x16xf32, #tpu.memory_space<vmem>>, vector<8x8x16xf32>
    %175 = vector.shape_cast %174 : vector<8x8x16xf32> to vector<64x16xf32>
    %c2_168 = arith.constant 2 : index
    %c0_169 = arith.constant 0 : index
    %c0_170 = arith.constant 0 : index
    %176 = vector.load %arg13[%c2_168, %c0_169, %c0_170] : memref<10x10x16xf32, #tpu.memory_space<vmem>>, vector<8x8x16xf32>
    %177 = vector.shape_cast %176 : vector<8x8x16xf32> to vector<64x16xf32>
    %c2_171 = arith.constant 2 : index
    %c1_172 = arith.constant 1 : index
    %c0_173 = arith.constant 0 : index
    %178 = vector.load %arg13[%c2_171, %c1_172, %c0_173] : memref<10x10x16xf32, #tpu.memory_space<vmem>>, vector<8x8x16xf32>
    %179 = vector.shape_cast %178 : vector<8x8x16xf32> to vector<64x16xf32>
    %c2_174 = arith.constant 2 : index
    %c2_175 = arith.constant 2 : index
    %c0_176 = arith.constant 0 : index
    %180 = vector.load %arg13[%c2_174, %c2_175, %c0_176] : memref<10x10x16xf32, #tpu.memory_space<vmem>>, vector<8x8x16xf32>
    %181 = vector.shape_cast %180 : vector<8x8x16xf32> to vector<64x16xf32>
    %c0_177 = arith.constant 0 : index
    %c0_178 = arith.constant 0 : index
    %c0_179 = arith.constant 0 : index
    %182 = vector.load %arg14[%c0_177, %c0_178, %c0_179] : memref<10x10x16xf32, #tpu.memory_space<vmem>>, vector<8x8x16xf32>
    %183 = vector.shape_cast %182 : vector<8x8x16xf32> to vector<64x16xf32>
    %c0_180 = arith.constant 0 : index
    %c1_181 = arith.constant 1 : index
    %c0_182 = arith.constant 0 : index
    %184 = vector.load %arg14[%c0_180, %c1_181, %c0_182] : memref<10x10x16xf32, #tpu.memory_space<vmem>>, vector<8x8x16xf32>
    %185 = vector.shape_cast %184 : vector<8x8x16xf32> to vector<64x16xf32>
    %c0_183 = arith.constant 0 : index
    %c2_184 = arith.constant 2 : index
    %c0_185 = arith.constant 0 : index
    %186 = vector.load %arg14[%c0_183, %c2_184, %c0_185] : memref<10x10x16xf32, #tpu.memory_space<vmem>>, vector<8x8x16xf32>
    %187 = vector.shape_cast %186 : vector<8x8x16xf32> to vector<64x16xf32>
    %c1_186 = arith.constant 1 : index
    %c0_187 = arith.constant 0 : index
    %c0_188 = arith.constant 0 : index
    %188 = vector.load %arg14[%c1_186, %c0_187, %c0_188] : memref<10x10x16xf32, #tpu.memory_space<vmem>>, vector<8x8x16xf32>
    %189 = vector.shape_cast %188 : vector<8x8x16xf32> to vector<64x16xf32>
    %c1_189 = arith.constant 1 : index
    %c1_190 = arith.constant 1 : index
    %c0_191 = arith.constant 0 : index
    %190 = vector.load %arg14[%c1_189, %c1_190, %c0_191] : memref<10x10x16xf32, #tpu.memory_space<vmem>>, vector<8x8x16xf32>
    %191 = vector.shape_cast %190 : vector<8x8x16xf32> to vector<64x16xf32>
    %c1_192 = arith.constant 1 : index
    %c2_193 = arith.constant 2 : index
    %c0_194 = arith.constant 0 : index
    %192 = vector.load %arg14[%c1_192, %c2_193, %c0_194] : memref<10x10x16xf32, #tpu.memory_space<vmem>>, vector<8x8x16xf32>
    %193 = vector.shape_cast %192 : vector<8x8x16xf32> to vector<64x16xf32>
    %c2_195 = arith.constant 2 : index
    %c0_196 = arith.constant 0 : index
    %c0_197 = arith.constant 0 : index
    %194 = vector.load %arg14[%c2_195, %c0_196, %c0_197] : memref<10x10x16xf32, #tpu.memory_space<vmem>>, vector<8x8x16xf32>
    %195 = vector.shape_cast %194 : vector<8x8x16xf32> to vector<64x16xf32>
    %c2_198 = arith.constant 2 : index
    %c1_199 = arith.constant 1 : index
    %c0_200 = arith.constant 0 : index
    %196 = vector.load %arg14[%c2_198, %c1_199, %c0_200] : memref<10x10x16xf32, #tpu.memory_space<vmem>>, vector<8x8x16xf32>
    %197 = vector.shape_cast %196 : vector<8x8x16xf32> to vector<64x16xf32>
    %c2_201 = arith.constant 2 : index
    %c2_202 = arith.constant 2 : index
    %c0_203 = arith.constant 0 : index
    %198 = vector.load %arg14[%c2_201, %c2_202, %c0_203] : memref<10x10x16xf32, #tpu.memory_space<vmem>>, vector<8x8x16xf32>
    %199 = vector.shape_cast %198 : vector<8x8x16xf32> to vector<64x16xf32>
    %200 = tpu.concatenate %165, %167, %169, %171, %173, %175, %177, %179, %181, %183, %185, %187, %189, %191, %193, %195 in 1 : vector<64x16xf32>, vector<64x16xf32>, vector<64x16xf32>, vector<64x16xf32>, vector<64x16xf32>, vector<64x16xf32>, vector<64x16xf32>, vector<64x16xf32>, vector<64x16xf32>, vector<64x16xf32>, vector<64x16xf32>, vector<64x16xf32>, vector<64x16xf32>, vector<64x16xf32>, vector<64x16xf32>, vector<64x16xf32> -> vector<64x256xf32>
    %201 = tpu.concatenate %197, %199 in 1 : vector<64x16xf32>, vector<64x16xf32> -> vector<64x32xf32>
    %202 = tpu.concatenate %200, %201 in 1 : vector<64x256xf32>, vector<64x32xf32> -> vector<64x288xf32>
    %c0_204 = arith.constant 0 : index
    %c0_205 = arith.constant 0 : index
    %203 = vector.load %arg3[%c0_204, %c0_205] : memref<288x32xf32, #tpu.memory_space<vmem>>, vector<288x32xf32>
    %cst_206 = arith.constant dense<0.000000e+00> : vector<64x32xf32>
    %204 = tpu.matmul %202, %203, %cst_206 {dimension_numbers = #tpu.dot_dimension_numbers<[1], [0], [0], [1], [0, 0, 1, 1], [], []>} : vector<64x288xf32>, vector<288x32xf32>, vector<64x32xf32> -> vector<64x32xf32>
    %c0_207 = arith.constant 0 : index
    %c0_208 = arith.constant 0 : index
    %205 = vector.load %arg4[%c0_207, %c0_208] : memref<1x32xf32, #tpu.memory_space<vmem>>, vector<1x32xf32>
    %206 = vector.broadcast %205 : vector<1x32xf32> to vector<64x32xf32>
    %207 = arith.addf %204, %206 : vector<64x32xf32>
    %c0_209 = arith.constant 0 : index
    %c0_210 = arith.constant 0 : index
    %208 = vector.load %arg5[%c0_209, %c0_210] : memref<1x32xf32, #tpu.memory_space<vmem>>, vector<1x32xf32>
    %c0_211 = arith.constant 0 : index
    %c0_212 = arith.constant 0 : index
    %209 = vector.load %arg6[%c0_211, %c0_212] : memref<1x32xf32, #tpu.memory_space<vmem>>, vector<1x32xf32>
    %210 = vector.shape_cast %207 : vector<64x32xf32> to vector<1x64x32xf32>
    %cst_213 = arith.constant dense<0.000000e+00> : vector<1xf32>
    %211 = vector.multi_reduction <add>, %210, %cst_213 [1, 2] : vector<1x64x32xf32> to vector<1xf32>
    %212 = vector.shape_cast %211 : vector<1xf32> to vector<1x1x1xf32>
    %213 = vector.extract %212[0, 0, 0] : f32 from vector<1x1x1xf32>
    %cst_214 = arith.constant 2.048000e+03 : f32
    %214 = arith.divf %213, %cst_214 : f32
    %215 = vector.broadcast %214 : f32 to vector<64x32xf32>
    %216 = arith.subf %207, %215 : vector<64x32xf32>
    %217 = vector.broadcast %214 : f32 to vector<64x32xf32>
    %218 = arith.subf %207, %217 : vector<64x32xf32>
    %219 = arith.mulf %216, %218 : vector<64x32xf32>
    %220 = vector.shape_cast %219 : vector<64x32xf32> to vector<1x64x32xf32>
    %cst_215 = arith.constant dense<0.000000e+00> : vector<1xf32>
    %221 = vector.multi_reduction <add>, %220, %cst_215 [1, 2] : vector<1x64x32xf32> to vector<1xf32>
    %222 = vector.shape_cast %221 : vector<1xf32> to vector<1x1x1xf32>
    %223 = vector.extract %222[0, 0, 0] : f32 from vector<1x1x1xf32>
    %cst_216 = arith.constant 2.048000e+03 : f32
    %224 = arith.divf %223, %cst_216 : f32
    %225 = vector.broadcast %214 : f32 to vector<64x32xf32>
    %226 = arith.subf %207, %225 : vector<64x32xf32>
    %cst_217 = arith.constant 9.99999974E-6 : f32
    %227 = arith.addf %224, %cst_217 : f32
    %228 = math.rsqrt %227 : f32
    %229 = vector.broadcast %228 : f32 to vector<64x32xf32>
    %230 = arith.mulf %226, %229 : vector<64x32xf32>
    %231 = vector.broadcast %208 : vector<1x32xf32> to vector<64x32xf32>
    %232 = arith.mulf %230, %231 : vector<64x32xf32>
    %233 = vector.broadcast %209 : vector<1x32xf32> to vector<64x32xf32>
    %234 = arith.addf %232, %233 : vector<64x32xf32>
    %235 = vector.extract_strided_slice %234 {offsets = [0, 0], sizes = [64, 16], strides = [1, 1]} : vector<64x32xf32> to vector<64x16xf32>
    %236 = arith.negf %235 : vector<64x16xf32>
    %237 = math.exp %236 : vector<64x16xf32>
    %cst_218 = arith.constant 1.000000e+00 : f32
    %238 = vector.broadcast %cst_218 : f32 to vector<64x16xf32>
    %239 = arith.addf %238, %237 : vector<64x16xf32>
    %240 = arith.divf %238, %239 : vector<64x16xf32>
    %241 = vector.extract_strided_slice %234 {offsets = [0, 16], sizes = [64, 16], strides = [1, 1]} : vector<64x32xf32> to vector<64x16xf32>
    %242 = arith.negf %241 : vector<64x16xf32>
    %243 = math.exp %242 : vector<64x16xf32>
    %cst_219 = arith.constant 1.000000e+00 : f32
    %244 = vector.broadcast %cst_219 : f32 to vector<64x16xf32>
    %245 = arith.addf %244, %243 : vector<64x16xf32>
    %246 = arith.divf %244, %245 : vector<64x16xf32>
    %247 = vector.shape_cast %156 : vector<8x8x16xf32> to vector<64x16xf32>
    %248 = arith.mulf %246, %247 : vector<64x16xf32>
    %249 = vector.shape_cast %248 : vector<64x16xf32> to vector<8x8x16xf32>
    %c1_220 = arith.constant 1 : index
    %c1_221 = arith.constant 1 : index
    %c0_222 = arith.constant 0 : index
    %250 = vector.load %arg14[%c1_220, %c1_221, %c0_222] : memref<10x10x16xf32, #tpu.memory_space<vmem>>, vector<8x8x16xf32>
    tpu.vector_store %arg14[%c1_220, %c1_221, %c0_222], %249 {strides = array<i32>} : memref<10x10x16xf32, #tpu.memory_space<vmem>>, vector<8x8x16xf32>,
    %c0_223 = arith.constant 0 : index
    %c0_224 = arith.constant 0 : index
    %c0_225 = arith.constant 0 : index
    %251 = vector.load %arg14[%c0_223, %c0_224, %c0_225] : memref<10x10x16xf32, #tpu.memory_space<vmem>>, vector<8x8x16xf32>
    %252 = vector.shape_cast %251 : vector<8x8x16xf32> to vector<64x16xf32>
    %c0_226 = arith.constant 0 : index
    %c1_227 = arith.constant 1 : index
    %c0_228 = arith.constant 0 : index
    %253 = vector.load %arg14[%c0_226, %c1_227, %c0_228] : memref<10x10x16xf32, #tpu.memory_space<vmem>>, vector<8x8x16xf32>
    %254 = vector.shape_cast %253 : vector<8x8x16xf32> to vector<64x16xf32>
    %c0_229 = arith.constant 0 : index
    %c2_230 = arith.constant 2 : index
    %c0_231 = arith.constant 0 : index
    %255 = vector.load %arg14[%c0_229, %c2_230, %c0_231] : memref<10x10x16xf32, #tpu.memory_space<vmem>>, vector<8x8x16xf32>
    %256 = vector.shape_cast %255 : vector<8x8x16xf32> to vector<64x16xf32>
    %c1_232 = arith.constant 1 : index
    %c0_233 = arith.constant 0 : index
    %c0_234 = arith.constant 0 : index
    %257 = vector.load %arg14[%c1_232, %c0_233, %c0_234] : memref<10x10x16xf32, #tpu.memory_space<vmem>>, vector<8x8x16xf32>
    %258 = vector.shape_cast %257 : vector<8x8x16xf32> to vector<64x16xf32>
    %c1_235 = arith.constant 1 : index
    %c1_236 = arith.constant 1 : index
    %c0_237 = arith.constant 0 : index
    %259 = vector.load %arg14[%c1_235, %c1_236, %c0_237] : memref<10x10x16xf32, #tpu.memory_space<vmem>>, vector<8x8x16xf32>
    %260 = vector.shape_cast %259 : vector<8x8x16xf32> to vector<64x16xf32>
    %c1_238 = arith.constant 1 : index
    %c2_239 = arith.constant 2 : index
    %c0_240 = arith.constant 0 : index
    %261 = vector.load %arg14[%c1_238, %c2_239, %c0_240] : memref<10x10x16xf32, #tpu.memory_space<vmem>>, vector<8x8x16xf32>
    %262 = vector.shape_cast %261 : vector<8x8x16xf32> to vector<64x16xf32>
    %c2_241 = arith.constant 2 : index
    %c0_242 = arith.constant 0 : index
    %c0_243 = arith.constant 0 : index
    %263 = vector.load %arg14[%c2_241, %c0_242, %c0_243] : memref<10x10x16xf32, #tpu.memory_space<vmem>>, vector<8x8x16xf32>
    %264 = vector.shape_cast %263 : vector<8x8x16xf32> to vector<64x16xf32>
    %c2_244 = arith.constant 2 : index
    %c1_245 = arith.constant 1 : index
    %c0_246 = arith.constant 0 : index
    %265 = vector.load %arg14[%c2_244, %c1_245, %c0_246] : memref<10x10x16xf32, #tpu.memory_space<vmem>>, vector<8x8x16xf32>
    %266 = vector.shape_cast %265 : vector<8x8x16xf32> to vector<64x16xf32>
    %c2_247 = arith.constant 2 : index
    %c2_248 = arith.constant 2 : index
    %c0_249 = arith.constant 0 : index
    %267 = vector.load %arg14[%c2_247, %c2_248, %c0_249] : memref<10x10x16xf32, #tpu.memory_space<vmem>>, vector<8x8x16xf32>
    %268 = vector.shape_cast %267 : vector<8x8x16xf32> to vector<64x16xf32>
    %269 = tpu.concatenate %165, %167, %169, %171, %173, %175, %177, %179, %181, %252, %254, %256, %258, %260, %262, %264 in 1 : vector<64x16xf32>, vector<64x16xf32>, vector<64x16xf32>, vector<64x16xf32>, vector<64x16xf32>, vector<64x16xf32>, vector<64x16xf32>, vector<64x16xf32>, vector<64x16xf32>, vector<64x16xf32>, vector<64x16xf32>, vector<64x16xf32>, vector<64x16xf32>, vector<64x16xf32>, vector<64x16xf32>, vector<64x16xf32> -> vector<64x256xf32>
    %270 = tpu.concatenate %266, %268 in 1 : vector<64x16xf32>, vector<64x16xf32> -> vector<64x32xf32>
    %271 = tpu.concatenate %269, %270 in 1 : vector<64x256xf32>, vector<64x32xf32> -> vector<64x288xf32>
    %c0_250 = arith.constant 0 : index
    %c0_251 = arith.constant 0 : index
    %272 = vector.load %arg7[%c0_250, %c0_251] : memref<288x16xf32, #tpu.memory_space<vmem>>, vector<288x16xf32>
    %cst_252 = arith.constant dense<0.000000e+00> : vector<64x16xf32>
    %273 = tpu.matmul %271, %272, %cst_252 {dimension_numbers = #tpu.dot_dimension_numbers<[1], [0], [0], [1], [0, 0, 1, 1], [], []>} : vector<64x288xf32>, vector<288x16xf32>, vector<64x16xf32> -> vector<64x16xf32>
    %c0_253 = arith.constant 0 : index
    %c0_254 = arith.constant 0 : index
    %274 = vector.load %arg8[%c0_253, %c0_254] : memref<1x16xf32, #tpu.memory_space<vmem>>, vector<1x16xf32>
    %275 = vector.broadcast %274 : vector<1x16xf32> to vector<64x16xf32>
    %276 = arith.addf %273, %275 : vector<64x16xf32>
    %c0_255 = arith.constant 0 : index
    %c0_256 = arith.constant 0 : index
    %277 = vector.load %arg9[%c0_255, %c0_256] : memref<1x16xf32, #tpu.memory_space<vmem>>, vector<1x16xf32>
    %c0_257 = arith.constant 0 : index
    %c0_258 = arith.constant 0 : index
    %278 = vector.load %arg10[%c0_257, %c0_258] : memref<1x16xf32, #tpu.memory_space<vmem>>, vector<1x16xf32>
    %279 = vector.shape_cast %276 : vector<64x16xf32> to vector<1x64x16xf32>
    %cst_259 = arith.constant dense<0.000000e+00> : vector<1xf32>
    %280 = vector.multi_reduction <add>, %279, %cst_259 [1, 2] : vector<1x64x16xf32> to vector<1xf32>
    %281 = vector.shape_cast %280 : vector<1xf32> to vector<1x1x1xf32>
    %282 = vector.extract %281[0, 0, 0] : f32 from vector<1x1x1xf32>
    %cst_260 = arith.constant 1.024000e+03 : f32
    %283 = arith.divf %282, %cst_260 : f32
    %284 = vector.broadcast %283 : f32 to vector<64x16xf32>
    %285 = arith.subf %276, %284 : vector<64x16xf32>
    %286 = vector.broadcast %283 : f32 to vector<64x16xf32>
    %287 = arith.subf %276, %286 : vector<64x16xf32>
    %288 = arith.mulf %285, %287 : vector<64x16xf32>
    %289 = vector.shape_cast %288 : vector<64x16xf32> to vector<1x64x16xf32>
    %cst_261 = arith.constant dense<0.000000e+00> : vector<1xf32>
    %290 = vector.multi_reduction <add>, %289, %cst_261 [1, 2] : vector<1x64x16xf32> to vector<1xf32>
    %291 = vector.shape_cast %290 : vector<1xf32> to vector<1x1x1xf32>
    %292 = vector.extract %291[0, 0, 0] : f32 from vector<1x1x1xf32>
    %cst_262 = arith.constant 1.024000e+03 : f32
    %293 = arith.divf %292, %cst_262 : f32
    %294 = vector.broadcast %283 : f32 to vector<64x16xf32>
    %295 = arith.subf %276, %294 : vector<64x16xf32>
    %cst_263 = arith.constant 9.99999974E-6 : f32
    %296 = arith.addf %293, %cst_263 : f32
    %297 = math.rsqrt %296 : f32
    %298 = vector.broadcast %297 : f32 to vector<64x16xf32>
    %299 = arith.mulf %295, %298 : vector<64x16xf32>
    %300 = vector.broadcast %277 : vector<1x16xf32> to vector<64x16xf32>
    %301 = arith.mulf %299, %300 : vector<64x16xf32>
    %302 = vector.broadcast %278 : vector<1x16xf32> to vector<64x16xf32>
    %303 = arith.addf %301, %302 : vector<64x16xf32>
    %304 = math.tanh %303 : vector<64x16xf32>
    %cst_264 = arith.constant 1.000000e+00 : f32
    %305 = vector.broadcast %cst_264 : f32 to vector<64x16xf32>
    %306 = arith.subf %305, %240 : vector<64x16xf32>
    %307 = arith.mulf %306, %247 : vector<64x16xf32>
    %308 = arith.mulf %240, %304 : vector<64x16xf32>
    %309 = arith.addf %307, %308 : vector<64x16xf32>
    %310 = vector.shape_cast %309 : vector<64x16xf32> to vector<8x8x16xf32>
    %c0_265 = arith.constant 0 : index
    %c1_266 = arith.constant 1 : index
    %c0_267 = arith.constant 0 : index
    %c0_268 = arith.constant 0 : index
    %c0_269 = arith.constant 0 : index
    %311 = vector.load %arg11[%c0_265, %c1_266, %c0_267, %c0_268, %c0_269] : memref<1x4x8x8x16xf32, #tpu.memory_space<vmem>>, vector<1x1x8x8x16xf32>
    %312 = vector.shape_cast %311 : vector<1x1x8x8x16xf32> to vector<8x8x16xf32>
    %313 = vector.shape_cast %310 : vector<8x8x16xf32> to vector<1x1x8x8x16xf32>
    tpu.vector_store %arg11[%c0_265, %c1_266, %c0_267, %c0_268, %c0_269], %313 {strides = array<i32>} : memref<1x4x8x8x16xf32, #tpu.memory_space<vmem>>, vector<1x1x8x8x16xf32>,
    %c0_270 = arith.constant 0 : index
    %c2_271 = arith.constant 2 : index
    %c0_272 = arith.constant 0 : index
    %c0_273 = arith.constant 0 : index
    %c0_274 = arith.constant 0 : index
    %314 = vector.load %arg1[%c0_270, %c2_271, %c0_272, %c0_273, %c0_274] : memref<1x4x8x8x16xf32, #tpu.memory_space<vmem>>, vector<1x1x8x8x16xf32>
    %315 = vector.shape_cast %314 : vector<1x1x8x8x16xf32> to vector<8x8x16xf32>
    %c1_275 = arith.constant 1 : index
    %c1_276 = arith.constant 1 : index
    %c0_277 = arith.constant 0 : index
    %316 = vector.load %arg13[%c1_275, %c1_276, %c0_277] : memref<10x10x16xf32, #tpu.memory_space<vmem>>, vector<8x8x16xf32>
    tpu.vector_store %arg13[%c1_275, %c1_276, %c0_277], %315 {strides = array<i32>} : memref<10x10x16xf32, #tpu.memory_space<vmem>>, vector<8x8x16xf32>,
    %c1_278 = arith.constant 1 : index
    %c1_279 = arith.constant 1 : index
    %c0_280 = arith.constant 0 : index
    %317 = vector.load %arg14[%c1_278, %c1_279, %c0_280] : memref<10x10x16xf32, #tpu.memory_space<vmem>>, vector<8x8x16xf32>
    tpu.vector_store %arg14[%c1_278, %c1_279, %c0_280], %310 {strides = array<i32>} : memref<10x10x16xf32, #tpu.memory_space<vmem>>, vector<8x8x16xf32>,
    %c0_281 = arith.constant 0 : index
    %c0_282 = arith.constant 0 : index
    %c0_283 = arith.constant 0 : index
    %318 = vector.load %arg13[%c0_281, %c0_282, %c0_283] : memref<10x10x16xf32, #tpu.memory_space<vmem>>, vector<8x8x16xf32>
    %319 = vector.shape_cast %318 : vector<8x8x16xf32> to vector<64x16xf32>
    %c0_284 = arith.constant 0 : index
    %c1_285 = arith.constant 1 : index
    %c0_286 = arith.constant 0 : index
    %320 = vector.load %arg13[%c0_284, %c1_285, %c0_286] : memref<10x10x16xf32, #tpu.memory_space<vmem>>, vector<8x8x16xf32>
    %321 = vector.shape_cast %320 : vector<8x8x16xf32> to vector<64x16xf32>
    %c0_287 = arith.constant 0 : index
    %c2_288 = arith.constant 2 : index
    %c0_289 = arith.constant 0 : index
    %322 = vector.load %arg13[%c0_287, %c2_288, %c0_289] : memref<10x10x16xf32, #tpu.memory_space<vmem>>, vector<8x8x16xf32>
    %323 = vector.shape_cast %322 : vector<8x8x16xf32> to vector<64x16xf32>
    %c1_290 = arith.constant 1 : index
    %c0_291 = arith.constant 0 : index
    %c0_292 = arith.constant 0 : index
    %324 = vector.load %arg13[%c1_290, %c0_291, %c0_292] : memref<10x10x16xf32, #tpu.memory_space<vmem>>, vector<8x8x16xf32>
    %325 = vector.shape_cast %324 : vector<8x8x16xf32> to vector<64x16xf32>
    %c1_293 = arith.constant 1 : index
    %c1_294 = arith.constant 1 : index
    %c0_295 = arith.constant 0 : index
    %326 = vector.load %arg13[%c1_293, %c1_294, %c0_295] : memref<10x10x16xf32, #tpu.memory_space<vmem>>, vector<8x8x16xf32>
    %327 = vector.shape_cast %326 : vector<8x8x16xf32> to vector<64x16xf32>
    %c1_296 = arith.constant 1 : index
    %c2_297 = arith.constant 2 : index
    %c0_298 = arith.constant 0 : index
    %328 = vector.load %arg13[%c1_296, %c2_297, %c0_298] : memref<10x10x16xf32, #tpu.memory_space<vmem>>, vector<8x8x16xf32>
    %329 = vector.shape_cast %328 : vector<8x8x16xf32> to vector<64x16xf32>
    %c2_299 = arith.constant 2 : index
    %c0_300 = arith.constant 0 : index
    %c0_301 = arith.constant 0 : index
    %330 = vector.load %arg13[%c2_299, %c0_300, %c0_301] : memref<10x10x16xf32, #tpu.memory_space<vmem>>, vector<8x8x16xf32>
    %331 = vector.shape_cast %330 : vector<8x8x16xf32> to vector<64x16xf32>
    %c2_302 = arith.constant 2 : index
    %c1_303 = arith.constant 1 : index
    %c0_304 = arith.constant 0 : index
    %332 = vector.load %arg13[%c2_302, %c1_303, %c0_304] : memref<10x10x16xf32, #tpu.memory_space<vmem>>, vector<8x8x16xf32>
    %333 = vector.shape_cast %332 : vector<8x8x16xf32> to vector<64x16xf32>
    %c2_305 = arith.constant 2 : index
    %c2_306 = arith.constant 2 : index
    %c0_307 = arith.constant 0 : index
    %334 = vector.load %arg13[%c2_305, %c2_306, %c0_307] : memref<10x10x16xf32, #tpu.memory_space<vmem>>, vector<8x8x16xf32>
    %335 = vector.shape_cast %334 : vector<8x8x16xf32> to vector<64x16xf32>
    %c0_308 = arith.constant 0 : index
    %c0_309 = arith.constant 0 : index
    %c0_310 = arith.constant 0 : index
    %336 = vector.load %arg14[%c0_308, %c0_309, %c0_310] : memref<10x10x16xf32, #tpu.memory_space<vmem>>, vector<8x8x16xf32>
    %337 = vector.shape_cast %336 : vector<8x8x16xf32> to vector<64x16xf32>
    %c0_311 = arith.constant 0 : index
    %c1_312 = arith.constant 1 : index
    %c0_313 = arith.constant 0 : index
    %338 = vector.load %arg14[%c0_311, %c1_312, %c0_313] : memref<10x10x16xf32, #tpu.memory_space<vmem>>, vector<8x8x16xf32>
    %339 = vector.shape_cast %338 : vector<8x8x16xf32> to vector<64x16xf32>
    %c0_314 = arith.constant 0 : index
    %c2_315 = arith.constant 2 : index
    %c0_316 = arith.constant 0 : index
    %340 = vector.load %arg14[%c0_314, %c2_315, %c0_316] : memref<10x10x16xf32, #tpu.memory_space<vmem>>, vector<8x8x16xf32>
    %341 = vector.shape_cast %340 : vector<8x8x16xf32> to vector<64x16xf32>
    %c1_317 = arith.constant 1 : index
    %c0_318 = arith.constant 0 : index
    %c0_319 = arith.constant 0 : index
    %342 = vector.load %arg14[%c1_317, %c0_318, %c0_319] : memref<10x10x16xf32, #tpu.memory_space<vmem>>, vector<8x8x16xf32>
    %343 = vector.shape_cast %342 : vector<8x8x16xf32> to vector<64x16xf32>
    %c1_320 = arith.constant 1 : index
    %c1_321 = arith.constant 1 : index
    %c0_322 = arith.constant 0 : index
    %344 = vector.load %arg14[%c1_320, %c1_321, %c0_322] : memref<10x10x16xf32, #tpu.memory_space<vmem>>, vector<8x8x16xf32>
    %345 = vector.shape_cast %344 : vector<8x8x16xf32> to vector<64x16xf32>
    %c1_323 = arith.constant 1 : index
    %c2_324 = arith.constant 2 : index
    %c0_325 = arith.constant 0 : index
    %346 = vector.load %arg14[%c1_323, %c2_324, %c0_325] : memref<10x10x16xf32, #tpu.memory_space<vmem>>, vector<8x8x16xf32>
    %347 = vector.shape_cast %346 : vector<8x8x16xf32> to vector<64x16xf32>
    %c2_326 = arith.constant 2 : index
    %c0_327 = arith.constant 0 : index
    %c0_328 = arith.constant 0 : index
    %348 = vector.load %arg14[%c2_326, %c0_327, %c0_328] : memref<10x10x16xf32, #tpu.memory_space<vmem>>, vector<8x8x16xf32>
    %349 = vector.shape_cast %348 : vector<8x8x16xf32> to vector<64x16xf32>
    %c2_329 = arith.constant 2 : index
    %c1_330 = arith.constant 1 : index
    %c0_331 = arith.constant 0 : index
    %350 = vector.load %arg14[%c2_329, %c1_330, %c0_331] : memref<10x10x16xf32, #tpu.memory_space<vmem>>, vector<8x8x16xf32>
    %351 = vector.shape_cast %350 : vector<8x8x16xf32> to vector<64x16xf32>
    %c2_332 = arith.constant 2 : index
    %c2_333 = arith.constant 2 : index
    %c0_334 = arith.constant 0 : index
    %352 = vector.load %arg14[%c2_332, %c2_333, %c0_334] : memref<10x10x16xf32, #tpu.memory_space<vmem>>, vector<8x8x16xf32>
    %353 = vector.shape_cast %352 : vector<8x8x16xf32> to vector<64x16xf32>
    %354 = tpu.concatenate %319, %321, %323, %325, %327, %329, %331, %333, %335, %337, %339, %341, %343, %345, %347, %349 in 1 : vector<64x16xf32>, vector<64x16xf32>, vector<64x16xf32>, vector<64x16xf32>, vector<64x16xf32>, vector<64x16xf32>, vector<64x16xf32>, vector<64x16xf32>, vector<64x16xf32>, vector<64x16xf32>, vector<64x16xf32>, vector<64x16xf32>, vector<64x16xf32>, vector<64x16xf32>, vector<64x16xf32>, vector<64x16xf32> -> vector<64x256xf32>
    %355 = tpu.concatenate %351, %353 in 1 : vector<64x16xf32>, vector<64x16xf32> -> vector<64x32xf32>
    %356 = tpu.concatenate %354, %355 in 1 : vector<64x256xf32>, vector<64x32xf32> -> vector<64x288xf32>
    %c0_335 = arith.constant 0 : index
    %c0_336 = arith.constant 0 : index
    %357 = vector.load %arg3[%c0_335, %c0_336] : memref<288x32xf32, #tpu.memory_space<vmem>>, vector<288x32xf32>
    %cst_337 = arith.constant dense<0.000000e+00> : vector<64x32xf32>
    %358 = tpu.matmul %356, %357, %cst_337 {dimension_numbers = #tpu.dot_dimension_numbers<[1], [0], [0], [1], [0, 0, 1, 1], [], []>} : vector<64x288xf32>, vector<288x32xf32>, vector<64x32xf32> -> vector<64x32xf32>
    %c0_338 = arith.constant 0 : index
    %c0_339 = arith.constant 0 : index
    %359 = vector.load %arg4[%c0_338, %c0_339] : memref<1x32xf32, #tpu.memory_space<vmem>>, vector<1x32xf32>
    %360 = vector.broadcast %359 : vector<1x32xf32> to vector<64x32xf32>
    %361 = arith.addf %358, %360 : vector<64x32xf32>
    %c0_340 = arith.constant 0 : index
    %c0_341 = arith.constant 0 : index
    %362 = vector.load %arg5[%c0_340, %c0_341] : memref<1x32xf32, #tpu.memory_space<vmem>>, vector<1x32xf32>
    %c0_342 = arith.constant 0 : index
    %c0_343 = arith.constant 0 : index
    %363 = vector.load %arg6[%c0_342, %c0_343] : memref<1x32xf32, #tpu.memory_space<vmem>>, vector<1x32xf32>
    %364 = vector.shape_cast %361 : vector<64x32xf32> to vector<1x64x32xf32>
    %cst_344 = arith.constant dense<0.000000e+00> : vector<1xf32>
    %365 = vector.multi_reduction <add>, %364, %cst_344 [1, 2] : vector<1x64x32xf32> to vector<1xf32>
    %366 = vector.shape_cast %365 : vector<1xf32> to vector<1x1x1xf32>
    %367 = vector.extract %366[0, 0, 0] : f32 from vector<1x1x1xf32>
    %cst_345 = arith.constant 2.048000e+03 : f32
    %368 = arith.divf %367, %cst_345 : f32
    %369 = vector.broadcast %368 : f32 to vector<64x32xf32>
    %370 = arith.subf %361, %369 : vector<64x32xf32>
    %371 = vector.broadcast %368 : f32 to vector<64x32xf32>
    %372 = arith.subf %361, %371 : vector<64x32xf32>
    %373 = arith.mulf %370, %372 : vector<64x32xf32>
    %374 = vector.shape_cast %373 : vector<64x32xf32> to vector<1x64x32xf32>
    %cst_346 = arith.constant dense<0.000000e+00> : vector<1xf32>
    %375 = vector.multi_reduction <add>, %374, %cst_346 [1, 2] : vector<1x64x32xf32> to vector<1xf32>
    %376 = vector.shape_cast %375 : vector<1xf32> to vector<1x1x1xf32>
    %377 = vector.extract %376[0, 0, 0] : f32 from vector<1x1x1xf32>
    %cst_347 = arith.constant 2.048000e+03 : f32
    %378 = arith.divf %377, %cst_347 : f32
    %379 = vector.broadcast %368 : f32 to vector<64x32xf32>
    %380 = arith.subf %361, %379 : vector<64x32xf32>
    %cst_348 = arith.constant 9.99999974E-6 : f32
    %381 = arith.addf %378, %cst_348 : f32
    %382 = math.rsqrt %381 : f32
    %383 = vector.broadcast %382 : f32 to vector<64x32xf32>
    %384 = arith.mulf %380, %383 : vector<64x32xf32>
    %385 = vector.broadcast %362 : vector<1x32xf32> to vector<64x32xf32>
    %386 = arith.mulf %384, %385 : vector<64x32xf32>
    %387 = vector.broadcast %363 : vector<1x32xf32> to vector<64x32xf32>
    %388 = arith.addf %386, %387 : vector<64x32xf32>
    %389 = vector.extract_strided_slice %388 {offsets = [0, 0], sizes = [64, 16], strides = [1, 1]} : vector<64x32xf32> to vector<64x16xf32>
    %390 = arith.negf %389 : vector<64x16xf32>
    %391 = math.exp %390 : vector<64x16xf32>
    %cst_349 = arith.constant 1.000000e+00 : f32
    %392 = vector.broadcast %cst_349 : f32 to vector<64x16xf32>
    %393 = arith.addf %392, %391 : vector<64x16xf32>
    %394 = arith.divf %392, %393 : vector<64x16xf32>
    %395 = vector.extract_strided_slice %388 {offsets = [0, 16], sizes = [64, 16], strides = [1, 1]} : vector<64x32xf32> to vector<64x16xf32>
    %396 = arith.negf %395 : vector<64x16xf32>
    %397 = math.exp %396 : vector<64x16xf32>
    %cst_350 = arith.constant 1.000000e+00 : f32
    %398 = vector.broadcast %cst_350 : f32 to vector<64x16xf32>
    %399 = arith.addf %398, %397 : vector<64x16xf32>
    %400 = arith.divf %398, %399 : vector<64x16xf32>
    %401 = vector.shape_cast %310 : vector<8x8x16xf32> to vector<64x16xf32>
    %402 = arith.mulf %400, %401 : vector<64x16xf32>
    %403 = vector.shape_cast %402 : vector<64x16xf32> to vector<8x8x16xf32>
    %c1_351 = arith.constant 1 : index
    %c1_352 = arith.constant 1 : index
    %c0_353 = arith.constant 0 : index
    %404 = vector.load %arg14[%c1_351, %c1_352, %c0_353] : memref<10x10x16xf32, #tpu.memory_space<vmem>>, vector<8x8x16xf32>
    tpu.vector_store %arg14[%c1_351, %c1_352, %c0_353], %403 {strides = array<i32>} : memref<10x10x16xf32, #tpu.memory_space<vmem>>, vector<8x8x16xf32>,
    %c0_354 = arith.constant 0 : index
    %c0_355 = arith.constant 0 : index
    %c0_356 = arith.constant 0 : index
    %405 = vector.load %arg14[%c0_354, %c0_355, %c0_356] : memref<10x10x16xf32, #tpu.memory_space<vmem>>, vector<8x8x16xf32>
    %406 = vector.shape_cast %405 : vector<8x8x16xf32> to vector<64x16xf32>
    %c0_357 = arith.constant 0 : index
    %c1_358 = arith.constant 1 : index
    %c0_359 = arith.constant 0 : index
    %407 = vector.load %arg14[%c0_357, %c1_358, %c0_359] : memref<10x10x16xf32, #tpu.memory_space<vmem>>, vector<8x8x16xf32>
    %408 = vector.shape_cast %407 : vector<8x8x16xf32> to vector<64x16xf32>
    %c0_360 = arith.constant 0 : index
    %c2_361 = arith.constant 2 : index
    %c0_362 = arith.constant 0 : index
    %409 = vector.load %arg14[%c0_360, %c2_361, %c0_362] : memref<10x10x16xf32, #tpu.memory_space<vmem>>, vector<8x8x16xf32>
    %410 = vector.shape_cast %409 : vector<8x8x16xf32> to vector<64x16xf32>
    %c1_363 = arith.constant 1 : index
    %c0_364 = arith.constant 0 : index
    %c0_365 = arith.constant 0 : index
    %411 = vector.load %arg14[%c1_363, %c0_364, %c0_365] : memref<10x10x16xf32, #tpu.memory_space<vmem>>, vector<8x8x16xf32>
    %412 = vector.shape_cast %411 : vector<8x8x16xf32> to vector<64x16xf32>
    %c1_366 = arith.constant 1 : index
    %c1_367 = arith.constant 1 : index
    %c0_368 = arith.constant 0 : index
    %413 = vector.load %arg14[%c1_366, %c1_367, %c0_368] : memref<10x10x16xf32, #tpu.memory_space<vmem>>, vector<8x8x16xf32>
    %414 = vector.shape_cast %413 : vector<8x8x16xf32> to vector<64x16xf32>
    %c1_369 = arith.constant 1 : index
    %c2_370 = arith.constant 2 : index
    %c0_371 = arith.constant 0 : index
    %415 = vector.load %arg14[%c1_369, %c2_370, %c0_371] : memref<10x10x16xf32, #tpu.memory_space<vmem>>, vector<8x8x16xf32>
    %416 = vector.shape_cast %415 : vector<8x8x16xf32> to vector<64x16xf32>
    %c2_372 = arith.constant 2 : index
    %c0_373 = arith.constant 0 : index
    %c0_374 = arith.constant 0 : index
    %417 = vector.load %arg14[%c2_372, %c0_373, %c0_374] : memref<10x10x16xf32, #tpu.memory_space<vmem>>, vector<8x8x16xf32>
    %418 = vector.shape_cast %417 : vector<8x8x16xf32> to vector<64x16xf32>
    %c2_375 = arith.constant 2 : index
    %c1_376 = arith.constant 1 : index
    %c0_377 = arith.constant 0 : index
    %419 = vector.load %arg14[%c2_375, %c1_376, %c0_377] : memref<10x10x16xf32, #tpu.memory_space<vmem>>, vector<8x8x16xf32>
    %420 = vector.shape_cast %419 : vector<8x8x16xf32> to vector<64x16xf32>
    %c2_378 = arith.constant 2 : index
    %c2_379 = arith.constant 2 : index
    %c0_380 = arith.constant 0 : index
    %421 = vector.load %arg14[%c2_378, %c2_379, %c0_380] : memref<10x10x16xf32, #tpu.memory_space<vmem>>, vector<8x8x16xf32>
    %422 = vector.shape_cast %421 : vector<8x8x16xf32> to vector<64x16xf32>
    %423 = tpu.concatenate %319, %321, %323, %325, %327, %329, %331, %333, %335, %406, %408, %410, %412, %414, %416, %418 in 1 : vector<64x16xf32>, vector<64x16xf32>, vector<64x16xf32>, vector<64x16xf32>, vector<64x16xf32>, vector<64x16xf32>, vector<64x16xf32>, vector<64x16xf32>, vector<64x16xf32>, vector<64x16xf32>, vector<64x16xf32>, vector<64x16xf32>, vector<64x16xf32>, vector<64x16xf32>, vector<64x16xf32>, vector<64x16xf32> -> vector<64x256xf32>
    %424 = tpu.concatenate %420, %422 in 1 : vector<64x16xf32>, vector<64x16xf32> -> vector<64x32xf32>
    %425 = tpu.concatenate %423, %424 in 1 : vector<64x256xf32>, vector<64x32xf32> -> vector<64x288xf32>
    %c0_381 = arith.constant 0 : index
    %c0_382 = arith.constant 0 : index
    %426 = vector.load %arg7[%c0_381, %c0_382] : memref<288x16xf32, #tpu.memory_space<vmem>>, vector<288x16xf32>
    %cst_383 = arith.constant dense<0.000000e+00> : vector<64x16xf32>
    %427 = tpu.matmul %425, %426, %cst_383 {dimension_numbers = #tpu.dot_dimension_numbers<[1], [0], [0], [1], [0, 0, 1, 1], [], []>} : vector<64x288xf32>, vector<288x16xf32>, vector<64x16xf32> -> vector<64x16xf32>
    %c0_384 = arith.constant 0 : index
    %c0_385 = arith.constant 0 : index
    %428 = vector.load %arg8[%c0_384, %c0_385] : memref<1x16xf32, #tpu.memory_space<vmem>>, vector<1x16xf32>
    %429 = vector.broadcast %428 : vector<1x16xf32> to vector<64x16xf32>
    %430 = arith.addf %427, %429 : vector<64x16xf32>
    %c0_386 = arith.constant 0 : index
    %c0_387 = arith.constant 0 : index
    %431 = vector.load %arg9[%c0_386, %c0_387] : memref<1x16xf32, #tpu.memory_space<vmem>>, vector<1x16xf32>
    %c0_388 = arith.constant 0 : index
    %c0_389 = arith.constant 0 : index
    %432 = vector.load %arg10[%c0_388, %c0_389] : memref<1x16xf32, #tpu.memory_space<vmem>>, vector<1x16xf32>
    %433 = vector.shape_cast %430 : vector<64x16xf32> to vector<1x64x16xf32>
    %cst_390 = arith.constant dense<0.000000e+00> : vector<1xf32>
    %434 = vector.multi_reduction <add>, %433, %cst_390 [1, 2] : vector<1x64x16xf32> to vector<1xf32>
    %435 = vector.shape_cast %434 : vector<1xf32> to vector<1x1x1xf32>
    %436 = vector.extract %435[0, 0, 0] : f32 from vector<1x1x1xf32>
    %cst_391 = arith.constant 1.024000e+03 : f32
    %437 = arith.divf %436, %cst_391 : f32
    %438 = vector.broadcast %437 : f32 to vector<64x16xf32>
    %439 = arith.subf %430, %438 : vector<64x16xf32>
    %440 = vector.broadcast %437 : f32 to vector<64x16xf32>
    %441 = arith.subf %430, %440 : vector<64x16xf32>
    %442 = arith.mulf %439, %441 : vector<64x16xf32>
    %443 = vector.shape_cast %442 : vector<64x16xf32> to vector<1x64x16xf32>
    %cst_392 = arith.constant dense<0.000000e+00> : vector<1xf32>
    %444 = vector.multi_reduction <add>, %443, %cst_392 [1, 2] : vector<1x64x16xf32> to vector<1xf32>
    %445 = vector.shape_cast %444 : vector<1xf32> to vector<1x1x1xf32>
    %446 = vector.extract %445[0, 0, 0] : f32 from vector<1x1x1xf32>
    %cst_393 = arith.constant 1.024000e+03 : f32
    %447 = arith.divf %446, %cst_393 : f32
    %448 = vector.broadcast %437 : f32 to vector<64x16xf32>
    %449 = arith.subf %430, %448 : vector<64x16xf32>
    %cst_394 = arith.constant 9.99999974E-6 : f32
    %450 = arith.addf %447, %cst_394 : f32
    %451 = math.rsqrt %450 : f32
    %452 = vector.broadcast %451 : f32 to vector<64x16xf32>
    %453 = arith.mulf %449, %452 : vector<64x16xf32>
    %454 = vector.broadcast %431 : vector<1x16xf32> to vector<64x16xf32>
    %455 = arith.mulf %453, %454 : vector<64x16xf32>
    %456 = vector.broadcast %432 : vector<1x16xf32> to vector<64x16xf32>
    %457 = arith.addf %455, %456 : vector<64x16xf32>
    %458 = math.tanh %457 : vector<64x16xf32>
    %cst_395 = arith.constant 1.000000e+00 : f32
    %459 = vector.broadcast %cst_395 : f32 to vector<64x16xf32>
    %460 = arith.subf %459, %394 : vector<64x16xf32>
    %461 = arith.mulf %460, %401 : vector<64x16xf32>
    %462 = arith.mulf %394, %458 : vector<64x16xf32>
    %463 = arith.addf %461, %462 : vector<64x16xf32>
    %464 = vector.shape_cast %463 : vector<64x16xf32> to vector<8x8x16xf32>
    %c0_396 = arith.constant 0 : index
    %c2_397 = arith.constant 2 : index
    %c0_398 = arith.constant 0 : index
    %c0_399 = arith.constant 0 : index
    %c0_400 = arith.constant 0 : index
    %465 = vector.load %arg11[%c0_396, %c2_397, %c0_398, %c0_399, %c0_400] : memref<1x4x8x8x16xf32, #tpu.memory_space<vmem>>, vector<1x1x8x8x16xf32>
    %466 = vector.shape_cast %465 : vector<1x1x8x8x16xf32> to vector<8x8x16xf32>
    %467 = vector.shape_cast %464 : vector<8x8x16xf32> to vector<1x1x8x8x16xf32>
    tpu.vector_store %arg11[%c0_396, %c2_397, %c0_398, %c0_399, %c0_400], %467 {strides = array<i32>} : memref<1x4x8x8x16xf32, #tpu.memory_space<vmem>>, vector<1x1x8x8x16xf32>,
    %c0_401 = arith.constant 0 : index
    %c3 = arith.constant 3 : index
    %c0_402 = arith.constant 0 : index
    %c0_403 = arith.constant 0 : index
    %c0_404 = arith.constant 0 : index
    %468 = vector.load %arg1[%c0_401, %c3, %c0_402, %c0_403, %c0_404] : memref<1x4x8x8x16xf32, #tpu.memory_space<vmem>>, vector<1x1x8x8x16xf32>
    %469 = vector.shape_cast %468 : vector<1x1x8x8x16xf32> to vector<8x8x16xf32>
    %c1_405 = arith.constant 1 : index
    %c1_406 = arith.constant 1 : index
    %c0_407 = arith.constant 0 : index
    %470 = vector.load %arg13[%c1_405, %c1_406, %c0_407] : memref<10x10x16xf32, #tpu.memory_space<vmem>>, vector<8x8x16xf32>
    tpu.vector_store %arg13[%c1_405, %c1_406, %c0_407], %469 {strides = array<i32>} : memref<10x10x16xf32, #tpu.memory_space<vmem>>, vector<8x8x16xf32>,
    %c1_408 = arith.constant 1 : index
    %c1_409 = arith.constant 1 : index
    %c0_410 = arith.constant 0 : index
    %471 = vector.load %arg14[%c1_408, %c1_409, %c0_410] : memref<10x10x16xf32, #tpu.memory_space<vmem>>, vector<8x8x16xf32>
    tpu.vector_store %arg14[%c1_408, %c1_409, %c0_410], %464 {strides = array<i32>} : memref<10x10x16xf32, #tpu.memory_space<vmem>>, vector<8x8x16xf32>,
    %c0_411 = arith.constant 0 : index
    %c0_412 = arith.constant 0 : index
    %c0_413 = arith.constant 0 : index
    %472 = vector.load %arg13[%c0_411, %c0_412, %c0_413] : memref<10x10x16xf32, #tpu.memory_space<vmem>>, vector<8x8x16xf32>
    %473 = vector.shape_cast %472 : vector<8x8x16xf32> to vector<64x16xf32>
    %c0_414 = arith.constant 0 : index
    %c1_415 = arith.constant 1 : index
    %c0_416 = arith.constant 0 : index
    %474 = vector.load %arg13[%c0_414, %c1_415, %c0_416] : memref<10x10x16xf32, #tpu.memory_space<vmem>>, vector<8x8x16xf32>
    %475 = vector.shape_cast %474 : vector<8x8x16xf32> to vector<64x16xf32>
    %c0_417 = arith.constant 0 : index
    %c2_418 = arith.constant 2 : index
    %c0_419 = arith.constant 0 : index
    %476 = vector.load %arg13[%c0_417, %c2_418, %c0_419] : memref<10x10x16xf32, #tpu.memory_space<vmem>>, vector<8x8x16xf32>
    %477 = vector.shape_cast %476 : vector<8x8x16xf32> to vector<64x16xf32>
    %c1_420 = arith.constant 1 : index
    %c0_421 = arith.constant 0 : index
    %c0_422 = arith.constant 0 : index
    %478 = vector.load %arg13[%c1_420, %c0_421, %c0_422] : memref<10x10x16xf32, #tpu.memory_space<vmem>>, vector<8x8x16xf32>
    %479 = vector.shape_cast %478 : vector<8x8x16xf32> to vector<64x16xf32>
    %c1_423 = arith.constant 1 : index
    %c1_424 = arith.constant 1 : index
    %c0_425 = arith.constant 0 : index
    %480 = vector.load %arg13[%c1_423, %c1_424, %c0_425] : memref<10x10x16xf32, #tpu.memory_space<vmem>>, vector<8x8x16xf32>
    %481 = vector.shape_cast %480 : vector<8x8x16xf32> to vector<64x16xf32>
    %c1_426 = arith.constant 1 : index
    %c2_427 = arith.constant 2 : index
    %c0_428 = arith.constant 0 : index
    %482 = vector.load %arg13[%c1_426, %c2_427, %c0_428] : memref<10x10x16xf32, #tpu.memory_space<vmem>>, vector<8x8x16xf32>
    %483 = vector.shape_cast %482 : vector<8x8x16xf32> to vector<64x16xf32>
    %c2_429 = arith.constant 2 : index
    %c0_430 = arith.constant 0 : index
    %c0_431 = arith.constant 0 : index
    %484 = vector.load %arg13[%c2_429, %c0_430, %c0_431] : memref<10x10x16xf32, #tpu.memory_space<vmem>>, vector<8x8x16xf32>
    %485 = vector.shape_cast %484 : vector<8x8x16xf32> to vector<64x16xf32>
    %c2_432 = arith.constant 2 : index
    %c1_433 = arith.constant 1 : index
    %c0_434 = arith.constant 0 : index
    %486 = vector.load %arg13[%c2_432, %c1_433, %c0_434] : memref<10x10x16xf32, #tpu.memory_space<vmem>>, vector<8x8x16xf32>
    %487 = vector.shape_cast %486 : vector<8x8x16xf32> to vector<64x16xf32>
    %c2_435 = arith.constant 2 : index
    %c2_436 = arith.constant 2 : index
    %c0_437 = arith.constant 0 : index
    %488 = vector.load %arg13[%c2_435, %c2_436, %c0_437] : memref<10x10x16xf32, #tpu.memory_space<vmem>>, vector<8x8x16xf32>
    %489 = vector.shape_cast %488 : vector<8x8x16xf32> to vector<64x16xf32>
    %c0_438 = arith.constant 0 : index
    %c0_439 = arith.constant 0 : index
    %c0_440 = arith.constant 0 : index
    %490 = vector.load %arg14[%c0_438, %c0_439, %c0_440] : memref<10x10x16xf32, #tpu.memory_space<vmem>>, vector<8x8x16xf32>
    %491 = vector.shape_cast %490 : vector<8x8x16xf32> to vector<64x16xf32>
    %c0_441 = arith.constant 0 : index
    %c1_442 = arith.constant 1 : index
    %c0_443 = arith.constant 0 : index
    %492 = vector.load %arg14[%c0_441, %c1_442, %c0_443] : memref<10x10x16xf32, #tpu.memory_space<vmem>>, vector<8x8x16xf32>
    %493 = vector.shape_cast %492 : vector<8x8x16xf32> to vector<64x16xf32>
    %c0_444 = arith.constant 0 : index
    %c2_445 = arith.constant 2 : index
    %c0_446 = arith.constant 0 : index
    %494 = vector.load %arg14[%c0_444, %c2_445, %c0_446] : memref<10x10x16xf32, #tpu.memory_space<vmem>>, vector<8x8x16xf32>
    %495 = vector.shape_cast %494 : vector<8x8x16xf32> to vector<64x16xf32>
    %c1_447 = arith.constant 1 : index
    %c0_448 = arith.constant 0 : index
    %c0_449 = arith.constant 0 : index
    %496 = vector.load %arg14[%c1_447, %c0_448, %c0_449] : memref<10x10x16xf32, #tpu.memory_space<vmem>>, vector<8x8x16xf32>
    %497 = vector.shape_cast %496 : vector<8x8x16xf32> to vector<64x16xf32>
    %c1_450 = arith.constant 1 : index
    %c1_451 = arith.constant 1 : index
    %c0_452 = arith.constant 0 : index
    %498 = vector.load %arg14[%c1_450, %c1_451, %c0_452] : memref<10x10x16xf32, #tpu.memory_space<vmem>>, vector<8x8x16xf32>
    %499 = vector.shape_cast %498 : vector<8x8x16xf32> to vector<64x16xf32>
    %c1_453 = arith.constant 1 : index
    %c2_454 = arith.constant 2 : index
    %c0_455 = arith.constant 0 : index
    %500 = vector.load %arg14[%c1_453, %c2_454, %c0_455] : memref<10x10x16xf32, #tpu.memory_space<vmem>>, vector<8x8x16xf32>
    %501 = vector.shape_cast %500 : vector<8x8x16xf32> to vector<64x16xf32>
    %c2_456 = arith.constant 2 : index
    %c0_457 = arith.constant 0 : index
    %c0_458 = arith.constant 0 : index
    %502 = vector.load %arg14[%c2_456, %c0_457, %c0_458] : memref<10x10x16xf32, #tpu.memory_space<vmem>>, vector<8x8x16xf32>
    %503 = vector.shape_cast %502 : vector<8x8x16xf32> to vector<64x16xf32>
    %c2_459 = arith.constant 2 : index
    %c1_460 = arith.constant 1 : index
    %c0_461 = arith.constant 0 : index
    %504 = vector.load %arg14[%c2_459, %c1_460, %c0_461] : memref<10x10x16xf32, #tpu.memory_space<vmem>>, vector<8x8x16xf32>
    %505 = vector.shape_cast %504 : vector<8x8x16xf32> to vector<64x16xf32>
    %c2_462 = arith.constant 2 : index
    %c2_463 = arith.constant 2 : index
    %c0_464 = arith.constant 0 : index
    %506 = vector.load %arg14[%c2_462, %c2_463, %c0_464] : memref<10x10x16xf32, #tpu.memory_space<vmem>>, vector<8x8x16xf32>
    %507 = vector.shape_cast %506 : vector<8x8x16xf32> to vector<64x16xf32>
    %508 = tpu.concatenate %473, %475, %477, %479, %481, %483, %485, %487, %489, %491, %493, %495, %497, %499, %501, %503 in 1 : vector<64x16xf32>, vector<64x16xf32>, vector<64x16xf32>, vector<64x16xf32>, vector<64x16xf32>, vector<64x16xf32>, vector<64x16xf32>, vector<64x16xf32>, vector<64x16xf32>, vector<64x16xf32>, vector<64x16xf32>, vector<64x16xf32>, vector<64x16xf32>, vector<64x16xf32>, vector<64x16xf32>, vector<64x16xf32> -> vector<64x256xf32>
    %509 = tpu.concatenate %505, %507 in 1 : vector<64x16xf32>, vector<64x16xf32> -> vector<64x32xf32>
    %510 = tpu.concatenate %508, %509 in 1 : vector<64x256xf32>, vector<64x32xf32> -> vector<64x288xf32>
    %c0_465 = arith.constant 0 : index
    %c0_466 = arith.constant 0 : index
    %511 = vector.load %arg3[%c0_465, %c0_466] : memref<288x32xf32, #tpu.memory_space<vmem>>, vector<288x32xf32>
    %cst_467 = arith.constant dense<0.000000e+00> : vector<64x32xf32>
    %512 = tpu.matmul %510, %511, %cst_467 {dimension_numbers = #tpu.dot_dimension_numbers<[1], [0], [0], [1], [0, 0, 1, 1], [], []>} : vector<64x288xf32>, vector<288x32xf32>, vector<64x32xf32> -> vector<64x32xf32>
    %c0_468 = arith.constant 0 : index
    %c0_469 = arith.constant 0 : index
    %513 = vector.load %arg4[%c0_468, %c0_469] : memref<1x32xf32, #tpu.memory_space<vmem>>, vector<1x32xf32>
    %514 = vector.broadcast %513 : vector<1x32xf32> to vector<64x32xf32>
    %515 = arith.addf %512, %514 : vector<64x32xf32>
    %c0_470 = arith.constant 0 : index
    %c0_471 = arith.constant 0 : index
    %516 = vector.load %arg5[%c0_470, %c0_471] : memref<1x32xf32, #tpu.memory_space<vmem>>, vector<1x32xf32>
    %c0_472 = arith.constant 0 : index
    %c0_473 = arith.constant 0 : index
    %517 = vector.load %arg6[%c0_472, %c0_473] : memref<1x32xf32, #tpu.memory_space<vmem>>, vector<1x32xf32>
    %518 = vector.shape_cast %515 : vector<64x32xf32> to vector<1x64x32xf32>
    %cst_474 = arith.constant dense<0.000000e+00> : vector<1xf32>
    %519 = vector.multi_reduction <add>, %518, %cst_474 [1, 2] : vector<1x64x32xf32> to vector<1xf32>
    %520 = vector.shape_cast %519 : vector<1xf32> to vector<1x1x1xf32>
    %521 = vector.extract %520[0, 0, 0] : f32 from vector<1x1x1xf32>
    %cst_475 = arith.constant 2.048000e+03 : f32
    %522 = arith.divf %521, %cst_475 : f32
    %523 = vector.broadcast %522 : f32 to vector<64x32xf32>
    %524 = arith.subf %515, %523 : vector<64x32xf32>
    %525 = vector.broadcast %522 : f32 to vector<64x32xf32>
    %526 = arith.subf %515, %525 : vector<64x32xf32>
    %527 = arith.mulf %524, %526 : vector<64x32xf32>
    %528 = vector.shape_cast %527 : vector<64x32xf32> to vector<1x64x32xf32>
    %cst_476 = arith.constant dense<0.000000e+00> : vector<1xf32>
    %529 = vector.multi_reduction <add>, %528, %cst_476 [1, 2] : vector<1x64x32xf32> to vector<1xf32>
    %530 = vector.shape_cast %529 : vector<1xf32> to vector<1x1x1xf32>
    %531 = vector.extract %530[0, 0, 0] : f32 from vector<1x1x1xf32>
    %cst_477 = arith.constant 2.048000e+03 : f32
    %532 = arith.divf %531, %cst_477 : f32
    %533 = vector.broadcast %522 : f32 to vector<64x32xf32>
    %534 = arith.subf %515, %533 : vector<64x32xf32>
    %cst_478 = arith.constant 9.99999974E-6 : f32
    %535 = arith.addf %532, %cst_478 : f32
    %536 = math.rsqrt %535 : f32
    %537 = vector.broadcast %536 : f32 to vector<64x32xf32>
    %538 = arith.mulf %534, %537 : vector<64x32xf32>
    %539 = vector.broadcast %516 : vector<1x32xf32> to vector<64x32xf32>
    %540 = arith.mulf %538, %539 : vector<64x32xf32>
    %541 = vector.broadcast %517 : vector<1x32xf32> to vector<64x32xf32>
    %542 = arith.addf %540, %541 : vector<64x32xf32>
    %543 = vector.extract_strided_slice %542 {offsets = [0, 0], sizes = [64, 16], strides = [1, 1]} : vector<64x32xf32> to vector<64x16xf32>
    %544 = arith.negf %543 : vector<64x16xf32>
    %545 = math.exp %544 : vector<64x16xf32>
    %cst_479 = arith.constant 1.000000e+00 : f32
    %546 = vector.broadcast %cst_479 : f32 to vector<64x16xf32>
    %547 = arith.addf %546, %545 : vector<64x16xf32>
    %548 = arith.divf %546, %547 : vector<64x16xf32>
    %549 = vector.extract_strided_slice %542 {offsets = [0, 16], sizes = [64, 16], strides = [1, 1]} : vector<64x32xf32> to vector<64x16xf32>
    %550 = arith.negf %549 : vector<64x16xf32>
    %551 = math.exp %550 : vector<64x16xf32>
    %cst_480 = arith.constant 1.000000e+00 : f32
    %552 = vector.broadcast %cst_480 : f32 to vector<64x16xf32>
    %553 = arith.addf %552, %551 : vector<64x16xf32>
    %554 = arith.divf %552, %553 : vector<64x16xf32>
    %555 = vector.shape_cast %464 : vector<8x8x16xf32> to vector<64x16xf32>
    %556 = arith.mulf %554, %555 : vector<64x16xf32>
    %557 = vector.shape_cast %556 : vector<64x16xf32> to vector<8x8x16xf32>
    %c1_481 = arith.constant 1 : index
    %c1_482 = arith.constant 1 : index
    %c0_483 = arith.constant 0 : index
    %558 = vector.load %arg14[%c1_481, %c1_482, %c0_483] : memref<10x10x16xf32, #tpu.memory_space<vmem>>, vector<8x8x16xf32>
    tpu.vector_store %arg14[%c1_481, %c1_482, %c0_483], %557 {strides = array<i32>} : memref<10x10x16xf32, #tpu.memory_space<vmem>>, vector<8x8x16xf32>,
    %c0_484 = arith.constant 0 : index
    %c0_485 = arith.constant 0 : index
    %c0_486 = arith.constant 0 : index
    %559 = vector.load %arg14[%c0_484, %c0_485, %c0_486] : memref<10x10x16xf32, #tpu.memory_space<vmem>>, vector<8x8x16xf32>
    %560 = vector.shape_cast %559 : vector<8x8x16xf32> to vector<64x16xf32>
    %c0_487 = arith.constant 0 : index
    %c1_488 = arith.constant 1 : index
    %c0_489 = arith.constant 0 : index
    %561 = vector.load %arg14[%c0_487, %c1_488, %c0_489] : memref<10x10x16xf32, #tpu.memory_space<vmem>>, vector<8x8x16xf32>
    %562 = vector.shape_cast %561 : vector<8x8x16xf32> to vector<64x16xf32>
    %c0_490 = arith.constant 0 : index
    %c2_491 = arith.constant 2 : index
    %c0_492 = arith.constant 0 : index
    %563 = vector.load %arg14[%c0_490, %c2_491, %c0_492] : memref<10x10x16xf32, #tpu.memory_space<vmem>>, vector<8x8x16xf32>
    %564 = vector.shape_cast %563 : vector<8x8x16xf32> to vector<64x16xf32>
    %c1_493 = arith.constant 1 : index
    %c0_494 = arith.constant 0 : index
    %c0_495 = arith.constant 0 : index
    %565 = vector.load %arg14[%c1_493, %c0_494, %c0_495] : memref<10x10x16xf32, #tpu.memory_space<vmem>>, vector<8x8x16xf32>
    %566 = vector.shape_cast %565 : vector<8x8x16xf32> to vector<64x16xf32>
    %c1_496 = arith.constant 1 : index
    %c1_497 = arith.constant 1 : index
    %c0_498 = arith.constant 0 : index
    %567 = vector.load %arg14[%c1_496, %c1_497, %c0_498] : memref<10x10x16xf32, #tpu.memory_space<vmem>>, vector<8x8x16xf32>
    %568 = vector.shape_cast %567 : vector<8x8x16xf32> to vector<64x16xf32>
    %c1_499 = arith.constant 1 : index
    %c2_500 = arith.constant 2 : index
    %c0_501 = arith.constant 0 : index
    %569 = vector.load %arg14[%c1_499, %c2_500, %c0_501] : memref<10x10x16xf32, #tpu.memory_space<vmem>>, vector<8x8x16xf32>
    %570 = vector.shape_cast %569 : vector<8x8x16xf32> to vector<64x16xf32>
    %c2_502 = arith.constant 2 : index
    %c0_503 = arith.constant 0 : index
    %c0_504 = arith.constant 0 : index
    %571 = vector.load %arg14[%c2_502, %c0_503, %c0_504] : memref<10x10x16xf32, #tpu.memory_space<vmem>>, vector<8x8x16xf32>
    %572 = vector.shape_cast %571 : vector<8x8x16xf32> to vector<64x16xf32>
    %c2_505 = arith.constant 2 : index
    %c1_506 = arith.constant 1 : index
    %c0_507 = arith.constant 0 : index
    %573 = vector.load %arg14[%c2_505, %c1_506, %c0_507] : memref<10x10x16xf32, #tpu.memory_space<vmem>>, vector<8x8x16xf32>
    %574 = vector.shape_cast %573 : vector<8x8x16xf32> to vector<64x16xf32>
    %c2_508 = arith.constant 2 : index
    %c2_509 = arith.constant 2 : index
    %c0_510 = arith.constant 0 : index
    %575 = vector.load %arg14[%c2_508, %c2_509, %c0_510] : memref<10x10x16xf32, #tpu.memory_space<vmem>>, vector<8x8x16xf32>
    %576 = vector.shape_cast %575 : vector<8x8x16xf32> to vector<64x16xf32>
    %577 = tpu.concatenate %473, %475, %477, %479, %481, %483, %485, %487, %489, %560, %562, %564, %566, %568, %570, %572 in 1 : vector<64x16xf32>, vector<64x16xf32>, vector<64x16xf32>, vector<64x16xf32>, vector<64x16xf32>, vector<64x16xf32>, vector<64x16xf32>, vector<64x16xf32>, vector<64x16xf32>, vector<64x16xf32>, vector<64x16xf32>, vector<64x16xf32>, vector<64x16xf32>, vector<64x16xf32>, vector<64x16xf32>, vector<64x16xf32> -> vector<64x256xf32>
    %578 = tpu.concatenate %574, %576 in 1 : vector<64x16xf32>, vector<64x16xf32> -> vector<64x32xf32>
    %579 = tpu.concatenate %577, %578 in 1 : vector<64x256xf32>, vector<64x32xf32> -> vector<64x288xf32>
    %c0_511 = arith.constant 0 : index
    %c0_512 = arith.constant 0 : index
    %580 = vector.load %arg7[%c0_511, %c0_512] : memref<288x16xf32, #tpu.memory_space<vmem>>, vector<288x16xf32>
    %cst_513 = arith.constant dense<0.000000e+00> : vector<64x16xf32>
    %581 = tpu.matmul %579, %580, %cst_513 {dimension_numbers = #tpu.dot_dimension_numbers<[1], [0], [0], [1], [0, 0, 1, 1], [], []>} : vector<64x288xf32>, vector<288x16xf32>, vector<64x16xf32> -> vector<64x16xf32>
    %c0_514 = arith.constant 0 : index
    %c0_515 = arith.constant 0 : index
    %582 = vector.load %arg8[%c0_514, %c0_515] : memref<1x16xf32, #tpu.memory_space<vmem>>, vector<1x16xf32>
    %583 = vector.broadcast %582 : vector<1x16xf32> to vector<64x16xf32>
    %584 = arith.addf %581, %583 : vector<64x16xf32>
    %c0_516 = arith.constant 0 : index
    %c0_517 = arith.constant 0 : index
    %585 = vector.load %arg9[%c0_516, %c0_517] : memref<1x16xf32, #tpu.memory_space<vmem>>, vector<1x16xf32>
    %c0_518 = arith.constant 0 : index
    %c0_519 = arith.constant 0 : index
    %586 = vector.load %arg10[%c0_518, %c0_519] : memref<1x16xf32, #tpu.memory_space<vmem>>, vector<1x16xf32>
    %587 = vector.shape_cast %584 : vector<64x16xf32> to vector<1x64x16xf32>
    %cst_520 = arith.constant dense<0.000000e+00> : vector<1xf32>
    %588 = vector.multi_reduction <add>, %587, %cst_520 [1, 2] : vector<1x64x16xf32> to vector<1xf32>
    %589 = vector.shape_cast %588 : vector<1xf32> to vector<1x1x1xf32>
    %590 = vector.extract %589[0, 0, 0] : f32 from vector<1x1x1xf32>
    %cst_521 = arith.constant 1.024000e+03 : f32
    %591 = arith.divf %590, %cst_521 : f32
    %592 = vector.broadcast %591 : f32 to vector<64x16xf32>
    %593 = arith.subf %584, %592 : vector<64x16xf32>
    %594 = vector.broadcast %591 : f32 to vector<64x16xf32>
    %595 = arith.subf %584, %594 : vector<64x16xf32>
    %596 = arith.mulf %593, %595 : vector<64x16xf32>
    %597 = vector.shape_cast %596 : vector<64x16xf32> to vector<1x64x16xf32>
    %cst_522 = arith.constant dense<0.000000e+00> : vector<1xf32>
    %598 = vector.multi_reduction <add>, %597, %cst_522 [1, 2] : vector<1x64x16xf32> to vector<1xf32>
    %599 = vector.shape_cast %598 : vector<1xf32> to vector<1x1x1xf32>
    %600 = vector.extract %599[0, 0, 0] : f32 from vector<1x1x1xf32>
    %cst_523 = arith.constant 1.024000e+03 : f32
    %601 = arith.divf %600, %cst_523 : f32
    %602 = vector.broadcast %591 : f32 to vector<64x16xf32>
    %603 = arith.subf %584, %602 : vector<64x16xf32>
    %cst_524 = arith.constant 9.99999974E-6 : f32
    %604 = arith.addf %601, %cst_524 : f32
    %605 = math.rsqrt %604 : f32
    %606 = vector.broadcast %605 : f32 to vector<64x16xf32>
    %607 = arith.mulf %603, %606 : vector<64x16xf32>
    %608 = vector.broadcast %585 : vector<1x16xf32> to vector<64x16xf32>
    %609 = arith.mulf %607, %608 : vector<64x16xf32>
    %610 = vector.broadcast %586 : vector<1x16xf32> to vector<64x16xf32>
    %611 = arith.addf %609, %610 : vector<64x16xf32>
    %612 = math.tanh %611 : vector<64x16xf32>
    %cst_525 = arith.constant 1.000000e+00 : f32
    %613 = vector.broadcast %cst_525 : f32 to vector<64x16xf32>
    %614 = arith.subf %613, %548 : vector<64x16xf32>
    %615 = arith.mulf %614, %555 : vector<64x16xf32>
    %616 = arith.mulf %548, %612 : vector<64x16xf32>
    %617 = arith.addf %615, %616 : vector<64x16xf32>
    %618 = vector.shape_cast %617 : vector<64x16xf32> to vector<8x8x16xf32>
    %c0_526 = arith.constant 0 : index
    %c3_527 = arith.constant 3 : index
    %c0_528 = arith.constant 0 : index
    %c0_529 = arith.constant 0 : index
    %c0_530 = arith.constant 0 : index
    %619 = vector.load %arg11[%c0_526, %c3_527, %c0_528, %c0_529, %c0_530] : memref<1x4x8x8x16xf32, #tpu.memory_space<vmem>>, vector<1x1x8x8x16xf32>
    %620 = vector.shape_cast %619 : vector<1x1x8x8x16xf32> to vector<8x8x16xf32>
    %621 = vector.shape_cast %618 : vector<8x8x16xf32> to vector<1x1x8x8x16xf32>
    tpu.vector_store %arg11[%c0_526, %c3_527, %c0_528, %c0_529, %c0_530], %621 {strides = array<i32>} : memref<1x4x8x8x16xf32, #tpu.memory_space<vmem>>, vector<1x1x8x8x16xf32>,
    %c0_531 = arith.constant 0 : index
    %c0_532 = arith.constant 0 : index
    %c0_533 = arith.constant 0 : index
    %c0_534 = arith.constant 0 : index
    %622 = vector.load %arg12[%c0_531, %c0_532, %c0_533, %c0_534] : memref<1x8x8x16xf32, #tpu.memory_space<vmem>>, vector<1x8x8x16xf32>
    %623 = vector.shape_cast %622 : vector<1x8x8x16xf32> to vector<8x8x16xf32>
    %624 = vector.shape_cast %618 : vector<8x8x16xf32> to vector<1x8x8x16xf32>
    tpu.vector_store %arg12[%c0_531, %c0_532, %c0_533, %c0_534], %624 {strides = array<i32>} : memref<1x8x8x16xf32, #tpu.memory_space<vmem>>, vector<1x8x8x16xf32>,
    return
  }
  func.func @transform_0(%arg0: i32) -> (i32, i32, i32, i32, i32) {
    %c0_i32 = arith.constant 0 : i32
    %c0_i32_0 = arith.constant 0 : i32
    %c0_i32_1 = arith.constant 0 : i32
    %c0_i32_2 = arith.constant 0 : i32
    %c0_i32_3 = arith.constant 0 : i32
    return %arg0, %c0_i32, %c0_i32_0, %c0_i32_1, %c0_i32_2 : i32, i32, i32, i32, i32
  }
  func.func @transform_1(%arg0: i32) -> (i32, i32, i32, i32) {
    %c0_i32 = arith.constant 0 : i32
    %c0_i32_0 = arith.constant 0 : i32
    %c0_i32_1 = arith.constant 0 : i32
    %c0_i32_2 = arith.constant 0 : i32
    return %arg0, %c0_i32, %c0_i32_0, %c0_i32_1 : i32, i32, i32, i32
  }
  func.func @transform_2(%arg0: i32) -> (i32, i32) {
    %c0_i32 = arith.constant 0 : i32
    %c0_i32_0 = arith.constant 0 : i32
    %c0_i32_1 = arith.constant 0 : i32
    return %c0_i32, %c0_i32_0 : i32, i32
  }
  func.func @transform_3(%arg0: i32) -> (i32, i32) {
    %c0_i32 = arith.constant 0 : i32
    %c0_i32_0 = arith.constant 0 : i32
    %c0_i32_1 = arith.constant 0 : i32
    return %c0_i32, %c0_i32_0 : i32, i32
  }
  func.func @transform_4(%arg0: i32) -> (i32, i32) {
    %c0_i32 = arith.constant 0 : i32
    %c0_i32_0 = arith.constant 0 : i32
    %c0_i32_1 = arith.constant 0 : i32
    return %c0_i32, %c0_i32_0 : i32, i32
  }
  func.func @transform_5(%arg0: i32) -> (i32, i32) {
    %c0_i32 = arith.constant 0 : i32
    %c0_i32_0 = arith.constant 0 : i32
    %c0_i32_1 = arith.constant 0 : i32
    return %c0_i32, %c0_i32_0 : i32, i32
  }
  func.func @transform_6(%arg0: i32) -> (i32, i32) {
    %c0_i32 = arith.constant 0 : i32
    %c0_i32_0 = arith.constant 0 : i32
    %c0_i32_1 = arith.constant 0 : i32
    return %c0_i32, %c0_i32_0 : i32, i32
  }
  func.func @transform_7(%arg0: i32) -> (i32, i32) {
    %c0_i32 = arith.constant 0 : i32
    %c0_i32_0 = arith.constant 0 : i32
    %c0_i32_1 = arith.constant 0 : i32
    return %c0_i32, %c0_i32_0 : i32, i32
  }
  func.func @transform_8(%arg0: i32) -> (i32, i32) {
    %c0_i32 = arith.constant 0 : i32
    %c0_i32_0 = arith.constant 0 : i32
    %c0_i32_1 = arith.constant 0 : i32
    return %c0_i32, %c0_i32_0 : i32, i32
  }
  func.func @transform_9(%arg0: i32) -> (i32, i32) {
    %c0_i32 = arith.constant 0 : i32
    %c0_i32_0 = arith.constant 0 : i32
    %c0_i32_1 = arith.constant 0 : i32
    return %c0_i32, %c0_i32_0 : i32, i32
  }
  func.func @transform_10(%arg0: i32) -> (i32, i32, i32, i32, i32) {
    %c0_i32 = arith.constant 0 : i32
    %c0_i32_0 = arith.constant 0 : i32
    %c0_i32_1 = arith.constant 0 : i32
    %c0_i32_2 = arith.constant 0 : i32
    %c0_i32_3 = arith.constant 0 : i32
    return %arg0, %c0_i32, %c0_i32_0, %c0_i32_1, %c0_i32_2 : i32, i32, i32, i32, i32
  }
  func.func @transform_11(%arg0: i32) -> (i32, i32, i32, i32) {
    %c0_i32 = arith.constant 0 : i32
    %c0_i32_0 = arith.constant 0 : i32
    %c0_i32_1 = arith.constant 0 : i32
    %c0_i32_2 = arith.constant 0 : i32
    return %arg0, %c0_i32, %c0_i32_0, %c0_i32_1 : i32, i32, i32, i32
  }
}

</mosaic_0001>

<bundles_post_ra>
// kernel: _cgru_pallas.1
= control target key start
LH: loop header
LB: loop body
LE: loop exit
PB: predicated region body
PF: predicated region fallthrough
CT: control target
= control target key end

     0   :  { %s16079_s0 = inlined_call_operand.vmem [shape: f32[2,4,8,8,16], index: 0, kind: input, shape index: {}]   ;;  %s16080_s1 = inlined_call_operand.vmem [shape: f32[2,8,8,16], index: 1, kind: input, shape index: {}]   ;;  %s16081_s2 = inlined_call_operand.vmem [shape: f32[288,32], index: 2, kind: input, shape index: {}]   ;;  %s16082_s3 = inlined_call_operand.vmem [shape: f32[1,32], index: 3, kind: input, shape index: {}]   ;;  %s16083_s4 = inlined_call_operand.vmem [shape: f32[1,32], index: 4, kind: input, shape index: {}]   ;;  %s16084_s5 = inlined_call_operand.vmem [shape: f32[1,32], index: 5, kind: input, shape index: {}]   ;;  %s16085_s6 = inlined_call_operand.vmem [shape: f32[288,16], index: 6, kind: input, shape index: {}]   ;;  %s16086_s7 = inlined_call_operand.vmem [shape: f32[1,16], index: 7, kind: input, shape index: {}]   ;;  %s16087_s8 = inlined_call_operand.vmem [shape: f32[1,16], index: 8, kind: input, shape index: {}]   ;;  %s16088_s9 = inlined_call_operand.vmem [shape: f32[1,16], index: 9, kind: input, shape index: {}]   ;;  %s16089_s10 = inlined_call_operand.hbm [shape: f32[2,4,8,8,16], index: 10, kind: output, shape index: {0}]   ;;  %s16090_s11 = inlined_call_operand.hbm [shape: f32[2,8,8,16], index: 11, kind: output, shape index: {1}]  }
   0x1   :  { %16113 = sst [smem:[#allocation17_spill]] %s16079_s0 }
   0x2   :  { %16114 = sst [smem:[#allocation18_spill]] %s16080_s1 }
   0x3   :  { %16115 = sst [smem:[#allocation19_spill]] %s16090_s11 }
   0x4   :  { %17 = vsyncpa [#allocation5], 0 }
   0x5   :  { %19 = vsyncpa [#allocation5 + $0x1], 0 }
   0x6   :  { %20 = vsyncpa [#allocation7], 0 }
   0x7   :  { %22 = vsyncpa [#allocation7 + $0x1], 0  ;;  %s12162_s17 = smov 0   ;;  %s12164_s18 = smov 0  }
   0x8   :  { %s12166_s19 = smov 0   ;;  %s12168_s20 = smov 0  }
   0x9 LB: > { %16116 = sst [smem:[#allocation10_spill]] %s12076_s17  ;;  %s12183_s21 = sadd.s32 4294967295, %s12088_s20   ;;  %s12088_s20 = sphi %s12168_s20, %s16138_s20   ;;  %s12084_s19 = sphi %s12166_s19, %s16141_s19   ;;  %s12080_s18 = sphi %s12164_s18, %s16140_s18   ;;  %s12076_s17 = sphi %s12162_s17, %s16139_s17  }
   0xa   : > { %16117 = sst [smem:[#allocation11_spill]] %s12080_s18  ;;  %s9103_s22 = sadd.s32 4294967294, %s12088_s20  }
   0xb   : > { %16118 = sst [smem:[#allocation12_spill]] %s12084_s19  ;;  %s12187_s23 = sadd.s32 1, %s12088_s20  }
   0xc   : > { %16119 = sst [smem:[#allocation13_spill]] %s12088_s20  ;;  %s255_s24 = sadd.s32 1, %s12084_s19 }
   0xd   : > { %16120 = sst [smem:[#allocation14_spill]] %s12187_s23  ;;  %s252_s25 = ssub.s32 %s12088_s20, %s12187_s23 }
   0xe   : > { %p265_p0 = scmp.ne.s32.totalorder %s12084_s19, %s12080_s18  ;;  %p253_p1 = scmp.eq.s32.totalorder %s252_s25, 0 }
   0xf   : > { %p266_p2 = scmp.eq.s32.totalorder %s12183_s21, 1  ;;  %p271_p3 = scmp.ne.s32.totalorder %s12080_s18, %s12076_s17 }
  0x10   : > { %p272_p4 = scmp.eq.s32.totalorder %s9103_s22, 1  ;;  %p9106_p7 = scmp.ge.s32.totalorder %s12088_s20, 1 }
  0x11   : > { %s12198_s26 = scalar_select %p253_p1, %s12084_s19, %s255_s24  }
  0x12   : > { %p12200_p5 = por %p266_p2, %p265_p0  ;;  %p12204_p6 = por %p272_p4, %p271_p3 }
  0x13   : > { %16121 = sst [smem:[#allocation15_spill]] %s12198_s26  ;;  %p356_p8 = scmp.lt.s32.totalorder %s12088_s20, 3 }
  0x14   : > { %s16123_s28 = scalar_select %p12204_p6, 1, 0 }
  0x15   : > { %p357_p9 = pnand %p9106_p7, %p356_p8 }
  0x16   : > { %16124 = sst [smem:[#allocation16_spill]] %s16123_s28  ;;  %p406_p10 = scmp.lt.s32.totalorder (!%p357_p9), %s12183_s21, 1 }
  0x17   : > { %360 = sbr.rel (%p357_p9) target bundleno = 8141 (0x1fcd), region = 60  ;;  %s16125_s0 = sld [smem:[#allocation17_spill]] (!%p357_p9) }
  0x18   : > { %s16126_s1 = sld [smem:[#allocation18_spill]] (!%p357_p9)  ;;  %s16106_s16 = smov (!%p357_p9), 16  }
  0x19   : > { %s16098_s22 = smov (!%p357_p9), 32   ;;  %s16102_s23 = smov (!%p357_p9), 80  }
  0x1a   : > { %s16104_s24 = smov (!%p357_p9), 112   ;;  %s16127_s26 = smov (!%p357_p9), 96  }
  0x1b   : > { %s16128_s13 = smov (!%p357_p9), 32   ;;  %s16130_s25 = smov (!%p357_p9), 64  }
  0x1c   : > { %vm416_vm0 = vcmask 130048   ;;  %vm418_vm1 = vcmask 123904   ;;  %v1275_v0 = vld [vmem:[%s16081_s2 + $0xf8] sm:$0xff]  ;;  %v12090_v1 = vmov 0.0   ;;  %v1274_v3 = vld [vmem:[%s16081_s2 + $0xf0] sm:$0xff]  ;;  %v1273_v5 = vld [vmem:[%s16081_s2 + $0xe8] sm:$0xff] }
  0x1d   : > { %417 = vst.msk [vmem:[#allocation2] sm:$0xff] %vm416_vm0, %v12090_v1  ;;  %438 = vst.msk [vmem:[#allocation3] sm:$0xff] %vm416_vm0, %v12090_v1  ;;  %9293 = vmatprep.subr.mxu0 %v1275_v0  ;;  %v1259_v2 = vld [vmem:[%s16081_s2 + $0x78] sm:$0xff]  ;;  %v1258_v4 = vld [vmem:[%s16081_s2 + $0x70] sm:$0xff]  ;;  %s407_s29 = scalar_select %p406_p10, %s12183_s21, 1  ;;  %vm1094_vm2 = vcmask 261120  }
  0x1e   : > { %419 = vst.msk [vmem:[#allocation2 + $0x8] sm:$0x3] %vm418_vm1, %v12090_v1  ;;  %421 = vst.msk [vmem:[#allocation2 + $0x18] sm:$0x3] %vm418_vm1, %v12090_v1  ;;  %9294 = vmatpush3.msra.mxu0 %v1259_v2  ;;  %v1257_v6 = vld [vmem:[%s16081_s2 + $0x68] sm:$0xff]  ;;  %v1272_v7 = vld [vmem:[%s16081_s2 + $0xe0] sm:$0xff] }
  0x1f   : > { %420 = vst.msk [vmem:[#allocation2 + $0x10] sm:$0xff] %vm416_vm0, %v12090_v1  ;;  %422 = vst.msk [vmem:[#allocation2 + $0x20] sm:$0xff] %vm416_vm0, %v12090_v1  ;;  %9295 = vmatprep.subr.mxu0 %v1274_v3  ;;  %s9289_s14 = sshll.u32 %s407_s29, 8  ;;  %s9290_s15 = sshll.u32 %s407_s29, 6  ;;  %v1256_v8 = vld [vmem:[%s16081_s2 + $0x60] sm:$0xff]  ;;  %v1271_v9 = vld [vmem:[%s16081_s2 + $0xd8] sm:$0xff] }
  0x20   : > { %423 = vst.msk [vmem:[#allocation2 + $0x28] sm:$0x3] %vm418_vm1, %v12090_v1  ;;  %425 = vst.msk [vmem:[#allocation2 + $0x38] sm:$0x3] %vm418_vm1, %v12090_v1  ;;  %9296 = vmatpush3.msra.mxu0 %v1258_v4  ;;  %s12279_s19 = scalar_lea.vmem %s16125_s0, %s9289_s14  ;;  %s12284_s30 = scalar_lea.vmem %s16126_s1, %s9290_s15  ;;  %v1255_v10 = vld [vmem:[%s16081_s2 + $0x58] sm:$0xff]  ;;  %v1270_v11 = vld [vmem:[%s16081_s2 + $0xd0] sm:$0xff] }
  0x21   : > { %424 = vst.msk [vmem:[#allocation2 + $0x30] sm:$0xff] %vm416_vm0, %v12090_v1  ;;  %426 = vst.msk [vmem:[#allocation2 + $0x40] sm:$0xff] %vm416_vm0, %v12090_v1  ;;  %9297 = vmatprep.subr.mxu0 %v1273_v5  ;;  %v466_v12 = vld [vmem:[%s12279_s19] sm:$0xff]  ;;  %v467_v14 = vld [vmem:[%s12279_s19 + $0x8] sm:$0xff]  ;;  %s16094_s14 = smov 64   ;;  %s16100_s15 = smov 96  }
  0x22   : > { %427 = vst.msk [vmem:[#allocation2 + $0x48] sm:$0x3] %vm418_vm1, %v12090_v1  ;;  %429 = vst.msk [vmem:[#allocation2 + $0x58] sm:$0x3] %vm418_vm1, %v12090_v1  ;;  %9298 = vmatpush3.msra.mxu0 %v1257_v6  ;;  %v12297_v13 = vld [vmem:[%s12284_s30] sm:$0xff]  ;;  %v1254_v15 = vld [vmem:[%s16081_s2 + $0x50] sm:$0xff] }
  0x23   : > { %428 = vst.msk [vmem:[#allocation2 + $0x50] sm:$0xff] %vm416_vm0, %v12090_v1  ;;  %430 = vst.msk [vmem:[#allocation2 + $0x60] sm:$0xff] %vm416_vm0, %v12090_v1  ;;  %9299 = vmatprep.subr.mxu0 %v1272_v7  ;;  %v1269_v19 = vld [vmem:[%s16081_s2 + $0xc8] sm:$0xff]  ;;  %v468_v24 = vld [vmem:[%s12279_s19 + $0x10] sm:$0xff]  ;;  %vm1103_vm3 = vcmask 392192   ;;  %vm1112_vm4 = vcmask 523264  }
  0x24   : > { %431 = vst.msk [vmem:[#allocation2 + $0x68] sm:$0x3] %vm418_vm1, %v12090_v1  ;;  %433 = vst.msk [vmem:[#allocation2 + $0x78] sm:$0x3] %vm418_vm1, %v12090_v1  ;;  %v565_v17 = vld [vmem:[#allocation3] sm:$0xff]  ;;  %9300 = vmatpush3.msra.mxu0 %v1256_v8  ;;  %v12311_v22 = vld [vmem:[%s12284_s30 + $0x8] sm:$0xff] }
  0x25   : > { %432 = vst.msk [vmem:[#allocation2 + $0x70] sm:$0xff] %vm416_vm0, %v12090_v1  ;;  %434 = vst.msk [vmem:[#allocation2 + $0x80] sm:$0xff] %vm416_vm0, %v12090_v1  ;;  %v500_v16 = vld [vmem:[#allocation2 + $0x1] sm:$0xff]  ;;  %9301 = vmatprep.subr.mxu0 %v1271_v9  ;;  %v12320_v25 = vld [vmem:[%s12284_s30 + $0x10] sm:$0xff]  ;;  %vm1121_vm5 = vcmask 654336   ;;  %vm1130_vm6 = vcmask 785408  }
  0x26   : > { %435 = vst.msk [vmem:[#allocation2 + $0x88] sm:$0x3] %vm418_vm1, %v12090_v1  ;;  %437 = vst.msk [vmem:[#allocation2 + $0x98] sm:$0x3] %vm418_vm1, %v12090_v1  ;;  %v508_v18 = vld [vmem:[#allocation2 + $0x2] sm:$0xff]  ;;  %v10099_v20 = vpack.i.bf16 %v500_v16, %v565_v17  ;;  %v469_v26 = vld [vmem:[%s12279_s19 + $0x18] sm:$0xff]  ;;  %9302 = vmatpush3.msra.mxu0 %v1255_v10 }
  0x27   : > { %436 = vst.msk [vmem:[#allocation2 + $0x90] sm:$0xff] %vm416_vm0, %v12090_v1  ;;  %440 = vst.msk [vmem:[#allocation3 + $0x10] sm:$0xff] %vm416_vm0, %v12090_v1  ;;  %v1253_v23 = vld [vmem:[%s16081_s2 + $0x48] sm:$0xff]  ;;  %v1268_v27 = vld [vmem:[%s16081_s2 + $0xc0] sm:$0xff]  ;;  %9303 = vmatprep.subr.mxu0 %v1270_v11  ;;  %vm1139_vm7 = vcmask 916480   ;;  %s16132_s0 = smov 112  }
  0x28   : > { %439 = vst.msk [vmem:[#allocation3 + $0x8] sm:$0x3] %vm418_vm1, %v12090_v1  ;;  %441 = vst.msk [vmem:[#allocation3 + $0x18] sm:$0x3] %vm418_vm1, %v12090_v1  ;;  %10100 = vrot.lane.b32.xlu0 %v10099_v20, %s16106_s16  ;;  %v12332_v30 = vld [vmem:[%s12284_s30 + $0x18] sm:$0xff]  ;;  %v470_v31 = vld [vmem:[%s12279_s19 + $0x20] sm:$0xff]  ;;  %9304 = vmatpush3.msra.mxu0 %v1254_v15 }
  0x29   : > { %442 = vst.msk [vmem:[#allocation3 + $0x20] sm:$0xff] %vm416_vm0, %v12090_v1  ;;  %444 = vst.msk [vmem:[#allocation3 + $0x30] sm:$0xff] %vm416_vm0, %v12090_v1  ;;  %v12336_v32 = vld [vmem:[%s12284_s30 + $0x20] sm:$0xff]  ;;  %v471_v33 = vld [vmem:[%s12279_s19 + $0x28] sm:$0xff]  ;;  %9305 = vmatprep.subr.mxu0 %v1269_v19  ;;  %s16133_s1 = smov 16  }
  0x2a   : > { %443 = vst.msk [vmem:[#allocation3 + $0x28] sm:$0x3] %vm418_vm1, %v12090_v1  ;;  %445 = vst.msk [vmem:[#allocation3 + $0x38] sm:$0x3] %vm418_vm1, %v12090_v1  ;;  %v12345_v34 = vld [vmem:[%s12284_s30 + $0x28] sm:$0xff]  ;;  %v472_v35 = vld [vmem:[%s12279_s19 + $0x30] sm:$0xff]  ;;  %9306 = vmatpush3.msra.mxu0 %v1253_v23 }
  0x2b   : > { %446 = vst.msk [vmem:[#allocation3 + $0x40] sm:$0xff] %vm416_vm0, %v12090_v1  ;;  %448 = vst.msk [vmem:[#allocation3 + $0x50] sm:$0xff] %vm416_vm0, %v12090_v1  ;;  %v12353_v36 = vld [vmem:[%s12284_s30 + $0x30] sm:$0xff]  ;;  %v473_v37 = vld [vmem:[%s12279_s19 + $0x38] sm:$0xff]  ;;  %9307 = vmatprep.subr.mxu0 %v1268_v27 }
  0x2c   : > { %447 = vst.msk [vmem:[#allocation3 + $0x48] sm:$0x3] %vm418_vm1, %v12090_v1  ;;  %449 = vst.msk [vmem:[#allocation3 + $0x58] sm:$0x3] %vm418_vm1, %v12090_v1  ;;  %v12357_v38 = vld [vmem:[%s12284_s30 + $0x38] sm:$0xff]  ;;  %s16096_s30 = smov 48  }
  0x2d   : > { %450 = vst.msk [vmem:[#allocation3 + $0x60] sm:$0xff] %vm416_vm0, %v12090_v1  ;;  %452 = vst.msk [vmem:[#allocation3 + $0x70] sm:$0xff] %vm416_vm0, %v12090_v1  ;;  %v9143_v58 = vld [vmem:[%s12279_s19 + $0x40] sm:$0xff]  ;;  %v1267_v60 = vld [vmem:[%s16081_s2 + $0xb8] sm:$0xff] }
  0x2e   : > { %451 = vst.msk [vmem:[#allocation3 + $0x68] sm:$0x3] %vm418_vm1, %v12090_v1  ;;  %453 = vst.msk [vmem:[#allocation3 + $0x78] sm:$0x3] %vm418_vm1, %v12090_v1  ;;  %v1252_v59 = vld [vmem:[%s16081_s2 + $0x40] sm:$0xff]  ;;  %v1251_v61 = vld [vmem:[%s16081_s2 + $0x38] sm:$0xff] }
  0x2f   : > { %454 = vst.msk [vmem:[#allocation3 + $0x80] sm:$0xff] %vm416_vm0, %v12090_v1  ;;  %456 = vst.msk [vmem:[#allocation3 + $0x90] sm:$0xff] %vm416_vm0, %v12090_v1  ;;  %v573_v21 = vld [vmem:[#allocation3 + $0x1] sm:$0xff]  ;;  %9308 = vmatpush3.msra.mxu0 %v1252_v59  ;;  %v1266_v62 = vld [vmem:[%s16081_s2 + $0xb0] sm:$0xff] }
  0x30   : > { %455 = vst.msk [vmem:[#allocation3 + $0x88] sm:$0x3] %vm418_vm1, %v12090_v1  ;;  %457 = vst.msk [vmem:[#allocation3 + $0x98] sm:$0x3] %vm418_vm1, %v12090_v1  ;;  %v10104_v28 = vpack.i.bf16 %v508_v18, %v573_v21  ;;  %v581_v29 = vld [vmem:[#allocation3 + $0x2] sm:$0xff]  ;;  %9309 = vmatprep.subr.mxu0 %v1267_v60  ;;  %v1250_v63 = vld [vmem:[%s16081_s2 + $0x30] sm:$0xff] }
  0x31   : > { %475 = vst.msk [vmem:[#allocation2 + $0x11] sm:$0xff] %vm416_vm0, %v466_v12  ;;  %484 = vst.msk [vmem:[#allocation3 + $0x11] sm:$0xff] %vm416_vm0, %v12297_v13  ;;  %9310 = vmatpush3.msra.mxu0 %v1251_v61  ;;  %v1265_v0 = vld [vmem:[%s16081_s2 + $0xa8] sm:$0xff]  ;;  %v1264_v5 = vld [vmem:[%s16081_s2 + $0xa0] sm:$0xff] }
  0x32   : > { %476 = vst.msk [vmem:[#allocation2 + $0x21] sm:$0xff] %vm416_vm0, %v467_v14  ;;  %485 = vst.msk [vmem:[#allocation3 + $0x21] sm:$0xff] %vm416_vm0, %v12311_v22  ;;  %10105 = vrot.lane.b32.xlu0 %v10104_v28, %s16098_s22  ;;  %9311 = vmatprep.subr.mxu0 %v1266_v62  ;;  %v1249_v2 = vld [vmem:[%s16081_s2 + $0x28] sm:$0xff]  ;;  %v1248_v6 = vld [vmem:[%s16081_s2 + $0x20] sm:$0xff] }
  0x33   : > { %477 = vst.msk [vmem:[#allocation2 + $0x31] sm:$0xff] %vm416_vm0, %v468_v24  ;;  %486 = vst.msk [vmem:[#allocation3 + $0x31] sm:$0xff] %vm416_vm0, %v12320_v25  ;;  %9312 = vmatpush3.msra.mxu0 %v1250_v63  ;;  %v1263_v7 = vld [vmem:[%s16081_s2 + $0x98] sm:$0xff]  ;;  %v1262_v10 = vld [vmem:[%s16081_s2 + $0x90] sm:$0xff] }
  0x34   : > { %478 = vst.msk [vmem:[#allocation2 + $0x41] sm:$0xff] %vm416_vm0, %v469_v26  ;;  %487 = vst.msk [vmem:[#allocation3 + $0x41] sm:$0xff] %vm416_vm0, %v12332_v30  ;;  %9313 = vmatprep.subr.mxu0 %v1265_v0  ;;  %v1247_v9 = vld [vmem:[%s16081_s2 + $0x18] sm:$0xff]  ;;  %v1246_v11 = vld [vmem:[%s16081_s2 + $0x10] sm:$0xff] }
  0x35   : > { %479 = vst.msk [vmem:[#allocation2 + $0x51] sm:$0xff] %vm416_vm0, %v470_v31  ;;  %488 = vst.msk [vmem:[#allocation3 + $0x51] sm:$0xff] %vm416_vm0, %v12336_v32  ;;  %9314 = vmatpush3.msra.mxu0 %v1249_v2  ;;  %v1261_v12 = vld [vmem:[%s16081_s2 + $0x88] sm:$0xff]  ;;  %v1260_v17 = vld [vmem:[%s16081_s2 + $0x80] sm:$0xff] }
  0x36   : > { %480 = vst.msk [vmem:[#allocation2 + $0x61] sm:$0xff] %vm416_vm0, %v471_v33  ;;  %489 = vst.msk [vmem:[#allocation3 + $0x61] sm:$0xff] %vm416_vm0, %v12345_v34  ;;  %9315 = vmatprep.subr.mxu0 %v1264_v5  ;;  %v1245_v14 = vld [vmem:[%s16081_s2 + $0x8] sm:$0xff]  ;;  %v1244_v18 = vld [vmem:[%s16081_s2] sm:$0xff] }
  0x37   : > { %481 = vst.msk [vmem:[#allocation2 + $0x71] sm:$0xff] %vm416_vm0, %v472_v35  ;;  %490 = vst.msk [vmem:[#allocation3 + $0x71] sm:$0xff] %vm416_vm0, %v12353_v36  ;;  %9316 = vmatpush3.msra.mxu0 %v1248_v6  ;;  %v12509_v63 = vld [vmem:[%s16081_s2 + $0x118] sm:$0xff] }
  0x38   : > { %482 = vst.msk [vmem:[#allocation2 + $0x81] sm:$0xff] %vm416_vm0, %v473_v37  ;;  %491 = vst.msk [vmem:[#allocation3 + $0x81] sm:$0xff] %vm416_vm0, %v12357_v38  ;;  %v12365_v39 = vld [vmem:[#allocation2 + $0x10] sm:$0xff]  ;;  %9317 = vmatprep.subr.mxu0 %v1263_v7 }
  0x39   : > { %v501_v40 = vld [vmem:[#allocation2 + $0x11] sm:$0xff]  ;;  %v10109_v42 = vpack.i.bf16 %v12365_v39, %v581_v29  ;;  %v12370_v47 = vld [vmem:[#allocation2 + $0x20] sm:$0xff]  ;;  %9318 = vmatpush3.msra.mxu0 %v1247_v9 }
  0x3a   : > { %v566_v41 = vld [vmem:[#allocation3 + $0x10] sm:$0xff]  ;;  %v525_v50 = vld [vmem:[#allocation2 + $0x21] sm:$0xff]  ;;  %9319 = vmatprep.subr.mxu0 %v1262_v10 }
  0x3b   : > { %v10119_v43 = vpack.i.bf16 %v501_v40, %v566_v41  ;;  %v509_v44 = vld [vmem:[#allocation2 + $0x12] sm:$0xff]  ;;  %10110 = vrot.lane.b32.xlu1 %v10109_v42, %s16096_s30  ;;  %v590_v51 = vld [vmem:[#allocation3 + $0x20] sm:$0xff]  ;;  %9320 = vmatpush3.msra.mxu0 %v1246_v11 }
  0x3c   : > { %v574_v45 = vld [vmem:[#allocation3 + $0x11] sm:$0xff]  ;;  %v10149_v52 = vpack.i.bf16 %v525_v50, %v590_v51  ;;  %v12377_v53 = vld [vmem:[#allocation2 + $0x22] sm:$0xff]  ;;  %2603 = vst.msk [vmem:[#allocation2 + $0x11] sm:$0xff] %vm416_vm0, %v9143_v58  ;;  %9321 = vmatprep.subr.mxu0 %v1261_v12 }
  0x3d   : > { %10120 = vrot.lane.b32.xlu0 %v10119_v43, %s16106_s16  ;;  %v10129_v46 = vpack.i.bf16 %v509_v44, %v574_v45  ;;  %v582_v48 = vld [vmem:[#allocation3 + $0x12] sm:$0xff]  ;;  %v598_v54 = vld [vmem:[#allocation3 + $0x21] sm:$0xff]  ;;  %9322 = vmatpush3.msra.mxu0 %v1245_v14 }
  0x3e   : > { %v10139_v49 = vpack.i.bf16 %v12370_v47, %v582_v48  ;;  %v12380_v55 = vld [vmem:[#allocation2 + $0x30] sm:$0xff]  ;;  %v10159_v56 = vpack.i.bf16 %v12377_v53, %v598_v54  ;;  %v12384_v57 = vld [vmem:[#allocation3 + $0x22] sm:$0xff]  ;;  %9323 = vmatprep.subr.mxu0 %v1260_v17 }
  0x3f   : > { %10115 = vrot.lane.b32.xlu1 %v10119_v43, %s16094_s14  ;;  %v10169_v1 = vpack.i.bf16 %v12380_v55, %v12384_v57  ;;  %v550_v3 = vld [vmem:[#allocation2 + $0x31] sm:$0xff]  ;;  %v12452_v20 = vld [vmem:[#allocation2 + $0x40] sm:$0xff]  ;;  %9324 = vmatpush3.msra.mxu0 %v1244_v18 }
  0x40   : > { %v615_v4 = vld [vmem:[#allocation3 + $0x30] sm:$0xff]  ;;  %v527_v24 = vld [vmem:[#allocation2 + $0x41] sm:$0xff]  ;;  %9837 = vmatprep.subr.mxu0 %v12509_v63 }
  0x41   : > { %10130 = vrot.lane.b32.xlu0 %v10129_v46, %s16098_s22  ;;  %v10179_v8 = vpack.i.bf16 %v550_v3, %v615_v4  ;;  %v12441_v15 = vld [vmem:[#allocation2 + $0x32] sm:$0xff]  ;;  %v592_v26 = vld [vmem:[#allocation3 + $0x40] sm:$0xff] }
  0x42   : > { %v576_v16 = vld [vmem:[#allocation3 + $0x31] sm:$0xff]  ;;  %v10219_v27 = vpack.i.bf16 %v527_v24, %v592_v26  ;;  %v12462_v28 = vld [vmem:[#allocation2 + $0x42] sm:$0xff] }
  0x43   : > { %10125 = vrot.lane.b32.xlu1 %v10129_v46, %s16102_s23  ;;  %v10199_v19 = vpack.i.bf16 %v12441_v15, %v576_v16  ;;  %v12454_v21 = vld [vmem:[#allocation3 + $0x32] sm:$0xff]  ;;  %v600_v29 = vld [vmem:[#allocation3 + $0x41] sm:$0xff] }
  0x44   : > { %v10209_v23 = vpack.i.bf16 %v12452_v20, %v12454_v21  ;;  %v10229_v31 = vpack.i.bf16 %v12462_v28, %v600_v29  ;;  %v12467_v33 = vld [vmem:[#allocation2 + $0x50] sm:$0xff]  ;;  %v12469_v35 = vld [vmem:[#allocation3 + $0x42] sm:$0xff] }
  0x45   : > { %10140 = vrot.lane.b32.xlu0 %v10139_v49, %s16096_s30  ;;  %s16131_s30 = smov 80   ;;  %v10239_v37 = vpack.i.bf16 %v12467_v33, %v12469_v35  ;;  %v552_v40 = vld [vmem:[#allocation2 + $0x51] sm:$0xff]  ;;  %v12484_v46 = vld [vmem:[#allocation2 + $0x60] sm:$0xff] }
  0x46   : > { %v617_v41 = vld [vmem:[#allocation3 + $0x50] sm:$0xff]  ;;  %v531_v50 = vld [vmem:[#allocation2 + $0x81] sm:$0xff] }
  0x47   : > { %10135 = vrot.lane.b32.xlu1 %v10139_v49, %s16100_s15  ;;  %v10249_v42 = vpack.i.bf16 %v552_v40, %v617_v41  ;;  %v12479_v43 = vld [vmem:[#allocation2 + $0x52] sm:$0xff]  ;;  %v523_v49 = vld [vmem:[#allocation2 + $0x80] sm:$0xff] }
  0x48   : > { %v578_v44 = vld [vmem:[#allocation3 + $0x51] sm:$0xff]  ;;  %v12489_v51 = vld [vmem:[#allocation2 + $0x82] sm:$0xff] }
  0x49   : > { %10150 = vrot.lane.b32.xlu0 %v10149_v52, %s16094_s14  ;;  %v10269_v45 = vpack.i.bf16 %v12479_v43, %v578_v44  ;;  %v12486_v48 = vld [vmem:[#allocation3 + $0x52] sm:$0xff]  ;;  %v594_v58 = vld [vmem:[#allocation3 + $0x60] sm:$0xff] }
  0x4a   : > { %v10279_v54 = vpack.i.bf16 %v12484_v46, %v12486_v48  ;;  %v12498_v60 = vld [vmem:[#allocation2 + $0x62] sm:$0xff]  ;;  %v12511_v0 = vld [vmem:[#allocation2 + $0x70] sm:$0xff] }
  0x4b   : > { %10145 = vrot.lane.b32.xlu1 %v10149_v52, %s16104_s24  ;;  %v12500_v61 = vld [vmem:[#allocation3 + $0x61] sm:$0xff]  ;;  %v554_v3 = vld [vmem:[#allocation2 + $0x71] sm:$0xff] }
  0x4c   : > { %v10299_v62 = vpack.i.bf16 %v12498_v60, %v12500_v61  ;;  %v619_v4 = vld [vmem:[#allocation3 + $0x70] sm:$0xff]  ;;  %v596_v11 = vld [vmem:[#allocation3 + $0x80] sm:$0xff] }
  0x4d   : > { %10160 = vrot.lane.b32.xlu0 %v10159_v56, %s16102_s23  ;;  %s16129_s23 = smov 48   ;;  %v10319_v5 = vpack.i.bf16 %v554_v3, %v619_v4  ;;  %v12521_v6 = vld [vmem:[#allocation2 + $0x72] sm:$0xff]  ;;  %v10359_v12 = vpack.i.bf16 %v531_v50, %v596_v11  ;;  %v612_v16 = vld [vmem:[#allocation3 + $0x82] sm:$0xff] }
  0x4e   : > { %v12523_v7 = vld [vmem:[#allocation3 + $0x71] sm:$0xff]  ;;  %v12535_v17 = vld [vmem:[#allocation3 + $0x81] sm:$0xff] }
  0x4f   : > { %10155 = vrot.lane.b32.xlu1 %v10149_v52, %s16106_s16  ;;  %v9150_v52 = vld [vmem:[%s12279_s19 + $0x78] sm:$0xff]  ;;  %v548_v14 = vld [vmem:[#allocation2 + $0x90] sm:$0xff]  ;;  %v492_v44 = vld [vmem:[#allocation2] sm:$0xff] }
  0x50   : > { %2610 = vst.msk [vmem:[#allocation2 + $0x81] sm:$0xff] %vm416_vm0, %v9150_v52  ;;  %v588_v9 = vld [vmem:[#allocation3 + $0x72] sm:$0xff]  ;;  %v10369_v18 = vpack.i.bf16 %v548_v14, %v612_v16 }
  0x51   : > { %10170 = vrot.lane.b32.xlu0 %v10169_v1, %s16127_s26  ;;  %v10349_v10 = vpack.i.bf16 %v523_v49, %v588_v9  ;;  %v621_v24 = vld [vmem:[#allocation3 + $0x90] sm:$0xff] }
  0x53   : > { %10165 = vrot.lane.b32.xlu1 %v10159_v56, %s16128_s13  ;;  %v529_v56 = vld [vmem:[#allocation2 + $0x61] sm:$0xff] }
  0x54   : > { %v10289_v59 = vpack.i.bf16 %v529_v56, %v594_v58 }
  0x55   : > { %10180 = vrot.lane.b32.xlu0 %v10179_v8, %s16104_s24 }
  0x57   : > { %10175 = vrot.lane.b32.xlu1 %v10169_v1, %s16129_s23  ;;  %v610_v1 = vld [vmem:[#allocation3 + $0x62] sm:$0xff] }
  0x58   : > { %v10309_v2 = vpack.i.bf16 %v12511_v0, %v610_v1 }
  0x59   : > { %10190 = vrot.lane.b32.xlu0 %v10179_v8, %s16106_s16 }
  0x5b   : > { %10185 = vrot.lane.b32.xlu1 %v10179_v8, %s16130_s25  ;;  %v10339_v8 = vpack.i.bf16 %v12521_v6, %v12523_v7 }
  0x5d   : > { %10200 = vrot.lane.b32.xlu0 %v10199_v19, %s16128_s13 }
  0x5f   : > { %10195 = vrot.lane.b32.xlu1 %v10199_v19, %s16131_s30  ;;  %v10364_v19 = vpack.i.bf16 %v12489_v51, %v12535_v17 }
  0x61   : > { %10210 = vrot.lane.b32.xlu0 %v10209_v23, %s16129_s23 }
  0x63   : > { %10205 = vrot.lane.b32.xlu1 %v10209_v23, %s16127_s26  ;;  %v556_v23 = vld [vmem:[#allocation2 + $0x91] sm:$0xff] }
  0x64   : > { %v10374_v26 = vpack.i.bf16 %v556_v23, %v621_v24 }
  0x65   : > { %10220 = vrot.lane.b32.xlu0 %v10219_v27, %s16130_s25 }
  0x67   : > { %10215 = vrot.lane.b32.xlu1 %v10219_v27, %s16104_s24 }
  0x69   : > { %10230 = vrot.lane.b32.xlu0 %v10229_v31, %s16131_s30 }
  0x6b   : > { %10225 = vrot.lane.b32.xlu1 %v10219_v27, %s16106_s16 }
  0x6d   : > { %10240 = vrot.lane.b32.xlu0 %v10239_v37, %s16127_s26 }
  0x6f   : > { %10235 = vrot.lane.b32.xlu1 %v10229_v31, %s16128_s13 }
  0x71   : > { %10250 = vrot.lane.b32.xlu0 %v10249_v42, %s16104_s24 }
  0x73   : > { %10245 = vrot.lane.b32.xlu1 %v10239_v37, %s16129_s23 }
  0x75   : > { %10260 = vrot.lane.b32.xlu0 %v10249_v42, %s16106_s16 }
  0x77   : > { %10255 = vrot.lane.b32.xlu1 %v10249_v42, %s16130_s25 }
  0x79   : > { %10270 = vrot.lane.b32.xlu0 %v10269_v45, %s16128_s13 }
  0x7b   : > { %10265 = vrot.lane.b32.xlu1 %v10269_v45, %s16131_s30 }
  0x7d   : > { %10280 = vrot.lane.b32.xlu0 %v10279_v54, %s16129_s23 }
  0x7f   : > { %10275 = vrot.lane.b32.xlu1 %v10279_v54, %s16127_s26 }
  0x81   : > { %10290 = vrot.lane.b32.xlu0 %v10289_v59, %s16130_s25 }
  0x83   : > { %10285 = vrot.lane.b32.xlu1 %v10289_v59, %s16104_s24 }
  0x85   : > { %10300 = vrot.lane.b32.xlu0 %v10299_v62, %s16131_s30 }
  0x87   : > { %10295 = vrot.lane.b32.xlu1 %v10289_v59, %s16106_s16 }
  0x89   : > { %10310 = vrot.lane.b32.xlu0 %v10309_v2, %s16127_s26 }
  0x8b   : > { %10305 = vrot.lane.b32.xlu1 %v10299_v62, %s16128_s13 }
  0x8d   : > { %10320 = vrot.lane.b32.xlu0 %v10319_v5, %s16104_s24 }
  0x8f   : > { %10315 = vrot.lane.b32.xlu1 %v10309_v2, %s16129_s23 }
  0x91   : > { %10330 = vrot.lane.b32.xlu0 %v10319_v5, %s16106_s16 }
  0x93   : > { %10325 = vrot.lane.b32.xlu1 %v10319_v5, %s16130_s25 }
  0x95   : > { %10340 = vrot.lane.b32.xlu0 %v10339_v8, %s16128_s13 }
  0x97   : > { %10335 = vrot.lane.b32.xlu1 %v10339_v8, %s16131_s30 }
  0x99   : > { %10350 = vrot.lane.b32.xlu0 %v10349_v10, %s16129_s23 }
  0x9a   : > { %v10101_v27 = vpop.permute.xlu0 %10100 }
  0x9b   : > { %10345 = vrot.lane.b32.xlu1 %v10349_v10, %s16127_s26  ;;  %v10103_v40 = vunpack.i.h.bf16 %v10101_v27  ;;  %v10102_v41 = vunpack.i.l.bf16 %v10101_v27 }
  0x9d   : > { %10360 = vrot.lane.b32.xlu0 %v10359_v12, %s16130_s25  ;;  %v1086_v50 = vsel %vm416_vm0, %v492_v44, %v10103_v40  ;;  %v1148_v52 = vsel %vm416_vm0, %v12377_v53, %v10102_v41 }
  0x9f   : > { %10355 = vrot.lane.b32.xlu1 %v10359_v12, %s16104_s24 }
  0xa1   : > { %10370 = vrot.lane.b32.xlu0 %v10369_v18, %s16127_s26 }
  0xa3   : > { %10365 = vrot.lane.b32.xlu1 %v10364_v19, %s16131_s30 }
  0xa4   : > { %v10106_v29 = vpop.permute.xlu0 %10105 }
  0xa5   : > { %1212 = vrot.lane.b32.xlu0 %v12384_v57, %s16106_s16  ;;  %v10108_v45 = vunpack.i.h.bf16 %v10106_v29  ;;  %v10107_v49 = vunpack.i.l.bf16 %v10106_v29 }
  0xa7   : > { %10375 = vrot.lane.b32.xlu1 %v10374_v26, %s16104_s24  ;;  %v1095_v58 = vsel %vm1094_vm2, %v1086_v50, %v10108_v45  ;;  %v1156_v59 = vsel %vm1094_vm2, %v1148_v52, %v10107_v49 }
  0xa9   : > { %1216 = vrot.lane.b32.xlu0 %v12469_v35, %s16106_s16  ;;  %v637_v35 = vld [vmem:[#allocation3 + $0x92] sm:$0xff] }
  0xab   : > { %1214 = vrot.lane.b32.xlu1 %v12454_v21, %s16106_s16 }
  0xad   : > { %1220 = vrot.lane.b32.xlu0 %v610_v1, %s16106_s16  ;;  %v10111_v31 = vpop.permute.xlu1 %10110 }
  0xae   : > { %v10113_v54 = vunpack.i.h.bf16 %v10111_v31  ;;  %v10112_v56 = vunpack.i.l.bf16 %v10111_v31 }
  0xaf   : > { %v10121_v37 = vpop.permute.xlu0 %10120  ;;  %1218 = vrot.lane.b32.xlu1 %v12486_v48, %s16106_s16 }
  0xb0   : > { %v10123_v53 = vunpack.i.h.bf16 %v10121_v37  ;;  %v10122_v8 = vunpack.i.l.bf16 %v10121_v37  ;;  %v1104_v11 = vsel %vm1103_vm3, %v1095_v58, %v10113_v54  ;;  %v1164_v12 = vsel %vm1103_vm3, %v1156_v59, %v10112_v56 }
  0xb1   : > { %1224 = vrot.lane.b32.xlu0 %v612_v16, %s16106_s16  ;;  %v10116_v57 = vpop.permute.xlu1 %10115 }
  0xb2   : > { %v10118_v62 = vunpack.i.h.bf16 %v10116_v57  ;;  %v10117_v1 = vunpack.i.l.bf16 %v10116_v57  ;;  %v1087_v37 = vsel %vm416_vm0, %v12365_v39, %v10123_v53  ;;  %v1149_v57 = vsel %vm416_vm0, %v12441_v15, %v10122_v8  ;;  %v1278_v39 = vld [vmem:[%s16081_s2 + $0x110] sm:$0xff] }
  0xb3   : > { %v10131_v42 = vpop.permute.xlu0 %10130  ;;  %1222 = vrot.lane.b32.xlu1 %v588_v9, %s16106_s16 }
  0xb4   : > { %v1113_v14 = vsel %vm1112_vm4, %v1104_v11, %v10118_v62  ;;  %v10133_v16 = vunpack.i.h.bf16 %v10131_v42  ;;  %v10132_v18 = vunpack.i.l.bf16 %v10131_v42  ;;  %v1172_v23 = vsel %vm1112_vm4, %v1164_v12, %v10117_v1 }
  0xb5   : > { %v10126_v21 = vpop.permute.xlu1 %10125 }
  0xb6   : > { %v10128_v3 = vunpack.i.h.bf16 %v10126_v21  ;;  %v10127_v4 = vunpack.i.l.bf16 %v10126_v21  ;;  %v1096_v21 = vsel %vm1094_vm2, %v1087_v37, %v10133_v16  ;;  %v1157_v15 = vsel %vm1094_vm2, %v1149_v57, %v10132_v18 }
  0xb7   : > { %v10141_v48 = vpop.permute.xlu0 %10140  ;;  %1226 = vrot.lane.b32.xlu1 %v637_v35, %s16106_s16 }
  0xb8   : > { %v1180_v29 = vsel %vm1121_vm5, %v1172_v23, %v10127_v4  ;;  %v1122_v31 = vsel %vm1121_vm5, %v1113_v14, %v10128_v3  ;;  %v10143_v35 = vunpack.i.h.bf16 %v10141_v48  ;;  %v10142_v45 = vunpack.i.l.bf16 %v10141_v48  ;;  %v1277_v48 = vld [vmem:[%s16081_s2 + $0x108] sm:$0xff]  ;;  %v1276_v4 = vld [vmem:[%s16081_s2 + $0x100] sm:$0xff] }
  0xb9   : > { %v10136_v2 = vpop.permute.xlu1 %10135 }
  0xba   : > { %v10138_v9 = vunpack.i.h.bf16 %v10136_v2  ;;  %v10137_v10 = vunpack.i.l.bf16 %v10136_v2  ;;  %v1105_v1 = vsel %vm1103_vm3, %v1096_v21, %v10143_v35  ;;  %v1165_v2 = vsel %vm1103_vm3, %v1157_v15, %v10142_v45 }
  0xbb   : > { %v10151_v5 = vpop.permute.xlu0 %10150 }
  0xbc   : > { %v1188_v40 = vsel %vm1130_vm6, %v1180_v29, %v10137_v10  ;;  %v1131_v41 = vsel %vm1130_vm6, %v1122_v31, %v10138_v9  ;;  %v10153_v50 = vunpack.i.h.bf16 %v10151_v5  ;;  %v10152_v52 = vunpack.i.l.bf16 %v10151_v5 }
  0xbd   : > { %v10146_v19 = vpop.permute.xlu1 %10145 }
  0xbe   : > { %v10148_v24 = vunpack.i.h.bf16 %v10146_v19  ;;  %v10147_v26 = vunpack.i.l.bf16 %v10146_v19  ;;  %v1114_v5 = vsel %vm1112_vm4, %v1105_v1, %v10153_v50 }
  0xbf   : > { %v10161_v27 = vpop.permute.xlu0 %10160 }
  0xc0   : > { %v1196_v42 = vsel %vm1139_vm7, %v1188_v40, %v10147_v26  ;;  %v12574_v44 = vsel %vm1139_vm7, %v1131_v41, %v10148_v24  ;;  %v10163_v56 = vunpack.i.h.bf16 %v10161_v27  ;;  %v10162_v58 = vunpack.i.l.bf16 %v10161_v27 }
  0xc1   : > { %v10156_v49 = vpop.permute.xlu1 %10155  ;;  %1375 = vmatprep.mubr.f32.mxu0 %v1196_v42 }
  0xc2   : > { %1376 = vmatmul.mubr.f32.vlgmr.msra.gmra.mxu0 %v12574_v44  ;;  %v1123_v11 = vsel %vm1121_vm5, %v1114_v5, %v10163_v56  ;;  %v10158_v27 = vunpack.i.h.bf16 %v10156_v49  ;;  %v10157_v29 = vunpack.i.l.bf16 %v10156_v49 }
  0xc3   : > { %v10171_v54 = vpop.permute.xlu0 %10170  ;;  %9838 = vmatpush3.msra.mxu0 %v12509_v63  ;;  %v1173_v63 = vsel %vm1112_vm4, %v1165_v2, %v10152_v52 }
  0xc4   : > { %v10173_v59 = vunpack.i.h.bf16 %v10171_v54  ;;  %v10172_v62 = vunpack.i.l.bf16 %v10171_v54  ;;  %9839 = vmatprep.subr.mxu0 %v1278_v39  ;;  %v1181_v10 = vsel %vm1121_vm5, %v1173_v63, %v10162_v58  ;;  %v1088_v35 = vsel %vm416_vm0, %v12370_v47, %v10158_v27 }
  0xc5   : > { %v10166_v3 = vpop.permute.xlu1 %10165  ;;  %9840 = vmatpush3.msra.mxu0 %v1278_v39  ;;  %v1150_v45 = vsel %vm416_vm0, %v12462_v28, %v10157_v29 }
  0xc6   : > { %9841 = vmatprep.subr.mxu0 %v1277_v48  ;;  %v1189_v12 = vsel %vm1130_vm6, %v1181_v10, %v10172_v62  ;;  %v1132_v14 = vsel %vm1130_vm6, %v1123_v11, %v10173_v59  ;;  %v10168_v37 = vunpack.i.h.bf16 %v10166_v3  ;;  %v10167_v57 = vunpack.i.l.bf16 %v10166_v3 }
  0xc7   : > { %v10181_v53 = vpop.permute.xlu0 %10180  ;;  %9842 = vmatpush3.msra.mxu0 %v1277_v48 }
  0xc8   : > { %v10183_v8 = vunpack.i.h.bf16 %v10181_v53  ;;  %v10182_v9 = vunpack.i.l.bf16 %v10181_v53  ;;  %9843 = vmatprep.subr.mxu0 %v1276_v4  ;;  %v1097_v50 = vsel %vm1094_vm2, %v1088_v35, %v10168_v37  ;;  %v1158_v52 = vsel %vm1094_vm2, %v1150_v45, %v10167_v57 }
  0xc9   : > { %v10176_v16 = vpop.permute.xlu1 %10175  ;;  %9844 = vmatpush3.msra.mxu0 %v1276_v4 }
  0xca   : > { %v1197_v18 = vsel %vm1139_vm7, %v1189_v12, %v10182_v9  ;;  %v12599_v19 = vsel %vm1139_vm7, %v1132_v14, %v10183_v8  ;;  %v10178_v41 = vunpack.i.h.bf16 %v10176_v16  ;;  %v10177_v42 = vunpack.i.l.bf16 %v10176_v16 }
  0xcb   : > { %v10191_v23 = vpop.permute.xlu0 %10190  ;;  %1380 = vmatprep.mubr.f32.mxu0 %v1197_v18 }
  0xcc   : > { %1381 = vmatmul.mubr.f32.gmra.mxu0 %v12599_v19  ;;  %v10193_v58 = vunpack.i.h.bf16 %v10191_v23  ;;  %v10192_v48 = vunpack.i.l.bf16 %v10191_v23  ;;  %v1106_v1 = vsel %vm1103_vm3, %v1097_v50, %v10178_v41  ;;  %v1166_v47 = vsel %vm1103_vm3, %v1158_v52, %v10177_v42 }
  0xcd   : > { %v10186_v24 = vpop.permute.xlu1 %10185 }
  0xce   : > { %v10188_v39 = vunpack.i.h.bf16 %v10186_v24  ;;  %v10187_v21 = vunpack.i.l.bf16 %v10186_v24  ;;  %v1089_v11 = vsel %vm416_vm0, %v12380_v55, %v10193_v58  ;;  %v1151_v12 = vsel %vm416_vm0, %v12479_v43, %v10192_v48 }
  0xcf   : > { %v10201_v26 = vpop.permute.xlu0 %10200 }
  0xd0   : > { %v1115_v28 = vsel %vm1112_vm4, %v1106_v1, %v10188_v39  ;;  %v1174_v2 = vsel %vm1112_vm4, %v1166_v47, %v10187_v21  ;;  %v10203_v3 = vunpack.i.h.bf16 %v10201_v26  ;;  %v10202_v4 = vunpack.i.l.bf16 %v10201_v26 }
  0xd1   : > { %v10196_v31 = vpop.permute.xlu1 %10195 }
  0xd2   : > { %v10198_v49 = vunpack.i.h.bf16 %v10196_v31  ;;  %v10197_v54 = vunpack.i.l.bf16 %v10196_v31  ;;  %v1098_v29 = vsel %vm1094_vm2, %v1089_v11, %v10203_v3  ;;  %v1159_v55 = vsel %vm1094_vm2, %v1151_v12, %v10202_v4 }
  0xd3   : > { %v10211_v40 = vpop.permute.xlu0 %10210 }
  0xd4   : > { %v1182_v9 = vsel %vm1121_vm5, %v1174_v2, %v10197_v54  ;;  %v1124_v10 = vsel %vm1121_vm5, %v1115_v28, %v10198_v49  ;;  %v10213_v24 = vunpack.i.h.bf16 %v10211_v40  ;;  %v10212_v26 = vunpack.i.l.bf16 %v10211_v40 }
  0xd5   : > { %v10206_v15 = vpop.permute.xlu1 %10205 }
  0xd6   : > { %v10208_v59 = vunpack.i.h.bf16 %v10206_v15  ;;  %v10207_v62 = vunpack.i.l.bf16 %v10206_v15  ;;  %v1107_v45 = vsel %vm1103_vm3, %v1098_v29, %v10213_v24  ;;  %v1167_v39 = vsel %vm1103_vm3, %v1159_v55, %v10212_v26 }
  0xd7   : > { %v10221_v56 = vpop.permute.xlu0 %10220 }
  0xd8   : > { %v1190_v14 = vsel %vm1130_vm6, %v1182_v9, %v10207_v62  ;;  %v1133_v16 = vsel %vm1130_vm6, %v1124_v10, %v10208_v59  ;;  %v10223_v31 = vunpack.i.h.bf16 %v10221_v56  ;;  %v10222_v37 = vunpack.i.l.bf16 %v10221_v56 }
  0xd9   : > { %v10216_v5 = vpop.permute.xlu1 %10215 }
  0xda   : > { %v10218_v63 = vunpack.i.h.bf16 %v10216_v5  ;;  %v10217_v53 = vunpack.i.l.bf16 %v10216_v5  ;;  %v1116_v21 = vsel %vm1112_vm4, %v1107_v45, %v10223_v31  ;;  %v1175_v15 = vsel %vm1112_vm4, %v1167_v39, %v10222_v37 }
  0xdb   : > { %v10231_v8 = vpop.permute.xlu0 %10230 }
  0xdc   : > { %v1198_v18 = vsel %vm1139_vm7, %v1190_v14, %v10217_v53  ;;  %v12622_v23 = vsel %vm1139_vm7, %v1133_v16, %v10218_v63  ;;  %v10233_v57 = vunpack.i.h.bf16 %v10231_v8  ;;  %v10232_v41 = vunpack.i.l.bf16 %v10231_v8 }
  0xdd   : > { %v10226_v27 = vpop.permute.xlu1 %10225  ;;  %1385 = vmatprep.mubr.f32.mxu0 %v1198_v18 }
  0xde   : > { %1386 = vmatmul.mubr.f32.gmra.mxu0 %v12622_v23  ;;  %v1183_v54 = vsel %vm1121_vm5, %v1175_v15, %v10232_v41  ;;  %v1125_v56 = vsel %vm1121_vm5, %v1116_v21, %v10233_v57  ;;  %v10228_v3 = vunpack.i.h.bf16 %v10226_v27  ;;  %v10227_v4 = vunpack.i.l.bf16 %v10226_v27 }
  0xdf   : > { %v10241_v43 = vpop.permute.xlu0 %10240 }
  0xe0   : > { %v10243_v42 = vunpack.i.h.bf16 %v10241_v43  ;;  %v10242_v35 = vunpack.i.l.bf16 %v10241_v43  ;;  %v1090_v11 = vsel %vm416_vm0, %v12452_v20, %v10228_v3  ;;  %v1152_v12 = vsel %vm416_vm0, %v12498_v60, %v10227_v4 }
  0xe1   : > { %v10236_v40 = vpop.permute.xlu1 %10235 }
  0xe2   : > { %v1191_v58 = vsel %vm1130_vm6, %v1183_v54, %v10242_v35  ;;  %v1134_v48 = vsel %vm1130_vm6, %v1125_v56, %v10243_v42  ;;  %v10238_v63 = vunpack.i.h.bf16 %v10236_v40  ;;  %v10237_v53 = vunpack.i.l.bf16 %v10236_v40 }
  0xe3   : > { %v10251_v50 = vpop.permute.xlu0 %10250 }
  0xe4   : > { %v10253_v52 = vunpack.i.h.bf16 %v10251_v50  ;;  %v10252_v49 = vunpack.i.l.bf16 %v10251_v50  ;;  %v1099_v24 = vsel %vm1094_vm2, %v1090_v11, %v10238_v63  ;;  %v1160_v26 = vsel %vm1094_vm2, %v1152_v12, %v10237_v53 }
  0xe5   : > { %v10246_v59 = vpop.permute.xlu1 %10245 }
  0xe6   : > { %v1199_v62 = vsel %vm1139_vm7, %v1191_v58, %v10252_v49  ;;  %v12637_v1 = vsel %vm1139_vm7, %v1134_v48, %v10253_v52  ;;  %v10248_v9 = vunpack.i.h.bf16 %v10246_v59  ;;  %v10247_v10 = vunpack.i.l.bf16 %v10246_v59 }
  0xe7   : > { %v10261_v47 = vpop.permute.xlu0 %10260  ;;  %1390 = vmatprep.mubr.f32.mxu0 %v1199_v62 }
  0xe8   : > { %1391 = vmatmul.mubr.f32.gmra.mxu0 %v12637_v1  ;;  %v10263_v31 = vunpack.i.h.bf16 %v10261_v47  ;;  %v10262_v37 = vunpack.i.l.bf16 %v10261_v47  ;;  %v1108_v41 = vsel %vm1103_vm3, %v1099_v24, %v10248_v9  ;;  %v1168_v20 = vsel %vm1103_vm3, %v1160_v26, %v10247_v10 }
  0xe9   : > { %v10256_v28 = vpop.permute.xlu1 %10255 }
  0xea   : > { %v10258_v14 = vunpack.i.h.bf16 %v10256_v28  ;;  %v10257_v16 = vunpack.i.l.bf16 %v10256_v28  ;;  %v1091_v49 = vsel %vm416_vm0, %v12467_v33, %v10263_v31  ;;  %v1153_v54 = vsel %vm416_vm0, %v12521_v6, %v10262_v37 }
  0xeb   : > { %v10271_v2 = vpop.permute.xlu0 %10270 }
  0xec   : > { %v1117_v60 = vsel %vm1112_vm4, %v1108_v41, %v10258_v14  ;;  %v1176_v42 = vsel %vm1112_vm4, %v1168_v20, %v10257_v16  ;;  %v10273_v35 = vunpack.i.h.bf16 %v10271_v2  ;;  %v10272_v45 = vunpack.i.l.bf16 %v10271_v2 }
  0xed   : > { %v10266_v5 = vpop.permute.xlu1 %10265 }
  0xee   : > { %v10268_v27 = vunpack.i.h.bf16 %v10266_v5  ;;  %v10267_v29 = vunpack.i.l.bf16 %v10266_v5  ;;  %v1100_v2 = vsel %vm1094_vm2, %v1091_v49, %v10273_v35  ;;  %v1161_v33 = vsel %vm1094_vm2, %v1153_v54, %v10272_v45  ;;  %v564_v49 = vld [vmem:[#allocation2 + $0x92] sm:$0xff] }
  0xef   : > { %v10281_v8 = vpop.permute.xlu0 %10280 }
  0xf0   : > { %v1184_v50 = vsel %vm1121_vm5, %v1176_v42, %v10267_v29  ;;  %v1126_v52 = vsel %vm1121_vm5, %v1117_v60, %v10268_v27  ;;  %v10283_v62 = vunpack.i.h.bf16 %v10281_v8  ;;  %v10282_v47 = vunpack.i.l.bf16 %v10281_v8 }
  0xf1   : > { %v10276_v18 = vpop.permute.xlu1 %10275 }
  0xf2   : > { %v10278_v43 = vunpack.i.h.bf16 %v10276_v18  ;;  %v10277_v57 = vunpack.i.l.bf16 %v10276_v18  ;;  %v1109_v10 = vsel %vm1103_vm3, %v1100_v2, %v10283_v62  ;;  %v1169_v11 = vsel %vm1103_vm3, %v1161_v33, %v10282_v47 }
  0xf3   : > { %v10291_v55 = vpop.permute.xlu0 %10290 }
  0xf4   : > { %v1192_v56 = vsel %vm1130_vm6, %v1184_v50, %v10277_v57  ;;  %v1135_v58 = vsel %vm1130_vm6, %v1126_v52, %v10278_v43  ;;  %v10293_v3 = vunpack.i.h.bf16 %v10291_v55  ;;  %v10292_v4 = vunpack.i.l.bf16 %v10291_v55 }
  0xf5   : > { %v10286_v39 = vpop.permute.xlu1 %10285 }
  0xf6   : > { %v10288_v40 = vunpack.i.h.bf16 %v10286_v39  ;;  %v10287_v21 = vunpack.i.l.bf16 %v10286_v39  ;;  %v1118_v12 = vsel %vm1112_vm4, %v1109_v10, %v10293_v3  ;;  %v1177_v14 = vsel %vm1112_vm4, %v1169_v11, %v10292_v4 }
  0xf7   : > { %v10301_v15 = vpop.permute.xlu0 %10300 }
  0xf8   : > { %v1200_v48 = vsel %vm1139_vm7, %v1192_v56, %v10287_v21  ;;  %v12660_v59 = vsel %vm1139_vm7, %v1135_v58, %v10288_v40  ;;  %v10303_v5 = vunpack.i.h.bf16 %v10301_v15  ;;  %v10302_v63 = vunpack.i.l.bf16 %v10301_v15 }
  0xf9   : > { %v10296_v28 = vpop.permute.xlu1 %10295  ;;  %1395 = vmatprep.mubr.f32.mxu0 %v1200_v48 }
  0xfa   : > { %1396 = vmatmul.mubr.f32.gmra.mxu0 %v12660_v59  ;;  %v1185_v26 = vsel %vm1121_vm5, %v1177_v14, %v10302_v63  ;;  %v1127_v27 = vsel %vm1121_vm5, %v1118_v12, %v10303_v5  ;;  %v10298_v60 = vunpack.i.h.bf16 %v10296_v28  ;;  %v10297_v42 = vunpack.i.l.bf16 %v10296_v28 }
  0xfb   : > { %v10311_v6 = vpop.permute.xlu0 %10310 }
  0xfc   : > { %v10313_v53 = vunpack.i.h.bf16 %v10311_v6  ;;  %v10312_v9 = vunpack.i.l.bf16 %v10311_v6  ;;  %v1092_v54 = vsel %vm416_vm0, %v12484_v46, %v10298_v60  ;;  %v1154_v56 = vsel %vm416_vm0, %v12489_v51, %v10297_v42 }
  0xfd   : > { %v10306_v8 = vpop.permute.xlu1 %10305 }
  0xfe   : > { %v1193_v29 = vsel %vm1130_vm6, %v1185_v26, %v10312_v9  ;;  %v1136_v55 = vsel %vm1130_vm6, %v1127_v27, %v10313_v53  ;;  %v10308_v35 = vunpack.i.h.bf16 %v10306_v8  ;;  %v10307_v45 = vunpack.i.l.bf16 %v10306_v8 }
  0xff   : > { %v10321_v16 = vpop.permute.xlu0 %10320 }
 0x100   : > { %v10323_v18 = vunpack.i.h.bf16 %v10321_v16  ;;  %v10322_v24 = vunpack.i.l.bf16 %v10321_v16  ;;  %v1101_v62 = vsel %vm1094_vm2, %v1092_v54, %v10308_v35  ;;  %v1162_v47 = vsel %vm1094_vm2, %v1154_v56, %v10307_v45 }
 0x101   : > { %v10316_v31 = vpop.permute.xlu1 %10315 }
 0x102   : > { %v1201_v37 = vsel %vm1139_vm7, %v1193_v29, %v10322_v24  ;;  %v12675_v43 = vsel %vm1139_vm7, %v1136_v55, %v10323_v18  ;;  %v10318_v50 = vunpack.i.h.bf16 %v10316_v31  ;;  %v10317_v52 = vunpack.i.l.bf16 %v10316_v31 }
 0x103   : > { %v10331_v57 = vpop.permute.xlu0 %10330  ;;  %1400 = vmatprep.mubr.f32.mxu0 %v1201_v37 }
 0x104   : > { %1401 = vmatmul.mubr.f32.gmra.mxu0 %v12675_v43  ;;  %v10333_v40 = vunpack.i.h.bf16 %v10331_v57  ;;  %v10332_v21 = vunpack.i.l.bf16 %v10331_v57  ;;  %v1110_v63 = vsel %vm1103_vm3, %v1101_v62, %v10318_v50  ;;  %v1170_v53 = vsel %vm1103_vm3, %v1162_v47, %v10317_v52 }
 0x105   : > { %v10326_v41 = vpop.permute.xlu1 %10325 }
 0x106   : > { %v10328_v58 = vunpack.i.h.bf16 %v10326_v41  ;;  %v10327_v48 = vunpack.i.l.bf16 %v10326_v41  ;;  %v1093_v3 = vsel %vm416_vm0, %v12511_v0, %v10333_v40  ;;  %v1155_v4 = vsel %vm416_vm0, %v564_v49, %v10332_v21 }
 0x107   : > { %v10341_v20 = vpop.permute.xlu0 %10340 }
 0x108   : > { %v10343_v28 = vunpack.i.h.bf16 %v10341_v20  ;;  %v10342_v2 = vunpack.i.l.bf16 %v10341_v20  ;;  %v1119_v11 = vsel %vm1112_vm4, %v1110_v63, %v10328_v58  ;;  %v1178_v8 = vsel %vm1112_vm4, %v1170_v53, %v10327_v48  ;;  %v622_v48 = vld [vmem:[#allocation3 + $0x21] sm:$0xff] }
 0x109   : > { %v10336_v39 = vpop.permute.xlu1 %10335  ;;  %v624_v63 = vld [vmem:[#allocation3 + $0x41] sm:$0xff] }
 0x10a   : > { %v10338_v6 = vunpack.i.h.bf16 %v10336_v39  ;;  %v10337_v5 = vunpack.i.l.bf16 %v10336_v39  ;;  %v1102_v12 = vsel %vm1094_vm2, %v1093_v3, %v10343_v28  ;;  %v1163_v14 = vsel %vm1094_vm2, %v1155_v4, %v10342_v2 }
 0x10b   : > { %v10351_v15 = vpop.permute.xlu0 %10350 }
 0x10c   : > { %v10353_v0 = vunpack.i.h.bf16 %v10351_v15  ;;  %v10352_v16 = vunpack.i.l.bf16 %v10351_v15  ;;  %v1186_v27 = vsel %vm1121_vm5, %v1178_v8, %v10337_v5  ;;  %v1128_v55 = vsel %vm1121_vm5, %v1119_v11, %v10338_v6  ;;  %v623_v5 = vld [vmem:[#allocation3 + $0x31] sm:$0xff] }
 0x10d   : > { %v10346_v33 = vpop.permute.xlu1 %10345  ;;  %v625_v11 = vld [vmem:[#allocation3 + $0x51] sm:$0xff] }
 0x10e   : > { %v10348_v9 = vunpack.i.h.bf16 %v10346_v33  ;;  %v10347_v10 = vunpack.i.l.bf16 %v10346_v33  ;;  %v1111_v35 = vsel %vm1103_vm3, %v1102_v12, %v10353_v0  ;;  %v1171_v45 = vsel %vm1103_vm3, %v1163_v14, %v10352_v16 }
 0x10f   : > { %v10361_v46 = vpop.permute.xlu0 %10360 }
 0x110   : > { %v10363_v31 = vunpack.i.h.bf16 %v10361_v46  ;;  %v10362_v37 = vunpack.i.l.bf16 %v10361_v46  ;;  %v1194_v57 = vsel %vm1130_vm6, %v1186_v27, %v10347_v10  ;;  %v1137_v41 = vsel %vm1130_vm6, %v1128_v55, %v10348_v9 }
 0x111   : > { %v10356_v18 = vpop.permute.xlu1 %10355 }
 0x112   : > { %v10358_v24 = vunpack.i.h.bf16 %v10356_v18  ;;  %v10357_v26 = vunpack.i.l.bf16 %v10356_v18  ;;  %v1120_v15 = vsel %vm1112_vm4, %v1111_v35, %v10363_v31  ;;  %v1179_v50 = vsel %vm1112_vm4, %v1171_v45, %v10362_v37 }
 0x113   : > { %v10371_v29 = vpop.permute.xlu0 %10370 }
 0x114   : > { %v1202_v20 = vsel %vm1139_vm7, %v1194_v57, %v10357_v26  ;;  %v12699_v60 = vsel %vm1139_vm7, %v1137_v41, %v10358_v24  ;;  %v10373_v52 = vunpack.i.h.bf16 %v10371_v29  ;;  %v10372_v49 = vunpack.i.l.bf16 %v10371_v29  ;;  %v629_v26 = vld [vmem:[#allocation3 + $0x91] sm:$0xff] }
 0x115   : > { %v10366_v42 = vpop.permute.xlu1 %10365  ;;  %1405 = vmatprep.mubr.f32.mxu0 %v1202_v20 }
 0x116   : > { %v10368_v39 = vunpack.i.h.bf16 %v10366_v42  ;;  %v10367_v40 = vunpack.i.l.bf16 %v10366_v42  ;;  %1406 = vmatmul.mubr.f32.gmra.mxu0 %v12699_v60 }
 0x117   : > { %v1213_v21 = vpop.permute.xlu0 %1212 }
 0x118   : > { %v1187_v54 = vsel %vm1121_vm5, %v1179_v50, %v10367_v40  ;;  %v1129_v56 = vsel %vm1121_vm5, %v1120_v15, %v10368_v39  ;;  %v1236_v6 = vsel %vm416_vm0, %v622_v48, %v1213_v21 }
 0x119   : > { %v10376_v58 = vpop.permute.xlu1 %10375  ;;  %v1195_v2 = vsel %vm1130_vm6, %v1187_v54, %v10372_v49  ;;  %v1138_v33 = vsel %vm1130_vm6, %v1129_v56, %v10373_v52  ;;  %v9113_v49 = vld [vmem:[%s16082_s3] ss:$0 sm:$0xff] }
 0x11a   : > { %v10378_v62 = vunpack.i.h.bf16 %v10376_v58  ;;  %v10377_v47 = vunpack.i.l.bf16 %v10376_v58 }
 0x11b   : > { %v1217_v28 = vpop.permute.xlu0 %1216 }
 0x11c   : > { %v1203_v3 = vsel %vm1139_vm7, %v1195_v2, %v10377_v47  ;;  %v12712_v4 = vsel %vm1139_vm7, %v1138_v33, %v10378_v62  ;;  %v1238_v10 = vsel %vm416_vm0, %v624_v63, %v1217_v28 }
 0x11d   : > { %1410 = vmatprep.mubr.f32.mxu0 %v1203_v3  ;;  %v1215_v46 = vpop.permute.xlu1 %1214 }
 0x11e   : > { %1411 = vmatmul.mubr.f32.gmra.mxu0 %v12712_v4  ;;  %v1237_v53 = vsel %vm416_vm0, %v623_v5, %v1215_v46 }
 0x11f   : > { %9845 = vmatprep.mubr.msk.f32.mxu0 %vm1094_vm2, %v1236_v6  ;;  %v1221_v9 = vpop.permute.xlu0 %1220 }
 0x120   : > { %v1240_v14 = vsel %vm416_vm0, %v12500_v61, %v1221_v9 }
 0x121   : > { %v1219_v8 = vpop.permute.xlu1 %1218 }
 0x122   : > { %9846 = vmatmul.mubr.msk.f32.vlgmr.msra.gmra.mxu0 %vm1094_vm2, %v1237_v53  ;;  %v1239_v12 = vsel %vm416_vm0, %v625_v11, %v1219_v8 }
 0x123   : > { %9848 = vmatprep.mubr.msk.f32.mxu0 %vm1094_vm2, %v1238_v10  ;;  %v1225_v16 = vpop.permute.xlu0 %1224 }
 0x124   : > { %v1242_v24 = vsel %vm416_vm0, %v12535_v17, %v1225_v16 }
 0x125   : > { %v1223_v0 = vpop.permute.xlu1 %1222 }
 0x126   : > { %9849 = vmatmul.mubr.msk.f32.gmra.mxu0 %vm1094_vm2, %v1239_v12  ;;  %v1241_v18 = vsel %vm416_vm0, %v12523_v7, %v1223_v0 }
 0x127   : > { %9851 = vmatprep.mubr.msk.f32.mxu0 %vm1094_vm2, %v1240_v14 }
 0x129   : > { %v1227_v27 = vpop.permute.xlu1 %1226 }
 0x12a   : > { %9852 = vmatmul.mubr.msk.f32.gmra.mxu0 %vm1094_vm2, %v1241_v18  ;;  %v1243_v29 = vsel %vm416_vm0, %v629_v26, %v1227_v27 }
 0x12b   : > { %9854 = vmatprep.mubr.msk.f32.mxu0 %vm1094_vm2, %v1242_v24 }
 0x12e   : > { %9855 = vmatmul.mubr.msk.f32.gmra.mxu0 %vm1094_vm2, %v1243_v29 }
 0x182   : > { %v9325_v61 = vpop.f32.mrf.mxu0 }
 0x184   : > { %v9326_v55 = vpop.f32.mrf.mxu0 }
 0x185   : > { %v9327_v15 = vadd.f32 %v9326_v55, %v9325_v61 }
 0x187   : > { %v1378_v62 = vadd.f32 %v9327_v15, %v9113_v49 }
 0x18c   : > { %v9328_v31 = vpop.f32.mrf.mxu0 }
 0x18e   : > { %v9329_v37 = vpop.f32.mrf.mxu0 }
 0x18f   : > { %v9330_v50 = vadd.f32 %v9329_v37, %v9328_v31 }
 0x191   : > { %v1383_v48 = vadd.f32 %v9330_v50, %v9113_v49 }
 0x19e   : > { %v9331_v7 = vpop.f32.mrf.mxu0 }
 0x1a0   : > { %v9332_v57 = vpop.f32.mrf.mxu0 }
 0x1a1   : > { %v9333_v56 = vadd.f32 %v9332_v57, %v9331_v7 }
 0x1a3   : > { %v1388_v63 = vadd.f32 %v9333_v56, %v9113_v49 }
 0x1a8   : > { %v9334_v41 = vpop.f32.mrf.mxu0 }
 0x1aa   : > { %v9335_v20 = vpop.f32.mrf.mxu0 }
 0x1ab   : > { %v9336_v58 = vadd.f32 %v9335_v20, %v9334_v41 }
 0x1ad   : > { %v1393_v46 = vadd.f32 %v9336_v58, %v9113_v49 }
 0x1ba   : > { %v9337_v42 = vpop.f32.mrf.mxu0 }
 0x1bc   : > { %v9338_v17 = vpop.f32.mrf.mxu0 }
 0x1bd   : > { %v9339_v33 = vadd.f32 %v9338_v17, %v9337_v42 }
 0x1bf   : > { %v1398_v14 = vadd.f32 %v9339_v33, %v9113_v49 }
 0x1c4   : > { %v9340_v35 = vpop.f32.mrf.mxu0 }
 0x1c6   : > { %v9341_v45 = vpop.f32.mrf.mxu0 }
 0x1c7   : > { %v9342_v6 = vadd.f32 %v9341_v45, %v9340_v35 }
 0x1c9   : > { %v1403_v24 = vadd.f32 %v9342_v6, %v9113_v49 }
 0x1d6   : > { %v9343_v39 = vpop.f32.mrf.mxu0 }
 0x1d8   : > { %v9344_v40 = vpop.f32.mrf.mxu0 }
 0x1d9   : > { %v9345_v0 = vadd.f32 %v9344_v40, %v9343_v39 }
 0x1db   : > { %v1408_v41 = vadd.f32 %v9345_v0, %v9113_v49 }
 0x1de   : > { %v9346_v21 = vpop.f32.mrf.mxu0 }
 0x1e0   : > { %v9347_v52 = vpop.f32.mrf.mxu0 }
 0x1e1   : > { %v9348_v16 = vadd.f32 %v9347_v52, %v9346_v21 }
 0x1e2   : > { %v9847_v54 = vpop.f32.mrf.mxu0 }
 0x1e3   : > { %v1488_v28 = vadd.f32 %v9847_v54, %v1383_v48  ;;  %v1413_v57 = vadd.f32 %v9348_v16, %v9113_v49 }
 0x1e4   : > { %v1482_v47 = vpop.f32.mrf.mxu0 }
 0x1e5   : > { %v1483_v2 = vadd.f32 %v1482_v47, %v1378_v62  ;;  %v1524_v9 = vsel %vm1094_vm2, %v1488_v28, 0.0 }
 0x1e6   : > { %v9850_v3 = vpop.f32.mrf.mxu0 }
 0x1e7   : > { %v1523_v5 = vsel %vm1094_vm2, %v1483_v2, 0.0  ;;  %v1498_v10 = vadd.f32 %v9850_v3, %v1393_v46 }
 0x1e8   : > { %v1492_v53 = vpop.f32.mrf.mxu0  ;;  %v1525_v8 = vadd.f32 %v1524_v9, %v1523_v5 }
 0x1e9   : > { %v1493_v11 = vadd.f32 %v1492_v53, %v1388_v63  ;;  %v1528_v29 = vsel %vm1094_vm2, %v1498_v10, 0.0 }
 0x1ea   : > { %v9853_v12 = vpop.f32.mrf.mxu0 }
 0x1eb   : > { %v1526_v18 = vsel %vm1094_vm2, %v1493_v11, 0.0  ;;  %v1508_v61 = vadd.f32 %v9853_v12, %v1403_v24 }
 0x1ec   : > { %v1527_v26 = vadd.f32 %v1526_v18, %v1525_v8  ;;  %v1502_v27 = vpop.f32.mrf.mxu0 }
 0x1ed   : > { %v1503_v55 = vadd.f32 %v1502_v27, %v1398_v14  ;;  %v1532_v17 = vsel %vm1094_vm2, %v1508_v61, 0.0 }
 0x1ee   : > { %v1529_v31 = vadd.f32 %v1528_v29, %v1527_v26  ;;  %v9856_v37 = vpop.f32.mrf.mxu0 }
 0x1ef   : > { %v1530_v7 = vsel %vm1094_vm2, %v1503_v55, 0.0  ;;  %v1518_v35 = vadd.f32 %v9856_v37, %v1413_v57 }
 0x1f0   : > { %v1531_v20 = vadd.f32 %v1530_v7, %v1529_v31  ;;  %v1512_v42 = vpop.f32.mrf.mxu0 }
 0x1f1   : > { %v1513_v45 = vadd.f32 %v1512_v42, %v1408_v41  ;;  %v1536_v15 = vsel %vm1094_vm2, %v1518_v35, 0.0 }
 0x1f2   : > { %v1533_v39 = vadd.f32 %v1532_v17, %v1531_v20 }
 0x1f3   : > { %v1534_v40 = vsel %vm1094_vm2, %v1513_v45, 0.0 }
 0x1f4   : > { %v1535_v21 = vadd.f32 %v1534_v40, %v1533_v39 }
 0x1f6   : > { %v1537_v50 = vadd.f32 %v1536_v15, %v1535_v21 }
 0x1f8   : > { %1538 = vadd.xlane.f32.xlu0 %v1537_v50 }
 0x20e   : > { %1691 = vrot.lane.b32.xlu0 %v12297_v13, %s16106_s16 }
 0x212   : > { %1695 = vrot.lane.b32.xlu0 %v12320_v25, %s16106_s16 }
 0x216   : > { %1699 = vrot.lane.b32.xlu0 %v12336_v32, %s16106_s16 }
 0x21a   : > { %1703 = vrot.lane.b32.xlu0 %v12353_v36, %s16106_s16 }
 0x281   : > { %v1539_v52 = vpop.xlane.xlu0 %1538 }
 0x282   : > { %v1540_v49 = vrot.slane %v1539_v52, 4 }
 0x284   : > { %v1541_v54 = vadd.f32 %v1540_v49, %v1539_v52  ;;  %v9122_v49 = vld [vmem:[%s16083_s4] ss:$0 sm:$0xff] }
 0x286   : > { %v1542_v56 = vrot.slane %v1541_v54, 2 }
 0x288   : > { %v1543_v58 = vadd.f32 %v1542_v56, %v1541_v54 }
 0x28a   : > { %v1544_v48 = vrot.slane %v1543_v58, 1 }
 0x28c   : > { %v1545_v62 = vadd.f32 %v1544_v48, %v1543_v58 }
 0x28e   : > { %9997 = vpush %v1545_v62 }
 0x2bf   : > { %s9998_s14 = spop %9997 }
 0x2c0   : > { %s1549_s22 = smul.f32 0.00048828125, %s9998_s14 }
 0x2c2   : > { %v1550_v47 = vstv %s1549_s22 }
 0x2c3   : > { %v1551_v33 = vsub.f32 %v1483_v2, %v1550_v47  ;;  %v1552_v3 = vsub.f32 %v1488_v28, %v1550_v47  ;;  %v1553_v6 = vsub.f32 %v1493_v11, %v1550_v47  ;;  %v1554_v5 = vsub.f32 %v1498_v10, %v1550_v47 }
 0x2c4   : > { %v1555_v46 = vsub.f32 %v1503_v55, %v1550_v47  ;;  %v1556_v8 = vsub.f32 %v1508_v61, %v1550_v47  ;;  %v1557_v18 = vsub.f32 %v1513_v45, %v1550_v47  ;;  %v1558_v2 = vsub.f32 %v1518_v35, %v1550_v47  ;;  %v9123_v47 = vld [vmem:[%s16084_s5] ss:$0 sm:$0xff] }
 0x2c5   : > { %v1559_v63 = vmul.f32 %v1551_v33, %v1551_v33  ;;  %v1560_v53 = vmul.f32 %v1552_v3, %v1552_v3  ;;  %v1561_v9 = vmul.f32 %v1553_v6, %v1553_v6  ;;  %v1562_v12 = vmul.f32 %v1554_v5, %v1554_v5 }
 0x2c6   : > { %v1563_v24 = vmul.f32 %v1555_v46, %v1555_v46  ;;  %v1564_v28 = vmul.f32 %v1556_v8, %v1556_v8  ;;  %v1565_v29 = vmul.f32 %v1557_v18, %v1557_v18  ;;  %v1566_v31 = vmul.f32 %v1558_v2, %v1558_v2 }
 0x2c7   : > { %v1567_v14 = vsel %vm1094_vm2, %v1559_v63, 0.0  ;;  %v1568_v0 = vsel %vm1094_vm2, %v1560_v53, 0.0  ;;  %v1570_v26 = vsel %vm1094_vm2, %v1561_v9, 0.0  ;;  %v1572_v10 = vsel %vm1094_vm2, %v1562_v12, 0.0 }
 0x2c8   : > { %v1569_v16 = vadd.f32 %v1568_v0, %v1567_v14  ;;  %v1574_v55 = vsel %vm1094_vm2, %v1563_v24, 0.0  ;;  %v1576_v37 = vsel %vm1094_vm2, %v1564_v28, 0.0  ;;  %v1578_v57 = vsel %vm1094_vm2, %v1565_v29, 0.0 }
 0x2c9   : > { %v1580_v20 = vsel %vm1094_vm2, %v1566_v31, 0.0 }
 0x2ca   : > { %v1571_v27 = vadd.f32 %v1570_v26, %v1569_v16 }
 0x2cc   : > { %v1573_v11 = vadd.f32 %v1572_v10, %v1571_v27 }
 0x2ce   : > { %v1575_v61 = vadd.f32 %v1574_v55, %v1573_v11 }
 0x2d0   : > { %v1577_v7 = vadd.f32 %v1576_v37, %v1575_v61 }
 0x2d2   : > { %v1579_v41 = vadd.f32 %v1578_v57, %v1577_v7 }
 0x2d4   : > { %v1581_v42 = vadd.f32 %v1580_v20, %v1579_v41 }
 0x2d6   : > { %1582 = vadd.xlane.f32.xlu1 %v1581_v42 }
 0x2e7   : > { %1693 = vrot.lane.b32.xlu1 %v12311_v22, %s16106_s16 }
 0x2eb   : > { %1697 = vrot.lane.b32.xlu1 %v12332_v30, %s16106_s16 }
 0x2ef   : > { %1701 = vrot.lane.b32.xlu1 %v12345_v34, %s16106_s16 }
 0x2f3   : > { %1705 = vrot.lane.b32.xlu1 %v12357_v38, %s16106_s16 }
 0x35f   : > { %v1583_v17 = vpop.xlane.xlu1 %1582 }
 0x360   : > { %v1584_v35 = vrot.slane %v1583_v17, 4 }
 0x362   : > { %v1585_v45 = vadd.f32 %v1584_v35, %v1583_v17 }
 0x364   : > { %v1586_v39 = vrot.slane %v1585_v45, 2 }
 0x366   : > { %v1587_v40 = vadd.f32 %v1586_v39, %v1585_v45 }
 0x368   : > { %v1588_v21 = vrot.slane %v1587_v40, 1 }
 0x36a   : > { %v1589_v15 = vadd.f32 %v1588_v21, %v1587_v40 }
 0x36c   : > { %9999 = vpush %v1589_v15 }
 0x39d   : > { %s10000_s15 = spop %9999 }
 0x39e   : > { %s1593_s29 = smul.f32 0.00048828125, %s10000_s15 }
 0x3a0   : > { %s1594_s12 = sadd.f32 1e-05, %s1593_s29 }
 0x3a2   : > { %v1595_v50 = vstv %s1594_s12 }
 0x3a3   : > { %11759 = vrsqrt.f32 %v1595_v50 }
 0x3b0   : > { %v11760_v52 = vpop.eup %11759 }
 0x3b1   : > { %10001 = vpush %v11760_v52 }
 0x3e2   : > { %s10002_s14 = spop %10001 }
 0x3e3   : > { %v1598_v54 = vstv %s10002_s14 }
 0x3e4   : > { %v1599_v56 = vmul.f32 %v1598_v54, %v1551_v33  ;;  %v1600_v58 = vmul.f32 %v1598_v54, %v1552_v3  ;;  %v1601_v48 = vmul.f32 %v1598_v54, %v1553_v6  ;;  %v1602_v62 = vmul.f32 %v1598_v54, %v1554_v5 }
 0x3e5   : > { %v1603_v63 = vmul.f32 %v1598_v54, %v1555_v46  ;;  %v1604_v53 = vmul.f32 %v1598_v54, %v1556_v8  ;;  %v1605_v9 = vmul.f32 %v1598_v54, %v1557_v18  ;;  %v1606_v12 = vmul.f32 %v1598_v54, %v1558_v2 }
 0x3e6   : > { %v1613_v14 = vmul.f32 %v9122_v49, %v1599_v56  ;;  %v1614_v0 = vmul.f32 %v9122_v49, %v1600_v58  ;;  %v1615_v16 = vmul.f32 %v9122_v49, %v1601_v48  ;;  %v1616_v24 = vmul.f32 %v9122_v49, %v1602_v62  ;;  %v1692_v56 = vpop.permute.xlu0 %1691  ;;  %v1694_v48 = vpop.permute.xlu1 %1693 }
 0x3e7   : > { %v1617_v26 = vmul.f32 %v9122_v49, %v1603_v63  ;;  %v1618_v27 = vmul.f32 %v9122_v49, %v1604_v53  ;;  %v1619_v28 = vmul.f32 %v9122_v49, %v1605_v9  ;;  %v1620_v10 = vmul.f32 %v9122_v49, %v1606_v12 }
 0x3e8   : > { %v1627_v33 = vadd.f32 %v9123_v47, %v1613_v14  ;;  %v1628_v3 = vadd.f32 %v9123_v47, %v1614_v0  ;;  %v1629_v6 = vadd.f32 %v9123_v47, %v1615_v16  ;;  %v1630_v5 = vadd.f32 %v9123_v47, %v1616_v24 }
 0x3e9   : > { %v1631_v11 = vadd.f32 %v9123_v47, %v1617_v26  ;;  %v1632_v29 = vadd.f32 %v9123_v47, %v1618_v27  ;;  %v1633_v55 = vadd.f32 %v9123_v47, %v1619_v28  ;;  %v1634_v18 = vadd.f32 %v9123_v47, %v1620_v10 }
 0x3ea   : > { %v9124_v61 = vmul.f32 -1.442695, %v1627_v33  ;;  %v9125_v46 = vmul.f32 -1.442695, %v1628_v3  ;;  %v9126_v8 = vmul.f32 -1.442695, %v1629_v6  ;;  %v1696_v47 = vpop.permute.xlu0 %1695  ;;  %v1698_v63 = vpop.permute.xlu1 %1697 }
 0x3eb   : > { %v9127_v2 = vmul.f32 -1.442695, %v1630_v5  ;;  %v9128_v31 = vmul.f32 -1.442695, %v1631_v11  ;;  %v9129_v37 = vmul.f32 -1.442695, %v1632_v29 }
 0x3ec   : > { %11761 = vpow2.f32 %v9124_v61  ;;  %v9130_v7 = vmul.f32 -1.442695, %v1633_v55  ;;  %v9131_v57 = vmul.f32 -1.442695, %v1634_v18  ;;  %v2170_v18 = vld [vmem:[%s16085_s6 + $0x78] sm:$0xff] }
 0x3ed   : > { %11763 = vpow2.f32 %v9125_v46 }
 0x3ee   : > { %11765 = vpow2.f32 %v9126_v8  ;;  %v1700_v24 = vpop.permute.xlu0 %1699  ;;  %v1702_v27 = vpop.permute.xlu1 %1701  ;;  %v2186_v8 = vld [vmem:[%s16085_s6 + $0xf8] sm:$0xff] }
 0x3ef   : > { %11767 = vpow2.f32 %v9127_v2  ;;  %v2185_v2 = vld [vmem:[%s16085_s6 + $0xf0] sm:$0xff]  ;;  %9361 = vmatprep.subr.mxu1 %v2186_v8 }
 0x3f0   : > { %11769 = vpow2.f32 %v9128_v31  ;;  %v2169_v31 = vld [vmem:[%s16085_s6 + $0x70] sm:$0xff]  ;;  %9362 = vmatpush3.msra.mxu1 %v2170_v18 }
 0x3f1   : > { %11771 = vpow2.f32 %v9129_v37  ;;  %v2184_v37 = vld [vmem:[%s16085_s6 + $0xe8] sm:$0xff]  ;;  %9363 = vmatprep.subr.mxu1 %v2185_v2  ;;  %v2173_v8 = vld [vmem:[%s16085_s6 + $0x90] sm:$0xff] }
 0x3f2   : > { %11773 = vpow2.f32 %v9130_v7  ;;  %v1704_v11 = vpop.permute.xlu0 %1703  ;;  %v1706_v55 = vpop.permute.xlu1 %1705  ;;  %v2168_v7 = vld [vmem:[%s16085_s6 + $0x68] sm:$0xff]  ;;  %9364 = vmatpush3.msra.mxu1 %v2169_v31  ;;  %v2157_v31 = vld [vmem:[%s16085_s6 + $0x10] sm:$0xff] }
 0x3f3   : > { %11775 = vpow2.f32 %v9131_v57  ;;  %v2183_v57 = vld [vmem:[%s16085_s6 + $0xe0] sm:$0xff]  ;;  %9365 = vmatprep.subr.mxu1 %v2184_v37 }
 0x3f4   : > { %9366 = vmatpush3.msra.mxu1 %v2168_v7 }
 0x3f5   : > { %9367 = vmatprep.subr.mxu1 %v2183_v57 }
 0x3f9   : > { %v11762_v41 = vpop.eup %11761 }
 0x3fa   : > { %v11764_v20 = vpop.eup %11763  ;;  %v1659_v42 = vadd.f32 1.0, %v11762_v41  ;;  %v2167_v41 = vld [vmem:[%s16085_s6 + $0x60] sm:$0xff] }
 0x3fb   : > { %v11766_v17 = vpop.eup %11765  ;;  %v1660_v35 = vadd.f32 1.0, %v11764_v20  ;;  %v2182_v20 = vld [vmem:[%s16085_s6 + $0xd8] sm:$0xff]  ;;  %9368 = vmatpush3.msra.mxu1 %v2167_v41 }
 0x3fc   : > { %v11768_v45 = vpop.eup %11767  ;;  %v1661_v39 = vadd.f32 1.0, %v11766_v17  ;;  %11777 = vrcp.f32 %v1659_v42  ;;  %v2166_v42 = vld [vmem:[%s16085_s6 + $0x58] sm:$0xff]  ;;  %v2181_v17 = vld [vmem:[%s16085_s6 + $0xd0] sm:$0xff]  ;;  %9369 = vmatprep.subr.mxu1 %v2182_v20 }
 0x3fd   : > { %v11770_v40 = vpop.eup %11769  ;;  %v1662_v21 = vadd.f32 1.0, %v11768_v45  ;;  %11779 = vrcp.f32 %v1660_v35  ;;  %v2165_v35 = vld [vmem:[%s16085_s6 + $0x50] sm:$0xff]  ;;  %9370 = vmatpush3.msra.mxu1 %v2166_v42  ;;  %v2180_v45 = vld [vmem:[%s16085_s6 + $0xc8] sm:$0xff] }
 0x3fe   : > { %v11772_v15 = vpop.eup %11771  ;;  %v1663_v50 = vadd.f32 1.0, %v11770_v40  ;;  %11781 = vrcp.f32 %v1661_v39  ;;  %9371 = vmatprep.subr.mxu1 %v2181_v17  ;;  %v2164_v39 = vld [vmem:[%s16085_s6 + $0x48] sm:$0xff]  ;;  %v2179_v40 = vld [vmem:[%s16085_s6 + $0xc0] sm:$0xff] }
 0x3ff   : > { %v11774_v52 = vpop.eup %11773  ;;  %v1664_v49 = vadd.f32 1.0, %v11772_v15  ;;  %11783 = vrcp.f32 %v1662_v21  ;;  %9372 = vmatpush3.msra.mxu1 %v2165_v35  ;;  %v2163_v21 = vld [vmem:[%s16085_s6 + $0x40] sm:$0xff]  ;;  %v2172_v17 = vld [vmem:[%s16085_s6 + $0x88] sm:$0xff] }
 0x400   : > { %v11776_v54 = vpop.eup %11775  ;;  %v1665_v58 = vadd.f32 1.0, %v11774_v52  ;;  %11785 = vrcp.f32 %v1663_v50  ;;  %9373 = vmatprep.subr.mxu1 %v2180_v45  ;;  %v2178_v50 = vld [vmem:[%s16085_s6 + $0xb8] sm:$0xff]  ;;  %v2156_v35 = vld [vmem:[%s16085_s6 + $0x8] sm:$0xff]  ;;  %v2171_v45 = vld [vmem:[%s16085_s6 + $0x80] sm:$0xff] }
 0x401   : > { %v1666_v62 = vadd.f32 1.0, %v11776_v54  ;;  %11787 = vrcp.f32 %v1664_v49  ;;  %9374 = vmatpush3.msra.mxu1 %v2164_v39  ;;  %v2162_v52 = vld [vmem:[%s16085_s6 + $0x38] sm:$0xff]  ;;  %v2177_v49 = vld [vmem:[%s16085_s6 + $0xb0] sm:$0xff] }
 0x402   : > { %11789 = vrcp.f32 %v1665_v58  ;;  %9375 = vmatprep.subr.mxu1 %v2179_v40 }
 0x403   : > { %11791 = vrcp.f32 %v1666_v62  ;;  %9376 = vmatpush3.msra.mxu1 %v2163_v21  ;;  %v2160_v62 = vld [vmem:[%s16085_s6 + $0x28] sm:$0xff]  ;;  %v2155_v21 = vld [vmem:[%s16085_s6] sm:$0xff] }
 0x404   : > { %9377 = vmatprep.subr.mxu1 %v2178_v50 }
 0x405   : > { %9378 = vmatpush3.msra.mxu1 %v2162_v52 }
 0x406   : > { %9379 = vmatprep.subr.mxu1 %v2177_v49 }
 0x409   : > { %v12775_v53 = vpop.eup %11777 }
 0x40a   : > { %v12777_v9 = vpop.eup %11779  ;;  %v1715_v12 = vmul.f32 %v12775_v53, %v1692_v56  ;;  %v2161_v56 = vld [vmem:[%s16085_s6 + $0x30] sm:$0xff] }
 0x40b   : > { %v12780_v14 = vpop.eup %11781  ;;  %v1716_v0 = vmul.f32 %v12777_v9, %v1694_v48  ;;  %9380 = vmatpush3.msra.mxu1 %v2161_v56  ;;  %v2176_v48 = vld [vmem:[%s16085_s6 + $0xa8] sm:$0xff] }
 0x40c   : > { %v12783_v16 = vpop.eup %11783  ;;  %1731 = vrot.lane.b32.xlu0 %v1715_v12, %s16132_s0  ;;  %v1717_v26 = vmul.f32 %v12780_v14, %v1696_v47  ;;  %v2175_v47 = vld [vmem:[%s16085_s6 + $0xa0] sm:$0xff]  ;;  %9381 = vmatprep.subr.mxu1 %v2176_v48 }
 0x40d   : > { %1733 = vrot.lane.b32.xlu1 %v1716_v0, %s16132_s0  ;;  %v12788_v28 = vpop.eup %11785  ;;  %v1718_v10 = vmul.f32 %v12783_v16, %v1698_v63  ;;  %v2159_v12 = vld [vmem:[%s16085_s6 + $0x20] sm:$0xff]  ;;  %9382 = vmatpush3.msra.mxu1 %v2160_v62 }
 0x40e   : > { %v12791_v33 = vpop.eup %11787  ;;  %v1719_v3 = vmul.f32 %v12788_v28, %v1700_v24  ;;  %v1771_v0 = vld [vmem:[#allocation3 + $0x1] sm:$0xff]  ;;  %9383 = vmatprep.subr.mxu1 %v2175_v47 }
 0x40f   : > { %v12796_v6 = vpop.eup %11789  ;;  %v1720_v5 = vmul.f32 %v12791_v33, %v1702_v27  ;;  %v1763_v24 = vld [vmem:[#allocation3] sm:$0xff]  ;;  %v2158_v27 = vld [vmem:[%s16085_s6 + $0x18] sm:$0xff]  ;;  %9384 = vmatpush3.msra.mxu1 %v2159_v12 }
 0x410   : > { %1735 = vrot.lane.b32.xlu0 %v1717_v26, %s16132_s0  ;;  %v12799_v29 = vpop.eup %11791  ;;  %v1721_v61 = vmul.f32 %v12796_v6, %v1704_v11  ;;  %v2174_v26 = vld [vmem:[%s16085_s6 + $0x98] sm:$0xff] }
 0x411   : > { %1737 = vrot.lane.b32.xlu1 %v1718_v10, %s16132_s0  ;;  %v1722_v46 = vmul.f32 %v12799_v29, %v1706_v55  ;;  %9385 = vmatprep.subr.mxu1 %v2174_v26 }
 0x412   : > { %9386 = vmatpush3.msra.mxu1 %v2158_v27 }
 0x413   : > { %9387 = vmatprep.subr.mxu1 %v2173_v8 }
 0x414   : > { %1739 = vrot.lane.b32.xlu0 %v1719_v3, %s16132_s0  ;;  %9388 = vmatpush3.msra.mxu1 %v2157_v31 }
 0x415   : > { %1741 = vrot.lane.b32.xlu1 %v1720_v5, %s16132_s0  ;;  %9389 = vmatprep.subr.mxu1 %v2172_v17 }
 0x416   : > { %9390 = vmatpush3.msra.mxu1 %v2156_v35 }
 0x417   : > { %9391 = vmatprep.subr.mxu1 %v2171_v45 }
 0x418   : > { %1743 = vrot.lane.b32.xlu0 %v1721_v61, %s16132_s0  ;;  %9392 = vmatpush3.msra.mxu1 %v2155_v21 }
 0x419   : > { %1745 = vrot.lane.b32.xlu1 %v1722_v46, %s16132_s0  ;;  %v1779_v46 = vld [vmem:[#allocation3 + $0x2] sm:$0xff] }
 0x47e   : > { %v1732_v15 = vpop.permute.xlu0 %1731 }
 0x47f   : > { %v1734_v54 = vpop.permute.xlu1 %1733  ;;  %1755 = vst.msk [vmem:[#allocation3 + $0x11] sm:$0xff] %vm416_vm0, %v1732_v15 }
 0x480   : > { %1756 = vst.msk [vmem:[#allocation3 + $0x21] sm:$0xff] %vm416_vm0, %v1734_v54 }
 0x482   : > { %v1736_v58 = vpop.permute.xlu0 %1735 }
 0x483   : > { %v1738_v63 = vpop.permute.xlu1 %1737  ;;  %1757 = vst.msk [vmem:[#allocation3 + $0x31] sm:$0xff] %vm416_vm0, %v1736_v58 }
 0x484   : > { %1758 = vst.msk [vmem:[#allocation3 + $0x41] sm:$0xff] %vm416_vm0, %v1738_v63 }
 0x486   : > { %v1740_v10 = vpop.permute.xlu0 %1739  ;;  %v1772_v3 = vld [vmem:[#allocation3 + $0x11] sm:$0xff] }
 0x487   : > { %v1764_v5 = vld [vmem:[#allocation3 + $0x10] sm:$0xff]  ;;  %v1742_v11 = vpop.permute.xlu1 %1741  ;;  %1759 = vst.msk [vmem:[#allocation3 + $0x51] sm:$0xff] %vm416_vm0, %v1740_v10  ;;  %v10384_v55 = vpack.i.bf16 %v1772_v3, %v1771_v0  ;;  %v1788_v18 = vld [vmem:[#allocation3 + $0x20] sm:$0xff] }
 0x488   : > { %v10379_v61 = vpack.i.bf16 %v1764_v5, %v1763_v24  ;;  %1760 = vst.msk [vmem:[#allocation3 + $0x61] sm:$0xff] %vm416_vm0, %v1742_v11  ;;  %v1780_v2 = vld [vmem:[#allocation3 + $0x12] sm:$0xff]  ;;  %v10394_v57 = vpack.i.bf16 %v1788_v18, %v1764_v5  ;;  %v12900_v20 = vld [vmem:[#allocation3 + $0x22] sm:$0xff] }
 0x489   : > { %10385 = vrot.lane.b32.xlu1 %v10384_v55, %s16128_s13  ;;  %v10389_v41 = vpack.i.bf16 %v1780_v2, %v1779_v46  ;;  %v12903_v42 = vld [vmem:[#allocation3 + $0x21] sm:$0xff]  ;;  %v10404_v39 = vpack.i.bf16 %v12900_v20, %v1780_v2  ;;  %v2190_v5 = vld [vmem:[%s16085_s6 + $0x118] sm:$0xff] }
 0x48a   : > { %10380 = vrot.lane.b32.xlu0 %v10379_v61, %s16133_s1  ;;  %v1744_v37 = vpop.permute.xlu0 %1743  ;;  %v10399_v40 = vpack.i.bf16 %v12903_v42, %v1772_v3  ;;  %v1812_v15 = vld [vmem:[#allocation3 + $0x30] sm:$0xff]  ;;  %9857 = vmatprep.subr.mxu0 %v2190_v5 }
 0x48b   : > { %v1746_v7 = vpop.permute.xlu1 %1745  ;;  %1761 = vst.msk [vmem:[#allocation3 + $0x71] sm:$0xff] %vm416_vm0, %v1744_v37  ;;  %v10409_v50 = vpack.i.bf16 %v1812_v15, %v1788_v18  ;;  %v12923_v52 = vld [vmem:[#allocation3 + $0x31] sm:$0xff]  ;;  %v1790_v58 = vld [vmem:[#allocation3 + $0x40] sm:$0xff]  ;;  %9858 = vmatpush3.msra.mxu0 %v2190_v5  ;;  %v2188_v18 = vld [vmem:[%s16085_s6 + $0x108] sm:$0xff] }
 0x48c   : > { %1762 = vst.msk [vmem:[#allocation3 + $0x81] sm:$0xff] %vm416_vm0, %v1746_v7  ;;  %v1782_v49 = vld [vmem:[#allocation3 + $0x32] sm:$0xff]  ;;  %v10419_v54 = vpack.i.bf16 %v12923_v52, %v12903_v42  ;;  %v12930_v48 = vld [vmem:[#allocation3 + $0x41] sm:$0xff]  ;;  %v10429_v62 = vpack.i.bf16 %v1790_v58, %v1812_v15 }
 0x48d   : > { %10395 = vrot.lane.b32.xlu1 %v10394_v57, %s16130_s25  ;;  %v10424_v56 = vpack.i.bf16 %v1782_v49, %v12900_v20  ;;  %v10434_v47 = vpack.i.bf16 %v12930_v48, %v12923_v52  ;;  %v1806_v63 = vld [vmem:[#allocation3 + $0x42] sm:$0xff]  ;;  %v2189_v61 = vld [vmem:[%s16085_s6 + $0x110] sm:$0xff] }
 0x48e   : > { %10390 = vrot.lane.b32.xlu0 %v10389_v41, %s16129_s23  ;;  %v1814_v12 = vld [vmem:[#allocation3 + $0x50] sm:$0xff]  ;;  %v10439_v0 = vpack.i.bf16 %v1806_v63, %v1782_v49  ;;  %9859 = vmatprep.subr.mxu0 %v2189_v61  ;;  %v2187_v7 = vld [vmem:[%s16085_s6 + $0x100] sm:$0xff] }
 0x48f   : > { %v10444_v24 = vpack.i.bf16 %v1814_v12, %v1790_v58  ;;  %v12938_v26 = vld [vmem:[#allocation3 + $0x51] sm:$0xff]  ;;  %v1792_v10 = vld [vmem:[#allocation3 + $0x60] sm:$0xff]  ;;  %9860 = vmatpush3.msra.mxu0 %v2189_v61 }
 0x490   : > { %v10454_v27 = vpack.i.bf16 %v12938_v26, %v12930_v48  ;;  %v1784_v3 = vld [vmem:[#allocation3 + $0x52] sm:$0xff]  ;;  %v10464_v11 = vpack.i.bf16 %v1792_v10, %v1814_v12  ;;  %v1808_v46 = vld [vmem:[#allocation3 + $0x62] sm:$0xff]  ;;  %9861 = vmatprep.subr.mxu0 %v2188_v18 }
 0x491   : > { %10405 = vrot.lane.b32.xlu1 %v10404_v39, %s16127_s26  ;;  %v10459_v55 = vpack.i.bf16 %v1784_v3, %v1806_v63  ;;  %v12952_v8 = vld [vmem:[#allocation3 + $0x61] sm:$0xff]  ;;  %v10474_v2 = vpack.i.bf16 %v1808_v46, %v1784_v3  ;;  %9862 = vmatpush3.msra.mxu0 %v2188_v18 }
 0x492   : > { %10400 = vrot.lane.b32.xlu0 %v10399_v40, %s16131_s30  ;;  %v10469_v31 = vpack.i.bf16 %v12952_v8, %v12938_v26  ;;  %v1816_v37 = vld [vmem:[#allocation3 + $0x70] sm:$0xff]  ;;  %9863 = vmatprep.subr.mxu0 %v2187_v7  ;;  %v11967_v12 = vld [vmem:[#allocation2 + $0x22] sm:$0xff] }
 0x493   : > { %v10479_v57 = vpack.i.bf16 %v1816_v37, %v1792_v10  ;;  %v12966_v41 = vld [vmem:[#allocation3 + $0x71] sm:$0xff]  ;;  %9864 = vmatpush3.msra.mxu0 %v2187_v7  ;;  %v1794_v39 = vld [vmem:[#allocation3 + $0x80] sm:$0xff] }
 0x494   : > { %v10489_v17 = vpack.i.bf16 %v12966_v41, %v12952_v8  ;;  %v1786_v35 = vld [vmem:[#allocation3 + $0x72] sm:$0xff]  ;;  %v12975_v40 = vld [vmem:[#allocation3 + $0x81] sm:$0xff]  ;;  %v10499_v21 = vpack.i.bf16 %v1794_v39, %v1816_v37 }
 0x495   : > { %10415 = vrot.lane.b32.xlu1 %v10409_v50, %s16133_s1  ;;  %v10494_v45 = vpack.i.bf16 %v1786_v35, %v1808_v46  ;;  %v10504_v15 = vpack.i.bf16 %v12975_v40, %v12966_v41 }
 0x496   : > { %10410 = vrot.lane.b32.xlu0 %v10409_v50, %s16132_s0  ;;  %v1810_v50 = vld [vmem:[#allocation3 + $0x82] sm:$0xff] }
 0x499   : > { %10425 = vrot.lane.b32.xlu1 %v10424_v56, %s16129_s23 }
 0x49a   : > { %10420 = vrot.lane.b32.xlu0 %v10419_v54, %s16128_s13  ;;  %v1834_v54 = vld [vmem:[#allocation3 + $0x92] sm:$0xff] }
 0x49d   : > { %10435 = vrot.lane.b32.xlu1 %v10434_v47, %s16131_s30 }
 0x49e   : > { %10430 = vrot.lane.b32.xlu0 %v10429_v62, %s16130_s25 }
 0x4a1   : > { %10445 = vrot.lane.b32.xlu1 %v10444_v24, %s16132_s0 }
 0x4a2   : > { %10440 = vrot.lane.b32.xlu0 %v10439_v0, %s16127_s26 }
 0x4a5   : > { %10455 = vrot.lane.b32.xlu1 %v10454_v27, %s16128_s13 }
 0x4a6   : > { %10450 = vrot.lane.b32.xlu0 %v10444_v24, %s16133_s1 }
 0x4a9   : > { %10465 = vrot.lane.b32.xlu1 %v10464_v11, %s16130_s25 }
 0x4aa   : > { %10460 = vrot.lane.b32.xlu0 %v10459_v55, %s16129_s23 }
 0x4ad   : > { %10475 = vrot.lane.b32.xlu1 %v10474_v2, %s16127_s26 }
 0x4ae   : > { %10470 = vrot.lane.b32.xlu0 %v10469_v31, %s16131_s30 }
 0x4b1   : > { %10485 = vrot.lane.b32.xlu1 %v10479_v57, %s16133_s1 }
 0x4b2   : > { %10480 = vrot.lane.b32.xlu0 %v10479_v57, %s16132_s0 }
 0x4b5   : > { %10490 = vrot.lane.b32.xlu1 %v10489_v17, %s16128_s13 }
 0x4b6   : > { %2123 = vrot.lane.b32.xlu0 %v12900_v20, %s16133_s1  ;;  %v10509_v20 = vpack.i.bf16 %v1810_v50, %v1786_v35 }
 0x4b9   : > { %10495 = vrot.lane.b32.xlu1 %v10494_v45, %s16129_s23 }
 0x4ba   : > { %2125 = vrot.lane.b32.xlu0 %v1782_v49, %s16133_s1  ;;  %v12989_v49 = vld [vmem:[#allocation3 + $0x90] sm:$0xff] }
 0x4bd   : > { %10505 = vrot.lane.b32.xlu1 %v10504_v15, %s16131_s30 }
 0x4be   : > { %10500 = vrot.lane.b32.xlu0 %v10499_v21, %s16130_s25 }
 0x4c1   : > { %10510 = vrot.lane.b32.xlu1 %v10509_v20, %s16127_s26 }
 0x4c2   : > { %2127 = vrot.lane.b32.xlu0 %v1806_v63, %s16133_s1 }
 0x4c5   : > { %2047 = vrot.lane.b32.xlu1 %v1794_v39, %s16132_s0 }
 0x4c6   : > { %2129 = vrot.lane.b32.xlu0 %v1784_v3, %s16133_s1  ;;  %v11968_v3 = vld [vmem:[#allocation2 + $0x32] sm:$0xff] }
 0x4c9   : > { %2133 = vrot.lane.b32.xlu1 %v1786_v35, %s16133_s1 }
 0x4ca   : > { %2131 = vrot.lane.b32.xlu0 %v1808_v46, %s16133_s1 }
 0x4cd   : > { %2135 = vrot.lane.b32.xlu1 %v1810_v50, %s16133_s1 }
 0x4ce   : > { %2049 = vrot.lane.b32.xlu0 %v12989_v49, %s16132_s0 }
 0x4d2   : > { %2137 = vrot.lane.b32.xlu0 %v1834_v54, %s16133_s1 }
 0x4fb   : > { %v10386_v56 = vpop.permute.xlu1 %10385 }
 0x4fc   : > { %v10381_v58 = vpop.permute.xlu0 %10380  ;;  %v10387_v63 = vunpack.i.l.bf16 %v10386_v56  ;;  %v10388_v24 = vunpack.i.h.bf16 %v10386_v56 }
 0x4fd   : > { %v10383_v62 = vunpack.i.h.bf16 %v10381_v58  ;;  %v10382_v47 = vunpack.i.l.bf16 %v10381_v58 }
 0x4ff   : > { %v2059_v0 = vsel %vm416_vm0, %v11967_v12, %v10382_v47  ;;  %v10396_v27 = vpop.permute.xlu1 %10395  ;;  %v2060_v5 = vsel %vm416_vm0, %v11968_v3, %v10383_v62 }
 0x500   : > { %v10391_v10 = vpop.permute.xlu0 %10390  ;;  %v10397_v61 = vunpack.i.l.bf16 %v10396_v27  ;;  %v2067_v46 = vsel %vm1094_vm2, %v2059_v0, %v10387_v63  ;;  %v10398_v2 = vunpack.i.h.bf16 %v10396_v27  ;;  %v2068_v31 = vsel %vm1094_vm2, %v2060_v5, %v10388_v24 }
 0x501   : > { %v10393_v11 = vunpack.i.h.bf16 %v10391_v10  ;;  %v10392_v55 = vunpack.i.l.bf16 %v10391_v10 }
 0x503   : > { %v2075_v18 = vsel %vm1103_vm3, %v2067_v46, %v10392_v55  ;;  %v10406_v37 = vpop.permute.xlu1 %10405  ;;  %v2076_v57 = vsel %vm1103_vm3, %v2068_v31, %v10393_v11  ;;  %v11969_v55 = vld [vmem:[#allocation2 + $0x52] sm:$0xff]  ;;  %v11970_v46 = vld [vmem:[#allocation2 + $0x42] sm:$0xff] }
 0x504   : > { %v10401_v7 = vpop.permute.xlu0 %10400  ;;  %v10407_v45 = vunpack.i.l.bf16 %v10406_v37  ;;  %v2083_v39 = vsel %vm1112_vm4, %v2075_v18, %v10397_v61  ;;  %v10408_v15 = vunpack.i.h.bf16 %v10406_v37  ;;  %v2084_v54 = vsel %vm1112_vm4, %v2076_v57, %v10398_v2 }
 0x505   : > { %v10403_v17 = vunpack.i.h.bf16 %v10401_v7  ;;  %v10402_v35 = vunpack.i.l.bf16 %v10401_v7 }
 0x507   : > { %v2091_v21 = vsel %vm1121_vm5, %v2083_v39, %v10402_v35  ;;  %v10416_v50 = vpop.permute.xlu1 %10415  ;;  %v2092_v62 = vsel %vm1121_vm5, %v2084_v54, %v10403_v17 }
 0x508   : > { %v10411_v20 = vpop.permute.xlu0 %10410  ;;  %v10418_v47 = vunpack.i.h.bf16 %v10416_v50  ;;  %v10417_v63 = vunpack.i.l.bf16 %v10416_v50  ;;  %v2099_v12 = vsel %vm1130_vm6, %v2091_v21, %v10407_v45  ;;  %v2100_v10 = vsel %vm1130_vm6, %v2092_v62, %v10408_v15 }
 0x509   : > { %v10413_v56 = vunpack.i.h.bf16 %v10411_v20  ;;  %v10412_v58 = vunpack.i.l.bf16 %v10411_v20 }
 0x50a   : > { %v2062_v61 = vsel %vm416_vm0, %v11969_v55, %v10418_v47  ;;  %v2061_v18 = vsel %vm416_vm0, %v11970_v46, %v10417_v63  ;;  %v11971_v46 = vld [vmem:[#allocation2 + $0x62] sm:$0xff] }
 0x50b   : > { %v2107_v0 = vsel %vm1139_vm7, %v2099_v12, %v10412_v58  ;;  %v10426_v24 = vpop.permute.xlu1 %10425  ;;  %v2108_v11 = vsel %vm1139_vm7, %v2100_v10, %v10413_v56 }
 0x50c   : > { %v10421_v27 = vpop.permute.xlu0 %10420  ;;  %2286 = vmatprep.mubr.f32.mxu1 %v2107_v0  ;;  %v10428_v2 = vunpack.i.h.bf16 %v10426_v24  ;;  %v10427_v31 = vunpack.i.l.bf16 %v10426_v24 }
 0x50d   : > { %v10423_v3 = vunpack.i.h.bf16 %v10421_v27  ;;  %v10422_v5 = vunpack.i.l.bf16 %v10421_v27  ;;  %2287 = vmatmul.mubr.f32.vlgmr.msra.gmra.mxu1 %v12574_v44 }
 0x50e   : > { %2291 = vmatprep.mubr.f32.mxu1 %v2108_v11 }
 0x50f   : > { %v2070_v37 = vsel %vm1094_vm2, %v2062_v61, %v10423_v3  ;;  %v2069_v7 = vsel %vm1094_vm2, %v2061_v18, %v10422_v5  ;;  %v10436_v57 = vpop.permute.xlu1 %10435 }
 0x510   : > { %v10431_v17 = vpop.permute.xlu0 %10430  ;;  %v10438_v44 = vunpack.i.h.bf16 %v10436_v57  ;;  %v10437_v39 = vunpack.i.l.bf16 %v10436_v57  ;;  %v2077_v21 = vsel %vm1103_vm3, %v2069_v7, %v10427_v31  ;;  %v2078_v15 = vsel %vm1103_vm3, %v2070_v37, %v10428_v2  ;;  %v11972_v7 = vld [vmem:[#allocation2 + $0x72] sm:$0xff] }
 0x511   : > { %v10433_v35 = vunpack.i.h.bf16 %v10431_v17  ;;  %v10432_v45 = vunpack.i.l.bf16 %v10431_v17  ;;  %2292 = vmatmul.mubr.f32.gmra.mxu1 %v12599_v19 }
 0x513   : > { %v2085_v50 = vsel %vm1112_vm4, %v2077_v21, %v10432_v45  ;;  %v2086_v20 = vsel %vm1112_vm4, %v2078_v15, %v10433_v35  ;;  %v10446_v54 = vpop.permute.xlu1 %10445 }
 0x514   : > { %v10441_v56 = vpop.permute.xlu0 %10440  ;;  %v10447_v58 = vunpack.i.l.bf16 %v10446_v54  ;;  %v10448_v63 = vunpack.i.h.bf16 %v10446_v54  ;;  %v2093_v12 = vsel %vm1121_vm5, %v2085_v50, %v10437_v39  ;;  %v2094_v19 = vsel %vm1121_vm5, %v2086_v20, %v10438_v44 }
 0x515   : > { %v10443_v62 = vunpack.i.h.bf16 %v10441_v56  ;;  %v10442_v47 = vunpack.i.l.bf16 %v10441_v56 }
 0x517   : > { %v2101_v0 = vsel %vm1130_vm6, %v2093_v12, %v10442_v47  ;;  %v2102_v24 = vsel %vm1130_vm6, %v2094_v19, %v10443_v62  ;;  %v10456_v27 = vpop.permute.xlu1 %10455 }
 0x518   : > { %v10451_v10 = vpop.permute.xlu0 %10450  ;;  %v2109_v3 = vsel %vm1139_vm7, %v2101_v0, %v10447_v58  ;;  %v10457_v55 = vunpack.i.l.bf16 %v10456_v27  ;;  %v2110_v61 = vsel %vm1139_vm7, %v2102_v24, %v10448_v63  ;;  %v10458_v2 = vunpack.i.h.bf16 %v10456_v27 }
 0x519   : > { %v10453_v5 = vunpack.i.h.bf16 %v10451_v10  ;;  %v10452_v11 = vunpack.i.l.bf16 %v10451_v10  ;;  %2296 = vmatprep.mubr.f32.mxu1 %v2109_v3 }
 0x51a   : > { %2297 = vmatmul.mubr.f32.gmra.mxu1 %v12622_v23 }
 0x51b   : > { %v2063_v18 = vsel %vm416_vm0, %v11971_v46, %v10452_v11  ;;  %2301 = vmatprep.mubr.f32.mxu1 %v2110_v61  ;;  %v10466_v31 = vpop.permute.xlu1 %10465  ;;  %v2064_v57 = vsel %vm416_vm0, %v11972_v7, %v10453_v5 }
 0x51c   : > { %v10461_v37 = vpop.permute.xlu0 %10460  ;;  %v10467_v45 = vunpack.i.l.bf16 %v10466_v31  ;;  %v2071_v44 = vsel %vm1094_vm2, %v2063_v18, %v10457_v55  ;;  %v10468_v39 = vunpack.i.h.bf16 %v10466_v31  ;;  %v2072_v21 = vsel %vm1094_vm2, %v2064_v57, %v10458_v2 }
 0x51d   : > { %v10463_v17 = vunpack.i.h.bf16 %v10461_v37  ;;  %v10462_v35 = vunpack.i.l.bf16 %v10461_v37 }
 0x51e   : > { %2302 = vmatmul.mubr.f32.gmra.mxu1 %v12637_v1 }
 0x51f   : > { %v2079_v23 = vsel %vm1103_vm3, %v2071_v44, %v10462_v35  ;;  %v10476_v15 = vpop.permute.xlu1 %10475  ;;  %v2080_v20 = vsel %vm1103_vm3, %v2072_v21, %v10463_v17 }
 0x520   : > { %v10471_v50 = vpop.permute.xlu0 %10470  ;;  %v10477_v58 = vunpack.i.l.bf16 %v10476_v15  ;;  %v2087_v62 = vsel %vm1112_vm4, %v2079_v23, %v10467_v45  ;;  %v10478_v63 = vunpack.i.h.bf16 %v10476_v15  ;;  %v2088_v1 = vsel %vm1112_vm4, %v2080_v20, %v10468_v39 }
 0x521   : > { %v10473_v54 = vunpack.i.h.bf16 %v10471_v50  ;;  %v10472_v56 = vunpack.i.l.bf16 %v10471_v50 }
 0x523   : > { %v2095_v47 = vsel %vm1121_vm5, %v2087_v62, %v10472_v56  ;;  %v10486_v12 = vpop.permute.xlu1 %10485  ;;  %v2096_v27 = vsel %vm1121_vm5, %v2088_v1, %v10473_v54 }
 0x524   : > { %v10481_v19 = vpop.permute.xlu0 %10480  ;;  %v2103_v10 = vsel %vm1130_vm6, %v2095_v47, %v10477_v58  ;;  %v2104_v55 = vsel %vm1130_vm6, %v2096_v27, %v10478_v63  ;;  %v10487_v18 = vunpack.i.l.bf16 %v10486_v12  ;;  %v10488_v15 = vunpack.i.h.bf16 %v10486_v12  ;;  %v11973_v63 = vld [vmem:[#allocation2 + $0x92] sm:$0xff] }
 0x525   : > { %v10483_v0 = vunpack.i.h.bf16 %v10481_v19  ;;  %v10482_v24 = vunpack.i.l.bf16 %v10481_v19 }
 0x526   : > { %v2066_v19 = vsel %vm416_vm0, %v11973_v63, %v10488_v15 }
 0x527   : > { %v2111_v3 = vsel %vm1139_vm7, %v2103_v10, %v10482_v24  ;;  %v10491_v5 = vpop.permute.xlu1 %10490  ;;  %v2112_v46 = vsel %vm1139_vm7, %v2104_v55, %v10483_v0 }
 0x528   : > { %v2124_v11 = vpop.permute.xlu0 %2123  ;;  %2306 = vmatprep.mubr.f32.mxu1 %v2111_v3  ;;  %v10492_v37 = vunpack.i.l.bf16 %v10491_v5  ;;  %v10493_v20 = vunpack.i.h.bf16 %v10491_v5 }
 0x529   : > { %v2147_v61 = vsel %vm416_vm0, %v12903_v42, %v2124_v11  ;;  %2307 = vmatmul.mubr.f32.gmra.mxu1 %v12660_v59  ;;  %v2065_v59 = vsel %vm416_vm0, %v12489_v51, %v10487_v18 }
 0x52a   : > { %2311 = vmatprep.mubr.f32.mxu1 %v2112_v46  ;;  %9865 = vmatprep.mubr.msk.f32.mxu0 %vm1094_vm2, %v2147_v61  ;;  %v2073_v35 = vsel %vm1094_vm2, %v2065_v59, %v10492_v37 }
 0x52b   : > { %v10496_v2 = vpop.permute.xlu1 %10495 }
 0x52c   : > { %v2126_v31 = vpop.permute.xlu0 %2125  ;;  %v10497_v57 = vunpack.i.l.bf16 %v10496_v2  ;;  %v10498_v54 = vunpack.i.h.bf16 %v10496_v2 }
 0x52d   : > { %v2148_v7 = vsel %vm416_vm0, %v12923_v52, %v2126_v31  ;;  %2312 = vmatmul.mubr.f32.gmra.mxu1 %v12675_v43 }
 0x52e   : > { %9866 = vmatmul.mubr.msk.f32.vlgmr.msra.gmra.mxu0 %vm1094_vm2, %v2148_v7  ;;  %v2081_v44 = vsel %vm1103_vm3, %v2073_v35, %v10497_v57 }
 0x52f   : > { %v10506_v42 = vpop.permute.xlu1 %10505 }
 0x530   : > { %v10501_v17 = vpop.permute.xlu0 %10500  ;;  %v10507_v23 = vunpack.i.l.bf16 %v10506_v42  ;;  %v10508_v24 = vunpack.i.h.bf16 %v10506_v42 }
 0x531   : > { %v10502_v45 = vunpack.i.l.bf16 %v10501_v17  ;;  %v10503_v58 = vunpack.i.h.bf16 %v10501_v17 }
 0x533   : > { %v2089_v39 = vsel %vm1112_vm4, %v2081_v44, %v10502_v45  ;;  %v10511_v21 = vpop.permute.xlu1 %10510 }
 0x534   : > { %v2128_v52 = vpop.permute.xlu0 %2127  ;;  %v10512_v43 = vunpack.i.l.bf16 %v10511_v21  ;;  %v2097_v51 = vsel %vm1121_vm5, %v2089_v39, %v10507_v23  ;;  %v10513_v10 = vunpack.i.h.bf16 %v10511_v21 }
 0x535   : > { %v2149_v50 = vsel %vm416_vm0, %v12930_v48, %v2128_v52  ;;  %v2074_v48 = vsel %vm1094_vm2, %v2066_v19, %v10493_v20 }
 0x536   : > { %9868 = vmatprep.mubr.msk.f32.mxu0 %vm1094_vm2, %v2149_v50  ;;  %v2105_v56 = vsel %vm1130_vm6, %v2097_v51, %v10512_v43  ;;  %v2082_v0 = vsel %vm1103_vm3, %v2074_v48, %v10498_v54 }
 0x537   : > { %v2048_v62 = vpop.permute.xlu1 %2047  ;;  %v2090_v27 = vsel %vm1112_vm4, %v2082_v0, %v10503_v58 }
 0x538   : > { %v2130_v47 = vpop.permute.xlu0 %2129  ;;  %v2113_v1 = vsel %vm1139_vm7, %v2105_v56, %v2048_v62  ;;  %v2098_v55 = vsel %vm1121_vm5, %v2090_v27, %v10508_v24 }
 0x539   : > { %v2150_v12 = vsel %vm416_vm0, %v12938_v26, %v2130_v47  ;;  %2316 = vmatprep.mubr.f32.mxu1 %v2113_v1 }
 0x53a   : > { %9869 = vmatmul.mubr.msk.f32.gmra.mxu0 %vm1094_vm2, %v2150_v12  ;;  %2317 = vmatmul.mubr.f32.gmra.mxu1 %v12699_v60  ;;  %v2106_v60 = vsel %vm1130_vm6, %v2098_v55, %v10513_v10 }
 0x53b   : > { %v2134_v3 = vpop.permute.xlu1 %2133 }
 0x53c   : > { %v2132_v5 = vpop.permute.xlu0 %2131  ;;  %v2152_v26 = vsel %vm416_vm0, %v12966_v41, %v2134_v3  ;;  %v1826_v41 = vld [vmem:[#allocation3 + $0x91] sm:$0xff] }
 0x53d   : > { %v2151_v11 = vsel %vm416_vm0, %v12952_v8, %v2132_v5 }
 0x53e   : > { %9871 = vmatprep.mubr.msk.f32.mxu0 %vm1094_vm2, %v2151_v11 }
 0x53f   : > { %9872 = vmatmul.mubr.msk.f32.gmra.mxu0 %vm1094_vm2, %v2152_v26  ;;  %v2136_v61 = vpop.permute.xlu1 %2135 }
 0x540   : > { %v2050_v46 = vpop.permute.xlu0 %2049  ;;  %v2153_v18 = vsel %vm416_vm0, %v12975_v40, %v2136_v61 }
 0x541   : > { %v2114_v2 = vsel %vm1139_vm7, %v2106_v60, %v2050_v46  ;;  %9874 = vmatprep.mubr.msk.f32.mxu0 %vm1094_vm2, %v2153_v18 }
 0x542   : > { %2321 = vmatprep.mubr.f32.mxu1 %v2114_v2 }
 0x543   : > { %2322 = vmatmul.mubr.f32.gmra.mxu1 %v12712_v4  ;;  %v9132_v4 = vld [vmem:[%s16086_s7] ss:$0 sm:$0xff] }
 0x544   : > { %v2138_v8 = vpop.permute.xlu0 %2137 }
 0x545   : > { %v2154_v31 = vsel %vm416_vm0, %v1826_v41, %v2138_v8 }
 0x546   : > { %9875 = vmatmul.mubr.msk.f32.gmra.mxu0 %vm1094_vm2, %v2154_v31 }
 0x5cd   : > { %v9393_v37 = vpop.f32.mrf.mxu1 }
 0x5cf   : > { %v9394_v7 = vpop.f32.mrf.mxu1 }
 0x5d0   : > { %v9395_v23 = vadd.f32 %v9394_v7, %v9393_v37 }
 0x5d1   : > { %v9396_v57 = vpop.f32.mrf.mxu1 }
 0x5d2   : > { %v2289_v15 = vadd.f32 %v9395_v23, %v9132_v4 }
 0x5d3   : > { %v9397_v59 = vpop.f32.mrf.mxu1 }
 0x5d4   : > { %v9398_v21 = vadd.f32 %v9397_v59, %v9396_v57 }
 0x5d6   : > { %v2294_v51 = vadd.f32 %v9398_v21, %v9132_v4 }
 0x5da   : > { %v9399_v42 = vpop.f32.mrf.mxu1 }
 0x5dc   : > { %v9400_v17 = vpop.f32.mrf.mxu1 }
 0x5dd   : > { %v9401_v50 = vadd.f32 %v9400_v17, %v9399_v42 }
 0x5de   : > { %v9402_v40 = vpop.f32.mrf.mxu1 }
 0x5df   : > { %v2299_v19 = vadd.f32 %v9401_v50, %v9132_v4 }
 0x5e0   : > { %v9403_v35 = vpop.f32.mrf.mxu1 }
 0x5e1   : > { %v9404_v20 = vadd.f32 %v9403_v35, %v9402_v40 }
 0x5e3   : > { %v2304_v63 = vadd.f32 %v9404_v20, %v9132_v4 }
 0x5e9   : > { %v9405_v45 = vpop.f32.mrf.mxu1 }
 0x5eb   : > { %v9406_v39 = vpop.f32.mrf.mxu1 }
 0x5ec   : > { %v9407_v12 = vadd.f32 %v9406_v39, %v9405_v45 }
 0x5ed   : > { %v9408_v43 = vpop.f32.mrf.mxu1 }
 0x5ee   : > { %v9867_v44 = vpop.f32.mrf.mxu0  ;;  %v2309_v61 = vadd.f32 %v9407_v12, %v9132_v4 }
 0x5ef   : > { %v2399_v56 = vadd.f32 %v9867_v44, %v2294_v51  ;;  %v9409_v58 = vpop.f32.mrf.mxu1 }
 0x5f0   : > { %v2393_v52 = vpop.f32.mrf.mxu0  ;;  %v9410_v3 = vadd.f32 %v9409_v58, %v9408_v43 }
 0x5f1   : > { %v2394_v54 = vadd.f32 %v2393_v52, %v2289_v15  ;;  %v2435_v0 = vsel %vm416_vm0, %v2399_v56, 0.0 }
 0x5f2   : > { %v2314_v8 = vadd.f32 %v9410_v3, %v9132_v4 }
 0x5f3   : > { %v2434_v47 = vsel %vm416_vm0, %v2394_v54, 0.0 }
 0x5f4   : > { %v2436_v10 = vadd.f32 %v2435_v0, %v2434_v47 }
 0x5fa   : > { %v9870_v62 = vpop.f32.mrf.mxu0  ;;  %v9411_v1 = vpop.f32.mrf.mxu1 }
 0x5fb   : > { %v2409_v24 = vadd.f32 %v9870_v62, %v2304_v63 }
 0x5fc   : > { %v2403_v48 = vpop.f32.mrf.mxu0  ;;  %v9412_v55 = vpop.f32.mrf.mxu1 }
 0x5fd   : > { %v2404_v27 = vadd.f32 %v2403_v48, %v2299_v19  ;;  %v2439_v46 = vsel %vm416_vm0, %v2409_v24, 0.0  ;;  %v9413_v41 = vadd.f32 %v9412_v55, %v9411_v1 }
 0x5ff   : > { %v2437_v5 = vsel %vm416_vm0, %v2404_v27, 0.0  ;;  %v9873_v26 = vpop.f32.mrf.mxu0  ;;  %v2319_v40 = vadd.f32 %v9413_v41, %v9132_v4 }
 0x600   : > { %v2438_v11 = vadd.f32 %v2437_v5, %v2436_v10  ;;  %v2419_v7 = vadd.f32 %v9873_v26, %v2314_v8 }
 0x601   : > { %v2413_v60 = vpop.f32.mrf.mxu0 }
 0x602   : > { %v2414_v18 = vadd.f32 %v2413_v60, %v2309_v61  ;;  %v2440_v2 = vadd.f32 %v2439_v46, %v2438_v11  ;;  %v2443_v44 = vsel %vm416_vm0, %v2419_v7, 0.0 }
 0x603   : > { %v9414_v31 = vpop.f32.mrf.mxu1 }
 0x604   : > { %v2441_v37 = vsel %vm416_vm0, %v2414_v18, 0.0 }
 0x605   : > { %v9415_v57 = vpop.f32.mrf.mxu1  ;;  %v2442_v59 = vadd.f32 %v2441_v37, %v2440_v2 }
 0x606   : > { %v9416_v42 = vadd.f32 %v9415_v57, %v9414_v31  ;;  %v9876_v17 = vpop.f32.mrf.mxu0 }
 0x607   : > { %v2444_v21 = vadd.f32 %v2443_v44, %v2442_v59 }
 0x608   : > { %v2324_v35 = vadd.f32 %v9416_v42, %v9132_v4  ;;  %v2423_v45 = vpop.f32.mrf.mxu0 }
 0x609   : > { %v2424_v23 = vadd.f32 %v2423_v45, %v2319_v40 }
 0x60a   : > { %v2429_v39 = vadd.f32 %v9876_v17, %v2324_v35 }
 0x60b   : > { %v2445_v52 = vsel %vm416_vm0, %v2424_v23, 0.0 }
 0x60c   : > { %v2447_v15 = vsel %vm416_vm0, %v2429_v39, 0.0  ;;  %v2446_v43 = vadd.f32 %v2445_v52, %v2444_v21 }
 0x60e   : > { %v2448_v50 = vadd.f32 %v2447_v15, %v2446_v43 }
 0x610   : > { %2449 = vadd.xlane.f32.xlu1 %v2448_v50  ;;  %v2635_v50 = vld [vmem:[#allocation2 + $0x2] sm:$0xff] }
 0x699   : > { %v2450_v20 = vpop.xlane.xlu1 %2449 }
 0x69a   : > { %v2451_v51 = vrot.slane %v2450_v20, 4 }
 0x69c   : > { %v2452_v58 = vadd.f32 %v2451_v51, %v2450_v20  ;;  %v2699_v20 = vld [vmem:[#allocation3 + $0x1] sm:$0xff] }
 0x69d   : > { %v10519_v51 = vpack.i.bf16 %v2635_v50, %v2699_v20  ;;  %v3376_v20 = vld [vmem:[%s16081_s2 + $0x68] sm:$0xff] }
 0x69e   : > { %v2453_v62 = vrot.slane %v2452_v58, 2 }
 0x69f   : > { %10520 = vrot.lane.b32.xlu1 %v10519_v51, %s16128_s13 }
 0x6a0   : > { %v2454_v47 = vadd.f32 %v2453_v62, %v2452_v58  ;;  %v2627_v58 = vld [vmem:[#allocation2 + $0x1] sm:$0xff] }
 0x6a1   : > { %v2691_v62 = vld [vmem:[#allocation3] sm:$0xff] }
 0x6a2   : > { %v2455_v63 = vrot.slane %v2454_v47, 1 }
 0x6a4   : > { %v2456_v4 = vadd.f32 %v2455_v63, %v2454_v47  ;;  %v9144_v47 = vld [vmem:[%s12279_s19 + $0x48] sm:$0xff]  ;;  %v10514_v63 = vpack.i.bf16 %v2627_v58, %v2691_v62  ;;  %v3391_v62 = vld [vmem:[%s16081_s2 + $0xe0] sm:$0xff] }
 0x6a5   : > { %2604 = vst.msk [vmem:[#allocation2 + $0x21] sm:$0xff] %vm416_vm0, %v9144_v47  ;;  %v3375_v47 = vld [vmem:[%s16081_s2 + $0x60] sm:$0xff] }
 0x6a6   : > { %10003 = vpush %v2456_v4  ;;  %v13136_v4 = vld [vmem:[#allocation2 + $0x10] sm:$0xff] }
 0x6d7   : > { %s10004_s22 = spop %10003 }
 0x6d8   : > { %s2460_s17 = smul.f32 0.0009765625, %s10004_s22  ;;  %s13208_s22 = sand.u32 1, %s12080_s18  }
 0x6da   : > { %v2461_v19 = vstv %s2460_s17 }
 0x6db   : > { %v13094_v12 = vsub.f32 %v2394_v54, %v2461_v19  ;;  %v13096_v1 = vsub.f32 %v2399_v56, %v2461_v19  ;;  %v13098_v48 = vsub.f32 %v2404_v27, %v2461_v19  ;;  %v13100_v0 = vsub.f32 %v2409_v24, %v2461_v19 }
 0x6dc   : > { %v13102_v10 = vsub.f32 %v2414_v18, %v2461_v19  ;;  %v13110_v11 = vsub.f32 %v2419_v7, %v2461_v19  ;;  %v13116_v55 = vsub.f32 %v2424_v23, %v2461_v19  ;;  %v13121_v18 = vsub.f32 %v2429_v39, %v2461_v19  ;;  %v2707_v19 = vld [vmem:[#allocation3 + $0x2] sm:$0xff] }
 0x6dd   : > { %v2470_v3 = vmul.f32 %v13094_v12, %v13094_v12  ;;  %v2471_v5 = vmul.f32 %v13096_v1, %v13096_v1  ;;  %v2472_v26 = vmul.f32 %v13098_v48, %v13098_v48  ;;  %v2473_v54 = vmul.f32 %v13100_v0, %v13100_v0 }
 0x6de   : > { %v2474_v61 = vmul.f32 %v13102_v10, %v13102_v10  ;;  %v2475_v2 = vmul.f32 %v13110_v11, %v13110_v11  ;;  %v2476_v31 = vmul.f32 %v13116_v55, %v13116_v55  ;;  %v2477_v57 = vmul.f32 %v13121_v18, %v13121_v18 }
 0x6df   : > { %v2478_v56 = vsel %vm416_vm0, %v2470_v3, 0.0  ;;  %v2479_v24 = vsel %vm416_vm0, %v2471_v5, 0.0  ;;  %v2481_v46 = vsel %vm416_vm0, %v2472_v26, 0.0  ;;  %v2483_v41 = vsel %vm416_vm0, %v2473_v54, 0.0  ;;  %v2682_v3 = vld [vmem:[#allocation2 + $0x91] sm:$0xff] }
 0x6e0   : > { %v2480_v27 = vadd.f32 %v2479_v24, %v2478_v56  ;;  %v2485_v37 = vsel %vm416_vm0, %v2474_v61, 0.0  ;;  %v2487_v59 = vsel %vm416_vm0, %v2475_v2, 0.0  ;;  %v2489_v17 = vsel %vm416_vm0, %v2476_v31, 0.0  ;;  %v9145_v26 = vld [vmem:[%s12279_s19 + $0x50] sm:$0xff]  ;;  %v9146_v54 = vld [vmem:[%s12279_s19 + $0x58] sm:$0xff]  ;;  %v9147_v24 = vld [vmem:[%s12279_s19 + $0x60] sm:$0xff] }
 0x6e1   : > { %v2491_v35 = vsel %vm416_vm0, %v2477_v57, 0.0  ;;  %v10524_v5 = vpack.i.bf16 %v13136_v4, %v2707_v19  ;;  %v10529_v56 = vpack.i.bf16 %v2682_v3, %v12989_v49  ;;  %2605 = vst.msk [vmem:[#allocation2 + $0x31] sm:$0xff] %vm416_vm0, %v9145_v26  ;;  %2606 = vst.msk [vmem:[#allocation2 + $0x41] sm:$0xff] %vm416_vm0, %v9146_v54  ;;  %v9149_v61 = vld [vmem:[%s12279_s19 + $0x70] sm:$0xff]  ;;  %v3374_v19 = vld [vmem:[%s16081_s2 + $0x58] sm:$0xff] }
 0x6e2   : > { %v2482_v60 = vadd.f32 %v2481_v46, %v2480_v27  ;;  %v9148_v27 = vld [vmem:[%s12279_s19 + $0x68] sm:$0xff]  ;;  %2607 = vst.msk [vmem:[#allocation2 + $0x51] sm:$0xff] %vm416_vm0, %v9147_v24  ;;  %2609 = vst.msk [vmem:[#allocation2 + $0x71] sm:$0xff] %vm416_vm0, %v9149_v61  ;;  %v3389_v3 = vld [vmem:[%s16081_s2 + $0xd0] sm:$0xff]  ;;  %v2555_v24 = vsub.f32 1.0, %v12777_v9 }
 0x6e3   : > { %2608 = vst.msk [vmem:[#allocation2 + $0x61] sm:$0xff] %vm416_vm0, %v9148_v27  ;;  %10525 = vrot.lane.b32.xlu1 %v10524_v5, %s16129_s23  ;;  %v3373_v5 = vld [vmem:[%s16081_s2 + $0x50] sm:$0xff]  ;;  %v3388_v26 = vld [vmem:[%s16081_s2 + $0xc8] sm:$0xff]  ;;  %v2556_v27 = vsub.f32 1.0, %v12780_v14  ;;  %v3387_v61 = vld [vmem:[%s16081_s2 + $0xc0] sm:$0xff] }
 0x6e4   : > { %v2484_v8 = vadd.f32 %v2483_v41, %v2482_v60  ;;  %v9141_v60 = vld [vmem:[%s16087_s8] ss:$0 sm:$0xff]  ;;  %v3372_v54 = vld [vmem:[%s16081_s2 + $0x48] sm:$0xff] }
 0x6e6   : > { %v2486_v7 = vadd.f32 %v2485_v37, %v2484_v8 }
 0x6e8   : > { %v2488_v42 = vadd.f32 %v2487_v59, %v2486_v7  ;;  %v9142_v7 = vld [vmem:[%s16088_s9] ss:$0 sm:$0xff] }
 0x6ea   : > { %v2490_v40 = vadd.f32 %v2489_v17, %v2488_v42 }
 0x6ec   : > { %v2492_v45 = vadd.f32 %v2491_v35, %v2490_v40 }
 0x6ee   : > { %2493 = vadd.xlane.f32.xlu0 %v2492_v45 }
 0x704   : > { %10515 = vrot.lane.b32.xlu0 %v10514_v63, %s16133_s1  ;;  %v3390_v63 = vld [vmem:[%s16081_s2 + $0xd8] sm:$0xff] }
 0x708   : > { %10530 = vrot.lane.b32.xlu0 %v10529_v56, %s16132_s0  ;;  %v2554_v56 = vsub.f32 1.0, %v12775_v53 }
 0x777   : > { %v2494_v44 = vpop.xlane.xlu0 %2493 }
 0x778   : > { %v2495_v23 = vrot.slane %v2494_v44, 4 }
 0x77a   : > { %v2496_v39 = vadd.f32 %v2495_v23, %v2494_v44 }
 0x77c   : > { %v2497_v21 = vrot.slane %v2496_v39, 2 }
 0x77e   : > { %v2498_v52 = vadd.f32 %v2497_v21, %v2496_v39 }
 0x780   : > { %v2499_v15 = vrot.slane %v2498_v52, 1 }
 0x782   : > { %v2500_v43 = vadd.f32 %v2499_v15, %v2498_v52  ;;  %v3393_v52 = vld [vmem:[%s16081_s2 + $0xf0] sm:$0xff] }
 0x783   : > { %v3377_v15 = vld [vmem:[%s16081_s2 + $0x70] sm:$0xff] }
 0x784   : > { %10005 = vpush %v2500_v43  ;;  %v3392_v43 = vld [vmem:[%s16081_s2 + $0xe8] sm:$0xff] }
 0x7b5   : > { %s10006_s28 = spop %10005 }
 0x7b6   : > { %s2504_s16 = smul.f32 0.0009765625, %s10006_s28 }
 0x7b8   : > { %s2505_s24 = sadd.f32 1e-05, %s2504_s16  ;;  %s9107_s16 = sshll.u32 %s13208_s22, 8 }
 0x7b9   : > { %s13255_s12 = scalar_lea.vmem [#allocation4], %s9107_s16 }
 0x7ba   : > { %v2506_v49 = vstv %s2505_s24 }
 0x7bb   : > { %11793 = vrsqrt.f32 %v2506_v49  ;;  %v3371_v49 = vld [vmem:[%s16081_s2 + $0x40] sm:$0xff] }
 0x7c8   : > { %v11794_v46 = vpop.eup %11793 }
 0x7c9   : > { %10007 = vpush %v11794_v46 }
 0x7fa   : > { %s10008_s15 = spop %10007 }
 0x7fb   : > { %v2509_v2 = vstv %s10008_s15 }
 0x7fc   : > { %v2510_v41 = vmul.f32 %v2509_v2, %v13094_v12  ;;  %v2511_v8 = vmul.f32 %v2509_v2, %v13096_v1  ;;  %v2512_v31 = vmul.f32 %v2509_v2, %v13098_v48  ;;  %v2513_v37 = vmul.f32 %v2509_v2, %v13100_v0  ;;  %v3394_v48 = vld [vmem:[%s16081_s2 + $0xf8] sm:$0xff] }
 0x7fd   : > { %v2514_v57 = vmul.f32 %v2509_v2, %v13102_v10  ;;  %v2515_v59 = vmul.f32 %v2509_v2, %v13110_v11  ;;  %v2516_v42 = vmul.f32 %v2509_v2, %v13116_v55  ;;  %v2517_v17 = vmul.f32 %v2509_v2, %v13121_v18  ;;  %v3378_v0 = vld [vmem:[%s16081_s2 + $0x78] sm:$0xff]  ;;  %9429 = vmatprep.subr.mxu1 %v3394_v48 }
 0x7fe   : > { %v2524_v40 = vmul.f32 %v9141_v60, %v2510_v41  ;;  %v2525_v12 = vmul.f32 %v9141_v60, %v2511_v8  ;;  %v2526_v35 = vmul.f32 %v9141_v60, %v2512_v31  ;;  %v2527_v1 = vmul.f32 %v9141_v60, %v2513_v37  ;;  %9430 = vmatpush3.msra.mxu1 %v3378_v0 }
 0x7ff   : > { %v2528_v45 = vmul.f32 %v9141_v60, %v2514_v57  ;;  %v2529_v10 = vmul.f32 %v9141_v60, %v2515_v59  ;;  %v2530_v11 = vmul.f32 %v9141_v60, %v2516_v42  ;;  %v2531_v18 = vmul.f32 %v9141_v60, %v2517_v17  ;;  %9431 = vmatprep.subr.mxu1 %v3393_v52  ;;  %v3367_v52 = vld [vmem:[%s16081_s2 + $0x20] sm:$0xff] }
 0x800   : > { %v2538_v44 = vadd.f32 %v9142_v7, %v2524_v40  ;;  %v2539_v55 = vadd.f32 %v9142_v7, %v2525_v12  ;;  %v2540_v23 = vadd.f32 %v9142_v7, %v2526_v35  ;;  %v2541_v39 = vadd.f32 %v9142_v7, %v2527_v1  ;;  %9432 = vmatpush3.msra.mxu1 %v3377_v15 }
 0x801   : > { %v2542_v21 = vadd.f32 %v9142_v7, %v2528_v45  ;;  %v2543_v50 = vadd.f32 %v9142_v7, %v2529_v10  ;;  %v2544_v51 = vadd.f32 %v9142_v7, %v2530_v11  ;;  %v2545_v58 = vadd.f32 %v9142_v7, %v2531_v18  ;;  %9433 = vmatprep.subr.mxu1 %v3392_v43  ;;  %v2651_v43 = vld [vmem:[#allocation2 + $0x11] sm:$0xff] }
 0x802   : > { %11795 = vtanh.f32 %v2538_v44  ;;  %9434 = vmatpush3.msra.mxu1 %v3376_v20  ;;  %v2557_v60 = vsub.f32 1.0, %v12783_v16  ;;  %v2558_v41 = vsub.f32 1.0, %v12788_v28  ;;  %v2562_v8 = vmul.f32 %v2554_v56, %v12297_v13 }
 0x803   : > { %11797 = vtanh.f32 %v2539_v55  ;;  %9435 = vmatprep.subr.mxu1 %v3391_v62  ;;  %v2559_v7 = vsub.f32 1.0, %v12791_v33  ;;  %v2563_v57 = vmul.f32 %v2555_v24, %v12311_v22  ;;  %v2560_v17 = vsub.f32 1.0, %v12796_v6  ;;  %v3365_v24 = vld [vmem:[%s16081_s2 + $0x10] sm:$0xff] }
 0x804   : > { %11799 = vtanh.f32 %v2540_v23  ;;  %9436 = vmatpush3.msra.mxu1 %v3375_v47  ;;  %v2564_v40 = vmul.f32 %v2556_v27, %v12320_v25  ;;  %v2565_v1 = vmul.f32 %v2557_v60, %v12332_v30  ;;  %v3370_v25 = vld [vmem:[%s16081_s2 + $0x38] sm:$0xff]  ;;  %v2566_v45 = vmul.f32 %v2558_v41, %v12336_v32  ;;  %v3369_v32 = vld [vmem:[%s16081_s2 + $0x30] sm:$0xff]  ;;  %v13330_v47 = vld [vmem:[#allocation2 + $0x20] sm:$0xff] }
 0x805   : > { %11801 = vtanh.f32 %v2541_v39  ;;  %9437 = vmatprep.subr.mxu1 %v3390_v63  ;;  %v2567_v10 = vmul.f32 %v2559_v7, %v12345_v34  ;;  %v2568_v23 = vmul.f32 %v2560_v17, %v12353_v36  ;;  %v3384_v36 = vld [vmem:[%s16081_s2 + $0xa8] sm:$0xff]  ;;  %v3363_v41 = vld [vmem:[%s16081_s2] sm:$0xff]  ;;  %v13381_v17 = vld [vmem:[#allocation2 + $0x32] sm:$0xff] }
 0x806   : > { %11803 = vtanh.f32 %v2542_v21  ;;  %9438 = vmatpush3.msra.mxu1 %v3374_v19  ;;  %v3382_v19 = vld [vmem:[%s16081_s2 + $0x98] sm:$0xff]  ;;  %v3380_v27 = vld [vmem:[%s16081_s2 + $0x88] sm:$0xff] }
 0x807   : > { %11805 = vtanh.f32 %v2543_v50  ;;  %9439 = vmatprep.subr.mxu1 %v3389_v3  ;;  %v3366_v3 = vld [vmem:[%s16081_s2 + $0x18] sm:$0xff] }
 0x808   : > { %11807 = vtanh.f32 %v2544_v51  ;;  %9440 = vmatpush3.msra.mxu1 %v3373_v5  ;;  %v2659_v51 = vld [vmem:[#allocation2 + $0x12] sm:$0xff] }
 0x809   : > { %11809 = vtanh.f32 %v2545_v58  ;;  %9441 = vmatprep.subr.mxu1 %v3388_v26  ;;  %v3381_v26 = vld [vmem:[%s16081_s2 + $0x90] sm:$0xff] }
 0x80a   : > { %9442 = vmatpush3.msra.mxu1 %v3372_v54  ;;  %v2675_v54 = vld [vmem:[#allocation2 + $0x21] sm:$0xff] }
 0x80b   : > { %9443 = vmatprep.subr.mxu1 %v3387_v61 }
 0x80c   : > { %9444 = vmatpush3.msra.mxu1 %v3371_v49  ;;  %v3364_v49 = vld [vmem:[%s16081_s2 + $0x8] sm:$0xff] }
 0x80f   : > { %v11796_v46 = vpop.eup %11795 }
 0x810   : > { %v11798_v2 = vpop.eup %11797  ;;  %v2570_v31 = vmul.f32 %v11796_v46, %v12775_v53  ;;  %v2561_v53 = vsub.f32 1.0, %v12799_v29  ;;  %v13355_v46 = vld [vmem:[#allocation2 + $0x22] sm:$0xff] }
 0x811   : > { %v11800_v37 = vpop.eup %11799  ;;  %v2571_v59 = vmul.f32 %v11798_v2, %v12777_v9  ;;  %v3386_v9 = vld [vmem:[%s16081_s2 + $0xb8] sm:$0xff]  ;;  %v3379_v2 = vld [vmem:[%s16081_s2 + $0x80] sm:$0xff] }
 0x812   : > { %v11802_v42 = vpop.eup %11801  ;;  %v2572_v12 = vmul.f32 %v11800_v37, %v12780_v14  ;;  %v13233_v35 = vadd.f32 %v2570_v31, %v2562_v8  ;;  %v3385_v14 = vld [vmem:[%s16081_s2 + $0xb0] sm:$0xff]  ;;  %9445 = vmatprep.subr.mxu1 %v3386_v9  ;;  %v2569_v34 = vmul.f32 %v2561_v53, %v12357_v38  ;;  %v3368_v38 = vld [vmem:[%s16081_s2 + $0x28] sm:$0xff] }
 0x813   : > { %v11804_v13 = vpop.eup %11803  ;;  %v2573_v48 = vmul.f32 %v11802_v42, %v12783_v16  ;;  %v13238_v22 = vadd.f32 %v2571_v59, %v2563_v57  ;;  %9446 = vmatpush3.msra.mxu1 %v3370_v25  ;;  %v13369_v31 = vld [vmem:[#allocation2 + $0x30] sm:$0xff] }
 0x814   : > { %v11806_v0 = vpop.eup %11805  ;;  %v2574_v30 = vmul.f32 %v11804_v13, %v12788_v28  ;;  %v13251_v16 = vadd.f32 %v2572_v12, %v2564_v40  ;;  %2586 = vst.msk [vmem:[%s13255_s12] sm:$0xff] %vm416_vm0, %v13233_v35  ;;  %2611 = vst.msk [vmem:[#allocation3 + $0x11] sm:$0xff] %vm416_vm0, %v13233_v35  ;;  %9447 = vmatprep.subr.mxu1 %v3385_v14  ;;  %v2676_v57 = vld [vmem:[#allocation2 + $0x31] sm:$0xff]  ;;  %v13389_v13 = vld [vmem:[#allocation2 + $0x40] sm:$0xff] }
 0x815   : > { %v11808_v28 = vpop.eup %11807  ;;  %v2575_v11 = vmul.f32 %v11806_v0, %v12791_v33  ;;  %v13267_v44 = vadd.f32 %v2573_v48, %v2565_v1  ;;  %2587 = vst.msk [vmem:[%s13255_s12 + $0x8] sm:$0xff] %vm416_vm0, %v13238_v22  ;;  %2612 = vst.msk [vmem:[#allocation3 + $0x21] sm:$0xff] %vm416_vm0, %v13238_v22  ;;  %9448 = vmatpush3.msra.mxu1 %v3369_v32  ;;  %v2677_v48 = vld [vmem:[#allocation2 + $0x41] sm:$0xff] }
 0x816   : > { %v11810_v55 = vpop.eup %11809  ;;  %v2576_v18 = vmul.f32 %v11808_v28, %v12796_v6  ;;  %v13276_v39 = vadd.f32 %v2574_v30, %v2566_v45  ;;  %2588 = vst.msk [vmem:[%s13255_s12 + $0x10] sm:$0xff] %vm416_vm0, %v13251_v16  ;;  %2613 = vst.msk [vmem:[#allocation3 + $0x31] sm:$0xff] %vm416_vm0, %v13251_v16  ;;  %v3383_v6 = vld [vmem:[%s16081_s2 + $0xa0] sm:$0xff]  ;;  %9449 = vmatprep.subr.mxu1 %v3384_v36  ;;  %v13407_v30 = vld [vmem:[#allocation2 + $0x50] sm:$0xff] }
 0x817   : > { %v2577_v33 = vmul.f32 %v11810_v55, %v12799_v29  ;;  %v13285_v21 = vadd.f32 %v2575_v11, %v2567_v10  ;;  %2589 = vst.msk [vmem:[%s13255_s12 + $0x18] sm:$0xff] %vm416_vm0, %v13267_v44  ;;  %2614 = vst.msk [vmem:[#allocation3 + $0x41] sm:$0xff] %vm416_vm0, %v13267_v44  ;;  %9450 = vmatpush3.msra.mxu1 %v3368_v38  ;;  %v13399_v14 = vld [vmem:[#allocation2 + $0x42] sm:$0xff]  ;;  %v2678_v10 = vld [vmem:[#allocation2 + $0x51] sm:$0xff] }
 0x818   : > { %v13301_v29 = vadd.f32 %v2576_v18, %v2568_v23  ;;  %2590 = vst.msk [vmem:[%s13255_s12 + $0x20] sm:$0xff] %vm416_vm0, %v13276_v39  ;;  %2615 = vst.msk [vmem:[#allocation3 + $0x51] sm:$0xff] %vm416_vm0, %v13276_v39  ;;  %9451 = vmatprep.subr.mxu1 %v3383_v6  ;;  %v13419_v23 = vld [vmem:[#allocation2 + $0x52] sm:$0xff] }
 0x819   : > { %v13311_v15 = vadd.f32 %v2577_v33, %v2569_v34  ;;  %2591 = vst.msk [vmem:[%s13255_s12 + $0x28] sm:$0xff] %vm416_vm0, %v13285_v21  ;;  %2616 = vst.msk [vmem:[#allocation3 + $0x61] sm:$0xff] %vm416_vm0, %v13285_v21  ;;  %9452 = vmatpush3.msra.mxu1 %v3367_v52  ;;  %v13427_v33 = vld [vmem:[#allocation2 + $0x60] sm:$0xff]  ;;  %v3398_v38 = vld [vmem:[%s16081_s2 + $0x118] sm:$0xff] }
 0x81a   : > { %2592 = vst.msk [vmem:[%s13255_s12 + $0x30] sm:$0xff] %vm416_vm0, %v13301_v29  ;;  %2617 = vst.msk [vmem:[#allocation3 + $0x71] sm:$0xff] %vm416_vm0, %v13301_v29  ;;  %9453 = vmatprep.subr.mxu1 %v3382_v19  ;;  %9877 = vmatprep.subr.mxu0 %v3398_v38  ;;  %v3397_v52 = vld [vmem:[%s16081_s2 + $0x110] sm:$0xff] }
 0x81b   : > { %2593 = vst.msk [vmem:[%s13255_s12 + $0x38] sm:$0xff] %vm416_vm0, %v13311_v15  ;;  %2618 = vst.msk [vmem:[#allocation3 + $0x81] sm:$0xff] %vm416_vm0, %v13311_v15  ;;  %v2715_v50 = vld [vmem:[#allocation3 + $0x10] sm:$0xff]  ;;  %9454 = vmatpush3.msra.mxu1 %v3366_v3  ;;  %9878 = vmatpush3.msra.mxu0 %v3398_v38 }
 0x81c   : > { %v10534_v20 = vpack.i.bf16 %v2651_v43, %v2715_v50  ;;  %v2723_v58 = vld [vmem:[#allocation3 + $0x11] sm:$0xff]  ;;  %v2739_v56 = vld [vmem:[#allocation3 + $0x20] sm:$0xff]  ;;  %9455 = vmatprep.subr.mxu1 %v3381_v26  ;;  %9879 = vmatprep.subr.mxu0 %v3397_v52 }
 0x81d   : > { %v10544_v62 = vpack.i.bf16 %v2659_v51, %v2723_v58  ;;  %v2731_v63 = vld [vmem:[#allocation3 + $0x12] sm:$0xff]  ;;  %v10564_v61 = vpack.i.bf16 %v2675_v54, %v2739_v56  ;;  %9456 = vmatpush3.msra.mxu1 %v3365_v24  ;;  %v13357_v60 = vld [vmem:[#allocation3 + $0x21] sm:$0xff]  ;;  %9880 = vmatpush3.msra.mxu0 %v3397_v52 }
 0x81e   : > { %10535 = vrot.lane.b32.xlu0 %v10534_v20, %s16130_s25  ;;  %10540 = vrot.lane.b32.xlu1 %v10534_v20, %s16133_s1  ;;  %v10554_v5 = vpack.i.bf16 %v13330_v47, %v2731_v63  ;;  %v10579_v8 = vpack.i.bf16 %v13355_v46, %v13357_v60  ;;  %v13371_v37 = vld [vmem:[#allocation3 + $0x22] sm:$0xff]  ;;  %v2740_v59 = vld [vmem:[#allocation3 + $0x30] sm:$0xff] }
 0x81f   : > { %9457 = vmatprep.subr.mxu1 %v3380_v27  ;;  %v10589_v7 = vpack.i.bf16 %v13369_v31, %v13371_v37  ;;  %v10599_v42 = vpack.i.bf16 %v2676_v57, %v2740_v59  ;;  %v13383_v40 = vld [vmem:[#allocation3 + $0x31] sm:$0xff]  ;;  %v2741_v9 = vld [vmem:[#allocation3 + $0x40] sm:$0xff]  ;;  %v3396_v20 = vld [vmem:[%s16081_s2 + $0x108] sm:$0xff]  ;;  %v10516_v59 = vpop.permute.xlu0 %10515 }
 0x820   : > { %9458 = vmatpush3.msra.mxu1 %v3364_v49  ;;  %v10614_v12 = vpack.i.bf16 %v13381_v17, %v13383_v40  ;;  %v13391_v53 = vld [vmem:[#allocation3 + $0x32] sm:$0xff]  ;;  %v10634_v25 = vpack.i.bf16 %v2677_v48, %v2741_v9  ;;  %v13401_v0 = vld [vmem:[#allocation3 + $0x41] sm:$0xff]  ;;  %9881 = vmatprep.subr.mxu0 %v3396_v20 }
 0x821   : > { %9459 = vmatprep.subr.mxu1 %v3379_v2  ;;  %v10624_v1 = vpack.i.bf16 %v13389_v13, %v13391_v53  ;;  %v10649_v45 = vpack.i.bf16 %v13399_v14, %v13401_v0  ;;  %v13409_v32 = vld [vmem:[#allocation3 + $0x42] sm:$0xff]  ;;  %v2742_v11 = vld [vmem:[#allocation3 + $0x50] sm:$0xff]  ;;  %9882 = vmatpush3.msra.mxu0 %v3396_v20 }
 0x822   : > { %10545 = vrot.lane.b32.xlu0 %v10544_v62, %s16131_s30  ;;  %10550 = vrot.lane.b32.xlu1 %v10544_v62, %s16128_s13  ;;  %v10659_v28 = vpack.i.bf16 %v13407_v30, %v13409_v32  ;;  %v10669_v55 = vpack.i.bf16 %v2678_v10, %v2742_v11  ;;  %v13421_v18 = vld [vmem:[#allocation3 + $0x51] sm:$0xff]  ;;  %v2679_v43 = vld [vmem:[#allocation2 + $0x61] sm:$0xff] }
 0x823   : > { %9460 = vmatpush3.msra.mxu1 %v3363_v41  ;;  %v10684_v34 = vpack.i.bf16 %v13419_v23, %v13421_v18  ;;  %v2735_v36 = vld [vmem:[#allocation3 + $0x52] sm:$0xff]  ;;  %v2743_v50 = vld [vmem:[#allocation3 + $0x60] sm:$0xff] }
 0x824   : > { %v10694_v6 = vpack.i.bf16 %v13427_v33, %v2735_v36  ;;  %v10704_v51 = vpack.i.bf16 %v2679_v43, %v2743_v50  ;;  %v13443_v58 = vld [vmem:[#allocation2 + $0x62] sm:$0xff]  ;;  %v13456_v3 = vld [vmem:[#allocation2 + $0x70] sm:$0xff] }
 0x825   : > { %v13445_v62 = vld [vmem:[#allocation3 + $0x61] sm:$0xff]  ;;  %v2680_v54 = vld [vmem:[#allocation2 + $0x71] sm:$0xff] }
 0x826   : > { %10555 = vrot.lane.b32.xlu0 %v10554_v5, %s16127_s26  ;;  %10560 = vrot.lane.b32.xlu1 %v10554_v5, %s16129_s23  ;;  %v3395_v63 = vld [vmem:[%s16081_s2 + $0x100] sm:$0xff]  ;;  %v10719_v19 = vpack.i.bf16 %v13443_v58, %v13445_v62  ;;  %v2744_v56 = vld [vmem:[#allocation3 + $0x70] sm:$0xff] }
 0x827   : > { %9883 = vmatprep.subr.mxu0 %v3395_v63  ;;  %v2736_v5 = vld [vmem:[#allocation3 + $0x62] sm:$0xff]  ;;  %v10739_v24 = vpack.i.bf16 %v2680_v54, %v2744_v56  ;;  %v13467_v27 = vld [vmem:[#allocation2 + $0x72] sm:$0xff] }
 0x828   : > { %9884 = vmatpush3.msra.mxu0 %v3395_v63  ;;  %v10729_v26 = vpack.i.bf16 %v13456_v3, %v2736_v5  ;;  %v2673_v2 = vld [vmem:[#allocation2 + $0x80] sm:$0xff]  ;;  %v2737_v41 = vld [vmem:[#allocation3 + $0x72] sm:$0xff] }
 0x829   : > { %v2674_v48 = vld [vmem:[#allocation2 + $0x90] sm:$0xff]  ;;  %v2738_v9 = vld [vmem:[#allocation3 + $0x82] sm:$0xff] }
 0x82a   : > { %10565 = vrot.lane.b32.xlu0 %v10564_v61, %s16132_s0  ;;  %10570 = vrot.lane.b32.xlu1 %v10564_v61, %s16130_s25 }
 0x82e   : > { %10575 = vrot.lane.b32.xlu0 %v10564_v61, %s16133_s1  ;;  %10580 = vrot.lane.b32.xlu1 %v10579_v8, %s16131_s30  ;;  %v13469_v61 = vld [vmem:[#allocation3 + $0x71] sm:$0xff] }
 0x82f   : > { %v10754_v49 = vpack.i.bf16 %v13467_v27, %v13469_v61 }
 0x832   : > { %10585 = vrot.lane.b32.xlu0 %v10579_v8, %s16128_s13  ;;  %10590 = vrot.lane.b32.xlu1 %v10589_v7, %s16127_s26  ;;  %v10764_v8 = vpack.i.bf16 %v2673_v2, %v2737_v41 }
 0x836   : > { %10595 = vrot.lane.b32.xlu0 %v10589_v7, %s16129_s23  ;;  %10600 = vrot.lane.b32.xlu1 %v10599_v42, %s16132_s0  ;;  %v2745_v7 = vld [vmem:[#allocation3 + $0x80] sm:$0xff] }
 0x83a   : > { %10605 = vrot.lane.b32.xlu0 %v10599_v42, %s16130_s25  ;;  %10610 = vrot.lane.b32.xlu1 %v10599_v42, %s16133_s1  ;;  %v13482_v42 = vld [vmem:[#allocation2 + $0x82] sm:$0xff] }
 0x83e   : > { %10615 = vrot.lane.b32.xlu0 %v10614_v12, %s16131_s30  ;;  %10620 = vrot.lane.b32.xlu1 %v10614_v12, %s16128_s13  ;;  %v13484_v12 = vld [vmem:[#allocation3 + $0x81] sm:$0xff] }
 0x842   : > { %10625 = vrot.lane.b32.xlu0 %v10624_v1, %s16127_s26  ;;  %10630 = vrot.lane.b32.xlu1 %v10624_v1, %s16129_s23  ;;  %v10784_v1 = vpack.i.bf16 %v13482_v42, %v13484_v12 }
 0x846   : > { %10635 = vrot.lane.b32.xlu0 %v10634_v25, %s16132_s0  ;;  %10640 = vrot.lane.b32.xlu1 %v10634_v25, %s16130_s25 }
 0x84a   : > { %10645 = vrot.lane.b32.xlu0 %v10634_v25, %s16133_s1  ;;  %10650 = vrot.lane.b32.xlu1 %v10649_v45, %s16131_s30  ;;  %v13492_v25 = vpop.permute.xlu0 %10530 }
 0x84e   : > { %10655 = vrot.lane.b32.xlu0 %v10649_v45, %s16128_s13  ;;  %10660 = vrot.lane.b32.xlu1 %v10659_v28, %s16127_s26 }
 0x852   : > { %10665 = vrot.lane.b32.xlu0 %v10659_v28, %s16129_s23  ;;  %10670 = vrot.lane.b32.xlu1 %v10669_v55, %s16132_s0  ;;  %v2762_v28 = vld [vmem:[#allocation3 + $0x92] sm:$0xff] }
 0x856   : > { %10675 = vrot.lane.b32.xlu0 %v10669_v55, %s16130_s25  ;;  %10680 = vrot.lane.b32.xlu1 %v10669_v55, %s16133_s1  ;;  %v10518_v55 = vunpack.i.h.bf16 %v10516_v59 }
 0x85a   : > { %10685 = vrot.lane.b32.xlu0 %v10684_v34, %s16131_s30  ;;  %10690 = vrot.lane.b32.xlu1 %v10684_v34, %s16128_s13  ;;  %v10517_v34 = vunpack.i.l.bf16 %v10516_v59 }
 0x85c   : > { %v3267_v20 = vsel %vm416_vm0, %v13355_v46, %v10517_v34 }
 0x85e   : > { %10695 = vrot.lane.b32.xlu0 %v10694_v6, %s16127_s26  ;;  %10700 = vrot.lane.b32.xlu1 %v10694_v6, %s16129_s23 }
 0x862   : > { %10705 = vrot.lane.b32.xlu0 %v10704_v51, %s16132_s0  ;;  %10710 = vrot.lane.b32.xlu1 %v10704_v51, %s16130_s25 }
 0x866   : > { %10715 = vrot.lane.b32.xlu0 %v10704_v51, %s16133_s1  ;;  %10720 = vrot.lane.b32.xlu1 %v10719_v19, %s16131_s30 }
 0x86a   : > { %3331 = vrot.lane.b32.xlu0 %v13371_v37, %s16133_s1  ;;  %10725 = vrot.lane.b32.xlu1 %v10719_v19, %s16128_s13  ;;  %v2681_v37 = vld [vmem:[#allocation2 + $0x81] sm:$0xff] }
 0x86b   : > { %v10774_v57 = vpack.i.bf16 %v2681_v37, %v2745_v7 }
 0x86e   : > { %10730 = vrot.lane.b32.xlu0 %v10729_v26, %s16127_s26  ;;  %3333 = vrot.lane.b32.xlu1 %v13391_v53, %s16133_s1  ;;  %v10521_v53 = vpop.permute.xlu1 %10520 }
 0x86f   : > { %v10523_v38 = vunpack.i.h.bf16 %v10521_v53  ;;  %v10522_v6 = vunpack.i.l.bf16 %v10521_v53 }
 0x872   : > { %10735 = vrot.lane.b32.xlu0 %v10729_v26, %s16129_s23  ;;  %10740 = vrot.lane.b32.xlu1 %v10739_v24, %s16132_s0  ;;  %v10526_v45 = vpop.permute.xlu1 %10525 }
 0x873   : > { %v10528_v51 = vunpack.i.h.bf16 %v10526_v45  ;;  %v10527_v63 = vunpack.i.l.bf16 %v10526_v45 }
 0x876   : > { %10745 = vrot.lane.b32.xlu0 %v10739_v24, %s16130_s25  ;;  %10750 = vrot.lane.b32.xlu1 %v10739_v24, %s16133_s1 }
 0x87a   : > { %10755 = vrot.lane.b32.xlu0 %v10754_v49, %s16131_s30  ;;  %3335 = vrot.lane.b32.xlu1 %v13409_v32, %s16133_s1  ;;  %v10789_v32 = vpack.i.bf16 %v2674_v48, %v2738_v9 }
 0x87e   : > { %10760 = vrot.lane.b32.xlu0 %v10754_v49, %s16128_s13  ;;  %10765 = vrot.lane.b32.xlu1 %v10764_v8, %s16127_s26 }
 0x882   : > { %3337 = vrot.lane.b32.xlu0 %v2735_v36, %s16133_s1  ;;  %10770 = vrot.lane.b32.xlu1 %v10764_v8, %s16129_s23  ;;  %v2619_v36 = vld [vmem:[#allocation2] sm:$0xff] }
 0x883   : > { %v3211_v50 = vsel %vm416_vm0, %v2619_v36, %v10518_v55 }
 0x884   : > { %v3219_v19 = vsel %vm1094_vm2, %v3211_v50, %v10523_v38 }
 0x885   : > { %v3227_v37 = vsel %vm1103_vm3, %v3219_v19, %v10528_v51 }
 0x886   : > { %10775 = vrot.lane.b32.xlu0 %v10774_v57, %s16132_s0  ;;  %10780 = vrot.lane.b32.xlu1 %v10774_v57, %s16130_s25 }
 0x88a   : > { %10785 = vrot.lane.b32.xlu0 %v10784_v1, %s16131_s30  ;;  %3339 = vrot.lane.b32.xlu1 %v2736_v5, %s16133_s1  ;;  %v3275_v5 = vsel %vm1094_vm2, %v3267_v20, %v10522_v6 }
 0x88b   : > { %v3283_v7 = vsel %vm1103_vm3, %v3275_v5, %v10527_v63 }
 0x88e   : > { %10790 = vrot.lane.b32.xlu0 %v10789_v32, %s16127_s26  ;;  %3341 = vrot.lane.b32.xlu1 %v2737_v41, %s16133_s1 }
 0x890   : > { %v10536_v10 = vpop.permute.xlu0 %10535  ;;  %v10541_v11 = vpop.permute.xlu1 %10540 }
 0x891   : > { %v10538_v26 = vunpack.i.h.bf16 %v10536_v10  ;;  %v10537_v54 = vunpack.i.l.bf16 %v10536_v10  ;;  %v10543_v38 = vunpack.i.h.bf16 %v10541_v11  ;;  %v10542_v6 = vunpack.i.l.bf16 %v10541_v11 }
 0x892   : > { %3343 = vrot.lane.b32.xlu1 %v2738_v9, %s16133_s1  ;;  %3345 = vrot.lane.b32.xlu0 %v2762_v28, %s16133_s1 }
 0x893   : > { %v3235_v46 = vsel %vm1112_vm4, %v3227_v37, %v10538_v26  ;;  %v3291_v57 = vsel %vm1112_vm4, %v3283_v7, %v10537_v54  ;;  %v3212_v54 = vsel %vm416_vm0, %v13136_v4, %v10543_v38 }
 0x894   : > { %v10546_v52 = vpop.permute.xlu0 %10545  ;;  %v10551_v43 = vpop.permute.xlu1 %10550 }
 0x895   : > { %v10548_v49 = vunpack.i.h.bf16 %v10546_v52  ;;  %v10547_v2 = vunpack.i.l.bf16 %v10546_v52  ;;  %v10553_v52 = vunpack.i.h.bf16 %v10551_v43  ;;  %v10552_v50 = vunpack.i.l.bf16 %v10551_v43 }
 0x897   : > { %v3243_v1 = vsel %vm1121_vm5, %v3235_v46, %v10548_v49  ;;  %v3299_v45 = vsel %vm1121_vm5, %v3291_v57, %v10547_v2  ;;  %v3220_v11 = vsel %vm1094_vm2, %v3212_v54, %v10553_v52 }
 0x898   : > { %v10556_v56 = vpop.permute.xlu0 %10555  ;;  %v10561_v24 = vpop.permute.xlu1 %10560 }
 0x899   : > { %v10558_v41 = vunpack.i.h.bf16 %v10556_v56  ;;  %v10557_v8 = vunpack.i.l.bf16 %v10556_v56  ;;  %v10563_v20 = vunpack.i.h.bf16 %v10561_v24  ;;  %v10562_v51 = vunpack.i.l.bf16 %v10561_v24 }
 0x89a   : > { %v3268_v56 = vsel %vm416_vm0, %v13381_v17, %v10542_v6 }
 0x89b   : > { %v3307_v32 = vsel %vm1130_vm6, %v3299_v45, %v10557_v8  ;;  %v3251_v28 = vsel %vm1130_vm6, %v3243_v1, %v10558_v41  ;;  %v3276_v41 = vsel %vm1094_vm2, %v3268_v56, %v10552_v50  ;;  %v3228_v24 = vsel %vm1103_vm3, %v3220_v11, %v10563_v20 }
 0x89c   : > { %v10566_v59 = vpop.permute.xlu0 %10565  ;;  %v10571_v53 = vpop.permute.xlu1 %10570  ;;  %v3284_v37 = vsel %vm1103_vm3, %v3276_v41, %v10562_v51 }
 0x89d   : > { %v10568_v48 = vunpack.i.h.bf16 %v10566_v59  ;;  %v10567_v9 = vunpack.i.l.bf16 %v10566_v59  ;;  %v10573_v63 = vunpack.i.h.bf16 %v10571_v53  ;;  %v10572_v19 = vunpack.i.l.bf16 %v10571_v53 }
 0x89f   : > { %v3315_v10 = vsel %vm1139_vm7, %v3307_v32, %v10567_v9  ;;  %v13513_v55 = vsel %vm1139_vm7, %v3251_v28, %v10568_v48  ;;  %v3236_v7 = vsel %vm1112_vm4, %v3228_v24, %v10573_v63  ;;  %v3292_v46 = vsel %vm1112_vm4, %v3284_v37, %v10572_v19 }
 0x8a0   : > { %v10576_v34 = vpop.permute.xlu0 %10575  ;;  %v10581_v36 = vpop.permute.xlu1 %10580  ;;  %3494 = vmatprep.mubr.f32.mxu1 %v3315_v10 }
 0x8a1   : > { %3495 = vmatmul.mubr.f32.vlgmr.msra.gmra.mxu1 %v13513_v55  ;;  %v10583_v49 = vunpack.i.h.bf16 %v10581_v36  ;;  %v10582_v2 = vunpack.i.l.bf16 %v10581_v36  ;;  %v10578_v6 = vunpack.i.h.bf16 %v10576_v34  ;;  %v10577_v52 = vunpack.i.l.bf16 %v10576_v34 }
 0x8a3   : > { %v3300_v53 = vsel %vm1121_vm5, %v3292_v46, %v10582_v2  ;;  %v3244_v1 = vsel %vm1121_vm5, %v3236_v7, %v10583_v49  ;;  %v3213_v49 = vsel %vm416_vm0, %v13330_v47, %v10578_v6  ;;  %v3269_v2 = vsel %vm416_vm0, %v13399_v14, %v10577_v52 }
 0x8a4   : > { %v10586_v5 = vpop.permute.xlu0 %10585  ;;  %v10591_v26 = vpop.permute.xlu1 %10590 }
 0x8a5   : > { %v10593_v8 = vunpack.i.h.bf16 %v10591_v26  ;;  %v10592_v43 = vunpack.i.l.bf16 %v10591_v26  ;;  %v10588_v50 = vunpack.i.h.bf16 %v10586_v5  ;;  %v10587_v20 = vunpack.i.l.bf16 %v10586_v5 }
 0x8a7   : > { %v3308_v48 = vsel %vm1130_vm6, %v3300_v53, %v10592_v43  ;;  %v3252_v9 = vsel %vm1130_vm6, %v3244_v1, %v10593_v8  ;;  %v3221_v8 = vsel %vm1094_vm2, %v3213_v49, %v10588_v50  ;;  %v3277_v34 = vsel %vm1094_vm2, %v3269_v2, %v10587_v20 }
 0x8a8   : > { %v10596_v4 = vpop.permute.xlu0 %10595  ;;  %v10601_v57 = vpop.permute.xlu1 %10600 }
 0x8a9   : > { %v10603_v59 = vunpack.i.h.bf16 %v10601_v57  ;;  %v10602_v17 = vunpack.i.l.bf16 %v10601_v57  ;;  %v10598_v51 = vunpack.i.h.bf16 %v10596_v4  ;;  %v10597_v63 = vunpack.i.l.bf16 %v10596_v4 }
 0x8ab   : > { %v3316_v45 = vsel %vm1139_vm7, %v3308_v48, %v10602_v17  ;;  %v13532_v32 = vsel %vm1139_vm7, %v3252_v9, %v10603_v59  ;;  %v3229_v24 = vsel %vm1103_vm3, %v3221_v8, %v10598_v51  ;;  %v3285_v37 = vsel %vm1103_vm3, %v3277_v34, %v10597_v63 }
 0x8ac   : > { %v10606_v28 = vpop.permute.xlu0 %10605  ;;  %v10611_v10 = vpop.permute.xlu1 %10610  ;;  %3499 = vmatprep.mubr.f32.mxu1 %v3316_v45 }
 0x8ad   : > { %3500 = vmatmul.mubr.f32.gmra.mxu1 %v13532_v32  ;;  %v10608_v19 = vunpack.i.h.bf16 %v10606_v28  ;;  %v10607_v26 = vunpack.i.l.bf16 %v10606_v28  ;;  %v10612_v6 = vunpack.i.l.bf16 %v10611_v10 }
 0x8af   : > { %v3237_v7 = vsel %vm1112_vm4, %v3229_v24, %v10608_v19  ;;  %v3293_v46 = vsel %vm1112_vm4, %v3285_v37, %v10607_v26  ;;  %v3270_v2 = vsel %vm416_vm0, %v13419_v23, %v10612_v6 }
 0x8b0   : > { %v10616_v36 = vpop.permute.xlu0 %10615  ;;  %v10621_v38 = vpop.permute.xlu1 %10620 }
 0x8b1   : > { %v10618_v11 = vunpack.i.h.bf16 %v10616_v36  ;;  %v10617_v41 = vunpack.i.l.bf16 %v10616_v36  ;;  %v10613_v36 = vunpack.i.h.bf16 %v10611_v10  ;;  %v10623_v52 = vunpack.i.h.bf16 %v10621_v38 }
 0x8b2   : > { %v10622_v50 = vunpack.i.l.bf16 %v10621_v38 }
 0x8b3   : > { %v3301_v59 = vsel %vm1121_vm5, %v3293_v46, %v10617_v41  ;;  %v3245_v17 = vsel %vm1121_vm5, %v3237_v7, %v10618_v11  ;;  %v3214_v49 = vsel %vm416_vm0, %v13369_v31, %v10613_v36 }
 0x8b4   : > { %v10626_v54 = vpop.permute.xlu0 %10625  ;;  %v10631_v56 = vpop.permute.xlu1 %10630  ;;  %v3222_v10 = vsel %vm1094_vm2, %v3214_v49, %v10623_v52  ;;  %v3278_v8 = vsel %vm1094_vm2, %v3270_v2, %v10622_v50 }
 0x8b5   : > { %v10628_v43 = vunpack.i.h.bf16 %v10626_v54  ;;  %v10627_v5 = vunpack.i.l.bf16 %v10626_v54  ;;  %v10633_v20 = vunpack.i.h.bf16 %v10631_v56  ;;  %v10632_v51 = vunpack.i.l.bf16 %v10631_v56 }
 0x8b7   : > { %v3309_v53 = vsel %vm1130_vm6, %v3301_v59, %v10627_v5  ;;  %v3253_v1 = vsel %vm1130_vm6, %v3245_v17, %v10628_v43  ;;  %v3230_v56 = vsel %vm1103_vm3, %v3222_v10, %v10633_v20  ;;  %v3286_v43 = vsel %vm1103_vm3, %v3278_v8, %v10632_v51 }
 0x8b8   : > { %v10636_v47 = vpop.permute.xlu0 %10635  ;;  %v10641_v4 = vpop.permute.xlu1 %10640 }
 0x8b9   : > { %v10638_v57 = vunpack.i.h.bf16 %v10636_v47  ;;  %v10637_v14 = vunpack.i.l.bf16 %v10636_v47  ;;  %v10643_v63 = vunpack.i.h.bf16 %v10641_v4  ;;  %v10642_v19 = vunpack.i.l.bf16 %v10641_v4 }
 0x8bb   : > { %v3317_v48 = vsel %vm1139_vm7, %v3309_v53, %v10637_v14  ;;  %v13551_v9 = vsel %vm1139_vm7, %v3253_v1, %v10638_v57  ;;  %v3238_v5 = vsel %vm1112_vm4, %v3230_v56, %v10643_v63  ;;  %v3294_v24 = vsel %vm1112_vm4, %v3286_v43, %v10642_v19 }
 0x8bc   : > { %v10646_v45 = vpop.permute.xlu0 %10645  ;;  %v10651_v28 = vpop.permute.xlu1 %10650  ;;  %3504 = vmatprep.mubr.f32.mxu1 %v3317_v48 }
 0x8bd   : > { %3505 = vmatmul.mubr.f32.gmra.mxu1 %v13551_v9  ;;  %v10653_v11 = vunpack.i.h.bf16 %v10651_v28  ;;  %v10652_v41 = vunpack.i.l.bf16 %v10651_v28  ;;  %v10648_v28 = vunpack.i.h.bf16 %v10646_v45  ;;  %v10647_v36 = vunpack.i.l.bf16 %v10646_v45 }
 0x8bf   : > { %v3302_v46 = vsel %vm1121_vm5, %v3294_v24, %v10652_v41  ;;  %v3246_v47 = vsel %vm1121_vm5, %v3238_v5, %v10653_v11  ;;  %v3215_v49 = vsel %vm416_vm0, %v13389_v13, %v10648_v28  ;;  %v3271_v2 = vsel %vm416_vm0, %v13443_v58, %v10647_v36 }
 0x8c0   : > { %v10656_v26 = vpop.permute.xlu0 %10655  ;;  %v10661_v54 = vpop.permute.xlu1 %10660 }
 0x8c1   : > { %v10663_v34 = vunpack.i.h.bf16 %v10661_v54  ;;  %v10662_v38 = vunpack.i.l.bf16 %v10661_v54  ;;  %v10658_v6 = vunpack.i.h.bf16 %v10656_v26  ;;  %v10657_v52 = vunpack.i.l.bf16 %v10656_v26 }
 0x8c3   : > { %v3310_v4 = vsel %vm1130_vm6, %v3302_v46, %v10662_v38  ;;  %v3254_v57 = vsel %vm1130_vm6, %v3246_v47, %v10663_v34  ;;  %v3223_v10 = vsel %vm1094_vm2, %v3215_v49, %v10658_v6  ;;  %v3279_v45 = vsel %vm1094_vm2, %v3271_v2, %v10657_v52 }
 0x8c4   : > { %v10666_v31 = vpop.permute.xlu0 %10665  ;;  %v10671_v37 = vpop.permute.xlu1 %10670 }
 0x8c5   : > { %v10673_v7 = vunpack.i.h.bf16 %v10671_v37  ;;  %v10672_v23 = vunpack.i.l.bf16 %v10671_v37  ;;  %v10668_v50 = vunpack.i.h.bf16 %v10666_v31  ;;  %v10667_v20 = vunpack.i.l.bf16 %v10666_v31 }
 0x8c7   : > { %v3318_v14 = vsel %vm1139_vm7, %v3310_v4, %v10672_v23  ;;  %v13570_v59 = vsel %vm1139_vm7, %v3254_v57, %v10673_v7  ;;  %v3231_v34 = vsel %vm1103_vm3, %v3223_v10, %v10668_v50  ;;  %v3287_v38 = vsel %vm1103_vm3, %v3279_v45, %v10667_v20 }
 0x8c8   : > { %v10676_v17 = vpop.permute.xlu0 %10675  ;;  %v10681_v53 = vpop.permute.xlu1 %10680  ;;  %3509 = vmatprep.mubr.f32.mxu1 %v3318_v14 }
 0x8c9   : > { %3510 = vmatmul.mubr.f32.gmra.mxu1 %v13570_v59  ;;  %v10678_v51 = vunpack.i.h.bf16 %v10676_v17  ;;  %v10677_v63 = vunpack.i.l.bf16 %v10676_v17  ;;  %v10683_v14 = vunpack.i.h.bf16 %v10681_v53  ;;  %v10682_v28 = vunpack.i.l.bf16 %v10681_v53 }
 0x8cb   : > { %v3239_v56 = vsel %vm1112_vm4, %v3231_v34, %v10678_v51  ;;  %v3295_v43 = vsel %vm1112_vm4, %v3287_v38, %v10677_v63  ;;  %v3216_v51 = vsel %vm416_vm0, %v13407_v30, %v10683_v14 }
 0x8cc   : > { %v10686_v1 = vpop.permute.xlu0 %10685  ;;  %v10691_v48 = vpop.permute.xlu1 %10690 }
 0x8cd   : > { %v10688_v11 = vunpack.i.h.bf16 %v10686_v1  ;;  %v10687_v41 = vunpack.i.l.bf16 %v10686_v1  ;;  %v10693_v6 = vunpack.i.h.bf16 %v10691_v48  ;;  %v10692_v52 = vunpack.i.l.bf16 %v10691_v48 }
 0x8cf   : > { %v3303_v31 = vsel %vm1121_vm5, %v3295_v43, %v10687_v41  ;;  %v3247_v37 = vsel %vm1121_vm5, %v3239_v56, %v10688_v11  ;;  %v3272_v11 = vsel %vm416_vm0, %v13467_v27, %v10682_v28  ;;  %v3224_v48 = vsel %vm1094_vm2, %v3216_v51, %v10693_v6 }
 0x8d0   : > { %v10696_v19 = vpop.permute.xlu0 %10695  ;;  %v10701_v54 = vpop.permute.xlu1 %10700  ;;  %v3280_v10 = vsel %vm1094_vm2, %v3272_v11, %v10692_v52 }
 0x8d1   : > { %v10698_v8 = vunpack.i.h.bf16 %v10696_v19  ;;  %v10697_v26 = vunpack.i.l.bf16 %v10696_v19  ;;  %v10703_v50 = vunpack.i.h.bf16 %v10701_v54  ;;  %v10702_v20 = vunpack.i.l.bf16 %v10701_v54 }
 0x8d3   : > { %v3311_v7 = vsel %vm1130_vm6, %v3303_v31, %v10697_v26  ;;  %v3255_v23 = vsel %vm1130_vm6, %v3247_v37, %v10698_v8  ;;  %v3232_v30 = vsel %vm1103_vm3, %v3224_v48, %v10703_v50  ;;  %v3288_v8 = vsel %vm1103_vm3, %v3280_v10, %v10702_v20 }
 0x8d4   : > { %v10706_v13 = vpop.permute.xlu0 %10705  ;;  %v10711_v5 = vpop.permute.xlu1 %10710 }
 0x8d5   : > { %v10708_v24 = vunpack.i.h.bf16 %v10706_v13  ;;  %v10707_v58 = vunpack.i.l.bf16 %v10706_v13  ;;  %v10713_v63 = vunpack.i.h.bf16 %v10711_v5  ;;  %v10712_v19 = vunpack.i.l.bf16 %v10711_v5 }
 0x8d7   : > { %v3319_v46 = vsel %vm1139_vm7, %v3311_v7, %v10707_v58  ;;  %v13589_v47 = vsel %vm1139_vm7, %v3255_v23, %v10708_v24  ;;  %v3240_v26 = vsel %vm1112_vm4, %v3232_v30, %v10713_v63  ;;  %v3296_v27 = vsel %vm1112_vm4, %v3288_v8, %v10712_v19 }
 0x8d8   : > { %v13591_v4 = vpop.permute.xlu0 %10715  ;;  %v10721_v57 = vpop.permute.xlu1 %10720  ;;  %3514 = vmatprep.mubr.f32.mxu1 %v3319_v46 }
 0x8d9   : > { %3515 = vmatmul.mubr.f32.gmra.mxu1 %v13589_v47  ;;  %v10723_v53 = vunpack.i.h.bf16 %v10721_v57  ;;  %v10722_v41 = vunpack.i.l.bf16 %v10721_v57  ;;  %v10718_v14 = vunpack.i.h.bf16 %v13591_v4 }
 0x8db   : > { %v3304_v43 = vsel %vm1121_vm5, %v3296_v27, %v10722_v41  ;;  %v3248_v13 = vsel %vm1121_vm5, %v3240_v26, %v10723_v53  ;;  %v3217_v51 = vsel %vm416_vm0, %v13427_v33, %v10718_v14 }
 0x8dc   : > { %v3332_v17 = vpop.permute.xlu0 %3331  ;;  %v13594_v1 = vpop.permute.xlu1 %10725 }
 0x8dd   : > { %v3355_v36 = vsel %vm416_vm0, %v13357_v60, %v3332_v17  ;;  %v10728_v6 = vunpack.i.h.bf16 %v13594_v1  ;;  %v10727_v52 = vunpack.i.l.bf16 %v13594_v1 }
 0x8de   : > { %9885 = vmatprep.mubr.msk.f32.mxu0 %vm1094_vm2, %v3355_v36  ;;  %v10717_v36 = vunpack.i.l.bf16 %v13591_v4 }
 0x8df   : > { %v3225_v41 = vsel %vm1094_vm2, %v3217_v51, %v10728_v6 }
 0x8e0   : > { %v10731_v49 = vpop.permute.xlu0 %10730  ;;  %v3334_v2 = vpop.permute.xlu1 %3333 }
 0x8e1   : > { %v3356_v60 = vsel %vm416_vm0, %v13383_v40, %v3334_v2  ;;  %v10733_v54 = vunpack.i.h.bf16 %v10731_v49  ;;  %v10732_v45 = vunpack.i.l.bf16 %v10731_v49  ;;  %v3273_v2 = vsel %vm416_vm0, %v13482_v42, %v10717_v36 }
 0x8e2   : > { %9886 = vmatmul.mubr.msk.f32.vlgmr.msra.gmra.mxu0 %vm1094_vm2, %v3356_v60  ;;  %v3281_v1 = vsel %vm1094_vm2, %v3273_v2, %v10727_v52 }
 0x8e3   : > { %v3312_v5 = vsel %vm1130_vm6, %v3304_v43, %v10732_v45  ;;  %v3256_v24 = vsel %vm1130_vm6, %v3248_v13, %v10733_v54  ;;  %v2690_v13 = vld [vmem:[#allocation2 + $0x92] sm:$0xff] }
 0x8e4   : > { %v10736_v34 = vpop.permute.xlu0 %10735  ;;  %v10741_v38 = vpop.permute.xlu1 %10740 }
 0x8e5   : > { %v10743_v56 = vunpack.i.h.bf16 %v10741_v38  ;;  %v10742_v40 = vunpack.i.l.bf16 %v10741_v38  ;;  %v10738_v50 = vunpack.i.h.bf16 %v10736_v34  ;;  %v10737_v20 = vunpack.i.l.bf16 %v10736_v34 }
 0x8e7   : > { %v3320_v58 = vsel %vm1139_vm7, %v3312_v5, %v10742_v40  ;;  %v13618_v31 = vsel %vm1139_vm7, %v3256_v24, %v10743_v56  ;;  %v3233_v33 = vsel %vm1103_vm3, %v3225_v41, %v10738_v50  ;;  %v3289_v10 = vsel %vm1103_vm3, %v3281_v1, %v10737_v20  ;;  %v2754_v41 = vld [vmem:[#allocation3 + $0x91] sm:$0xff] }
 0x8e8   : > { %v10746_v37 = vpop.permute.xlu0 %10745  ;;  %v10751_v7 = vpop.permute.xlu1 %10750  ;;  %3519 = vmatprep.mubr.f32.mxu1 %v3320_v58 }
 0x8e9   : > { %3520 = vmatmul.mubr.f32.gmra.mxu1 %v13618_v31  ;;  %v10748_v63 = vunpack.i.h.bf16 %v10746_v37  ;;  %v10747_v19 = vunpack.i.l.bf16 %v10746_v37  ;;  %v10753_v45 = vunpack.i.h.bf16 %v10751_v7  ;;  %v10752_v38 = vunpack.i.l.bf16 %v10751_v7 }
 0x8eb   : > { %v3241_v54 = vsel %vm1112_vm4, %v3233_v33, %v10748_v63  ;;  %v3297_v42 = vsel %vm1112_vm4, %v3289_v10, %v10747_v19  ;;  %v3218_v7 = vsel %vm416_vm0, %v13456_v3, %v10753_v45 }
 0x8ec   : > { %v10756_v23 = vpop.permute.xlu0 %10755  ;;  %v3336_v46 = vpop.permute.xlu1 %3335 }
 0x8ed   : > { %v3357_v57 = vsel %vm416_vm0, %v13401_v0, %v3336_v46  ;;  %v10758_v11 = vunpack.i.h.bf16 %v10756_v23  ;;  %v10757_v53 = vunpack.i.l.bf16 %v10756_v23 }
 0x8ee   : > { %9888 = vmatprep.mubr.msk.f32.mxu0 %vm1094_vm2, %v3357_v57 }
 0x8ef   : > { %v3305_v27 = vsel %vm1121_vm5, %v3297_v42, %v10757_v53  ;;  %v3249_v34 = vsel %vm1121_vm5, %v3241_v54, %v10758_v11  ;;  %v10533_v53 = vunpack.i.h.bf16 %v13492_v25 }
 0x8f0   : > { %v10761_v17 = vpop.permute.xlu0 %10760  ;;  %v10766_v28 = vpop.permute.xlu1 %10765 }
 0x8f1   : > { %v10768_v60 = vunpack.i.h.bf16 %v10766_v28  ;;  %v10767_v48 = vunpack.i.l.bf16 %v10766_v28  ;;  %v10763_v56 = vunpack.i.h.bf16 %v10761_v17  ;;  %v10762_v5 = vunpack.i.l.bf16 %v10761_v17 }
 0x8f2   : > { %v3274_v17 = vsel %vm416_vm0, %v2690_v13, %v10752_v38  ;;  %v9151_v13 = vld [vmem:[%s16082_s3] ss:$0 sm:$0xff] }
 0x8f3   : > { %v3313_v40 = vsel %vm1130_vm6, %v3305_v27, %v10767_v48  ;;  %v3257_v43 = vsel %vm1130_vm6, %v3249_v34, %v10768_v60  ;;  %v3226_v6 = vsel %vm1094_vm2, %v3218_v7, %v10763_v56  ;;  %v3282_v20 = vsel %vm1094_vm2, %v3274_v17, %v10762_v5 }
 0x8f4   : > { %v3338_v0 = vpop.permute.xlu0 %3337  ;;  %v10771_v49 = vpop.permute.xlu1 %10770 }
 0x8f5   : > { %v3358_v4 = vsel %vm416_vm0, %v13421_v18, %v3338_v0  ;;  %v10773_v24 = vunpack.i.h.bf16 %v10771_v49  ;;  %v10772_v23 = vunpack.i.l.bf16 %v10771_v49 }
 0x8f6   : > { %9889 = vmatmul.mubr.msk.f32.gmra.mxu0 %vm1094_vm2, %v3358_v4  ;;  %v10532_v4 = vunpack.i.l.bf16 %v13492_v25 }
 0x8f7   : > { %v3234_v51 = vsel %vm1103_vm3, %v3226_v6, %v10773_v24  ;;  %v3290_v3 = vsel %vm1103_vm3, %v3282_v20, %v10772_v23 }
 0x8f8   : > { %v10776_v30 = vpop.permute.xlu0 %10775  ;;  %v10781_v8 = vpop.permute.xlu1 %10780 }
 0x8f9   : > { %v10778_v18 = vunpack.i.h.bf16 %v10776_v30  ;;  %v10777_v26 = vunpack.i.l.bf16 %v10776_v30  ;;  %v10783_v46 = vunpack.i.h.bf16 %v10781_v8  ;;  %v10782_v28 = vunpack.i.l.bf16 %v10781_v8 }
 0x8fb   : > { %v3321_v58 = vsel %vm1139_vm7, %v3313_v40, %v10777_v26  ;;  %v13647_v37 = vsel %vm1139_vm7, %v3257_v43, %v10778_v18  ;;  %v3242_v63 = vsel %vm1112_vm4, %v3234_v51, %v10783_v46  ;;  %v3298_v0 = vsel %vm1112_vm4, %v3290_v3, %v10782_v28 }
 0x8fc   : > { %v10786_v57 = vpop.permute.xlu0 %10785  ;;  %v3340_v14 = vpop.permute.xlu1 %3339  ;;  %3524 = vmatprep.mubr.f32.mxu1 %v3321_v58 }
 0x8fd   : > { %v3359_v36 = vsel %vm416_vm0, %v13445_v62, %v3340_v14  ;;  %3525 = vmatmul.mubr.f32.gmra.mxu1 %v13647_v37  ;;  %v10788_v52 = vunpack.i.h.bf16 %v10786_v57  ;;  %v10787_v50 = vunpack.i.l.bf16 %v10786_v57 }
 0x8fe   : > { %9891 = vmatprep.mubr.msk.f32.mxu0 %vm1094_vm2, %v3359_v36 }
 0x8ff   : > { %v3306_v1 = vsel %vm1121_vm5, %v3298_v0, %v10787_v50  ;;  %v3250_v60 = vsel %vm1121_vm5, %v3242_v63, %v10788_v52 }
 0x900   : > { %v10791_v19 = vpop.permute.xlu0 %10790  ;;  %v3342_v62 = vpop.permute.xlu1 %3341 }
 0x901   : > { %v10793_v49 = vunpack.i.h.bf16 %v10791_v19  ;;  %v10792_v2 = vunpack.i.l.bf16 %v10791_v19  ;;  %v3360_v11 = vsel %vm416_vm0, %v13469_v61, %v3342_v62 }
 0x902   : > { %9892 = vmatmul.mubr.msk.f32.gmra.mxu0 %vm1094_vm2, %v3360_v11 }
 0x903   : > { %v3314_v48 = vsel %vm1130_vm6, %v3306_v1, %v10792_v2  ;;  %v3258_v33 = vsel %vm1130_vm6, %v3250_v60, %v10793_v49 }
 0x904   : > { %v3344_v10 = vpop.permute.xlu1 %3343  ;;  %v3346_v54 = vpop.permute.xlu0 %3345  ;;  %v3322_v42 = vsel %vm1139_vm7, %v3314_v48, %v10532_v4  ;;  %v13673_v61 = vsel %vm1139_vm7, %v3258_v33, %v10533_v53 }
 0x905   : > { %v3361_v25 = vsel %vm416_vm0, %v13484_v12, %v3344_v10  ;;  %v3362_v45 = vsel %vm416_vm0, %v2754_v41, %v3346_v54  ;;  %3529 = vmatprep.mubr.f32.mxu1 %v3322_v42 }
 0x906   : > { %3530 = vmatmul.mubr.f32.gmra.mxu1 %v13673_v61  ;;  %9894 = vmatprep.mubr.msk.f32.mxu0 %vm1094_vm2, %v3361_v25 }
 0x907   : > { %9895 = vmatmul.mubr.msk.f32.gmra.mxu0 %vm1094_vm2, %v3362_v45 }
 0x961   : > { %v9461_v30 = vpop.f32.mrf.mxu1 }
 0x963   : > { %v9462_v8 = vpop.f32.mrf.mxu1 }
 0x964   : > { %v9463_v12 = vadd.f32 %v9462_v8, %v9461_v30 }
 0x966   : > { %v3497_v57 = vadd.f32 %v9463_v12, %v9151_v13 }
 0x96d   : > { %v9464_v18 = vpop.f32.mrf.mxu1 }
 0x96f   : > { %v9465_v26 = vpop.f32.mrf.mxu1 }
 0x970   : > { %v9466_v24 = vadd.f32 %v9465_v26, %v9464_v18 }
 0x972   : > { %v3502_v28 = vadd.f32 %v9466_v24, %v9151_v13 }
 0x97d   : > { %v9467_v27 = vpop.f32.mrf.mxu1 }
 0x97f   : > { %v9468_v34 = vpop.f32.mrf.mxu1 }
 0x980   : > { %v9469_v58 = vadd.f32 %v9468_v34, %v9467_v27 }
 0x982   : > { %v3507_v17 = vadd.f32 %v9469_v58, %v9151_v13 }
 0x989   : > { %v9470_v38 = vpop.f32.mrf.mxu1 }
 0x98b   : > { %v9471_v56 = vpop.f32.mrf.mxu1 }
 0x98c   : > { %v9472_v6 = vadd.f32 %v9471_v56, %v9470_v38 }
 0x98e   : > { %v3512_v63 = vadd.f32 %v9472_v6, %v9151_v13 }
 0x999   : > { %v9473_v43 = vpop.f32.mrf.mxu1 }
 0x99b   : > { %v9474_v23 = vpop.f32.mrf.mxu1 }
 0x99c   : > { %v9475_v19 = vadd.f32 %v9474_v23, %v9473_v43 }
 0x99e   : > { %v3517_v60 = vadd.f32 %v9475_v19, %v9151_v13 }
 0x9a2   : > { %v9887_v40 = vpop.f32.mrf.mxu0 }
 0x9a3   : > { %v3607_v52 = vadd.f32 %v9887_v40, %v3502_v28 }
 0x9a4   : > { %v3601_v5 = vpop.f32.mrf.mxu0 }
 0x9a5   : > { %v3602_v36 = vadd.f32 %v3601_v5, %v3497_v57  ;;  %v3643_v62 = vsel %vm1094_vm2, %v3607_v52, 0.0 }
 0x9a7   : > { %v3642_v51 = vsel %vm1094_vm2, %v3602_v36, 0.0 }
 0x9a8   : > { %v3644_v2 = vadd.f32 %v3643_v62, %v3642_v51 }
 0x9a9   : > { %v9476_v14 = vpop.f32.mrf.mxu1 }
 0x9ab   : > { %v9477_v50 = vpop.f32.mrf.mxu1 }
 0x9ac   : > { %v9478_v0 = vadd.f32 %v9477_v50, %v9476_v14 }
 0x9ae   : > { %v3522_v1 = vadd.f32 %v9478_v0, %v9151_v13 }
 0x9b6   : > { %v9890_v46 = vpop.f32.mrf.mxu0 }
 0x9b7   : > { %v3617_v11 = vadd.f32 %v9890_v46, %v3512_v63 }
 0x9b8   : > { %v3611_v7 = vpop.f32.mrf.mxu0 }
 0x9b9   : > { %v3612_v20 = vadd.f32 %v3611_v7, %v3507_v17  ;;  %v3647_v10 = vsel %vm1094_vm2, %v3617_v11, 0.0 }
 0x9bb   : > { %v3645_v49 = vsel %vm1094_vm2, %v3612_v20, 0.0 }
 0x9bc   : > { %v3646_v4 = vadd.f32 %v3645_v49, %v3644_v2 }
 0x9bd   : > { %v9479_v3 = vpop.f32.mrf.mxu1 }
 0x9be   : > { %v3648_v25 = vadd.f32 %v3647_v10, %v3646_v4 }
 0x9bf   : > { %v9480_v53 = vpop.f32.mrf.mxu1 }
 0x9c0   : > { %v9481_v48 = vadd.f32 %v9480_v53, %v9479_v3 }
 0x9c2   : > { %v9893_v41 = vpop.f32.mrf.mxu0  ;;  %v3527_v27 = vadd.f32 %v9481_v48, %v9151_v13 }
 0x9c3   : > { %v3627_v54 = vadd.f32 %v9893_v41, %v3522_v1 }
 0x9c4   : > { %v3621_v33 = vpop.f32.mrf.mxu0 }
 0x9c5   : > { %v3622_v42 = vadd.f32 %v3621_v33, %v3517_v60  ;;  %v3651_v34 = vsel %vm1094_vm2, %v3627_v54, 0.0 }
 0x9c6   : > { %v9482_v45 = vpop.f32.mrf.mxu1 }
 0x9c7   : > { %v3649_v30 = vsel %vm1094_vm2, %v3622_v42, 0.0  ;;  %v9896_v8 = vpop.f32.mrf.mxu0 }
 0x9c8   : > { %v3650_v18 = vadd.f32 %v3649_v30, %v3648_v25  ;;  %v9483_v26 = vpop.f32.mrf.mxu1 }
 0x9c9   : > { %v9484_v38 = vadd.f32 %v9483_v26, %v9482_v45  ;;  %v3631_v56 = vpop.f32.mrf.mxu0 }
 0x9ca   : > { %v3632_v40 = vadd.f32 %v3631_v56, %v3527_v27  ;;  %v3652_v43 = vadd.f32 %v3651_v34, %v3650_v18 }
 0x9cb   : > { %v3532_v12 = vadd.f32 %v9484_v38, %v9151_v13 }
 0x9cc   : > { %v3653_v5 = vsel %vm1094_vm2, %v3632_v40, 0.0 }
 0x9cd   : > { %v3637_v24 = vadd.f32 %v9896_v8, %v3532_v12  ;;  %v3654_v58 = vadd.f32 %v3653_v5, %v3652_v43 }
 0x9cf   : > { %v3655_v23 = vsel %vm1094_vm2, %v3637_v24, 0.0 }
 0x9d0   : > { %v3656_v46 = vadd.f32 %v3655_v23, %v3654_v58 }
 0x9d2   : > { %3657 = vadd.xlane.f32.xlu1 %v3656_v46 }
 0x9e3   : > { %3812 = vrot.lane.b32.xlu1 %v13238_v22, %s16133_s1 }
 0x9e7   : > { %3814 = vrot.lane.b32.xlu1 %v13251_v16, %s16133_s1 }
 0x9eb   : > { %3818 = vrot.lane.b32.xlu1 %v13276_v39, %s16133_s1 }
 0x9ef   : > { %3822 = vrot.lane.b32.xlu1 %v13301_v29, %s16133_s1 }
 0xa5b   : > { %v3658_v13 = vpop.xlane.xlu1 %3657 }
 0xa5c   : > { %v3659_v57 = vrot.slane %v3658_v13, 4 }
 0xa5e   : > { %v3660_v14 = vadd.f32 %v3659_v57, %v3658_v13  ;;  %v9160_v13 = vld [vmem:[%s16083_s4] ss:$0 sm:$0xff] }
 0xa60   : > { %v3661_v7 = vrot.slane %v3660_v14, 2 }
 0xa62   : > { %v3662_v28 = vadd.f32 %v3661_v7, %v3660_v14 }
 0xa64   : > { %v3663_v17 = vrot.slane %v3662_v28, 1 }
 0xa66   : > { %v3664_v6 = vadd.f32 %v3663_v17, %v3662_v28 }
 0xa68   : > { %10009 = vpush %v3664_v6  ;;  %v9161_v6 = vld [vmem:[%s16084_s5] ss:$0 sm:$0xff] }
 0xa99   : > { %s10010_s15 = spop %10009 }
 0xa9a   : > { %s3668_s29 = smul.f32 0.00048828125, %s10010_s15 }
 0xa9c   : > { %v3669_v50 = vstv %s3668_s29 }
 0xa9d   : > { %v3670_v51 = vsub.f32 %v3602_v36, %v3669_v50  ;;  %v3671_v3 = vsub.f32 %v3607_v52, %v3669_v50  ;;  %v3672_v63 = vsub.f32 %v3612_v20, %v3669_v50  ;;  %v3673_v19 = vsub.f32 %v3617_v11, %v3669_v50 }
 0xa9e   : > { %v3674_v62 = vsub.f32 %v3622_v42, %v3669_v50  ;;  %v3675_v53 = vsub.f32 %v3627_v54, %v3669_v50  ;;  %v3676_v48 = vsub.f32 %v3632_v40, %v3669_v50  ;;  %v3677_v36 = vsub.f32 %v3637_v24, %v3669_v50 }
 0xa9f   : > { %v3678_v0 = vmul.f32 %v3670_v51, %v3670_v51  ;;  %v3679_v49 = vmul.f32 %v3671_v3, %v3671_v3  ;;  %v3680_v2 = vmul.f32 %v3672_v63, %v3672_v63  ;;  %v3681_v4 = vmul.f32 %v3673_v19, %v3673_v19 }
 0xaa0   : > { %v3682_v33 = vmul.f32 %v3674_v62, %v3674_v62  ;;  %v3683_v52 = vmul.f32 %v3675_v53, %v3675_v53  ;;  %v3684_v42 = vmul.f32 %v3676_v48, %v3676_v48  ;;  %v3685_v30 = vmul.f32 %v3677_v36, %v3677_v36 }
 0xaa1   : > { %v3686_v41 = vsel %vm1094_vm2, %v3678_v0, 0.0  ;;  %v3687_v1 = vsel %vm1094_vm2, %v3679_v49, 0.0  ;;  %v3689_v10 = vsel %vm1094_vm2, %v3680_v2, 0.0  ;;  %v3691_v20 = vsel %vm1094_vm2, %v3681_v4, 0.0 }
 0xaa2   : > { %v3688_v60 = vadd.f32 %v3687_v1, %v3686_v41  ;;  %v3693_v45 = vsel %vm1094_vm2, %v3682_v33, 0.0  ;;  %v3695_v8 = vsel %vm1094_vm2, %v3683_v52, 0.0  ;;  %v3697_v26 = vsel %vm1094_vm2, %v3684_v42, 0.0 }
 0xaa3   : > { %v3699_v34 = vsel %vm1094_vm2, %v3685_v30, 0.0 }
 0xaa4   : > { %v3690_v25 = vadd.f32 %v3689_v10, %v3688_v60 }
 0xaa6   : > { %v3692_v11 = vadd.f32 %v3691_v20, %v3690_v25 }
 0xaa8   : > { %v3694_v54 = vadd.f32 %v3693_v45, %v3692_v11 }
 0xaaa   : > { %v3696_v18 = vadd.f32 %v3695_v8, %v3694_v54 }
 0xaac   : > { %v3698_v27 = vadd.f32 %v3697_v26, %v3696_v18 }
 0xaae   : > { %v3700_v38 = vadd.f32 %v3699_v34, %v3698_v27 }
 0xab0   : > { %3701 = vadd.xlane.f32.xlu0 %v3700_v38 }
 0xac6   : > { %3810 = vrot.lane.b32.xlu0 %v13233_v35, %s16133_s1 }
 0xaca   : > { %3816 = vrot.lane.b32.xlu0 %v13267_v44, %s16133_s1 }
 0xace   : > { %3820 = vrot.lane.b32.xlu0 %v13285_v21, %s16133_s1 }
 0xad2   : > { %3824 = vrot.lane.b32.xlu0 %v13311_v15, %s16133_s1 }
 0xb39   : > { %v3702_v56 = vpop.xlane.xlu0 %3701 }
 0xb3a   : > { %v3703_v40 = vrot.slane %v3702_v56, 4 }
 0xb3c   : > { %v3704_v43 = vadd.f32 %v3703_v40, %v3702_v56 }
 0xb3e   : > { %v3705_v12 = vrot.slane %v3704_v43, 2 }
 0xb40   : > { %v3706_v5 = vadd.f32 %v3705_v12, %v3704_v43 }
 0xb42   : > { %v3707_v24 = vrot.slane %v3706_v5, 1 }
 0xb44   : > { %v3708_v58 = vadd.f32 %v3707_v24, %v3706_v5 }
 0xb46   : > { %10011 = vpush %v3708_v58 }
 0xb77   : > { %s10012_s18 = spop %10011 }
 0xb78   : > { %s3712_s14 = smul.f32 0.00048828125, %s10012_s18 }
 0xb7a   : > { %s3713_s17 = sadd.f32 1e-05, %s3712_s14 }
 0xb7c   : > { %v3714_v23 = vstv %s3713_s17 }
 0xb7d   : > { %11811 = vrsqrt.f32 %v3714_v23 }
 0xb8a   : > { %v11812_v46 = vpop.eup %11811 }
 0xb8b   : > { %10013 = vpush %v11812_v46 }
 0xbbc   : > { %s10014_s16 = spop %10013 }
 0xbbd   : > { %v3717_v57 = vstv %s10014_s16 }
 0xbbe   : > { %v3718_v14 = vmul.f32 %v3717_v57, %v3670_v51  ;;  %v3719_v7 = vmul.f32 %v3717_v57, %v3671_v3  ;;  %v3720_v28 = vmul.f32 %v3717_v57, %v3672_v63  ;;  %v3721_v17 = vmul.f32 %v3717_v57, %v3673_v19 }
 0xbbf   : > { %v3722_v50 = vmul.f32 %v3717_v57, %v3674_v62  ;;  %v3723_v0 = vmul.f32 %v3717_v57, %v3675_v53  ;;  %v3724_v49 = vmul.f32 %v3717_v57, %v3676_v48  ;;  %v3725_v2 = vmul.f32 %v3717_v57, %v3677_v36 }
 0xbc0   : > { %v3732_v4 = vmul.f32 %v9160_v13, %v3718_v14  ;;  %v3733_v41 = vmul.f32 %v9160_v13, %v3719_v7  ;;  %v3734_v1 = vmul.f32 %v9160_v13, %v3720_v28  ;;  %v3735_v60 = vmul.f32 %v9160_v13, %v3721_v17  ;;  %v3813_v14 = vpop.permute.xlu1 %3812  ;;  %v3811_v28 = vpop.permute.xlu0 %3810 }
 0xbc1   : > { %v3736_v33 = vmul.f32 %v9160_v13, %v3722_v50  ;;  %v3737_v10 = vmul.f32 %v9160_v13, %v3723_v0  ;;  %v3738_v25 = vmul.f32 %v9160_v13, %v3724_v49  ;;  %v3739_v52 = vmul.f32 %v9160_v13, %v3725_v2 }
 0xbc2   : > { %v3746_v51 = vadd.f32 %v9161_v6, %v3732_v4  ;;  %v3747_v3 = vadd.f32 %v9161_v6, %v3733_v41  ;;  %v3748_v63 = vadd.f32 %v9161_v6, %v3734_v1  ;;  %v3749_v19 = vadd.f32 %v9161_v6, %v3735_v60 }
 0xbc3   : > { %v3750_v20 = vadd.f32 %v9161_v6, %v3736_v33  ;;  %v3751_v11 = vadd.f32 %v9161_v6, %v3737_v10  ;;  %v3752_v42 = vadd.f32 %v9161_v6, %v3738_v25  ;;  %v3753_v48 = vadd.f32 %v9161_v6, %v3739_v52 }
 0xbc4   : > { %v9162_v45 = vmul.f32 -1.442695, %v3746_v51  ;;  %v9163_v62 = vmul.f32 -1.442695, %v3747_v3  ;;  %v9164_v53 = vmul.f32 -1.442695, %v3748_v63  ;;  %v3815_v6 = vpop.permute.xlu1 %3814  ;;  %v3817_v0 = vpop.permute.xlu0 %3816 }
 0xbc5   : > { %v9165_v36 = vmul.f32 -1.442695, %v3749_v19  ;;  %v9166_v54 = vmul.f32 -1.442695, %v3750_v20  ;;  %v9167_v30 = vmul.f32 -1.442695, %v3751_v11 }
 0xbc6   : > { %11813 = vpow2.f32 %v9162_v45  ;;  %v9168_v8 = vmul.f32 -1.442695, %v3752_v42  ;;  %v9169_v18 = vmul.f32 -1.442695, %v3753_v48  ;;  %v4304_v48 = vld [vmem:[%s16085_s6 + $0xf0] sm:$0xff] }
 0xbc7   : > { %11815 = vpow2.f32 %v9163_v62  ;;  %v4305_v62 = vld [vmem:[%s16085_s6 + $0xf8] sm:$0xff] }
 0xbc8   : > { %11817 = vpow2.f32 %v9164_v53  ;;  %v3819_v33 = vpop.permute.xlu1 %3818  ;;  %v3821_v52 = vpop.permute.xlu0 %3820  ;;  %v4289_v53 = vld [vmem:[%s16085_s6 + $0x78] sm:$0xff]  ;;  %9497 = vmatprep.subr.mxu1 %v4305_v62 }
 0xbc9   : > { %11819 = vpow2.f32 %v9165_v36  ;;  %v4288_v36 = vld [vmem:[%s16085_s6 + $0x70] sm:$0xff]  ;;  %9498 = vmatpush3.msra.mxu1 %v4289_v53 }
 0xbca   : > { %11821 = vpow2.f32 %v9166_v54  ;;  %v4303_v54 = vld [vmem:[%s16085_s6 + $0xe8] sm:$0xff]  ;;  %9499 = vmatprep.subr.mxu1 %v4304_v48  ;;  %v4276_v48 = vld [vmem:[%s16085_s6 + $0x10] sm:$0xff] }
 0xbcb   : > { %11823 = vpow2.f32 %v9167_v30  ;;  %v4287_v30 = vld [vmem:[%s16085_s6 + $0x68] sm:$0xff]  ;;  %9500 = vmatpush3.msra.mxu1 %v4288_v36 }
 0xbcc   : > { %11825 = vpow2.f32 %v9168_v8  ;;  %v3823_v20 = vpop.permute.xlu1 %3822  ;;  %v3825_v11 = vpop.permute.xlu0 %3824  ;;  %v4302_v8 = vld [vmem:[%s16085_s6 + $0xe0] sm:$0xff]  ;;  %9501 = vmatprep.subr.mxu1 %v4303_v54 }
 0xbcd   : > { %11827 = vpow2.f32 %v9169_v18  ;;  %v4286_v18 = vld [vmem:[%s16085_s6 + $0x60] sm:$0xff]  ;;  %9502 = vmatpush3.msra.mxu1 %v4287_v30 }
 0xbce   : > { %9503 = vmatprep.subr.mxu1 %v4302_v8 }
 0xbcf   : > { %9504 = vmatpush3.msra.mxu1 %v4286_v18 }
 0xbd3   : > { %v11814_v26 = vpop.eup %11813 }
 0xbd4   : > { %v11816_v27 = vpop.eup %11815  ;;  %v3778_v34 = vadd.f32 1.0, %v11814_v26  ;;  %v4301_v26 = vld [vmem:[%s16085_s6 + $0xd8] sm:$0xff] }
 0xbd5   : > { %v11818_v38 = vpop.eup %11817  ;;  %v3779_v56 = vadd.f32 1.0, %v11816_v27  ;;  %v4285_v27 = vld [vmem:[%s16085_s6 + $0x58] sm:$0xff]  ;;  %9505 = vmatprep.subr.mxu1 %v4301_v26 }
 0xbd6   : > { %v11820_v40 = vpop.eup %11819  ;;  %v3780_v43 = vadd.f32 1.0, %v11818_v38  ;;  %11829 = vrcp.f32 %v3778_v34  ;;  %v4300_v34 = vld [vmem:[%s16085_s6 + $0xd0] sm:$0xff]  ;;  %9506 = vmatpush3.msra.mxu1 %v4285_v27  ;;  %v4291_v27 = vld [vmem:[%s16085_s6 + $0x88] sm:$0xff] }
 0xbd7   : > { %v11822_v12 = vpop.eup %11821  ;;  %v3781_v5 = vadd.f32 1.0, %v11820_v40  ;;  %11831 = vrcp.f32 %v3779_v56  ;;  %v4284_v38 = vld [vmem:[%s16085_s6 + $0x50] sm:$0xff]  ;;  %v4299_v56 = vld [vmem:[%s16085_s6 + $0xc8] sm:$0xff]  ;;  %9507 = vmatprep.subr.mxu1 %v4300_v34 }
 0xbd8   : > { %v11824_v24 = vpop.eup %11823  ;;  %v3782_v58 = vadd.f32 1.0, %v11822_v12  ;;  %11833 = vrcp.f32 %v3780_v43  ;;  %v4283_v40 = vld [vmem:[%s16085_s6 + $0x48] sm:$0xff]  ;;  %9508 = vmatpush3.msra.mxu1 %v4284_v38  ;;  %v4298_v43 = vld [vmem:[%s16085_s6 + $0xc0] sm:$0xff] }
 0xbd9   : > { %v11826_v23 = vpop.eup %11825  ;;  %v3783_v46 = vadd.f32 1.0, %v11824_v24  ;;  %11835 = vrcp.f32 %v3781_v5  ;;  %9509 = vmatprep.subr.mxu1 %v4299_v56  ;;  %v4282_v12 = vld [vmem:[%s16085_s6 + $0x40] sm:$0xff]  ;;  %v4297_v24 = vld [vmem:[%s16085_s6 + $0xb8] sm:$0xff]  ;;  %v4275_v34 = vld [vmem:[%s16085_s6 + $0x8] sm:$0xff] }
 0xbda   : > { %v11828_v13 = vpop.eup %11827  ;;  %v3784_v57 = vadd.f32 1.0, %v11826_v23  ;;  %11837 = vrcp.f32 %v3782_v58  ;;  %9510 = vmatpush3.msra.mxu1 %v4283_v40  ;;  %v4281_v58 = vld [vmem:[%s16085_s6 + $0x38] sm:$0xff]  ;;  %v4296_v23 = vld [vmem:[%s16085_s6 + $0xb0] sm:$0xff]  ;;  %v4290_v38 = vld [vmem:[%s16085_s6 + $0x80] sm:$0xff] }
 0xbdb   : > { %v3785_v7 = vadd.f32 1.0, %v11828_v13  ;;  %11839 = vrcp.f32 %v3783_v46  ;;  %9511 = vmatprep.subr.mxu1 %v4298_v43  ;;  %v4280_v13 = vld [vmem:[%s16085_s6 + $0x30] sm:$0xff]  ;;  %v4274_v43 = vld [vmem:[%s16085_s6] sm:$0xff] }
 0xbdc   : > { %11841 = vrcp.f32 %v3784_v57  ;;  %9512 = vmatpush3.msra.mxu1 %v4282_v12 }
 0xbdd   : > { %11843 = vrcp.f32 %v3785_v7  ;;  %9513 = vmatprep.subr.mxu1 %v4297_v24  ;;  %v4279_v7 = vld [vmem:[%s16085_s6 + $0x28] sm:$0xff] }
 0xbde   : > { %9514 = vmatpush3.msra.mxu1 %v4281_v58 }
 0xbdf   : > { %9515 = vmatprep.subr.mxu1 %v4296_v23 }
 0xbe0   : > { %9516 = vmatpush3.msra.mxu1 %v4280_v13 }
 0xbe3   : > { %v13722_v17 = vpop.eup %11829 }
 0xbe4   : > { %v13724_v50 = vpop.eup %11831  ;;  %v3834_v49 = vmul.f32 %v13722_v17, %v3811_v28  ;;  %v4294_v28 = vld [vmem:[%s16085_s6 + $0xa0] sm:$0xff] }
 0xbe5   : > { %v13727_v2 = vpop.eup %11833  ;;  %v3835_v4 = vmul.f32 %v13724_v50, %v3813_v14  ;;  %v4295_v14 = vld [vmem:[%s16085_s6 + $0xa8] sm:$0xff] }
 0xbe6   : > { %v13730_v41 = vpop.eup %11835  ;;  %3850 = vrot.lane.b32.xlu1 %v3834_v49, %s16132_s0  ;;  %v3836_v1 = vmul.f32 %v13727_v2, %v3815_v6  ;;  %9517 = vmatprep.subr.mxu1 %v4295_v14  ;;  %v3890_v49 = vld [vmem:[#allocation3 + $0x1] sm:$0xff] }
 0xbe7   : > { %3852 = vrot.lane.b32.xlu0 %v3835_v4, %s16132_s0  ;;  %v13735_v60 = vpop.eup %11837  ;;  %v3837_v10 = vmul.f32 %v13730_v41, %v3817_v0  ;;  %v4278_v0 = vld [vmem:[%s16085_s6 + $0x20] sm:$0xff]  ;;  %9518 = vmatpush3.msra.mxu1 %v4279_v7 }
 0xbe8   : > { %v13738_v25 = vpop.eup %11839  ;;  %v3838_v51 = vmul.f32 %v13735_v60, %v3819_v33  ;;  %v3882_v4 = vld [vmem:[#allocation3] sm:$0xff]  ;;  %9519 = vmatprep.subr.mxu1 %v4294_v28  ;;  %v4277_v33 = vld [vmem:[%s16085_s6 + $0x18] sm:$0xff] }
 0xbe9   : > { %v13743_v3 = vpop.eup %11841  ;;  %v3839_v63 = vmul.f32 %v13738_v25, %v3821_v52  ;;  %9520 = vmatpush3.msra.mxu1 %v4278_v0 }
 0xbea   : > { %3854 = vrot.lane.b32.xlu1 %v3836_v1, %s16132_s0  ;;  %v13746_v19 = vpop.eup %11843  ;;  %v3840_v42 = vmul.f32 %v13743_v3, %v3823_v20  ;;  %v4293_v1 = vld [vmem:[%s16085_s6 + $0x98] sm:$0xff] }
 0xbeb   : > { %3856 = vrot.lane.b32.xlu0 %v3837_v10, %s16132_s0  ;;  %v3841_v45 = vmul.f32 %v13746_v19, %v3825_v11  ;;  %9521 = vmatprep.subr.mxu1 %v4293_v1 }
 0xbec   : > { %9522 = vmatpush3.msra.mxu1 %v4277_v33 }
 0xbee   : > { %3858 = vrot.lane.b32.xlu1 %v3838_v51, %s16132_s0 }
 0xbef   : > { %3860 = vrot.lane.b32.xlu0 %v3839_v63, %s16132_s0 }
 0xbf2   : > { %3862 = vrot.lane.b32.xlu1 %v3840_v42, %s16132_s0  ;;  %v3898_v42 = vld [vmem:[#allocation3 + $0x2] sm:$0xff] }
 0xbf3   : > { %3864 = vrot.lane.b32.xlu0 %v3841_v45, %s16132_s0  ;;  %v4292_v45 = vld [vmem:[%s16085_s6 + $0x90] sm:$0xff] }
 0xbf4   : > { %9523 = vmatprep.subr.mxu1 %v4292_v45  ;;  %v4307_v45 = vld [vmem:[%s16085_s6 + $0x108] sm:$0xff] }
 0xbf5   : > { %9524 = vmatpush3.msra.mxu1 %v4276_v48 }
 0xbf6   : > { %9525 = vmatprep.subr.mxu1 %v4291_v27 }
 0xbf7   : > { %9526 = vmatpush3.msra.mxu1 %v4275_v34 }
 0xbf8   : > { %9527 = vmatprep.subr.mxu1 %v4290_v38 }
 0xbf9   : > { %9528 = vmatpush3.msra.mxu1 %v4274_v43 }
 0xc58   : > { %v3851_v5 = vpop.permute.xlu1 %3850 }
 0xc59   : > { %v3853_v46 = vpop.permute.xlu0 %3852  ;;  %3874 = vst.msk [vmem:[#allocation3 + $0x11] sm:$0xff] %vm416_vm0, %v3851_v5 }
 0xc5a   : > { %3875 = vst.msk [vmem:[#allocation3 + $0x21] sm:$0xff] %vm416_vm0, %v3853_v46 }
 0xc5c   : > { %v3855_v57 = vpop.permute.xlu1 %3854 }
 0xc5d   : > { %v3857_v6 = vpop.permute.xlu0 %3856  ;;  %3876 = vst.msk [vmem:[#allocation3 + $0x31] sm:$0xff] %vm416_vm0, %v3855_v57 }
 0xc5e   : > { %3877 = vst.msk [vmem:[#allocation3 + $0x41] sm:$0xff] %vm416_vm0, %v3857_v6 }
 0xc60   : > { %v3859_v10 = vpop.permute.xlu1 %3858  ;;  %v3891_v52 = vld [vmem:[#allocation3 + $0x11] sm:$0xff] }
 0xc61   : > { %v3883_v51 = vld [vmem:[#allocation3 + $0x10] sm:$0xff]  ;;  %v3861_v63 = vpop.permute.xlu0 %3860  ;;  %3878 = vst.msk [vmem:[#allocation3 + $0x51] sm:$0xff] %vm416_vm0, %v3859_v10  ;;  %v10799_v20 = vpack.i.bf16 %v3891_v52, %v3890_v49  ;;  %v3907_v62 = vld [vmem:[#allocation3 + $0x20] sm:$0xff] }
 0xc62   : > { %v10794_v11 = vpack.i.bf16 %v3883_v51, %v3882_v4  ;;  %3879 = vst.msk [vmem:[#allocation3 + $0x61] sm:$0xff] %vm416_vm0, %v3861_v63  ;;  %v3899_v53 = vld [vmem:[#allocation3 + $0x12] sm:$0xff]  ;;  %v10809_v30 = vpack.i.bf16 %v3907_v62, %v3883_v51  ;;  %v13847_v18 = vld [vmem:[#allocation3 + $0x22] sm:$0xff] }
 0xc63   : > { %10800 = vrot.lane.b32.xlu0 %v10799_v20, %s16128_s13  ;;  %v10804_v8 = vpack.i.bf16 %v3899_v53, %v3898_v42  ;;  %v13850_v26 = vld [vmem:[#allocation3 + $0x21] sm:$0xff]  ;;  %v10819_v56 = vpack.i.bf16 %v13847_v18, %v3899_v53  ;;  %v4308_v20 = vld [vmem:[%s16085_s6 + $0x110] sm:$0xff] }
 0xc64   : > { %10795 = vrot.lane.b32.xlu1 %v10794_v11, %s16133_s1  ;;  %v3863_v36 = vpop.permute.xlu1 %3862  ;;  %v10814_v40 = vpack.i.bf16 %v13850_v26, %v3891_v52  ;;  %v3931_v12 = vld [vmem:[#allocation3 + $0x30] sm:$0xff]  ;;  %v4309_v52 = vld [vmem:[%s16085_s6 + $0x118] sm:$0xff] }
 0xc65   : > { %v3865_v54 = vpop.permute.xlu0 %3864  ;;  %3880 = vst.msk [vmem:[#allocation3 + $0x71] sm:$0xff] %vm416_vm0, %v3863_v36  ;;  %v10824_v5 = vpack.i.bf16 %v3931_v12, %v3907_v62  ;;  %v13870_v24 = vld [vmem:[#allocation3 + $0x31] sm:$0xff]  ;;  %v3909_v13 = vld [vmem:[#allocation3 + $0x40] sm:$0xff]  ;;  %9897 = vmatprep.subr.mxu0 %v4309_v52 }
 0xc66   : > { %3881 = vst.msk [vmem:[#allocation3 + $0x81] sm:$0xff] %vm416_vm0, %v3865_v54  ;;  %v3901_v58 = vld [vmem:[#allocation3 + $0x32] sm:$0xff]  ;;  %v10834_v23 = vpack.i.bf16 %v13870_v24, %v13850_v26  ;;  %v13877_v57 = vld [vmem:[#allocation3 + $0x41] sm:$0xff]  ;;  %v10844_v14 = vpack.i.bf16 %v3909_v13, %v3931_v12  ;;  %9898 = vmatpush3.msra.mxu0 %v4309_v52 }
 0xc67   : > { %10810 = vrot.lane.b32.xlu0 %v10809_v30, %s16130_s25  ;;  %v10839_v46 = vpack.i.bf16 %v3901_v58, %v13847_v18  ;;  %v10849_v7 = vpack.i.bf16 %v13877_v57, %v13870_v24  ;;  %v3925_v28 = vld [vmem:[#allocation3 + $0x42] sm:$0xff]  ;;  %9899 = vmatprep.subr.mxu0 %v4308_v20 }
 0xc68   : > { %10805 = vrot.lane.b32.xlu1 %v10804_v8, %s16129_s23  ;;  %v3933_v6 = vld [vmem:[#allocation3 + $0x50] sm:$0xff]  ;;  %v10854_v0 = vpack.i.bf16 %v3925_v28, %v3901_v58  ;;  %9900 = vmatpush3.msra.mxu0 %v4308_v20  ;;  %v4306_v36 = vld [vmem:[%s16085_s6 + $0x100] sm:$0xff] }
 0xc69   : > { %v10859_v49 = vpack.i.bf16 %v3933_v6, %v3909_v13  ;;  %v13885_v4 = vld [vmem:[#allocation3 + $0x51] sm:$0xff]  ;;  %v3911_v33 = vld [vmem:[#allocation3 + $0x60] sm:$0xff]  ;;  %9901 = vmatprep.subr.mxu0 %v4307_v45 }
 0xc6a   : > { %v10869_v1 = vpack.i.bf16 %v13885_v4, %v13877_v57  ;;  %v3903_v10 = vld [vmem:[#allocation3 + $0x52] sm:$0xff]  ;;  %v10879_v51 = vpack.i.bf16 %v3911_v33, %v3933_v6  ;;  %v3927_v11 = vld [vmem:[#allocation3 + $0x62] sm:$0xff]  ;;  %9902 = vmatpush3.msra.mxu0 %v4307_v45 }
 0xc6b   : > { %10820 = vrot.lane.b32.xlu0 %v10819_v56, %s16127_s26  ;;  %v10874_v63 = vpack.i.bf16 %v3903_v10, %v3925_v28  ;;  %v13899_v42 = vld [vmem:[#allocation3 + $0x61] sm:$0xff]  ;;  %v10889_v62 = vpack.i.bf16 %v3927_v11, %v3903_v10  ;;  %9903 = vmatprep.subr.mxu0 %v4306_v36 }
 0xc6c   : > { %10815 = vrot.lane.b32.xlu1 %v10814_v40, %s16131_s30  ;;  %v10884_v53 = vpack.i.bf16 %v13899_v42, %v13885_v4  ;;  %v3935_v48 = vld [vmem:[#allocation3 + $0x70] sm:$0xff]  ;;  %9904 = vmatpush3.msra.mxu0 %v4306_v36 }
 0xc6d   : > { %v10894_v54 = vpack.i.bf16 %v3935_v48, %v3911_v33  ;;  %v13913_v30 = vld [vmem:[#allocation3 + $0x71] sm:$0xff]  ;;  %v3913_v38 = vld [vmem:[#allocation3 + $0x80] sm:$0xff] }
 0xc6e   : > { %v10904_v8 = vpack.i.bf16 %v13913_v30, %v13899_v42  ;;  %v3905_v27 = vld [vmem:[#allocation3 + $0x72] sm:$0xff]  ;;  %v13922_v56 = vld [vmem:[#allocation3 + $0x81] sm:$0xff]  ;;  %v10914_v40 = vpack.i.bf16 %v3913_v38, %v3935_v48 }
 0xc6f   : > { %10830 = vrot.lane.b32.xlu0 %v10824_v5, %s16133_s1  ;;  %v10909_v34 = vpack.i.bf16 %v3905_v27, %v3927_v11  ;;  %v10919_v43 = vpack.i.bf16 %v13922_v56, %v13913_v30  ;;  %v3929_v12 = vld [vmem:[#allocation3 + $0x82] sm:$0xff]  ;;  %v11975_v33 = vld [vmem:[#allocation2 + $0x32] sm:$0xff] }
 0xc70   : > { %10825 = vrot.lane.b32.xlu1 %v10824_v5, %s16132_s0  ;;  %v13936_v5 = vld [vmem:[#allocation3 + $0x90] sm:$0xff] }
 0xc73   : > { %10840 = vrot.lane.b32.xlu0 %v10839_v46, %s16129_s23 }
 0xc74   : > { %10835 = vrot.lane.b32.xlu1 %v10834_v23, %s16128_s13 }
 0xc77   : > { %10850 = vrot.lane.b32.xlu0 %v10849_v7, %s16131_s30 }
 0xc78   : > { %10845 = vrot.lane.b32.xlu1 %v10844_v14, %s16130_s25 }
 0xc7b   : > { %10860 = vrot.lane.b32.xlu0 %v10859_v49, %s16132_s0 }
 0xc7c   : > { %10855 = vrot.lane.b32.xlu1 %v10854_v0, %s16127_s26 }
 0xc7f   : > { %10870 = vrot.lane.b32.xlu0 %v10869_v1, %s16128_s13 }
 0xc80   : > { %10865 = vrot.lane.b32.xlu1 %v10859_v49, %s16133_s1 }
 0xc83   : > { %10880 = vrot.lane.b32.xlu0 %v10879_v51, %s16130_s25 }
 0xc84   : > { %10875 = vrot.lane.b32.xlu1 %v10874_v63, %s16129_s23 }
 0xc87   : > { %10890 = vrot.lane.b32.xlu0 %v10889_v62, %s16127_s26 }
 0xc88   : > { %10885 = vrot.lane.b32.xlu1 %v10884_v53, %s16131_s30 }
 0xc8b   : > { %10900 = vrot.lane.b32.xlu0 %v10894_v54, %s16133_s1 }
 0xc8c   : > { %10895 = vrot.lane.b32.xlu1 %v10894_v54, %s16132_s0 }
 0xc8f   : > { %10905 = vrot.lane.b32.xlu0 %v10904_v8, %s16128_s13 }
 0xc90   : > { %4242 = vrot.lane.b32.xlu1 %v13847_v18, %s16133_s1  ;;  %v10924_v18 = vpack.i.bf16 %v3929_v12, %v3905_v27 }
 0xc93   : > { %10910 = vrot.lane.b32.xlu0 %v10909_v34, %s16129_s23 }
 0xc94   : > { %4244 = vrot.lane.b32.xlu1 %v3901_v58, %s16133_s1  ;;  %v3953_v58 = vld [vmem:[#allocation3 + $0x92] sm:$0xff] }
 0xc97   : > { %10920 = vrot.lane.b32.xlu0 %v10919_v43, %s16131_s30 }
 0xc98   : > { %10915 = vrot.lane.b32.xlu1 %v10914_v40, %s16130_s25 }
 0xc9b   : > { %10925 = vrot.lane.b32.xlu0 %v10924_v18, %s16127_s26 }
 0xc9c   : > { %4246 = vrot.lane.b32.xlu1 %v3925_v28, %s16133_s1  ;;  %v11974_v28 = vld [vmem:[#allocation2 + $0x22] sm:$0xff] }
 0xc9f   : > { %4166 = vrot.lane.b32.xlu0 %v3913_v38, %s16132_s0 }
 0xca0   : > { %4248 = vrot.lane.b32.xlu1 %v3903_v10, %s16133_s1 }
 0xca3   : > { %4252 = vrot.lane.b32.xlu0 %v3905_v27, %s16133_s1 }
 0xca4   : > { %4250 = vrot.lane.b32.xlu1 %v3927_v11, %s16133_s1 }
 0xca7   : > { %4254 = vrot.lane.b32.xlu0 %v3929_v12, %s16133_s1 }
 0xca8   : > { %4168 = vrot.lane.b32.xlu1 %v13936_v5, %s16132_s0 }
 0xcac   : > { %4256 = vrot.lane.b32.xlu1 %v3953_v58, %s16133_s1 }
 0xcd5   : > { %v10801_v23 = vpop.permute.xlu0 %10800 }
 0xcd6   : > { %v10796_v46 = vpop.permute.xlu1 %10795  ;;  %v10802_v7 = vunpack.i.l.bf16 %v10801_v23  ;;  %v10803_v0 = vunpack.i.h.bf16 %v10801_v23 }
 0xcd7   : > { %v10798_v13 = vunpack.i.h.bf16 %v10796_v46  ;;  %v10797_v14 = vunpack.i.l.bf16 %v10796_v46 }
 0xcd9   : > { %v4178_v6 = vsel %vm416_vm0, %v11974_v28, %v10797_v14  ;;  %v10811_v49 = vpop.permute.xlu0 %10810  ;;  %v4179_v10 = vsel %vm416_vm0, %v11975_v33, %v10798_v13 }
 0xcda   : > { %v10806_v1 = vpop.permute.xlu1 %10805  ;;  %v10812_v63 = vunpack.i.l.bf16 %v10811_v49  ;;  %v4186_v20 = vsel %vm1094_vm2, %v4178_v6, %v10802_v7  ;;  %v10813_v45 = vunpack.i.h.bf16 %v10811_v49  ;;  %v4187_v62 = vsel %vm1094_vm2, %v4179_v10, %v10803_v0 }
 0xcdb   : > { %v10808_v52 = vunpack.i.h.bf16 %v10806_v1  ;;  %v10807_v51 = vunpack.i.l.bf16 %v10806_v1 }
 0xcdd   : > { %v4194_v11 = vsel %vm1103_vm3, %v4186_v20, %v10807_v51  ;;  %v10821_v53 = vpop.permute.xlu0 %10820  ;;  %v4195_v36 = vsel %vm1103_vm3, %v4187_v62, %v10808_v52  ;;  %v11976_v52 = vld [vmem:[#allocation2 + $0x52] sm:$0xff] }
 0xcde   : > { %v10816_v48 = vpop.permute.xlu1 %10815  ;;  %v10822_v27 = vunpack.i.l.bf16 %v10821_v53  ;;  %v4202_v34 = vsel %vm1112_vm4, %v4194_v11, %v10812_v63  ;;  %v10823_v40 = vunpack.i.h.bf16 %v10821_v53  ;;  %v4203_v18 = vsel %vm1112_vm4, %v4195_v36, %v10813_v45  ;;  %v11977_v63 = vld [vmem:[#allocation2 + $0x42] sm:$0xff] }
 0xcdf   : > { %v10818_v54 = vunpack.i.h.bf16 %v10816_v48  ;;  %v10817_v8 = vunpack.i.l.bf16 %v10816_v48 }
 0xce1   : > { %v4210_v38 = vsel %vm1121_vm5, %v4202_v34, %v10817_v8  ;;  %v10831_v43 = vpop.permute.xlu0 %10830  ;;  %v4211_v46 = vsel %vm1121_vm5, %v4203_v18, %v10818_v54 }
 0xce2   : > { %v10826_v12 = vpop.permute.xlu1 %10825  ;;  %v10833_v13 = vunpack.i.h.bf16 %v10831_v43  ;;  %v10832_v14 = vunpack.i.l.bf16 %v10831_v43  ;;  %v4218_v7 = vsel %vm1130_vm6, %v4210_v38, %v10822_v27  ;;  %v4219_v49 = vsel %vm1130_vm6, %v4211_v46, %v10823_v40 }
 0xce3   : > { %v10828_v58 = vunpack.i.h.bf16 %v10826_v12  ;;  %v10827_v23 = vunpack.i.l.bf16 %v10826_v12 }
 0xce4   : > { %v4181_v51 = vsel %vm416_vm0, %v11976_v52, %v10833_v13  ;;  %v4180_v20 = vsel %vm416_vm0, %v11977_v63, %v10832_v14 }
 0xce5   : > { %v4226_v28 = vsel %vm1139_vm7, %v4218_v7, %v10827_v23  ;;  %v10841_v6 = vpop.permute.xlu0 %10840  ;;  %v4227_v10 = vsel %vm1139_vm7, %v4219_v49, %v10828_v58 }
 0xce6   : > { %v10836_v0 = vpop.permute.xlu1 %10835  ;;  %4405 = vmatprep.mubr.f32.mxu1 %v4226_v28  ;;  %v10843_v11 = vunpack.i.h.bf16 %v10841_v6  ;;  %v10842_v45 = vunpack.i.l.bf16 %v10841_v6 }
 0xce7   : > { %v10838_v1 = vunpack.i.h.bf16 %v10836_v0  ;;  %v10837_v33 = vunpack.i.l.bf16 %v10836_v0  ;;  %4406 = vmatmul.mubr.f32.vlgmr.msra.gmra.mxu1 %v13513_v55 }
 0xce8   : > { %4410 = vmatprep.mubr.f32.mxu1 %v4227_v10 }
 0xce9   : > { %v4189_v62 = vsel %vm1094_vm2, %v4181_v51, %v10838_v1  ;;  %v4188_v53 = vsel %vm1094_vm2, %v4180_v20, %v10837_v33  ;;  %v10851_v48 = vpop.permute.xlu0 %10850  ;;  %v11978_v51 = vld [vmem:[#allocation2 + $0x62] sm:$0xff] }
 0xcea   : > { %v10846_v36 = vpop.permute.xlu1 %10845  ;;  %v10853_v55 = vunpack.i.h.bf16 %v10851_v48  ;;  %v10852_v27 = vunpack.i.l.bf16 %v10851_v48  ;;  %v4196_v34 = vsel %vm1103_vm3, %v4188_v53, %v10842_v45  ;;  %v4197_v38 = vsel %vm1103_vm3, %v4189_v62, %v10843_v11  ;;  %v11979_v62 = vld [vmem:[#allocation2 + $0x72] sm:$0xff] }
 0xceb   : > { %v10848_v54 = vunpack.i.h.bf16 %v10846_v36  ;;  %v10847_v8 = vunpack.i.l.bf16 %v10846_v36  ;;  %4411 = vmatmul.mubr.f32.gmra.mxu1 %v13532_v32 }
 0xced   : > { %v4204_v40 = vsel %vm1112_vm4, %v4196_v34, %v10847_v8  ;;  %v4205_v43 = vsel %vm1112_vm4, %v4197_v38, %v10848_v54  ;;  %v10861_v12 = vpop.permute.xlu0 %10860 }
 0xcee   : > { %v10856_v18 = vpop.permute.xlu1 %10855  ;;  %v10862_v58 = vunpack.i.l.bf16 %v10861_v12  ;;  %v10863_v13 = vunpack.i.h.bf16 %v10861_v12  ;;  %v4212_v14 = vsel %vm1121_vm5, %v4204_v40, %v10852_v27  ;;  %v4213_v32 = vsel %vm1121_vm5, %v4205_v43, %v10853_v55 }
 0xcef   : > { %v10858_v23 = vunpack.i.h.bf16 %v10856_v18  ;;  %v10857_v46 = vunpack.i.l.bf16 %v10856_v18 }
 0xcf1   : > { %v4220_v7 = vsel %vm1130_vm6, %v4212_v14, %v10857_v46  ;;  %v4221_v28 = vsel %vm1130_vm6, %v4213_v32, %v10858_v23  ;;  %v10871_v6 = vpop.permute.xlu0 %10870 }
 0xcf2   : > { %v10866_v0 = vpop.permute.xlu1 %10865  ;;  %v4228_v49 = vsel %vm1139_vm7, %v4220_v7, %v10862_v58  ;;  %v10872_v10 = vunpack.i.l.bf16 %v10871_v6  ;;  %v4229_v52 = vsel %vm1139_vm7, %v4221_v28, %v10863_v13  ;;  %v10873_v20 = vunpack.i.h.bf16 %v10871_v6 }
 0xcf3   : > { %v10868_v1 = vunpack.i.h.bf16 %v10866_v0  ;;  %v10867_v33 = vunpack.i.l.bf16 %v10866_v0  ;;  %4415 = vmatprep.mubr.f32.mxu1 %v4228_v49 }
 0xcf4   : > { %4416 = vmatmul.mubr.f32.gmra.mxu1 %v13551_v9 }
 0xcf5   : > { %v4182_v63 = vsel %vm416_vm0, %v11978_v51, %v10867_v33  ;;  %4420 = vmatprep.mubr.f32.mxu1 %v4229_v52  ;;  %v10881_v11 = vpop.permute.xlu0 %10880  ;;  %v4183_v53 = vsel %vm416_vm0, %v11979_v62, %v10868_v1 }
 0xcf6   : > { %v10876_v45 = vpop.permute.xlu1 %10875  ;;  %v10882_v54 = vunpack.i.l.bf16 %v10881_v11  ;;  %v4190_v8 = vsel %vm1094_vm2, %v4182_v63, %v10872_v10  ;;  %v10883_v55 = vunpack.i.h.bf16 %v10881_v11  ;;  %v4191_v27 = vsel %vm1094_vm2, %v4183_v53, %v10873_v20 }
 0xcf7   : > { %v10878_v48 = vunpack.i.h.bf16 %v10876_v45  ;;  %v10877_v36 = vunpack.i.l.bf16 %v10876_v45 }
 0xcf8   : > { %4421 = vmatmul.mubr.f32.gmra.mxu1 %v13570_v59 }
 0xcf9   : > { %v4198_v9 = vsel %vm1103_vm3, %v4190_v8, %v10877_v36  ;;  %v10891_v34 = vpop.permute.xlu0 %10890  ;;  %v4199_v40 = vsel %vm1103_vm3, %v4191_v27, %v10878_v48 }
 0xcfa   : > { %v10886_v38 = vpop.permute.xlu1 %10885  ;;  %v10892_v18 = vunpack.i.l.bf16 %v10891_v34  ;;  %v4206_v58 = vsel %vm1112_vm4, %v4198_v9, %v10882_v54  ;;  %v10893_v46 = vunpack.i.h.bf16 %v10891_v34  ;;  %v4207_v59 = vsel %vm1112_vm4, %v4199_v40, %v10883_v55 }
 0xcfb   : > { %v10888_v43 = vunpack.i.h.bf16 %v10886_v38  ;;  %v10887_v12 = vunpack.i.l.bf16 %v10886_v38 }
 0xcfd   : > { %v4214_v23 = vsel %vm1121_vm5, %v4206_v58, %v10887_v12  ;;  %v10901_v13 = vpop.permute.xlu0 %10900  ;;  %v4215_v28 = vsel %vm1121_vm5, %v4207_v59, %v10888_v43 }
 0xcfe   : > { %v10896_v14 = vpop.permute.xlu1 %10895  ;;  %v4222_v6 = vsel %vm1130_vm6, %v4214_v23, %v10892_v18  ;;  %v4223_v33 = vsel %vm1130_vm6, %v4215_v28, %v10893_v46  ;;  %v10902_v51 = vunpack.i.l.bf16 %v10901_v13  ;;  %v10903_v34 = vunpack.i.h.bf16 %v10901_v13 }
 0xcff   : > { %v10898_v32 = vunpack.i.h.bf16 %v10896_v14  ;;  %v10897_v7 = vunpack.i.l.bf16 %v10896_v14  ;;  %v11981_v14 = vld [vmem:[#allocation2 + $0x92] sm:$0xff] }
 0xd00   : > { %v4185_v59 = vsel %vm416_vm0, %v11981_v14, %v10903_v34 }
 0xd01   : > { %v4230_v0 = vsel %vm1139_vm7, %v4222_v6, %v10897_v7  ;;  %v10906_v49 = vpop.permute.xlu0 %10905  ;;  %v4231_v52 = vsel %vm1139_vm7, %v4223_v33, %v10898_v32 }
 0xd02   : > { %v4243_v1 = vpop.permute.xlu1 %4242  ;;  %4425 = vmatprep.mubr.f32.mxu1 %v4230_v0  ;;  %v10907_v11 = vunpack.i.l.bf16 %v10906_v49  ;;  %v10908_v40 = vunpack.i.h.bf16 %v10906_v49 }
 0xd03   : > { %v4266_v10 = vsel %vm416_vm0, %v13850_v26, %v4243_v1  ;;  %4426 = vmatmul.mubr.f32.gmra.mxu1 %v13589_v47  ;;  %v11980_v26 = vld [vmem:[#allocation2 + $0x82] sm:$0xff] }
 0xd04   : > { %4430 = vmatprep.mubr.f32.mxu1 %v4231_v52  ;;  %9905 = vmatprep.mubr.msk.f32.mxu0 %vm1094_vm2, %v4266_v10  ;;  %v4184_v47 = vsel %vm416_vm0, %v11980_v26, %v10902_v51 }
 0xd05   : > { %v10911_v63 = vpop.permute.xlu0 %10910  ;;  %v4192_v36 = vsel %vm1094_vm2, %v4184_v47, %v10907_v11 }
 0xd06   : > { %v4245_v20 = vpop.permute.xlu1 %4244  ;;  %v10912_v62 = vunpack.i.l.bf16 %v10911_v63  ;;  %v10913_v12 = vunpack.i.h.bf16 %v10911_v63 }
 0xd07   : > { %v4267_v45 = vsel %vm416_vm0, %v13870_v24, %v4245_v20  ;;  %4431 = vmatmul.mubr.f32.gmra.mxu1 %v13618_v31 }
 0xd08   : > { %9906 = vmatmul.mubr.msk.f32.vlgmr.msra.gmra.mxu0 %vm1094_vm2, %v4267_v45  ;;  %v4200_v8 = vsel %vm1103_vm3, %v4192_v36, %v10912_v62 }
 0xd09   : > { %v10921_v53 = vpop.permute.xlu0 %10920 }
 0xd0a   : > { %v10916_v48 = vpop.permute.xlu1 %10915  ;;  %v10922_v9 = vunpack.i.l.bf16 %v10921_v53  ;;  %v10923_v28 = vunpack.i.h.bf16 %v10921_v53 }
 0xd0b   : > { %v10917_v54 = vunpack.i.l.bf16 %v10916_v48  ;;  %v10918_v58 = vunpack.i.h.bf16 %v10916_v48 }
 0xd0d   : > { %v4208_v55 = vsel %vm1112_vm4, %v4200_v8, %v10917_v54  ;;  %v10926_v27 = vpop.permute.xlu0 %10925 }
 0xd0e   : > { %v4247_v24 = vpop.permute.xlu1 %4246  ;;  %v10927_v31 = vunpack.i.l.bf16 %v10926_v27  ;;  %v4216_v43 = vsel %vm1121_vm5, %v4208_v55, %v10922_v9  ;;  %v10928_v0 = vunpack.i.h.bf16 %v10926_v27 }
 0xd0f   : > { %v4268_v38 = vsel %vm416_vm0, %v13877_v57, %v4247_v24  ;;  %v4193_v57 = vsel %vm1094_vm2, %v4185_v59, %v10908_v40 }
 0xd10   : > { %9908 = vmatprep.mubr.msk.f32.mxu0 %vm1094_vm2, %v4268_v38  ;;  %v4224_v18 = vsel %vm1130_vm6, %v4216_v43, %v10927_v31  ;;  %v4201_v7 = vsel %vm1103_vm3, %v4193_v57, %v10913_v12 }
 0xd11   : > { %v4167_v23 = vpop.permute.xlu0 %4166  ;;  %v4209_v6 = vsel %vm1112_vm4, %v4201_v7, %v10918_v58 }
 0xd12   : > { %v4249_v46 = vpop.permute.xlu1 %4248  ;;  %v4232_v32 = vsel %vm1139_vm7, %v4224_v18, %v4167_v23  ;;  %v4217_v10 = vsel %vm1121_vm5, %v4209_v6, %v10923_v28 }
 0xd13   : > { %v4269_v13 = vsel %vm416_vm0, %v13885_v4, %v4249_v46  ;;  %4435 = vmatprep.mubr.f32.mxu1 %v4232_v32 }
 0xd14   : > { %9909 = vmatmul.mubr.msk.f32.gmra.mxu0 %vm1094_vm2, %v4269_v13  ;;  %4436 = vmatmul.mubr.f32.gmra.mxu1 %v13647_v37  ;;  %v4225_v37 = vsel %vm1130_vm6, %v4217_v10, %v10928_v0 }
 0xd15   : > { %v4253_v49 = vpop.permute.xlu0 %4252 }
 0xd16   : > { %v4251_v1 = vpop.permute.xlu1 %4250  ;;  %v4271_v4 = vsel %vm416_vm0, %v13913_v30, %v4253_v49  ;;  %v3945_v30 = vld [vmem:[#allocation3 + $0x91] sm:$0xff] }
 0xd17   : > { %v4270_v33 = vsel %vm416_vm0, %v13899_v42, %v4251_v1 }
 0xd18   : > { %9911 = vmatprep.mubr.msk.f32.mxu0 %vm1094_vm2, %v4270_v33 }
 0xd19   : > { %9912 = vmatmul.mubr.msk.f32.gmra.mxu0 %vm1094_vm2, %v4271_v4  ;;  %v4255_v52 = vpop.permute.xlu0 %4254 }
 0xd1a   : > { %v4169_v51 = vpop.permute.xlu1 %4168  ;;  %v4272_v63 = vsel %vm416_vm0, %v13922_v56, %v4255_v52 }
 0xd1b   : > { %v4233_v20 = vsel %vm1139_vm7, %v4225_v37, %v4169_v51  ;;  %9914 = vmatprep.mubr.msk.f32.mxu0 %vm1094_vm2, %v4272_v63 }
 0xd1c   : > { %4440 = vmatprep.mubr.f32.mxu1 %v4233_v20 }
 0xd1d   : > { %4441 = vmatmul.mubr.f32.gmra.mxu1 %v13673_v61  ;;  %v9170_v61 = vld [vmem:[%s16086_s7] ss:$0 sm:$0xff] }
 0xd1e   : > { %v4257_v42 = vpop.permute.xlu1 %4256 }
 0xd1f   : > { %v4273_v11 = vsel %vm416_vm0, %v3945_v30, %v4257_v42 }
 0xd20   : > { %9915 = vmatmul.mubr.msk.f32.gmra.mxu0 %vm1094_vm2, %v4273_v11 }
 0xda7   : > { %v9529_v45 = vpop.f32.mrf.mxu1 }
 0xda9   : > { %v9530_v62 = vpop.f32.mrf.mxu1 }
 0xdaa   : > { %v9531_v9 = vadd.f32 %v9530_v62, %v9529_v45 }
 0xdab   : > { %v9532_v26 = vpop.f32.mrf.mxu1 }
 0xdac   : > { %v4408_v34 = vadd.f32 %v9531_v9, %v9170_v61 }
 0xdad   : > { %v9533_v47 = vpop.f32.mrf.mxu1 }
 0xdae   : > { %v9534_v27 = vadd.f32 %v9533_v47, %v9532_v26 }
 0xdb0   : > { %v4413_v43 = vadd.f32 %v9534_v27, %v9170_v61 }
 0xdb4   : > { %v9535_v53 = vpop.f32.mrf.mxu1 }
 0xdb6   : > { %v9536_v48 = vpop.f32.mrf.mxu1 }
 0xdb7   : > { %v9537_v38 = vadd.f32 %v9536_v48, %v9535_v53 }
 0xdb8   : > { %v9538_v56 = vpop.f32.mrf.mxu1 }
 0xdb9   : > { %v4418_v59 = vadd.f32 %v9537_v38, %v9170_v61 }
 0xdba   : > { %v9539_v36 = vpop.f32.mrf.mxu1 }
 0xdbb   : > { %v9540_v40 = vadd.f32 %v9539_v36, %v9538_v56 }
 0xdbd   : > { %v4423_v14 = vadd.f32 %v9540_v40, %v9170_v61 }
 0xdc3   : > { %v9541_v54 = vpop.f32.mrf.mxu1 }
 0xdc5   : > { %v9542_v55 = vpop.f32.mrf.mxu1 }
 0xdc6   : > { %v9543_v13 = vadd.f32 %v9542_v55, %v9541_v54 }
 0xdc7   : > { %v9544_v31 = vpop.f32.mrf.mxu1 }
 0xdc8   : > { %v9907_v8 = vpop.f32.mrf.mxu0  ;;  %v4428_v52 = vadd.f32 %v9543_v13, %v9170_v61 }
 0xdc9   : > { %v4518_v18 = vadd.f32 %v9907_v8, %v4413_v43  ;;  %v9545_v58 = vpop.f32.mrf.mxu1 }
 0xdca   : > { %v4512_v24 = vpop.f32.mrf.mxu0  ;;  %v9546_v49 = vadd.f32 %v9545_v58, %v9544_v31 }
 0xdcb   : > { %v4513_v12 = vadd.f32 %v4512_v24, %v4408_v34  ;;  %v4554_v7 = vsel %vm416_vm0, %v4518_v18, 0.0 }
 0xdcc   : > { %v4433_v42 = vadd.f32 %v9546_v49, %v9170_v61 }
 0xdcd   : > { %v4553_v46 = vsel %vm416_vm0, %v4513_v12, 0.0 }
 0xdce   : > { %v4555_v0 = vadd.f32 %v4554_v7, %v4553_v46 }
 0xdd4   : > { %v9910_v23 = vpop.f32.mrf.mxu0  ;;  %v9547_v32 = vpop.f32.mrf.mxu1 }
 0xdd5   : > { %v4528_v28 = vadd.f32 %v9910_v23, %v4423_v14 }
 0xdd6   : > { %v4522_v57 = vpop.f32.mrf.mxu0  ;;  %v9548_v10 = vpop.f32.mrf.mxu1 }
 0xdd7   : > { %v4523_v6 = vadd.f32 %v4522_v57, %v4418_v59  ;;  %v4558_v51 = vsel %vm416_vm0, %v4528_v28, 0.0  ;;  %v9549_v30 = vadd.f32 %v9548_v10, %v9547_v32 }
 0xdd9   : > { %v4556_v1 = vsel %vm416_vm0, %v4523_v6, 0.0  ;;  %v9913_v4 = vpop.f32.mrf.mxu0  ;;  %v4438_v56 = vadd.f32 %v9549_v30, %v9170_v61 }
 0xdda   : > { %v4557_v33 = vadd.f32 %v4556_v1, %v4555_v0  ;;  %v4538_v62 = vadd.f32 %v9913_v4, %v4433_v42 }
 0xddb   : > { %v4532_v37 = vpop.f32.mrf.mxu0 }
 0xddc   : > { %v4533_v63 = vadd.f32 %v4532_v37, %v4428_v52  ;;  %v4559_v20 = vadd.f32 %v4558_v51, %v4557_v33  ;;  %v4562_v8 = vsel %vm416_vm0, %v4538_v62, 0.0 }
 0xddd   : > { %v9550_v11 = vpop.f32.mrf.mxu1 }
 0xdde   : > { %v4560_v45 = vsel %vm416_vm0, %v4533_v63, 0.0 }
 0xddf   : > { %v9551_v26 = vpop.f32.mrf.mxu1  ;;  %v4561_v47 = vadd.f32 %v4560_v45, %v4559_v20 }
 0xde0   : > { %v9552_v53 = vadd.f32 %v9551_v26, %v9550_v11  ;;  %v9916_v48 = vpop.f32.mrf.mxu0 }
 0xde1   : > { %v4563_v27 = vadd.f32 %v4562_v8, %v4561_v47 }
 0xde2   : > { %v4443_v36 = vadd.f32 %v9552_v53, %v9170_v61  ;;  %v4542_v54 = vpop.f32.mrf.mxu0 }
 0xde3   : > { %v4543_v9 = vadd.f32 %v4542_v54, %v4438_v56 }
 0xde4   : > { %v4548_v55 = vadd.f32 %v9916_v48, %v4443_v36 }
 0xde5   : > { %v4564_v24 = vsel %vm416_vm0, %v4543_v9, 0.0 }
 0xde6   : > { %v4566_v34 = vsel %vm416_vm0, %v4548_v55, 0.0  ;;  %v4565_v31 = vadd.f32 %v4564_v24, %v4563_v27 }
 0xde8   : > { %v4567_v38 = vadd.f32 %v4566_v34, %v4565_v31 }
 0xdea   : > { %4568 = vadd.xlane.f32.xlu0 %v4567_v38  ;;  %v9189_v38 = vld [vmem:[%s12279_s19 + $0x80] sm:$0xff] }
 0xdeb   : > { %4723 = vst.msk [vmem:[#allocation2 + $0x11] sm:$0xff] %vm416_vm0, %v9189_v38  ;;  %v5497_v38 = vld [vmem:[%s16081_s2 + $0x70] sm:$0xff] }
 0xe73   : > { %v4569_v40 = vpop.xlane.xlu0 %4568 }
 0xe74   : > { %v4570_v43 = vrot.slane %v4569_v40, 4 }
 0xe76   : > { %v4571_v58 = vadd.f32 %v4570_v43, %v4569_v40  ;;  %v4747_v40 = vld [vmem:[#allocation2 + $0x1] sm:$0xff] }
 0xe77   : > { %v4811_v43 = vld [vmem:[#allocation3] sm:$0xff] }
 0xe78   : > { %v4572_v23 = vrot.slane %v4571_v58, 2 }
 0xe7a   : > { %v4573_v46 = vadd.f32 %v4572_v23, %v4571_v58  ;;  %v10929_v58 = vpack.i.bf16 %v4747_v40, %v4811_v43  ;;  %v4755_v23 = vld [vmem:[#allocation2 + $0x2] sm:$0xff] }
 0xe7b   : > { %v5512_v40 = vld [vmem:[%s16081_s2 + $0xe8] sm:$0xff] }
 0xe7c   : > { %v4574_v14 = vrot.slane %v4573_v46, 1  ;;  %10930 = vrot.lane.b32.xlu0 %v10929_v58, %s16133_s1  ;;  %v5496_v58 = vld [vmem:[%s16081_s2 + $0x68] sm:$0xff] }
 0xe7e   : > { %v4575_v61 = vadd.f32 %v4574_v14, %v4573_v46  ;;  %v4819_v46 = vld [vmem:[#allocation3 + $0x1] sm:$0xff] }
 0xe7f   : > { %v9190_v14 = vld [vmem:[%s12279_s19 + $0x88] sm:$0xff] }
 0xe80   : > { %10015 = vpush %v4575_v61  ;;  %v10934_v61 = vpack.i.bf16 %v4755_v23, %v4819_v46 }
 0xe81   : > { %4724 = vst.msk [vmem:[#allocation2 + $0x21] sm:$0xff] %vm416_vm0, %v9190_v14  ;;  %v5511_v14 = vld [vmem:[%s16081_s2 + $0xe0] sm:$0xff] }
 0xeb1   : > { %s10016_s28 = spop %10015 }
 0xeb2   : > { %s4579_s24 = smul.f32 0.0009765625, %s10016_s28 }
 0xeb4   : > { %v4580_v59 = vstv %s4579_s24 }
 0xeb5   : > { %v14040_v13 = vsub.f32 %v4513_v12, %v4580_v59  ;;  %v14042_v32 = vsub.f32 %v4518_v18, %v4580_v59  ;;  %v14044_v57 = vsub.f32 %v4523_v6, %v4580_v59  ;;  %v14046_v7 = vsub.f32 %v4528_v28, %v4580_v59 }
 0xeb6   : > { %v14048_v0 = vsub.f32 %v4533_v63, %v4580_v59  ;;  %v14056_v33 = vsub.f32 %v4538_v62, %v4580_v59  ;;  %v14062_v10 = vsub.f32 %v4543_v9, %v4580_v59  ;;  %v14067_v63 = vsub.f32 %v4548_v55, %v4580_v59  ;;  %v14084_v59 = vld [vmem:[#allocation2 + $0x10] sm:$0xff] }
 0xeb7   : > { %v4589_v49 = vmul.f32 %v14040_v13, %v14040_v13  ;;  %v4590_v1 = vmul.f32 %v14042_v32, %v14042_v32  ;;  %v4591_v4 = vmul.f32 %v14044_v57, %v14044_v57  ;;  %v4592_v12 = vmul.f32 %v14046_v7, %v14046_v7 }
 0xeb8   : > { %v4593_v52 = vmul.f32 %v14048_v0, %v14048_v0  ;;  %v4594_v20 = vmul.f32 %v14056_v33, %v14056_v33  ;;  %v4595_v11 = vmul.f32 %v14062_v10, %v14062_v10  ;;  %v4596_v26 = vmul.f32 %v14067_v63, %v14067_v63 }
 0xeb9   : > { %v4597_v18 = vsel %vm416_vm0, %v4589_v49, 0.0  ;;  %v4598_v28 = vsel %vm416_vm0, %v4590_v1, 0.0  ;;  %v4600_v51 = vsel %vm416_vm0, %v4591_v4, 0.0  ;;  %v4602_v30 = vsel %vm416_vm0, %v4592_v12, 0.0  ;;  %v4827_v49 = vld [vmem:[#allocation3 + $0x2] sm:$0xff]  ;;  %v4802_v1 = vld [vmem:[#allocation2 + $0x91] sm:$0xff] }
 0xeba   : > { %v4599_v6 = vadd.f32 %v4598_v28, %v4597_v18  ;;  %v4604_v45 = vsel %vm416_vm0, %v4593_v52, 0.0  ;;  %v4606_v47 = vsel %vm416_vm0, %v4594_v20, 0.0  ;;  %v4608_v48 = vsel %vm416_vm0, %v4595_v11, 0.0  ;;  %v9191_v12 = vld [vmem:[%s12279_s19 + $0x90] sm:$0xff]  ;;  %v9192_v18 = vld [vmem:[%s12279_s19 + $0x98] sm:$0xff]  ;;  %v9194_v52 = vld [vmem:[%s12279_s19 + $0xa8] sm:$0xff] }
 0xebb   : > { %v4610_v36 = vsel %vm416_vm0, %v4596_v26, 0.0  ;;  %v10939_v4 = vpack.i.bf16 %v14084_v59, %v4827_v49  ;;  %v10944_v28 = vpack.i.bf16 %v4802_v1, %v13936_v5  ;;  %4725 = vst.msk [vmem:[#allocation2 + $0x31] sm:$0xff] %vm416_vm0, %v9191_v12  ;;  %4726 = vst.msk [vmem:[#allocation2 + $0x41] sm:$0xff] %vm416_vm0, %v9192_v18  ;;  %v5510_v49 = vld [vmem:[%s16081_s2 + $0xd8] sm:$0xff]  ;;  %v5493_v12 = vld [vmem:[%s16081_s2 + $0x50] sm:$0xff] }
 0xebc   : > { %v4601_v37 = vadd.f32 %v4600_v51, %v4599_v6  ;;  %v9193_v6 = vld [vmem:[%s12279_s19 + $0xa0] sm:$0xff]  ;;  %v9195_v51 = vld [vmem:[%s12279_s19 + $0xb0] sm:$0xff]  ;;  %4728 = vst.msk [vmem:[#allocation2 + $0x61] sm:$0xff] %vm416_vm0, %v9194_v52  ;;  %v5494_v1 = vld [vmem:[%s16081_s2 + $0x58] sm:$0xff]  ;;  %v4674_v52 = vsub.f32 1.0, %v13724_v50 }
 0xebd   : > { %10940 = vrot.lane.b32.xlu0 %v10939_v4, %s16129_s23  ;;  %4727 = vst.msk [vmem:[#allocation2 + $0x51] sm:$0xff] %vm416_vm0, %v9193_v6  ;;  %4729 = vst.msk [vmem:[#allocation2 + $0x71] sm:$0xff] %vm416_vm0, %v9195_v51  ;;  %v5509_v4 = vld [vmem:[%s16081_s2 + $0xd0] sm:$0xff]  ;;  %v5508_v18 = vld [vmem:[%s16081_s2 + $0xc8] sm:$0xff]  ;;  %v4673_v6 = vsub.f32 1.0, %v13722_v17  ;;  %v4675_v51 = vsub.f32 1.0, %v13727_v2 }
 0xebe   : > { %v4603_v42 = vadd.f32 %v4602_v30, %v4601_v37  ;;  %v9196_v37 = vld [vmem:[%s12279_s19 + $0xb8] sm:$0xff]  ;;  %v9179_v30 = vld [vmem:[%s16087_s8] ss:$0 sm:$0xff] }
 0xebf   : > { %4730 = vst.msk [vmem:[#allocation2 + $0x81] sm:$0xff] %vm416_vm0, %v9196_v37  ;;  %v5507_v37 = vld [vmem:[%s16081_s2 + $0xc0] sm:$0xff] }
 0xec0   : > { %v4605_v62 = vadd.f32 %v4604_v45, %v4603_v42 }
 0xec2   : > { %v4607_v53 = vadd.f32 %v4606_v47, %v4605_v62  ;;  %v9180_v47 = vld [vmem:[%s16088_s9] ss:$0 sm:$0xff] }
 0xec4   : > { %v4609_v56 = vadd.f32 %v4608_v48, %v4607_v53 }
 0xec6   : > { %v4611_v54 = vadd.f32 %v4610_v36, %v4609_v56 }
 0xec8   : > { %4612 = vadd.xlane.f32.xlu1 %v4611_v54 }
 0xed9   : > { %10935 = vrot.lane.b32.xlu1 %v10934_v61, %s16128_s13  ;;  %v5495_v61 = vld [vmem:[%s16081_s2 + $0x60] sm:$0xff] }
 0xedd   : > { %10945 = vrot.lane.b32.xlu1 %v10944_v28, %s16132_s0  ;;  %v5492_v28 = vld [vmem:[%s16081_s2 + $0x48] sm:$0xff] }
 0xf51   : > { %v4613_v8 = vpop.xlane.xlu1 %4612 }
 0xf52   : > { %v4614_v9 = vrot.slane %v4613_v8, 4 }
 0xf54   : > { %v4615_v55 = vadd.f32 %v4614_v9, %v4613_v8 }
 0xf56   : > { %v4616_v27 = vrot.slane %v4615_v55, 2 }
 0xf58   : > { %v4617_v24 = vadd.f32 %v4616_v27, %v4615_v55 }
 0xf5a   : > { %v4618_v34 = vrot.slane %v4617_v24, 1 }
 0xf5c   : > { %v4619_v31 = vadd.f32 %v4618_v34, %v4617_v24 }
 0xf5e   : > { %10017 = vpush %v4619_v31  ;;  %v5513_v31 = vld [vmem:[%s16081_s2 + $0xf0] sm:$0xff] }
 0xf8f   : > { %s10018_s15 = spop %10017 }
 0xf90   : > { %s4623_s29 = smul.f32 0.0009765625, %s10018_s15 }
 0xf92   : > { %s4624_s11 = sadd.f32 1e-05, %s4623_s29 }
 0xf94   : > { %v4625_v5 = vstv %s4624_s11 }
 0xf95   : > { %11845 = vrsqrt.f32 %v4625_v5  ;;  %v5491_v5 = vld [vmem:[%s16081_s2 + $0x40] sm:$0xff] }
 0xfa2   : > { %v11846_v20 = vpop.eup %11845 }
 0xfa3   : > { %10019 = vpush %v11846_v20 }
 0xfd4   : > { %s10020_s20 = spop %10019 }
 0xfd5   : > { %v4628_v42 = vstv %s10020_s20 }
 0xfd6   : > { %v4629_v11 = vmul.f32 %v4628_v42, %v14040_v13  ;;  %v4630_v45 = vmul.f32 %v4628_v42, %v14042_v32  ;;  %v4631_v62 = vmul.f32 %v4628_v42, %v14044_v57  ;;  %v4632_v26 = vmul.f32 %v4628_v42, %v14046_v7  ;;  %v5514_v57 = vld [vmem:[%s16081_s2 + $0xf8] sm:$0xff] }
 0xfd7   : > { %v4633_v53 = vmul.f32 %v4628_v42, %v14048_v0  ;;  %v4634_v48 = vmul.f32 %v4628_v42, %v14056_v33  ;;  %v4635_v56 = vmul.f32 %v4628_v42, %v14062_v10  ;;  %v4636_v36 = vmul.f32 %v4628_v42, %v14067_v63  ;;  %v5498_v7 = vld [vmem:[%s16081_s2 + $0x78] sm:$0xff]  ;;  %9565 = vmatprep.subr.mxu0 %v5514_v57 }
 0xfd8   : > { %v4643_v54 = vmul.f32 %v9179_v30, %v4629_v11  ;;  %v4644_v13 = vmul.f32 %v9179_v30, %v4630_v45  ;;  %v4645_v8 = vmul.f32 %v9179_v30, %v4631_v62  ;;  %v4646_v32 = vmul.f32 %v9179_v30, %v4632_v26  ;;  %9566 = vmatpush3.msra.mxu0 %v5498_v7 }
 0xfd9   : > { %v4647_v9 = vmul.f32 %v9179_v30, %v4633_v53  ;;  %v4648_v0 = vmul.f32 %v9179_v30, %v4634_v48  ;;  %v4649_v33 = vmul.f32 %v9179_v30, %v4635_v56  ;;  %v4650_v63 = vmul.f32 %v9179_v30, %v4636_v36  ;;  %9567 = vmatprep.subr.mxu0 %v5513_v31  ;;  %v5487_v31 = vld [vmem:[%s16081_s2 + $0x20] sm:$0xff] }
 0xfda   : > { %v4657_v55 = vadd.f32 %v9180_v47, %v4643_v54  ;;  %v4658_v10 = vadd.f32 %v9180_v47, %v4644_v13  ;;  %v4659_v27 = vadd.f32 %v9180_v47, %v4645_v8  ;;  %v4660_v24 = vadd.f32 %v9180_v47, %v4646_v32  ;;  %9568 = vmatpush3.msra.mxu0 %v5497_v38 }
 0xfdb   : > { %v4661_v34 = vadd.f32 %v9180_v47, %v4647_v9  ;;  %v4662_v43 = vadd.f32 %v9180_v47, %v4648_v0  ;;  %v4663_v23 = vadd.f32 %v9180_v47, %v4649_v33  ;;  %v4664_v46 = vadd.f32 %v9180_v47, %v4650_v63  ;;  %9569 = vmatprep.subr.mxu0 %v5512_v40  ;;  %v5489_v0 = vld [vmem:[%s16081_s2 + $0x30] sm:$0xff] }
 0xfdc   : > { %11847 = vtanh.f32 %v4657_v55  ;;  %9570 = vmatpush3.msra.mxu0 %v5496_v58  ;;  %v4676_v30 = vsub.f32 1.0, %v13730_v41  ;;  %v4677_v11 = vsub.f32 1.0, %v13735_v60  ;;  %v4681_v45 = vmul.f32 %v4673_v6, %v13233_v35  ;;  %v4771_v40 = vld [vmem:[#allocation2 + $0x11] sm:$0xff] }
 0xfdd   : > { %11849 = vtanh.f32 %v4658_v10  ;;  %9571 = vmatprep.subr.mxu0 %v5511_v14  ;;  %v4678_v47 = vsub.f32 1.0, %v13738_v25  ;;  %v4682_v53 = vmul.f32 %v4674_v52, %v13238_v22  ;;  %v4679_v36 = vsub.f32 1.0, %v13743_v3  ;;  %v5485_v52 = vld [vmem:[%s16081_s2 + $0x10] sm:$0xff] }
 0xfde   : > { %11851 = vtanh.f32 %v4659_v27  ;;  %9572 = vmatpush3.msra.mxu0 %v5495_v61  ;;  %v4683_v54 = vmul.f32 %v4675_v51, %v13251_v16  ;;  %v4684_v32 = vmul.f32 %v4676_v30, %v13267_v44  ;;  %v5490_v16 = vld [vmem:[%s16081_s2 + $0x38] sm:$0xff]  ;;  %v4685_v44 = vmul.f32 %v4677_v11, %v13276_v39  ;;  %v14272_v61 = vld [vmem:[#allocation2 + $0x20] sm:$0xff]  ;;  %v5500_v51 = vld [vmem:[%s16081_s2 + $0x88] sm:$0xff] }
 0xfdf   : > { %11853 = vtanh.f32 %v4660_v24  ;;  %9573 = vmatprep.subr.mxu0 %v5510_v49  ;;  %v4686_v55 = vmul.f32 %v4678_v47, %v13285_v21  ;;  %v4687_v27 = vmul.f32 %v4679_v36, %v13301_v29  ;;  %v5504_v29 = vld [vmem:[%s16081_s2 + $0xa8] sm:$0xff]  ;;  %v5483_v11 = vld [vmem:[%s16081_s2] sm:$0xff]  ;;  %v14323_v36 = vld [vmem:[#allocation2 + $0x32] sm:$0xff] }
 0xfe0   : > { %11855 = vtanh.f32 %v4661_v34  ;;  %9574 = vmatpush3.msra.mxu0 %v5494_v1  ;;  %v5502_v1 = vld [vmem:[%s16081_s2 + $0x98] sm:$0xff] }
 0xfe1   : > { %11857 = vtanh.f32 %v4662_v43  ;;  %9575 = vmatprep.subr.mxu0 %v5509_v4  ;;  %v5486_v4 = vld [vmem:[%s16081_s2 + $0x18] sm:$0xff] }
 0xfe2   : > { %11859 = vtanh.f32 %v4663_v23  ;;  %9576 = vmatpush3.msra.mxu0 %v5493_v12  ;;  %v4779_v23 = vld [vmem:[#allocation2 + $0x12] sm:$0xff] }
 0xfe3   : > { %11861 = vtanh.f32 %v4664_v46  ;;  %9577 = vmatprep.subr.mxu0 %v5508_v18  ;;  %v5501_v18 = vld [vmem:[%s16081_s2 + $0x90] sm:$0xff] }
 0xfe4   : > { %9578 = vmatpush3.msra.mxu0 %v5492_v28  ;;  %v4795_v28 = vld [vmem:[#allocation2 + $0x21] sm:$0xff] }
 0xfe5   : > { %9579 = vmatprep.subr.mxu0 %v5507_v37 }
 0xfe6   : > { %9580 = vmatpush3.msra.mxu0 %v5491_v5  ;;  %v5484_v5 = vld [vmem:[%s16081_s2 + $0x8] sm:$0xff] }
 0xfe9   : > { %v11848_v20 = vpop.eup %11847 }
 0xfea   : > { %v11850_v42 = vpop.eup %11849  ;;  %v4689_v62 = vmul.f32 %v11848_v20, %v13722_v17  ;;  %v4680_v17 = vsub.f32 1.0, %v13746_v19  ;;  %v14297_v20 = vld [vmem:[#allocation2 + $0x22] sm:$0xff] }
 0xfeb   : > { %v11852_v26 = vpop.eup %11851  ;;  %v4690_v48 = vmul.f32 %v11850_v42, %v13724_v50  ;;  %v5506_v50 = vld [vmem:[%s16081_s2 + $0xb8] sm:$0xff]  ;;  %v5499_v42 = vld [vmem:[%s16081_s2 + $0x80] sm:$0xff] }
 0xfec   : > { %v11854_v56 = vpop.eup %11853  ;;  %v4691_v13 = vmul.f32 %v11852_v26, %v13727_v2  ;;  %v14179_v8 = vadd.f32 %v4689_v62, %v4681_v45  ;;  %v5505_v2 = vld [vmem:[%s16081_s2 + $0xb0] sm:$0xff]  ;;  %9581 = vmatprep.subr.mxu0 %v5506_v50  ;;  %v4688_v21 = vmul.f32 %v4680_v17, %v13311_v15  ;;  %v5488_v15 = vld [vmem:[%s16081_s2 + $0x28] sm:$0xff] }
 0xfed   : > { %v11856_v35 = vpop.eup %11855  ;;  %v4692_v57 = vmul.f32 %v11854_v56, %v13730_v41  ;;  %v14184_v22 = vadd.f32 %v4690_v48, %v4682_v53  ;;  %9582 = vmatpush3.msra.mxu0 %v5490_v16  ;;  %v14311_v62 = vld [vmem:[#allocation2 + $0x30] sm:$0xff] }
 0xfee   : > { %v11858_v7 = vpop.eup %11857  ;;  %v4693_v41 = vmul.f32 %v11856_v35, %v13735_v60  ;;  %v14197_v9 = vadd.f32 %v4691_v13, %v4683_v54  ;;  %9181 = vst.msk [vmem:[%s13255_s12 + $0x40] sm:$0xff] %vm416_vm0, %v14179_v8  ;;  %4731 = vst.msk [vmem:[#allocation3 + $0x11] sm:$0xff] %vm416_vm0, %v14179_v8  ;;  %9583 = vmatprep.subr.mxu0 %v5505_v2  ;;  %v4796_v53 = vld [vmem:[#allocation2 + $0x31] sm:$0xff]  ;;  %v14331_v35 = vld [vmem:[#allocation2 + $0x40] sm:$0xff] }
 0xfef   : > { %v11860_v33 = vpop.eup %11859  ;;  %v4694_v39 = vmul.f32 %v11858_v7, %v13738_v25  ;;  %v14209_v60 = vadd.f32 %v4692_v57, %v4684_v32  ;;  %9182 = vst.msk [vmem:[%s13255_s12 + $0x48] sm:$0xff] %vm416_vm0, %v14184_v22  ;;  %4732 = vst.msk [vmem:[#allocation3 + $0x21] sm:$0xff] %vm416_vm0, %v14184_v22  ;;  %9584 = vmatpush3.msra.mxu0 %v5489_v0  ;;  %v4797_v57 = vld [vmem:[#allocation2 + $0x41] sm:$0xff] }
 0xff0   : > { %v11862_v10 = vpop.eup %11861  ;;  %v4695_v63 = vmul.f32 %v11860_v33, %v13743_v3  ;;  %v14218_v24 = vadd.f32 %v4693_v41, %v4685_v44  ;;  %9183 = vst.msk [vmem:[%s13255_s12 + $0x50] sm:$0xff] %vm416_vm0, %v14197_v9  ;;  %4733 = vst.msk [vmem:[#allocation3 + $0x31] sm:$0xff] %vm416_vm0, %v14197_v9  ;;  %v5503_v3 = vld [vmem:[%s16081_s2 + $0xa0] sm:$0xff]  ;;  %9585 = vmatprep.subr.mxu0 %v5504_v29  ;;  %v14349_v41 = vld [vmem:[#allocation2 + $0x50] sm:$0xff] }
 0xff1   : > { %v4696_v25 = vmul.f32 %v11862_v10, %v13746_v19  ;;  %v14227_v34 = vadd.f32 %v4694_v39, %v4686_v55  ;;  %9184 = vst.msk [vmem:[%s13255_s12 + $0x58] sm:$0xff] %vm416_vm0, %v14209_v60  ;;  %4734 = vst.msk [vmem:[#allocation3 + $0x41] sm:$0xff] %vm416_vm0, %v14209_v60  ;;  %9586 = vmatpush3.msra.mxu0 %v5488_v15  ;;  %v14341_v2 = vld [vmem:[#allocation2 + $0x42] sm:$0xff]  ;;  %v4798_v55 = vld [vmem:[#allocation2 + $0x51] sm:$0xff] }
 0xff2   : > { %v14243_v19 = vadd.f32 %v4695_v63, %v4687_v27  ;;  %9185 = vst.msk [vmem:[%s13255_s12 + $0x60] sm:$0xff] %vm416_vm0, %v14218_v24  ;;  %4735 = vst.msk [vmem:[#allocation3 + $0x51] sm:$0xff] %vm416_vm0, %v14218_v24  ;;  %9587 = vmatprep.subr.mxu0 %v5503_v3  ;;  %v14361_v27 = vld [vmem:[#allocation2 + $0x52] sm:$0xff] }
 0xff3   : > { %v14253_v38 = vadd.f32 %v4696_v25, %v4688_v21  ;;  %9186 = vst.msk [vmem:[%s13255_s12 + $0x68] sm:$0xff] %vm416_vm0, %v14227_v34  ;;  %4736 = vst.msk [vmem:[#allocation3 + $0x61] sm:$0xff] %vm416_vm0, %v14227_v34  ;;  %9588 = vmatpush3.msra.mxu0 %v5487_v31  ;;  %v14369_v25 = vld [vmem:[#allocation2 + $0x60] sm:$0xff]  ;;  %v5518_v15 = vld [vmem:[%s16081_s2 + $0x118] sm:$0xff] }
 0xff4   : > { %9187 = vst.msk [vmem:[%s13255_s12 + $0x70] sm:$0xff] %vm416_vm0, %v14243_v19  ;;  %4737 = vst.msk [vmem:[#allocation3 + $0x71] sm:$0xff] %vm416_vm0, %v14243_v19  ;;  %9589 = vmatprep.subr.mxu0 %v5502_v1  ;;  %9917 = vmatprep.subr.mxu1 %v5518_v15  ;;  %v5517_v31 = vld [vmem:[%s16081_s2 + $0x110] sm:$0xff] }
 0xff5   : > { %9188 = vst.msk [vmem:[%s13255_s12 + $0x78] sm:$0xff] %vm416_vm0, %v14253_v38  ;;  %4738 = vst.msk [vmem:[#allocation3 + $0x81] sm:$0xff] %vm416_vm0, %v14253_v38  ;;  %v4835_v43 = vld [vmem:[#allocation3 + $0x10] sm:$0xff]  ;;  %9590 = vmatpush3.msra.mxu0 %v5486_v4  ;;  %9918 = vmatpush3.msra.mxu1 %v5518_v15 }
 0xff6   : > { %v10949_v58 = vpack.i.bf16 %v4771_v40, %v4835_v43  ;;  %v4843_v46 = vld [vmem:[#allocation3 + $0x11] sm:$0xff]  ;;  %v4859_v6 = vld [vmem:[#allocation3 + $0x20] sm:$0xff]  ;;  %9591 = vmatprep.subr.mxu0 %v5501_v18  ;;  %9919 = vmatprep.subr.mxu1 %v5517_v31 }
 0xff7   : > { %v10959_v14 = vpack.i.bf16 %v4779_v23, %v4843_v46  ;;  %v4851_v49 = vld [vmem:[#allocation3 + $0x12] sm:$0xff]  ;;  %v10979_v37 = vpack.i.bf16 %v4795_v28, %v4859_v6  ;;  %9592 = vmatpush3.msra.mxu0 %v5485_v52  ;;  %v14299_v30 = vld [vmem:[#allocation3 + $0x21] sm:$0xff]  ;;  %9920 = vmatpush3.msra.mxu1 %v5517_v31 }
 0xff8   : > { %10950 = vrot.lane.b32.xlu1 %v10949_v58, %s16130_s25  ;;  %10955 = vrot.lane.b32.xlu0 %v10949_v58, %s16133_s1  ;;  %v10969_v12 = vpack.i.bf16 %v14272_v61, %v4851_v49  ;;  %v10994_v45 = vpack.i.bf16 %v14297_v20, %v14299_v30  ;;  %v14313_v26 = vld [vmem:[#allocation3 + $0x22] sm:$0xff]  ;;  %v4860_v48 = vld [vmem:[#allocation3 + $0x30] sm:$0xff] }
 0xff9   : > { %9593 = vmatprep.subr.mxu0 %v5500_v51  ;;  %v11004_v47 = vpack.i.bf16 %v14311_v62, %v14313_v26  ;;  %v11014_v56 = vpack.i.bf16 %v4796_v53, %v4860_v48  ;;  %v14325_v54 = vld [vmem:[#allocation3 + $0x31] sm:$0xff]  ;;  %v4861_v50 = vld [vmem:[#allocation3 + $0x40] sm:$0xff]  ;;  %v5516_v58 = vld [vmem:[%s16081_s2 + $0x108] sm:$0xff]  ;;  %v10936_v48 = vpop.permute.xlu1 %10935 }
 0xffa   : > { %9594 = vmatpush3.msra.mxu0 %v5484_v5  ;;  %v11029_v13 = vpack.i.bf16 %v14323_v36, %v14325_v54  ;;  %v14333_v17 = vld [vmem:[#allocation3 + $0x32] sm:$0xff]  ;;  %v11049_v16 = vpack.i.bf16 %v4797_v57, %v4861_v50  ;;  %v14343_v7 = vld [vmem:[#allocation3 + $0x41] sm:$0xff]  ;;  %9921 = vmatprep.subr.mxu1 %v5516_v58  ;;  %v10938_v15 = vunpack.i.h.bf16 %v10936_v48 }
 0xffb   : > { %9595 = vmatprep.subr.mxu0 %v5499_v42  ;;  %v11039_v32 = vpack.i.bf16 %v14331_v35, %v14333_v17  ;;  %v11064_v44 = vpack.i.bf16 %v14341_v2, %v14343_v7  ;;  %v14351_v0 = vld [vmem:[#allocation3 + $0x42] sm:$0xff]  ;;  %v4862_v39 = vld [vmem:[#allocation3 + $0x50] sm:$0xff]  ;;  %9922 = vmatpush3.msra.mxu1 %v5516_v58 }
 0xffc   : > { %10960 = vrot.lane.b32.xlu1 %v10959_v14, %s16131_s30  ;;  %10965 = vrot.lane.b32.xlu0 %v10959_v14, %s16128_s13  ;;  %v11074_v33 = vpack.i.bf16 %v14349_v41, %v14351_v0  ;;  %v11084_v10 = vpack.i.bf16 %v4798_v55, %v4862_v39  ;;  %v14363_v63 = vld [vmem:[#allocation3 + $0x51] sm:$0xff]  ;;  %v4799_v40 = vld [vmem:[#allocation2 + $0x61] sm:$0xff] }
 0xffd   : > { %9596 = vmatpush3.msra.mxu0 %v5483_v11  ;;  %v11099_v21 = vpack.i.bf16 %v14361_v27, %v14363_v63  ;;  %v4855_v29 = vld [vmem:[#allocation3 + $0x52] sm:$0xff]  ;;  %v4863_v43 = vld [vmem:[#allocation3 + $0x60] sm:$0xff] }
 0xffe   : > { %v11109_v3 = vpack.i.bf16 %v14369_v25, %v4855_v29  ;;  %v11119_v23 = vpack.i.bf16 %v4799_v40, %v4863_v43  ;;  %v14385_v46 = vld [vmem:[#allocation2 + $0x62] sm:$0xff]  ;;  %v14398_v4 = vld [vmem:[#allocation2 + $0x70] sm:$0xff] }
 0xfff   : > { %v14387_v14 = vld [vmem:[#allocation3 + $0x61] sm:$0xff]  ;;  %v4800_v28 = vld [vmem:[#allocation2 + $0x71] sm:$0xff] }
0x1000   : > { %10970 = vrot.lane.b32.xlu1 %v10969_v12, %s16127_s26  ;;  %10975 = vrot.lane.b32.xlu0 %v10969_v12, %s16129_s23  ;;  %v5515_v49 = vld [vmem:[%s16081_s2 + $0x100] sm:$0xff]  ;;  %v11134_v1 = vpack.i.bf16 %v14385_v46, %v14387_v14  ;;  %v4864_v6 = vld [vmem:[#allocation3 + $0x70] sm:$0xff] }
0x1001   : > { %9923 = vmatprep.subr.mxu1 %v5515_v49  ;;  %v4856_v12 = vld [vmem:[#allocation3 + $0x62] sm:$0xff]  ;;  %v11154_v52 = vpack.i.bf16 %v4800_v28, %v4864_v6  ;;  %v14409_v51 = vld [vmem:[#allocation2 + $0x72] sm:$0xff] }
0x1002   : > { %9924 = vmatpush3.msra.mxu1 %v5515_v49  ;;  %v11144_v18 = vpack.i.bf16 %v14398_v4, %v4856_v12  ;;  %v4793_v42 = vld [vmem:[#allocation2 + $0x80] sm:$0xff]  ;;  %v4857_v11 = vld [vmem:[#allocation3 + $0x72] sm:$0xff] }
0x1003   : > { %v4794_v57 = vld [vmem:[#allocation2 + $0x90] sm:$0xff]  ;;  %v4858_v50 = vld [vmem:[#allocation3 + $0x82] sm:$0xff] }
0x1004   : > { %10980 = vrot.lane.b32.xlu1 %v10979_v37, %s16132_s0  ;;  %10985 = vrot.lane.b32.xlu0 %v10979_v37, %s16130_s25 }
0x1008   : > { %10990 = vrot.lane.b32.xlu1 %v10979_v37, %s16133_s1  ;;  %10995 = vrot.lane.b32.xlu0 %v10994_v45, %s16131_s30  ;;  %v14411_v37 = vld [vmem:[#allocation3 + $0x71] sm:$0xff] }
0x1009   : > { %v11169_v5 = vpack.i.bf16 %v14409_v51, %v14411_v37 }
0x100c   : > { %11000 = vrot.lane.b32.xlu1 %v10994_v45, %s16128_s13  ;;  %11005 = vrot.lane.b32.xlu0 %v11004_v47, %s16127_s26  ;;  %v11179_v45 = vpack.i.bf16 %v4793_v42, %v4857_v11 }
0x1010   : > { %11010 = vrot.lane.b32.xlu1 %v11004_v47, %s16129_s23  ;;  %11015 = vrot.lane.b32.xlu0 %v11014_v56, %s16132_s0  ;;  %v4865_v47 = vld [vmem:[#allocation3 + $0x80] sm:$0xff] }
0x1014   : > { %11020 = vrot.lane.b32.xlu1 %v11014_v56, %s16130_s25  ;;  %11025 = vrot.lane.b32.xlu0 %v11014_v56, %s16133_s1  ;;  %v14424_v56 = vld [vmem:[#allocation2 + $0x82] sm:$0xff] }
0x1018   : > { %11030 = vrot.lane.b32.xlu1 %v11029_v13, %s16131_s30  ;;  %11035 = vrot.lane.b32.xlu0 %v11029_v13, %s16128_s13  ;;  %v14426_v13 = vld [vmem:[#allocation3 + $0x81] sm:$0xff] }
0x101c   : > { %11040 = vrot.lane.b32.xlu1 %v11039_v32, %s16127_s26  ;;  %11045 = vrot.lane.b32.xlu0 %v11039_v32, %s16129_s23  ;;  %v11199_v32 = vpack.i.bf16 %v14424_v56, %v14426_v13 }
0x1020   : > { %11050 = vrot.lane.b32.xlu1 %v11049_v16, %s16132_s0  ;;  %11055 = vrot.lane.b32.xlu0 %v11049_v16, %s16130_s25 }
0x1024   : > { %11060 = vrot.lane.b32.xlu1 %v11049_v16, %s16133_s1  ;;  %11065 = vrot.lane.b32.xlu0 %v11064_v44, %s16131_s30  ;;  %v14434_v16 = vpop.permute.xlu1 %10945 }
0x1028   : > { %11070 = vrot.lane.b32.xlu1 %v11064_v44, %s16128_s13  ;;  %11075 = vrot.lane.b32.xlu0 %v11074_v33, %s16127_s26 }
0x102c   : > { %11080 = vrot.lane.b32.xlu1 %v11074_v33, %s16129_s23  ;;  %11085 = vrot.lane.b32.xlu0 %v11084_v10, %s16132_s0  ;;  %v4882_v33 = vld [vmem:[#allocation3 + $0x92] sm:$0xff] }
0x1030   : > { %11090 = vrot.lane.b32.xlu1 %v11084_v10, %s16130_s25  ;;  %11095 = vrot.lane.b32.xlu0 %v11084_v10, %s16133_s1 }
0x1034   : > { %11100 = vrot.lane.b32.xlu1 %v11099_v21, %s16131_s30  ;;  %11105 = vrot.lane.b32.xlu0 %v11099_v21, %s16128_s13 }
0x1038   : > { %11110 = vrot.lane.b32.xlu1 %v11109_v3, %s16127_s26  ;;  %11115 = vrot.lane.b32.xlu0 %v11109_v3, %s16129_s23  ;;  %v10937_v3 = vunpack.i.l.bf16 %v10936_v48 }
0x103c   : > { %11120 = vrot.lane.b32.xlu1 %v11119_v23, %s16132_s0  ;;  %11125 = vrot.lane.b32.xlu0 %v11119_v23, %s16130_s25 }
0x1040   : > { %11130 = vrot.lane.b32.xlu1 %v11119_v23, %s16133_s1  ;;  %11135 = vrot.lane.b32.xlu0 %v11134_v1, %s16131_s30 }
0x1044   : > { %5451 = vrot.lane.b32.xlu1 %v14313_v26, %s16133_s1  ;;  %11140 = vrot.lane.b32.xlu0 %v11134_v1, %s16128_s13  ;;  %v4801_v26 = vld [vmem:[#allocation2 + $0x81] sm:$0xff] }
0x1045   : > { %v11189_v53 = vpack.i.bf16 %v4801_v26, %v4865_v47 }
0x1048   : > { %11145 = vrot.lane.b32.xlu1 %v11144_v18, %s16127_s26  ;;  %5453 = vrot.lane.b32.xlu0 %v14333_v17, %s16133_s1  ;;  %v10931_v17 = vpop.permute.xlu0 %10930 }
0x1049   : > { %v10933_v10 = vunpack.i.h.bf16 %v10931_v17  ;;  %v10932_v21 = vunpack.i.l.bf16 %v10931_v17 }
0x104b   : > { %v5387_v58 = vsel %vm416_vm0, %v14297_v20, %v10932_v21 }
0x104c   : > { %11150 = vrot.lane.b32.xlu1 %v11144_v18, %s16129_s23  ;;  %11155 = vrot.lane.b32.xlu0 %v11154_v52, %s16132_s0  ;;  %v10941_v44 = vpop.permute.xlu0 %10940 }
0x104d   : > { %v10943_v23 = vunpack.i.h.bf16 %v10941_v44  ;;  %v10942_v49 = vunpack.i.l.bf16 %v10941_v44 }
0x1050   : > { %11160 = vrot.lane.b32.xlu1 %v11154_v52, %s16130_s25  ;;  %11165 = vrot.lane.b32.xlu0 %v11154_v52, %s16133_s1 }
0x1054   : > { %11170 = vrot.lane.b32.xlu1 %v11169_v5, %s16131_s30  ;;  %5455 = vrot.lane.b32.xlu0 %v14351_v0, %s16133_s1  ;;  %v11204_v0 = vpack.i.bf16 %v4794_v57, %v4858_v50 }
0x1058   : > { %11175 = vrot.lane.b32.xlu1 %v11169_v5, %s16128_s13  ;;  %11180 = vrot.lane.b32.xlu0 %v11179_v45, %s16127_s26 }
0x105c   : > { %5457 = vrot.lane.b32.xlu1 %v4855_v29, %s16133_s1  ;;  %11185 = vrot.lane.b32.xlu0 %v11179_v45, %s16129_s23  ;;  %v4739_v29 = vld [vmem:[#allocation2] sm:$0xff] }
0x105d   : > { %v5331_v43 = vsel %vm416_vm0, %v4739_v29, %v10933_v10 }
0x105e   : > { %v5339_v1 = vsel %vm1094_vm2, %v5331_v43, %v10938_v15 }
0x105f   : > { %v5347_v26 = vsel %vm1103_vm3, %v5339_v1, %v10943_v23 }
0x1060   : > { %11190 = vrot.lane.b32.xlu1 %v11189_v53, %s16132_s0  ;;  %11195 = vrot.lane.b32.xlu0 %v11189_v53, %s16130_s25 }
0x1064   : > { %11200 = vrot.lane.b32.xlu1 %v11199_v32, %s16131_s30  ;;  %5459 = vrot.lane.b32.xlu0 %v4856_v12, %s16133_s1  ;;  %v5395_v12 = vsel %vm1094_vm2, %v5387_v58, %v10937_v3 }
0x1065   : > { %v5403_v47 = vsel %vm1103_vm3, %v5395_v12, %v10942_v49 }
0x1068   : > { %11205 = vrot.lane.b32.xlu1 %v11204_v0, %s16127_s26  ;;  %5461 = vrot.lane.b32.xlu0 %v4857_v11, %s16133_s1 }
0x106a   : > { %v10951_v55 = vpop.permute.xlu1 %10950  ;;  %v10956_v39 = vpop.permute.xlu0 %10955 }
0x106b   : > { %v10953_v18 = vunpack.i.h.bf16 %v10951_v55  ;;  %v10952_v28 = vunpack.i.l.bf16 %v10951_v55  ;;  %v10958_v15 = vunpack.i.h.bf16 %v10956_v39  ;;  %v10957_v3 = vunpack.i.l.bf16 %v10956_v39 }
0x106c   : > { %5463 = vrot.lane.b32.xlu0 %v4858_v50, %s16133_s1  ;;  %5465 = vrot.lane.b32.xlu1 %v4882_v33, %s16133_s1 }
0x106d   : > { %v5355_v20 = vsel %vm1112_vm4, %v5347_v26, %v10953_v18  ;;  %v5411_v53 = vsel %vm1112_vm4, %v5403_v47, %v10952_v28  ;;  %v5332_v28 = vsel %vm416_vm0, %v14084_v59, %v10958_v15 }
0x106e   : > { %v10961_v31 = vpop.permute.xlu1 %10960  ;;  %v10966_v40 = vpop.permute.xlu0 %10965 }
0x106f   : > { %v10963_v5 = vunpack.i.h.bf16 %v10961_v31  ;;  %v10962_v42 = vunpack.i.l.bf16 %v10961_v31  ;;  %v10968_v31 = vunpack.i.h.bf16 %v10966_v40  ;;  %v10967_v43 = vunpack.i.l.bf16 %v10966_v40 }
0x1071   : > { %v5363_v32 = vsel %vm1121_vm5, %v5355_v20, %v10963_v5  ;;  %v5419_v44 = vsel %vm1121_vm5, %v5411_v53, %v10962_v42  ;;  %v5340_v39 = vsel %vm1094_vm2, %v5332_v28, %v10968_v31 }
0x1072   : > { %v10971_v6 = vpop.permute.xlu1 %10970  ;;  %v10976_v52 = vpop.permute.xlu0 %10975 }
0x1073   : > { %v10973_v11 = vunpack.i.h.bf16 %v10971_v6  ;;  %v10972_v45 = vunpack.i.l.bf16 %v10971_v6  ;;  %v10978_v58 = vunpack.i.h.bf16 %v10976_v52  ;;  %v10977_v23 = vunpack.i.l.bf16 %v10976_v52 }
0x1074   : > { %v5388_v6 = vsel %vm416_vm0, %v14323_v36, %v10957_v3 }
0x1075   : > { %v5427_v0 = vsel %vm1130_vm6, %v5419_v44, %v10972_v45  ;;  %v5371_v33 = vsel %vm1130_vm6, %v5363_v32, %v10973_v11  ;;  %v5396_v11 = vsel %vm1094_vm2, %v5388_v6, %v10967_v43  ;;  %v5348_v52 = vsel %vm1103_vm3, %v5340_v39, %v10978_v58 }
0x1076   : > { %v10981_v48 = vpop.permute.xlu1 %10980  ;;  %v10986_v17 = vpop.permute.xlu0 %10985  ;;  %v5404_v26 = vsel %vm1103_vm3, %v5396_v11, %v10977_v23 }
0x1077   : > { %v10983_v57 = vunpack.i.h.bf16 %v10981_v48  ;;  %v10982_v50 = vunpack.i.l.bf16 %v10981_v48  ;;  %v10988_v49 = vunpack.i.h.bf16 %v10986_v17  ;;  %v10987_v1 = vunpack.i.l.bf16 %v10986_v17 }
0x1079   : > { %v5435_v55 = vsel %vm1139_vm7, %v5427_v0, %v10982_v50  ;;  %v14455_v10 = vsel %vm1139_vm7, %v5371_v33, %v10983_v57  ;;  %v5356_v47 = vsel %vm1112_vm4, %v5348_v52, %v10988_v49  ;;  %v5412_v20 = vsel %vm1112_vm4, %v5404_v26, %v10987_v1 }
0x107a   : > { %v10991_v21 = vpop.permute.xlu1 %10990  ;;  %v10996_v29 = vpop.permute.xlu0 %10995  ;;  %5614 = vmatprep.mubr.f32.mxu0 %v5435_v55 }
0x107b   : > { %5615 = vmatmul.mubr.f32.vlgmr.msra.gmra.mxu0 %v14455_v10  ;;  %v10998_v5 = vunpack.i.h.bf16 %v10996_v29  ;;  %v10997_v42 = vunpack.i.l.bf16 %v10996_v29  ;;  %v10993_v3 = vunpack.i.h.bf16 %v10991_v21  ;;  %v10992_v31 = vunpack.i.l.bf16 %v10991_v21 }
0x107d   : > { %v5420_v17 = vsel %vm1121_vm5, %v5412_v20, %v10997_v42  ;;  %v5364_v32 = vsel %vm1121_vm5, %v5356_v47, %v10998_v5  ;;  %v5333_v5 = vsel %vm416_vm0, %v14272_v61, %v10993_v3  ;;  %v5389_v42 = vsel %vm416_vm0, %v14341_v2, %v10992_v31 }
0x107e   : > { %v11001_v12 = vpop.permute.xlu1 %11000  ;;  %v11006_v18 = vpop.permute.xlu0 %11005 }
0x107f   : > { %v11008_v45 = vunpack.i.h.bf16 %v11006_v18  ;;  %v11007_v40 = vunpack.i.l.bf16 %v11006_v18  ;;  %v11003_v43 = vunpack.i.h.bf16 %v11001_v12  ;;  %v11002_v58 = vunpack.i.l.bf16 %v11001_v12 }
0x1081   : > { %v5428_v57 = vsel %vm1130_vm6, %v5420_v17, %v11007_v40  ;;  %v5372_v50 = vsel %vm1130_vm6, %v5364_v32, %v11008_v45  ;;  %v5341_v45 = vsel %vm1094_vm2, %v5333_v5, %v11003_v43  ;;  %v5397_v21 = vsel %vm1094_vm2, %v5389_v42, %v11002_v58 }
0x1082   : > { %v11011_v59 = vpop.permute.xlu1 %11010  ;;  %v11016_v53 = vpop.permute.xlu0 %11015 }
0x1083   : > { %v11018_v48 = vunpack.i.h.bf16 %v11016_v53  ;;  %v11017_v36 = vunpack.i.l.bf16 %v11016_v53  ;;  %v11013_v23 = vunpack.i.h.bf16 %v11011_v59  ;;  %v11012_v49 = vunpack.i.l.bf16 %v11011_v59 }
0x1085   : > { %v5436_v44 = vsel %vm1139_vm7, %v5428_v57, %v11017_v36  ;;  %v14474_v0 = vsel %vm1139_vm7, %v5372_v50, %v11018_v48  ;;  %v5349_v52 = vsel %vm1103_vm3, %v5341_v45, %v11013_v23  ;;  %v5405_v26 = vsel %vm1103_vm3, %v5397_v21, %v11012_v49 }
0x1086   : > { %v11021_v33 = vpop.permute.xlu1 %11020  ;;  %v11026_v55 = vpop.permute.xlu0 %11025  ;;  %5619 = vmatprep.mubr.f32.mxu0 %v5436_v44 }
0x1087   : > { %5620 = vmatmul.mubr.f32.gmra.mxu0 %v14474_v0  ;;  %v11023_v1 = vunpack.i.h.bf16 %v11021_v33  ;;  %v11022_v18 = vunpack.i.l.bf16 %v11021_v33  ;;  %v11027_v3 = vunpack.i.l.bf16 %v11026_v55 }
0x1089   : > { %v5357_v47 = vsel %vm1112_vm4, %v5349_v52, %v11023_v1  ;;  %v5413_v20 = vsel %vm1112_vm4, %v5405_v26, %v11022_v18  ;;  %v5390_v42 = vsel %vm416_vm0, %v14361_v27, %v11027_v3 }
0x108a   : > { %v11031_v29 = vpop.permute.xlu1 %11030  ;;  %v11036_v15 = vpop.permute.xlu0 %11035 }
0x108b   : > { %v11033_v39 = vunpack.i.h.bf16 %v11031_v29  ;;  %v11032_v11 = vunpack.i.l.bf16 %v11031_v29  ;;  %v11028_v29 = vunpack.i.h.bf16 %v11026_v55  ;;  %v11038_v31 = vunpack.i.h.bf16 %v11036_v15 }
0x108c   : > { %v11037_v43 = vunpack.i.l.bf16 %v11036_v15 }
0x108d   : > { %v5421_v48 = vsel %vm1121_vm5, %v5413_v20, %v11032_v11  ;;  %v5365_v36 = vsel %vm1121_vm5, %v5357_v47, %v11033_v39  ;;  %v5334_v5 = vsel %vm416_vm0, %v14311_v62, %v11028_v29 }
0x108e   : > { %v11041_v28 = vpop.permute.xlu1 %11040  ;;  %v11046_v6 = vpop.permute.xlu0 %11045  ;;  %v5342_v55 = vsel %vm1094_vm2, %v5334_v5, %v11038_v31  ;;  %v5398_v45 = vsel %vm1094_vm2, %v5390_v42, %v11037_v43 }
0x108f   : > { %v11043_v40 = vunpack.i.h.bf16 %v11041_v28  ;;  %v11042_v12 = vunpack.i.l.bf16 %v11041_v28  ;;  %v11048_v58 = vunpack.i.h.bf16 %v11046_v6  ;;  %v11047_v23 = vunpack.i.l.bf16 %v11046_v6 }
0x1091   : > { %v5429_v17 = vsel %vm1130_vm6, %v5421_v48, %v11042_v12  ;;  %v5373_v32 = vsel %vm1130_vm6, %v5365_v36, %v11043_v40  ;;  %v5350_v6 = vsel %vm1103_vm3, %v5342_v55, %v11048_v58  ;;  %v5406_v40 = vsel %vm1103_vm3, %v5398_v45, %v11047_v23 }
0x1092   : > { %v11051_v61 = vpop.permute.xlu1 %11050  ;;  %v11056_v59 = vpop.permute.xlu0 %11055 }
0x1093   : > { %v11053_v53 = vunpack.i.h.bf16 %v11051_v61  ;;  %v11052_v2 = vunpack.i.l.bf16 %v11051_v61  ;;  %v11058_v49 = vunpack.i.h.bf16 %v11056_v59  ;;  %v11057_v1 = vunpack.i.l.bf16 %v11056_v59 }
0x1095   : > { %v5437_v57 = vsel %vm1139_vm7, %v5429_v17, %v11052_v2  ;;  %v14493_v50 = vsel %vm1139_vm7, %v5373_v32, %v11053_v53  ;;  %v5358_v12 = vsel %vm1112_vm4, %v5350_v6, %v11058_v49  ;;  %v5414_v52 = vsel %vm1112_vm4, %v5406_v40, %v11057_v1 }
0x1096   : > { %v11061_v44 = vpop.permute.xlu1 %11060  ;;  %v11066_v33 = vpop.permute.xlu0 %11065  ;;  %5624 = vmatprep.mubr.f32.mxu0 %v5437_v57 }
0x1097   : > { %5625 = vmatmul.mubr.f32.gmra.mxu0 %v14493_v50  ;;  %v11068_v39 = vunpack.i.h.bf16 %v11066_v33  ;;  %v11067_v11 = vunpack.i.l.bf16 %v11066_v33  ;;  %v11063_v33 = vunpack.i.h.bf16 %v11061_v44  ;;  %v11062_v29 = vunpack.i.l.bf16 %v11061_v44 }
0x1099   : > { %v5422_v20 = vsel %vm1121_vm5, %v5414_v52, %v11067_v11  ;;  %v5366_v61 = vsel %vm1121_vm5, %v5358_v12, %v11068_v39  ;;  %v5335_v5 = vsel %vm416_vm0, %v14331_v35, %v11063_v33  ;;  %v5391_v42 = vsel %vm416_vm0, %v14385_v46, %v11062_v29 }
0x109a   : > { %v11071_v18 = vpop.permute.xlu1 %11070  ;;  %v11076_v28 = vpop.permute.xlu0 %11075 }
0x109b   : > { %v11078_v21 = vunpack.i.h.bf16 %v11076_v28  ;;  %v11077_v15 = vunpack.i.l.bf16 %v11076_v28  ;;  %v11073_v3 = vunpack.i.h.bf16 %v11071_v18  ;;  %v11072_v31 = vunpack.i.l.bf16 %v11071_v18 }
0x109d   : > { %v5430_v59 = vsel %vm1130_vm6, %v5422_v20, %v11077_v15  ;;  %v5374_v53 = vsel %vm1130_vm6, %v5366_v61, %v11078_v21  ;;  %v5343_v55 = vsel %vm1094_vm2, %v5335_v5, %v11073_v3  ;;  %v5399_v44 = vsel %vm1094_vm2, %v5391_v42, %v11072_v31 }
0x109e   : > { %v11081_v62 = vpop.permute.xlu1 %11080  ;;  %v11086_v26 = vpop.permute.xlu0 %11085 }
0x109f   : > { %v11088_v47 = vunpack.i.h.bf16 %v11086_v26  ;;  %v11087_v27 = vunpack.i.l.bf16 %v11086_v26  ;;  %v11083_v43 = vunpack.i.h.bf16 %v11081_v62  ;;  %v11082_v58 = vunpack.i.l.bf16 %v11081_v62 }
0x10a1   : > { %v5438_v2 = vsel %vm1139_vm7, %v5430_v59, %v11087_v27  ;;  %v14512_v48 = vsel %vm1139_vm7, %v5374_v53, %v11088_v47  ;;  %v5351_v21 = vsel %vm1103_vm3, %v5343_v55, %v11083_v43  ;;  %v5407_v15 = vsel %vm1103_vm3, %v5399_v44, %v11082_v58 }
0x10a2   : > { %v11091_v36 = vpop.permute.xlu1 %11090  ;;  %v11096_v17 = vpop.permute.xlu0 %11095  ;;  %5629 = vmatprep.mubr.f32.mxu0 %v5438_v2 }
0x10a3   : > { %5630 = vmatmul.mubr.f32.gmra.mxu0 %v14512_v48  ;;  %v11093_v23 = vunpack.i.h.bf16 %v11091_v36  ;;  %v11092_v49 = vunpack.i.l.bf16 %v11091_v36  ;;  %v11098_v2 = vunpack.i.h.bf16 %v11096_v17  ;;  %v11097_v33 = vunpack.i.l.bf16 %v11096_v17 }
0x10a5   : > { %v5359_v6 = vsel %vm1112_vm4, %v5351_v21, %v11093_v23  ;;  %v5415_v40 = vsel %vm1112_vm4, %v5407_v15, %v11092_v49  ;;  %v5336_v23 = vsel %vm416_vm0, %v14349_v41, %v11098_v2 }
0x10a6   : > { %v11101_v32 = vpop.permute.xlu1 %11100  ;;  %v11106_v57 = vpop.permute.xlu0 %11105 }
0x10a7   : > { %v11103_v39 = vunpack.i.h.bf16 %v11101_v32  ;;  %v11102_v11 = vunpack.i.l.bf16 %v11101_v32  ;;  %v11108_v3 = vunpack.i.h.bf16 %v11106_v57  ;;  %v11107_v31 = vunpack.i.l.bf16 %v11106_v57 }
0x10a9   : > { %v5423_v62 = vsel %vm1121_vm5, %v5415_v40, %v11102_v11  ;;  %v5367_v26 = vsel %vm1121_vm5, %v5359_v6, %v11103_v39  ;;  %v5392_v39 = vsel %vm416_vm0, %v14409_v51, %v11097_v33  ;;  %v5344_v57 = vsel %vm1094_vm2, %v5336_v23, %v11108_v3 }
0x10aa   : > { %v11111_v1 = vpop.permute.xlu1 %11110  ;;  %v11116_v28 = vpop.permute.xlu0 %11115  ;;  %v5400_v55 = vsel %vm1094_vm2, %v5392_v39, %v11107_v31 }
0x10ab   : > { %v11113_v45 = vunpack.i.h.bf16 %v11111_v1  ;;  %v11112_v18 = vunpack.i.l.bf16 %v11111_v1  ;;  %v11118_v43 = vunpack.i.h.bf16 %v11116_v28  ;;  %v11117_v58 = vunpack.i.l.bf16 %v11116_v28 }
0x10ad   : > { %v5431_v47 = vsel %vm1130_vm6, %v5423_v62, %v11112_v18  ;;  %v5375_v27 = vsel %vm1130_vm6, %v5367_v26, %v11113_v45  ;;  %v5352_v41 = vsel %vm1103_vm3, %v5344_v57, %v11118_v43  ;;  %v5408_v45 = vsel %vm1103_vm3, %v5400_v55, %v11117_v58 }
0x10ae   : > { %v11121_v35 = vpop.permute.xlu1 %11120  ;;  %v11126_v12 = vpop.permute.xlu0 %11125 }
0x10af   : > { %v11123_v52 = vunpack.i.h.bf16 %v11121_v35  ;;  %v11122_v46 = vunpack.i.l.bf16 %v11121_v35  ;;  %v11128_v49 = vunpack.i.h.bf16 %v11126_v12  ;;  %v11127_v1 = vunpack.i.l.bf16 %v11126_v12 }
0x10b1   : > { %v5439_v20 = vsel %vm1139_vm7, %v5431_v47, %v11122_v46  ;;  %v14531_v61 = vsel %vm1139_vm7, %v5375_v27, %v11123_v52  ;;  %v5360_v18 = vsel %vm1112_vm4, %v5352_v41, %v11128_v49  ;;  %v5416_v51 = vsel %vm1112_vm4, %v5408_v45, %v11127_v1 }
0x10b2   : > { %v14533_v59 = vpop.permute.xlu1 %11130  ;;  %v11136_v53 = vpop.permute.xlu0 %11135  ;;  %5634 = vmatprep.mubr.f32.mxu0 %v5439_v20 }
0x10b3   : > { %5635 = vmatmul.mubr.f32.gmra.mxu0 %v14531_v61  ;;  %v11138_v17 = vunpack.i.h.bf16 %v11136_v53  ;;  %v11137_v11 = vunpack.i.l.bf16 %v11136_v53  ;;  %v11133_v2 = vunpack.i.h.bf16 %v14533_v59 }
0x10b5   : > { %v5424_v40 = vsel %vm1121_vm5, %v5416_v51, %v11137_v11  ;;  %v5368_v35 = vsel %vm1121_vm5, %v5360_v18, %v11138_v17  ;;  %v5337_v23 = vsel %vm416_vm0, %v14369_v25, %v11133_v2 }
0x10b6   : > { %v5452_v36 = vpop.permute.xlu1 %5451  ;;  %v14536_v32 = vpop.permute.xlu0 %11140 }
0x10b7   : > { %v5475_v29 = vsel %vm416_vm0, %v14299_v30, %v5452_v36  ;;  %v11143_v3 = vunpack.i.h.bf16 %v14536_v32  ;;  %v11142_v31 = vunpack.i.l.bf16 %v14536_v32 }
0x10b8   : > { %9925 = vmatprep.mubr.msk.f32.mxu1 %vm1094_vm2, %v5475_v29  ;;  %v11132_v29 = vunpack.i.l.bf16 %v14533_v59 }
0x10b9   : > { %v5345_v11 = vsel %vm1094_vm2, %v5337_v23, %v11143_v3 }
0x10ba   : > { %v11146_v5 = vpop.permute.xlu1 %11145  ;;  %v5454_v42 = vpop.permute.xlu0 %5453 }
0x10bb   : > { %v5476_v30 = vsel %vm416_vm0, %v14325_v54, %v5454_v42  ;;  %v11148_v28 = vunpack.i.h.bf16 %v11146_v5  ;;  %v11147_v44 = vunpack.i.l.bf16 %v11146_v5  ;;  %v5393_v42 = vsel %vm416_vm0, %v14424_v56, %v11132_v29 }
0x10bc   : > { %9926 = vmatmul.mubr.msk.f32.vlgmr.msra.gmra.mxu1 %vm1094_vm2, %v5476_v30  ;;  %v5401_v32 = vsel %vm1094_vm2, %v5393_v42, %v11142_v31 }
0x10bd   : > { %v5432_v12 = vsel %vm1130_vm6, %v5424_v40, %v11147_v44  ;;  %v5376_v52 = vsel %vm1130_vm6, %v5368_v35, %v11148_v28  ;;  %v4810_v35 = vld [vmem:[#allocation2 + $0x92] sm:$0xff] }
0x10be   : > { %v11151_v21 = vpop.permute.xlu1 %11150  ;;  %v11156_v15 = vpop.permute.xlu0 %11155 }
0x10bf   : > { %v11158_v6 = vunpack.i.h.bf16 %v11156_v15  ;;  %v11157_v54 = vunpack.i.l.bf16 %v11156_v15  ;;  %v11153_v43 = vunpack.i.h.bf16 %v11151_v21  ;;  %v11152_v58 = vunpack.i.l.bf16 %v11151_v21 }
0x10c1   : > { %v5440_v46 = vsel %vm1139_vm7, %v5432_v12, %v11157_v54  ;;  %v14560_v62 = vsel %vm1139_vm7, %v5376_v52, %v11158_v6  ;;  %v5353_v25 = vsel %vm1103_vm3, %v5345_v11, %v11153_v43  ;;  %v5409_v55 = vsel %vm1103_vm3, %v5401_v32, %v11152_v58  ;;  %v4874_v11 = vld [vmem:[#allocation3 + $0x91] sm:$0xff] }
0x10c2   : > { %v11161_v26 = vpop.permute.xlu1 %11160  ;;  %v11166_v47 = vpop.permute.xlu0 %11165  ;;  %5639 = vmatprep.mubr.f32.mxu0 %v5440_v46 }
0x10c3   : > { %5640 = vmatmul.mubr.f32.gmra.mxu0 %v14560_v62  ;;  %v11163_v49 = vunpack.i.h.bf16 %v11161_v26  ;;  %v11162_v1 = vunpack.i.l.bf16 %v11161_v26  ;;  %v11168_v44 = vunpack.i.h.bf16 %v11166_v47  ;;  %v11167_v15 = vunpack.i.l.bf16 %v11166_v47 }
0x10c5   : > { %v5361_v28 = vsel %vm1112_vm4, %v5353_v25, %v11163_v49  ;;  %v5417_v56 = vsel %vm1112_vm4, %v5409_v55, %v11162_v1  ;;  %v5338_v47 = vsel %vm416_vm0, %v14398_v4, %v11168_v44 }
0x10c6   : > { %v11171_v27 = vpop.permute.xlu1 %11170  ;;  %v5456_v20 = vpop.permute.xlu0 %5455 }
0x10c7   : > { %v5477_v53 = vsel %vm416_vm0, %v14343_v7, %v5456_v20  ;;  %v11173_v39 = vunpack.i.h.bf16 %v11171_v27  ;;  %v11172_v17 = vunpack.i.l.bf16 %v11171_v27 }
0x10c8   : > { %9928 = vmatprep.mubr.msk.f32.mxu1 %vm1094_vm2, %v5477_v53 }
0x10c9   : > { %v5425_v51 = vsel %vm1121_vm5, %v5417_v56, %v11172_v17  ;;  %v5369_v21 = vsel %vm1121_vm5, %v5361_v28, %v11173_v39  ;;  %v10948_v17 = vunpack.i.h.bf16 %v14434_v16 }
0x10ca   : > { %v11176_v36 = vpop.permute.xlu1 %11175  ;;  %v11181_v33 = vpop.permute.xlu0 %11180 }
0x10cb   : > { %v11183_v30 = vunpack.i.h.bf16 %v11181_v33  ;;  %v11182_v57 = vunpack.i.l.bf16 %v11181_v33  ;;  %v11178_v6 = vunpack.i.h.bf16 %v11176_v36  ;;  %v11177_v12 = vunpack.i.l.bf16 %v11176_v36 }
0x10cc   : > { %v5394_v36 = vsel %vm416_vm0, %v4810_v35, %v11167_v15  ;;  %v9197_v35 = vld [vmem:[%s16082_s3] ss:$0 sm:$0xff] }
0x10cd   : > { %v5433_v54 = vsel %vm1130_vm6, %v5425_v51, %v11182_v57  ;;  %v5377_v40 = vsel %vm1130_vm6, %v5369_v21, %v11183_v30  ;;  %v5346_v3 = vsel %vm1094_vm2, %v5338_v47, %v11178_v6  ;;  %v5402_v58 = vsel %vm1094_vm2, %v5394_v36, %v11177_v12 }
0x10ce   : > { %v5458_v7 = vpop.permute.xlu1 %5457  ;;  %v11186_v5 = vpop.permute.xlu0 %11185 }
0x10cf   : > { %v5478_v59 = vsel %vm416_vm0, %v14363_v63, %v5458_v7  ;;  %v11188_v52 = vunpack.i.h.bf16 %v11186_v5  ;;  %v11187_v27 = vunpack.i.l.bf16 %v11186_v5 }
0x10d0   : > { %9929 = vmatmul.mubr.msk.f32.gmra.mxu1 %vm1094_vm2, %v5478_v59  ;;  %v10947_v59 = vunpack.i.l.bf16 %v14434_v16 }
0x10d1   : > { %v5354_v23 = vsel %vm1103_vm3, %v5346_v3, %v11188_v52  ;;  %v5410_v4 = vsel %vm1103_vm3, %v5402_v58, %v11187_v27 }
0x10d2   : > { %v11191_v41 = vpop.permute.xlu1 %11190  ;;  %v11196_v45 = vpop.permute.xlu0 %11195 }
0x10d3   : > { %v11193_v63 = vunpack.i.h.bf16 %v11191_v41  ;;  %v11192_v18 = vunpack.i.l.bf16 %v11191_v41  ;;  %v11198_v20 = vunpack.i.h.bf16 %v11196_v45  ;;  %v11197_v33 = vunpack.i.l.bf16 %v11196_v45 }
0x10d5   : > { %v5441_v46 = vsel %vm1139_vm7, %v5433_v54, %v11192_v18  ;;  %v14589_v26 = vsel %vm1139_vm7, %v5377_v40, %v11193_v63  ;;  %v5362_v49 = vsel %vm1112_vm4, %v5354_v23, %v11198_v20  ;;  %v5418_v7 = vsel %vm1112_vm4, %v5410_v4, %v11197_v33 }
0x10d6   : > { %v11201_v53 = vpop.permute.xlu1 %11200  ;;  %v5460_v2 = vpop.permute.xlu0 %5459  ;;  %5644 = vmatprep.mubr.f32.mxu0 %v5441_v46 }
0x10d7   : > { %v5479_v29 = vsel %vm416_vm0, %v14387_v14, %v5460_v2  ;;  %5645 = vmatmul.mubr.f32.gmra.mxu0 %v14589_v26  ;;  %v11203_v31 = vunpack.i.h.bf16 %v11201_v53  ;;  %v11202_v43 = vunpack.i.l.bf16 %v11201_v53 }
0x10d8   : > { %9931 = vmatprep.mubr.msk.f32.mxu1 %vm1094_vm2, %v5479_v29 }
0x10d9   : > { %v5426_v32 = vsel %vm1121_vm5, %v5418_v7, %v11202_v43  ;;  %v5370_v30 = vsel %vm1121_vm5, %v5362_v49, %v11203_v31 }
0x10da   : > { %v11206_v1 = vpop.permute.xlu1 %11205  ;;  %v5462_v14 = vpop.permute.xlu0 %5461 }
0x10db   : > { %v11208_v5 = vunpack.i.h.bf16 %v11206_v1  ;;  %v11207_v42 = vunpack.i.l.bf16 %v11206_v1  ;;  %v5480_v39 = vsel %vm416_vm0, %v14411_v37, %v5462_v14 }
0x10dc   : > { %9932 = vmatmul.mubr.msk.f32.gmra.mxu1 %vm1094_vm2, %v5480_v39 }
0x10dd   : > { %v5434_v57 = vsel %vm1130_vm6, %v5426_v32, %v11207_v42  ;;  %v5378_v25 = vsel %vm1130_vm6, %v5370_v30, %v11208_v5 }
0x10de   : > { %v5464_v55 = vpop.permute.xlu0 %5463  ;;  %v5466_v28 = vpop.permute.xlu1 %5465  ;;  %v5442_v56 = vsel %vm1139_vm7, %v5434_v57, %v10947_v59  ;;  %v14615_v37 = vsel %vm1139_vm7, %v5378_v25, %v10948_v17 }
0x10df   : > { %v5481_v16 = vsel %vm416_vm0, %v14426_v13, %v5464_v55  ;;  %v5482_v44 = vsel %vm416_vm0, %v4874_v11, %v5466_v28  ;;  %5649 = vmatprep.mubr.f32.mxu0 %v5442_v56 }
0x10e0   : > { %5650 = vmatmul.mubr.f32.gmra.mxu0 %v14615_v37  ;;  %9934 = vmatprep.mubr.msk.f32.mxu1 %vm1094_vm2, %v5481_v16 }
0x10e1   : > { %9935 = vmatmul.mubr.msk.f32.gmra.mxu1 %vm1094_vm2, %v5482_v44 }
0x113b   : > { %v9597_v41 = vpop.f32.mrf.mxu0 }
0x113d   : > { %v9598_v45 = vpop.f32.mrf.mxu0 }
0x113e   : > { %v9599_v13 = vadd.f32 %v9598_v45, %v9597_v41 }
0x1140   : > { %v5617_v53 = vadd.f32 %v9599_v13, %v9197_v35 }
0x1147   : > { %v9600_v63 = vpop.f32.mrf.mxu0 }
0x1149   : > { %v9601_v18 = vpop.f32.mrf.mxu0 }
0x114a   : > { %v9602_v52 = vadd.f32 %v9601_v18, %v9600_v63 }
0x114c   : > { %v5622_v33 = vadd.f32 %v9602_v52, %v9197_v35 }
0x1157   : > { %v9603_v51 = vpop.f32.mrf.mxu0 }
0x1159   : > { %v9604_v21 = vpop.f32.mrf.mxu0 }
0x115a   : > { %v9605_v46 = vadd.f32 %v9604_v21, %v9603_v51 }
0x115c   : > { %v5627_v36 = vadd.f32 %v9605_v46, %v9197_v35 }
0x1163   : > { %v9606_v15 = vpop.f32.mrf.mxu0 }
0x1165   : > { %v9607_v6 = vpop.f32.mrf.mxu0 }
0x1166   : > { %v9608_v3 = vadd.f32 %v9607_v6, %v9606_v15 }
0x1168   : > { %v5632_v49 = vadd.f32 %v9608_v3, %v9197_v35 }
0x1173   : > { %v9609_v40 = vpop.f32.mrf.mxu0 }
0x1175   : > { %v9610_v27 = vpop.f32.mrf.mxu0 }
0x1176   : > { %v9611_v1 = vadd.f32 %v9610_v27, %v9609_v40 }
0x1178   : > { %v5637_v30 = vadd.f32 %v9611_v1, %v9197_v35 }
0x117c   : > { %v9927_v54 = vpop.f32.mrf.mxu1 }
0x117d   : > { %v5727_v31 = vadd.f32 %v9927_v54, %v5622_v33 }
0x117e   : > { %v5721_v12 = vpop.f32.mrf.mxu1 }
0x117f   : > { %v5722_v29 = vadd.f32 %v5721_v12, %v5617_v53  ;;  %v5763_v14 = vsel %vm1094_vm2, %v5727_v31, 0.0 }
0x1181   : > { %v5762_v23 = vsel %vm1094_vm2, %v5722_v29, 0.0 }
0x1182   : > { %v5764_v42 = vadd.f32 %v5763_v14, %v5762_v23 }
0x1183   : > { %v9612_v2 = vpop.f32.mrf.mxu0 }
0x1185   : > { %v9613_v43 = vpop.f32.mrf.mxu0 }
0x1186   : > { %v9614_v7 = vadd.f32 %v9613_v43, %v9612_v2 }
0x1188   : > { %v5642_v32 = vadd.f32 %v9614_v7, %v9197_v35 }
0x1190   : > { %v9930_v20 = vpop.f32.mrf.mxu1 }
0x1191   : > { %v5737_v39 = vadd.f32 %v9930_v20, %v5632_v49 }
0x1192   : > { %v5731_v47 = vpop.f32.mrf.mxu1 }
0x1193   : > { %v5732_v58 = vadd.f32 %v5731_v47, %v5627_v36  ;;  %v5767_v55 = vsel %vm1094_vm2, %v5737_v39, 0.0 }
0x1195   : > { %v5765_v5 = vsel %vm1094_vm2, %v5732_v58, 0.0 }
0x1196   : > { %v5766_v59 = vadd.f32 %v5765_v5, %v5764_v42 }
0x1197   : > { %v9615_v4 = vpop.f32.mrf.mxu0 }
0x1198   : > { %v5768_v16 = vadd.f32 %v5767_v55, %v5766_v59 }
0x1199   : > { %v9616_v17 = vpop.f32.mrf.mxu0 }
0x119a   : > { %v9617_v57 = vadd.f32 %v9616_v17, %v9615_v4 }
0x119c   : > { %v9933_v11 = vpop.f32.mrf.mxu1  ;;  %v5647_v51 = vadd.f32 %v9617_v57, %v9197_v35 }
0x119d   : > { %v5747_v28 = vadd.f32 %v9933_v11, %v5642_v32 }
0x119e   : > { %v5741_v25 = vpop.f32.mrf.mxu1 }
0x119f   : > { %v5742_v56 = vadd.f32 %v5741_v25, %v5637_v30  ;;  %v5771_v21 = vsel %vm1094_vm2, %v5747_v28, 0.0 }
0x11a0   : > { %v9618_v44 = vpop.f32.mrf.mxu0 }
0x11a1   : > { %v5769_v41 = vsel %vm1094_vm2, %v5742_v56, 0.0  ;;  %v9936_v45 = vpop.f32.mrf.mxu1 }
0x11a2   : > { %v5770_v63 = vadd.f32 %v5769_v41, %v5768_v16  ;;  %v9619_v18 = vpop.f32.mrf.mxu0 }
0x11a3   : > { %v9620_v15 = vadd.f32 %v9619_v18, %v9618_v44  ;;  %v5751_v6 = vpop.f32.mrf.mxu1 }
0x11a4   : > { %v5752_v54 = vadd.f32 %v5751_v6, %v5647_v51  ;;  %v5772_v40 = vadd.f32 %v5771_v21, %v5770_v63 }
0x11a5   : > { %v5652_v13 = vadd.f32 %v9620_v15, %v9197_v35 }
0x11a6   : > { %v5773_v12 = vsel %vm1094_vm2, %v5752_v54, 0.0 }
0x11a7   : > { %v5757_v52 = vadd.f32 %v9936_v45, %v5652_v13  ;;  %v5774_v46 = vadd.f32 %v5773_v12, %v5772_v40 }
0x11a9   : > { %v5775_v27 = vsel %vm1094_vm2, %v5757_v52, 0.0 }
0x11aa   : > { %v5776_v20 = vadd.f32 %v5775_v27, %v5774_v46 }
0x11ac   : > { %5777 = vadd.xlane.f32.xlu0 %v5776_v20 }
0x11c2   : > { %5930 = vrot.lane.b32.xlu0 %v14179_v8, %s16133_s1 }
0x11c6   : > { %5934 = vrot.lane.b32.xlu0 %v14197_v9, %s16133_s1 }
0x11ca   : > { %5938 = vrot.lane.b32.xlu0 %v14218_v24, %s16133_s1 }
0x11ce   : > { %5942 = vrot.lane.b32.xlu0 %v14243_v19, %s16133_s1 }
0x1235   : > { %v5778_v35 = vpop.xlane.xlu0 %5777 }
0x1236   : > { %v5779_v53 = vrot.slane %v5778_v35, 4 }
0x1238   : > { %v5780_v2 = vadd.f32 %v5779_v53, %v5778_v35  ;;  %v9206_v35 = vld [vmem:[%s16083_s4] ss:$0 sm:$0xff] }
0x123a   : > { %v5781_v47 = vrot.slane %v5780_v2, 2 }
0x123c   : > { %v5782_v33 = vadd.f32 %v5781_v47, %v5780_v2 }
0x123e   : > { %v5783_v36 = vrot.slane %v5782_v33, 1 }
0x1240   : > { %v5784_v3 = vadd.f32 %v5783_v36, %v5782_v33 }
0x1242   : > { %10021 = vpush %v5784_v3  ;;  %v9207_v3 = vld [vmem:[%s16084_s5] ss:$0 sm:$0xff] }
0x1273   : > { %s10022_s11 = spop %10021 }
0x1274   : > { %s5788_s20 = smul.f32 0.00048828125, %s10022_s11  ;;  %s9108_s11 = sshll.u32 %s13208_s22, 6 }
0x1276   : > { %v5789_v43 = vstv %s5788_s20 }
0x1277   : > { %v5790_v23 = vsub.f32 %v5722_v29, %v5789_v43  ;;  %v5791_v4 = vsub.f32 %v5727_v31, %v5789_v43  ;;  %v5792_v49 = vsub.f32 %v5732_v58, %v5789_v43  ;;  %v5793_v1 = vsub.f32 %v5737_v39, %v5789_v43 }
0x1278   : > { %v5794_v14 = vsub.f32 %v5742_v56, %v5789_v43  ;;  %v5795_v17 = vsub.f32 %v5747_v28, %v5789_v43  ;;  %v5796_v57 = vsub.f32 %v5752_v54, %v5789_v43  ;;  %v5797_v29 = vsub.f32 %v5757_v52, %v5789_v43 }
0x1279   : > { %v5798_v7 = vmul.f32 %v5790_v23, %v5790_v23  ;;  %v5799_v5 = vmul.f32 %v5791_v4, %v5791_v4  ;;  %v5800_v42 = vmul.f32 %v5792_v49, %v5792_v49  ;;  %v5801_v59 = vmul.f32 %v5793_v1, %v5793_v1 }
0x127a   : > { %v5802_v25 = vmul.f32 %v5794_v14, %v5794_v14  ;;  %v5803_v31 = vmul.f32 %v5795_v17, %v5795_v17  ;;  %v5804_v56 = vmul.f32 %v5796_v57, %v5796_v57  ;;  %v5805_v41 = vmul.f32 %v5797_v29, %v5797_v29 }
0x127b   : > { %v5806_v11 = vsel %vm1094_vm2, %v5798_v7, 0.0  ;;  %v5807_v32 = vsel %vm1094_vm2, %v5799_v5, 0.0  ;;  %v5809_v55 = vsel %vm1094_vm2, %v5800_v42, 0.0  ;;  %v5811_v58 = vsel %vm1094_vm2, %v5801_v59, 0.0 }
0x127c   : > { %v5808_v30 = vadd.f32 %v5807_v32, %v5806_v11  ;;  %v5813_v44 = vsel %vm1094_vm2, %v5802_v25, 0.0  ;;  %v5815_v45 = vsel %vm1094_vm2, %v5803_v31, 0.0  ;;  %v5817_v18 = vsel %vm1094_vm2, %v5804_v56, 0.0 }
0x127d   : > { %v5819_v21 = vsel %vm1094_vm2, %v5805_v41, 0.0 }
0x127e   : > { %v5810_v16 = vadd.f32 %v5809_v55, %v5808_v30 }
0x1280   : > { %v5812_v39 = vadd.f32 %v5811_v58, %v5810_v16 }
0x1282   : > { %v5814_v28 = vadd.f32 %v5813_v44, %v5812_v39 }
0x1284   : > { %v5816_v63 = vadd.f32 %v5815_v45, %v5814_v28 }
0x1286   : > { %v5818_v51 = vadd.f32 %v5817_v18, %v5816_v63 }
0x1288   : > { %v5820_v15 = vadd.f32 %v5819_v21, %v5818_v51 }
0x128a   : > { %5821 = vadd.xlane.f32.xlu1 %v5820_v15 }
0x129b   : > { %5932 = vrot.lane.b32.xlu1 %v14184_v22, %s16133_s1 }
0x129f   : > { %5936 = vrot.lane.b32.xlu1 %v14209_v60, %s16133_s1 }
0x12a3   : > { %5940 = vrot.lane.b32.xlu1 %v14227_v34, %s16133_s1 }
0x12a7   : > { %5944 = vrot.lane.b32.xlu1 %v14253_v38, %s16133_s1 }
0x1313   : > { %v5822_v6 = vpop.xlane.xlu1 %5821 }
0x1314   : > { %v5823_v54 = vrot.slane %v5822_v6, 4 }
0x1316   : > { %v5824_v40 = vadd.f32 %v5823_v54, %v5822_v6 }
0x1318   : > { %v5825_v13 = vrot.slane %v5824_v40, 2 }
0x131a   : > { %v5826_v12 = vadd.f32 %v5825_v13, %v5824_v40 }
0x131c   : > { %v5827_v52 = vrot.slane %v5826_v12, 1 }
0x131e   : > { %v5828_v46 = vadd.f32 %v5827_v52, %v5826_v12 }
0x1320   : > { %10023 = vpush %v5828_v46 }
0x1351   : > { %s10024_s18 = spop %10023 }
0x1352   : > { %s5832_s14 = smul.f32 0.00048828125, %s10024_s18 }
0x1354   : > { %s5833_s17 = sadd.f32 1e-05, %s5832_s14 }
0x1356   : > { %v5834_v27 = vstv %s5833_s17 }
0x1357   : > { %11863 = vrsqrt.f32 %v5834_v27 }
0x1364   : > { %v11864_v20 = vpop.eup %11863 }
0x1365   : > { %10025 = vpush %v11864_v20 }
0x1396   : > { %s10026_s16 = spop %10025 }
0x1397   : > { %v5837_v53 = vstv %s10026_s16 }
0x1398   : > { %v5838_v2 = vmul.f32 %v5837_v53, %v5790_v23  ;;  %v5839_v47 = vmul.f32 %v5837_v53, %v5791_v4  ;;  %v5840_v33 = vmul.f32 %v5837_v53, %v5792_v49  ;;  %v5841_v36 = vmul.f32 %v5837_v53, %v5793_v1 }
0x1399   : > { %v5842_v43 = vmul.f32 %v5837_v53, %v5794_v14  ;;  %v5843_v7 = vmul.f32 %v5837_v53, %v5795_v17  ;;  %v5844_v5 = vmul.f32 %v5837_v53, %v5796_v57  ;;  %v5845_v42 = vmul.f32 %v5837_v53, %v5797_v29 }
0x139a   : > { %v5852_v59 = vmul.f32 %v9206_v35, %v5838_v2  ;;  %v5853_v11 = vmul.f32 %v9206_v35, %v5839_v47  ;;  %v5854_v32 = vmul.f32 %v9206_v35, %v5840_v33  ;;  %v5855_v30 = vmul.f32 %v9206_v35, %v5841_v36  ;;  %v5931_v2 = vpop.permute.xlu0 %5930  ;;  %v5933_v33 = vpop.permute.xlu1 %5932 }
0x139b   : > { %v5856_v25 = vmul.f32 %v9206_v35, %v5842_v43  ;;  %v5857_v55 = vmul.f32 %v9206_v35, %v5843_v7  ;;  %v5858_v16 = vmul.f32 %v9206_v35, %v5844_v5  ;;  %v5859_v31 = vmul.f32 %v9206_v35, %v5845_v42 }
0x139c   : > { %v5866_v23 = vadd.f32 %v9207_v3, %v5852_v59  ;;  %v5867_v4 = vadd.f32 %v9207_v3, %v5853_v11  ;;  %v5868_v49 = vadd.f32 %v9207_v3, %v5854_v32  ;;  %v5869_v1 = vadd.f32 %v9207_v3, %v5855_v30 }
0x139d   : > { %v5870_v58 = vadd.f32 %v9207_v3, %v5856_v25  ;;  %v5871_v39 = vadd.f32 %v9207_v3, %v5857_v55  ;;  %v5872_v56 = vadd.f32 %v9207_v3, %v5858_v16  ;;  %v5873_v57 = vadd.f32 %v9207_v3, %v5859_v31 }
0x139e   : > { %v9208_v44 = vmul.f32 -1.442695, %v5866_v23  ;;  %v9209_v14 = vmul.f32 -1.442695, %v5867_v4  ;;  %v9210_v17 = vmul.f32 -1.442695, %v5868_v49  ;;  %v5935_v3 = vpop.permute.xlu0 %5934  ;;  %v5937_v7 = vpop.permute.xlu1 %5936 }
0x139f   : > { %v9211_v29 = vmul.f32 -1.442695, %v5869_v1  ;;  %v9212_v28 = vmul.f32 -1.442695, %v5870_v58  ;;  %v9213_v41 = vmul.f32 -1.442695, %v5871_v39 }
0x13a0   : > { %11865 = vpow2.f32 %v9208_v44  ;;  %v9214_v45 = vmul.f32 -1.442695, %v5872_v56  ;;  %v9215_v63 = vmul.f32 -1.442695, %v5873_v57  ;;  %v6424_v57 = vld [vmem:[%s16085_s6 + $0xf0] sm:$0xff] }
0x13a1   : > { %11867 = vpow2.f32 %v9209_v14  ;;  %v6425_v14 = vld [vmem:[%s16085_s6 + $0xf8] sm:$0xff] }
0x13a2   : > { %11869 = vpow2.f32 %v9210_v17  ;;  %v5939_v25 = vpop.permute.xlu0 %5938  ;;  %v5941_v31 = vpop.permute.xlu1 %5940  ;;  %v6409_v17 = vld [vmem:[%s16085_s6 + $0x78] sm:$0xff]  ;;  %9633 = vmatprep.subr.mxu0 %v6425_v14 }
0x13a3   : > { %11871 = vpow2.f32 %v9211_v29  ;;  %v6408_v29 = vld [vmem:[%s16085_s6 + $0x70] sm:$0xff]  ;;  %9634 = vmatpush3.msra.mxu0 %v6409_v17 }
0x13a4   : > { %11873 = vpow2.f32 %v9212_v28  ;;  %v6423_v28 = vld [vmem:[%s16085_s6 + $0xe8] sm:$0xff]  ;;  %9635 = vmatprep.subr.mxu0 %v6424_v57  ;;  %v6396_v57 = vld [vmem:[%s16085_s6 + $0x10] sm:$0xff] }
0x13a5   : > { %11875 = vpow2.f32 %v9213_v41  ;;  %v6407_v41 = vld [vmem:[%s16085_s6 + $0x68] sm:$0xff]  ;;  %9636 = vmatpush3.msra.mxu0 %v6408_v29 }
0x13a6   : > { %11877 = vpow2.f32 %v9214_v45  ;;  %v5943_v58 = vpop.permute.xlu0 %5942  ;;  %v5945_v39 = vpop.permute.xlu1 %5944  ;;  %v6422_v45 = vld [vmem:[%s16085_s6 + $0xe0] sm:$0xff]  ;;  %9637 = vmatprep.subr.mxu0 %v6423_v28 }
0x13a7   : > { %11879 = vpow2.f32 %v9215_v63  ;;  %v6406_v63 = vld [vmem:[%s16085_s6 + $0x60] sm:$0xff]  ;;  %9638 = vmatpush3.msra.mxu0 %v6407_v41 }
0x13a8   : > { %9639 = vmatprep.subr.mxu0 %v6422_v45 }
0x13a9   : > { %9640 = vmatpush3.msra.mxu0 %v6406_v63 }
0x13ad   : > { %v11866_v18 = vpop.eup %11865 }
0x13ae   : > { %v11868_v51 = vpop.eup %11867  ;;  %v5898_v21 = vadd.f32 1.0, %v11866_v18  ;;  %v6421_v18 = vld [vmem:[%s16085_s6 + $0xd8] sm:$0xff] }
0x13af   : > { %v11870_v15 = vpop.eup %11869  ;;  %v5899_v6 = vadd.f32 1.0, %v11868_v51  ;;  %v6405_v51 = vld [vmem:[%s16085_s6 + $0x58] sm:$0xff]  ;;  %9641 = vmatprep.subr.mxu0 %v6421_v18 }
0x13b0   : > { %v11872_v54 = vpop.eup %11871  ;;  %v5900_v40 = vadd.f32 1.0, %v11870_v15  ;;  %11881 = vrcp.f32 %v5898_v21  ;;  %v6420_v21 = vld [vmem:[%s16085_s6 + $0xd0] sm:$0xff]  ;;  %9642 = vmatpush3.msra.mxu0 %v6405_v51  ;;  %v6411_v51 = vld [vmem:[%s16085_s6 + $0x88] sm:$0xff] }
0x13b1   : > { %v11874_v13 = vpop.eup %11873  ;;  %v5901_v12 = vadd.f32 1.0, %v11872_v54  ;;  %11883 = vrcp.f32 %v5899_v6  ;;  %v6404_v15 = vld [vmem:[%s16085_s6 + $0x50] sm:$0xff]  ;;  %v6419_v6 = vld [vmem:[%s16085_s6 + $0xc8] sm:$0xff]  ;;  %9643 = vmatprep.subr.mxu0 %v6420_v21 }
0x13b2   : > { %v11876_v52 = vpop.eup %11875  ;;  %v5902_v46 = vadd.f32 1.0, %v11874_v13  ;;  %11885 = vrcp.f32 %v5900_v40  ;;  %v6403_v54 = vld [vmem:[%s16085_s6 + $0x48] sm:$0xff]  ;;  %9644 = vmatpush3.msra.mxu0 %v6404_v15  ;;  %v6418_v40 = vld [vmem:[%s16085_s6 + $0xc0] sm:$0xff] }
0x13b3   : > { %v11878_v27 = vpop.eup %11877  ;;  %v5903_v20 = vadd.f32 1.0, %v11876_v52  ;;  %11887 = vrcp.f32 %v5901_v12  ;;  %9645 = vmatprep.subr.mxu0 %v6419_v6  ;;  %v6402_v13 = vld [vmem:[%s16085_s6 + $0x40] sm:$0xff]  ;;  %v6417_v52 = vld [vmem:[%s16085_s6 + $0xb8] sm:$0xff]  ;;  %v6395_v21 = vld [vmem:[%s16085_s6 + $0x8] sm:$0xff] }
0x13b4   : > { %v11880_v35 = vpop.eup %11879  ;;  %v5904_v53 = vadd.f32 1.0, %v11878_v27  ;;  %11889 = vrcp.f32 %v5902_v46  ;;  %9646 = vmatpush3.msra.mxu0 %v6403_v54  ;;  %v6401_v46 = vld [vmem:[%s16085_s6 + $0x38] sm:$0xff]  ;;  %v6416_v27 = vld [vmem:[%s16085_s6 + $0xb0] sm:$0xff]  ;;  %v6410_v15 = vld [vmem:[%s16085_s6 + $0x80] sm:$0xff] }
0x13b5   : > { %v5905_v47 = vadd.f32 1.0, %v11880_v35  ;;  %11891 = vrcp.f32 %v5903_v20  ;;  %9647 = vmatprep.subr.mxu0 %v6418_v40  ;;  %v6400_v35 = vld [vmem:[%s16085_s6 + $0x30] sm:$0xff]  ;;  %v6394_v40 = vld [vmem:[%s16085_s6] sm:$0xff] }
0x13b6   : > { %11893 = vrcp.f32 %v5904_v53  ;;  %9648 = vmatpush3.msra.mxu0 %v6402_v13 }
0x13b7   : > { %11895 = vrcp.f32 %v5905_v47  ;;  %9649 = vmatprep.subr.mxu0 %v6417_v52  ;;  %v6399_v47 = vld [vmem:[%s16085_s6 + $0x28] sm:$0xff] }
0x13b8   : > { %9650 = vmatpush3.msra.mxu0 %v6401_v46 }
0x13b9   : > { %9651 = vmatprep.subr.mxu0 %v6416_v27 }
0x13ba   : > { %9652 = vmatpush3.msra.mxu0 %v6400_v35 }
0x13bd   : > { %v14664_v36 = vpop.eup %11881 }
0x13be   : > { %v14666_v43 = vpop.eup %11883  ;;  %v5954_v5 = vmul.f32 %v14664_v36, %v5931_v2  ;;  %v6415_v2 = vld [vmem:[%s16085_s6 + $0xa8] sm:$0xff] }
0x13bf   : > { %v14669_v42 = vpop.eup %11885  ;;  %v5955_v59 = vmul.f32 %v14666_v43, %v5933_v33  ;;  %v6414_v33 = vld [vmem:[%s16085_s6 + $0xa0] sm:$0xff]  ;;  %9653 = vmatprep.subr.mxu0 %v6415_v2 }
0x13c0   : > { %v14672_v11 = vpop.eup %11887  ;;  %5970 = vrot.lane.b32.xlu0 %v5954_v5, %s16132_s0  ;;  %v5956_v32 = vmul.f32 %v14669_v42, %v5935_v3  ;;  %v6010_v5 = vld [vmem:[#allocation3 + $0x1] sm:$0xff]  ;;  %9654 = vmatpush3.msra.mxu0 %v6399_v47 }
0x13c1   : > { %5972 = vrot.lane.b32.xlu1 %v5955_v59, %s16132_s0  ;;  %v14677_v30 = vpop.eup %11889  ;;  %v5957_v55 = vmul.f32 %v14672_v11, %v5937_v7  ;;  %v6398_v7 = vld [vmem:[%s16085_s6 + $0x20] sm:$0xff]  ;;  %9655 = vmatprep.subr.mxu0 %v6414_v33 }
0x13c2   : > { %v14680_v16 = vpop.eup %11891  ;;  %v5958_v23 = vmul.f32 %v14677_v30, %v5939_v25  ;;  %v6002_v59 = vld [vmem:[#allocation3] sm:$0xff]  ;;  %v6397_v25 = vld [vmem:[%s16085_s6 + $0x18] sm:$0xff]  ;;  %9656 = vmatpush3.msra.mxu0 %v6398_v7 }
0x13c3   : > { %v14685_v4 = vpop.eup %11893  ;;  %v5959_v49 = vmul.f32 %v14680_v16, %v5941_v31 }
0x13c4   : > { %5974 = vrot.lane.b32.xlu0 %v5956_v32, %s16132_s0  ;;  %v14688_v1 = vpop.eup %11895  ;;  %v5960_v56 = vmul.f32 %v14685_v4, %v5943_v58  ;;  %v6413_v32 = vld [vmem:[%s16085_s6 + $0x98] sm:$0xff] }
0x13c5   : > { %5976 = vrot.lane.b32.xlu1 %v5957_v55, %s16132_s0  ;;  %v5961_v44 = vmul.f32 %v14688_v1, %v5945_v39  ;;  %9657 = vmatprep.subr.mxu0 %v6413_v32 }
0x13c6   : > { %9658 = vmatpush3.msra.mxu0 %v6397_v25 }
0x13c8   : > { %5978 = vrot.lane.b32.xlu0 %v5958_v23, %s16132_s0 }
0x13c9   : > { %5980 = vrot.lane.b32.xlu1 %v5959_v49, %s16132_s0 }
0x13cc   : > { %5982 = vrot.lane.b32.xlu0 %v5960_v56, %s16132_s0  ;;  %v6018_v56 = vld [vmem:[#allocation3 + $0x2] sm:$0xff] }
0x13cd   : > { %5984 = vrot.lane.b32.xlu1 %v5961_v44, %s16132_s0  ;;  %v6412_v44 = vld [vmem:[%s16085_s6 + $0x90] sm:$0xff] }
0x13ce   : > { %9659 = vmatprep.subr.mxu0 %v6412_v44  ;;  %v6427_v44 = vld [vmem:[%s16085_s6 + $0x108] sm:$0xff] }
0x13cf   : > { %9660 = vmatpush3.msra.mxu0 %v6396_v57 }
0x13d0   : > { %9661 = vmatprep.subr.mxu0 %v6411_v51 }
0x13d1   : > { %9662 = vmatpush3.msra.mxu0 %v6395_v21 }
0x13d2   : > { %9663 = vmatprep.subr.mxu0 %v6410_v15 }
0x13d3   : > { %9664 = vmatpush3.msra.mxu0 %v6394_v40 }
0x1432   : > { %v5971_v12 = vpop.permute.xlu0 %5970 }
0x1433   : > { %v5973_v20 = vpop.permute.xlu1 %5972  ;;  %5994 = vst.msk [vmem:[#allocation3 + $0x11] sm:$0xff] %vm416_vm0, %v5971_v12 }
0x1434   : > { %5995 = vst.msk [vmem:[#allocation3 + $0x21] sm:$0xff] %vm416_vm0, %v5973_v20 }
0x1436   : > { %v5975_v53 = vpop.permute.xlu0 %5974 }
0x1437   : > { %v5977_v3 = vpop.permute.xlu1 %5976  ;;  %5996 = vst.msk [vmem:[#allocation3 + $0x31] sm:$0xff] %vm416_vm0, %v5975_v53 }
0x1438   : > { %5997 = vst.msk [vmem:[#allocation3 + $0x41] sm:$0xff] %vm416_vm0, %v5977_v3 }
0x143a   : > { %v5979_v55 = vpop.permute.xlu0 %5978  ;;  %v6011_v31 = vld [vmem:[#allocation3 + $0x11] sm:$0xff] }
0x143b   : > { %v6003_v23 = vld [vmem:[#allocation3 + $0x10] sm:$0xff]  ;;  %v5981_v49 = vpop.permute.xlu1 %5980  ;;  %5998 = vst.msk [vmem:[#allocation3 + $0x51] sm:$0xff] %vm416_vm0, %v5979_v55  ;;  %v11214_v58 = vpack.i.bf16 %v6011_v31, %v6010_v5  ;;  %v6027_v14 = vld [vmem:[#allocation3 + $0x20] sm:$0xff] }
0x143c   : > { %v11209_v39 = vpack.i.bf16 %v6003_v23, %v6002_v59  ;;  %5999 = vst.msk [vmem:[#allocation3 + $0x61] sm:$0xff] %vm416_vm0, %v5981_v49  ;;  %v6019_v17 = vld [vmem:[#allocation3 + $0x12] sm:$0xff]  ;;  %v11224_v41 = vpack.i.bf16 %v6027_v14, %v6003_v23  ;;  %v14789_v63 = vld [vmem:[#allocation3 + $0x22] sm:$0xff] }
0x143d   : > { %11215 = vrot.lane.b32.xlu1 %v11214_v58, %s16128_s13  ;;  %v11219_v45 = vpack.i.bf16 %v6019_v17, %v6018_v56  ;;  %v14792_v18 = vld [vmem:[#allocation3 + $0x21] sm:$0xff]  ;;  %v11234_v6 = vpack.i.bf16 %v14789_v63, %v6019_v17  ;;  %v6428_v58 = vld [vmem:[%s16085_s6 + $0x110] sm:$0xff] }
0x143e   : > { %11210 = vrot.lane.b32.xlu0 %v11209_v39, %s16133_s1  ;;  %v5983_v29 = vpop.permute.xlu0 %5982  ;;  %v11229_v54 = vpack.i.bf16 %v14792_v18, %v6011_v31  ;;  %v6051_v13 = vld [vmem:[#allocation3 + $0x30] sm:$0xff]  ;;  %v6429_v31 = vld [vmem:[%s16085_s6 + $0x118] sm:$0xff] }
0x143f   : > { %v5985_v28 = vpop.permute.xlu1 %5984  ;;  %6000 = vst.msk [vmem:[#allocation3 + $0x71] sm:$0xff] %vm416_vm0, %v5983_v29  ;;  %v11239_v12 = vpack.i.bf16 %v6051_v13, %v6027_v14  ;;  %v14812_v52 = vld [vmem:[#allocation3 + $0x31] sm:$0xff]  ;;  %v6029_v35 = vld [vmem:[#allocation3 + $0x40] sm:$0xff]  ;;  %9937 = vmatprep.subr.mxu1 %v6429_v31 }
0x1440   : > { %6001 = vst.msk [vmem:[#allocation3 + $0x81] sm:$0xff] %vm416_vm0, %v5985_v28  ;;  %v6021_v46 = vld [vmem:[#allocation3 + $0x32] sm:$0xff]  ;;  %v11249_v27 = vpack.i.bf16 %v14812_v52, %v14792_v18  ;;  %v14819_v53 = vld [vmem:[#allocation3 + $0x41] sm:$0xff]  ;;  %v11259_v2 = vpack.i.bf16 %v6029_v35, %v6051_v13  ;;  %9938 = vmatpush3.msra.mxu1 %v6429_v31 }
0x1441   : > { %11225 = vrot.lane.b32.xlu1 %v11224_v41, %s16130_s25  ;;  %v11254_v20 = vpack.i.bf16 %v6021_v46, %v14789_v63  ;;  %v11264_v47 = vpack.i.bf16 %v14819_v53, %v14812_v52  ;;  %v6045_v33 = vld [vmem:[#allocation3 + $0x42] sm:$0xff]  ;;  %9939 = vmatprep.subr.mxu1 %v6428_v58 }
0x1442   : > { %11220 = vrot.lane.b32.xlu0 %v11219_v45, %s16129_s23  ;;  %v6053_v3 = vld [vmem:[#allocation3 + $0x50] sm:$0xff]  ;;  %v11269_v7 = vpack.i.bf16 %v6045_v33, %v6021_v46  ;;  %9940 = vmatpush3.msra.mxu1 %v6428_v58  ;;  %v6426_v29 = vld [vmem:[%s16085_s6 + $0x100] sm:$0xff] }
0x1443   : > { %v11274_v5 = vpack.i.bf16 %v6053_v3, %v6029_v35  ;;  %v14827_v59 = vld [vmem:[#allocation3 + $0x51] sm:$0xff]  ;;  %v6031_v25 = vld [vmem:[#allocation3 + $0x60] sm:$0xff]  ;;  %9941 = vmatprep.subr.mxu1 %v6427_v44 }
0x1444   : > { %v11284_v32 = vpack.i.bf16 %v14827_v59, %v14819_v53  ;;  %v6023_v55 = vld [vmem:[#allocation3 + $0x52] sm:$0xff]  ;;  %v11294_v23 = vpack.i.bf16 %v6031_v25, %v6053_v3  ;;  %v6047_v39 = vld [vmem:[#allocation3 + $0x62] sm:$0xff]  ;;  %9942 = vmatpush3.msra.mxu1 %v6427_v44 }
0x1445   : > { %11235 = vrot.lane.b32.xlu1 %v11234_v6, %s16127_s26  ;;  %v11289_v49 = vpack.i.bf16 %v6023_v55, %v6045_v33  ;;  %v14841_v56 = vld [vmem:[#allocation3 + $0x61] sm:$0xff]  ;;  %v11304_v14 = vpack.i.bf16 %v6047_v39, %v6023_v55  ;;  %9943 = vmatprep.subr.mxu1 %v6426_v29 }
0x1446   : > { %11230 = vrot.lane.b32.xlu0 %v11229_v54, %s16131_s30  ;;  %v11299_v17 = vpack.i.bf16 %v14841_v56, %v14827_v59  ;;  %v6055_v57 = vld [vmem:[#allocation3 + $0x70] sm:$0xff]  ;;  %9944 = vmatpush3.msra.mxu1 %v6426_v29 }
0x1447   : > { %v11309_v28 = vpack.i.bf16 %v6055_v57, %v6031_v25  ;;  %v14855_v41 = vld [vmem:[#allocation3 + $0x71] sm:$0xff]  ;;  %v6033_v15 = vld [vmem:[#allocation3 + $0x80] sm:$0xff] }
0x1448   : > { %v11319_v45 = vpack.i.bf16 %v14855_v41, %v14841_v56  ;;  %v6025_v51 = vld [vmem:[#allocation3 + $0x72] sm:$0xff]  ;;  %v14864_v6 = vld [vmem:[#allocation3 + $0x81] sm:$0xff]  ;;  %v11329_v54 = vpack.i.bf16 %v6033_v15, %v6055_v57 }
0x1449   : > { %11245 = vrot.lane.b32.xlu1 %v11239_v12, %s16133_s1  ;;  %v11324_v21 = vpack.i.bf16 %v6025_v51, %v6047_v39  ;;  %v11334_v40 = vpack.i.bf16 %v14864_v6, %v14855_v41  ;;  %v6049_v13 = vld [vmem:[#allocation3 + $0x82] sm:$0xff]  ;;  %v11983_v25 = vld [vmem:[#allocation2 + $0x32] sm:$0xff] }
0x144a   : > { %11240 = vrot.lane.b32.xlu0 %v11239_v12, %s16132_s0  ;;  %v14878_v12 = vld [vmem:[#allocation3 + $0x90] sm:$0xff] }
0x144d   : > { %11255 = vrot.lane.b32.xlu1 %v11254_v20, %s16129_s23 }
0x144e   : > { %11250 = vrot.lane.b32.xlu0 %v11249_v27, %s16128_s13 }
0x1451   : > { %11265 = vrot.lane.b32.xlu1 %v11264_v47, %s16131_s30 }
0x1452   : > { %11260 = vrot.lane.b32.xlu0 %v11259_v2, %s16130_s25 }
0x1455   : > { %11275 = vrot.lane.b32.xlu1 %v11274_v5, %s16132_s0 }
0x1456   : > { %11270 = vrot.lane.b32.xlu0 %v11269_v7, %s16127_s26 }
0x1459   : > { %11285 = vrot.lane.b32.xlu1 %v11284_v32, %s16128_s13 }
0x145a   : > { %11280 = vrot.lane.b32.xlu0 %v11274_v5, %s16133_s1 }
0x145d   : > { %11295 = vrot.lane.b32.xlu1 %v11294_v23, %s16130_s25 }
0x145e   : > { %11290 = vrot.lane.b32.xlu0 %v11289_v49, %s16129_s23 }
0x1461   : > { %11305 = vrot.lane.b32.xlu1 %v11304_v14, %s16127_s26 }
0x1462   : > { %11300 = vrot.lane.b32.xlu0 %v11299_v17, %s16131_s30 }
0x1465   : > { %11315 = vrot.lane.b32.xlu1 %v11309_v28, %s16133_s1 }
0x1466   : > { %11310 = vrot.lane.b32.xlu0 %v11309_v28, %s16132_s0 }
0x1469   : > { %11320 = vrot.lane.b32.xlu1 %v11319_v45, %s16128_s13 }
0x146a   : > { %6362 = vrot.lane.b32.xlu0 %v14789_v63, %s16133_s1  ;;  %v11339_v63 = vpack.i.bf16 %v6049_v13, %v6025_v51 }
0x146d   : > { %11325 = vrot.lane.b32.xlu1 %v11324_v21, %s16129_s23 }
0x146e   : > { %6364 = vrot.lane.b32.xlu0 %v6021_v46, %s16133_s1  ;;  %v6073_v46 = vld [vmem:[#allocation3 + $0x92] sm:$0xff] }
0x1471   : > { %11335 = vrot.lane.b32.xlu1 %v11334_v40, %s16131_s30 }
0x1472   : > { %11330 = vrot.lane.b32.xlu0 %v11329_v54, %s16130_s25 }
0x1475   : > { %11340 = vrot.lane.b32.xlu1 %v11339_v63, %s16127_s26 }
0x1476   : > { %6366 = vrot.lane.b32.xlu0 %v6045_v33, %s16133_s1  ;;  %v11982_v33 = vld [vmem:[#allocation2 + $0x22] sm:$0xff] }
0x1479   : > { %6286 = vrot.lane.b32.xlu1 %v6033_v15, %s16132_s0 }
0x147a   : > { %6368 = vrot.lane.b32.xlu0 %v6023_v55, %s16133_s1 }
0x147d   : > { %6372 = vrot.lane.b32.xlu1 %v6025_v51, %s16133_s1 }
0x147e   : > { %6370 = vrot.lane.b32.xlu0 %v6047_v39, %s16133_s1 }
0x1481   : > { %6374 = vrot.lane.b32.xlu1 %v6049_v13, %s16133_s1 }
0x1482   : > { %6288 = vrot.lane.b32.xlu0 %v14878_v12, %s16132_s0 }
0x1486   : > { %6376 = vrot.lane.b32.xlu0 %v6073_v46, %s16133_s1 }
0x14af   : > { %v11216_v27 = vpop.permute.xlu1 %11215 }
0x14b0   : > { %v11211_v20 = vpop.permute.xlu0 %11210  ;;  %v11217_v47 = vunpack.i.l.bf16 %v11216_v27  ;;  %v11218_v7 = vunpack.i.h.bf16 %v11216_v27 }
0x14b1   : > { %v11213_v35 = vunpack.i.h.bf16 %v11211_v20  ;;  %v11212_v2 = vunpack.i.l.bf16 %v11211_v20 }
0x14b3   : > { %v6298_v3 = vsel %vm416_vm0, %v11982_v33, %v11212_v2  ;;  %v11226_v5 = vpop.permute.xlu1 %11225  ;;  %v6299_v55 = vsel %vm416_vm0, %v11983_v25, %v11213_v35 }
0x14b4   : > { %v11221_v32 = vpop.permute.xlu0 %11220  ;;  %v11227_v49 = vunpack.i.l.bf16 %v11226_v5  ;;  %v6306_v58 = vsel %vm1094_vm2, %v6298_v3, %v11217_v47  ;;  %v11228_v44 = vunpack.i.h.bf16 %v11226_v5  ;;  %v6307_v14 = vsel %vm1094_vm2, %v6299_v55, %v11218_v7 }
0x14b5   : > { %v11223_v31 = vunpack.i.h.bf16 %v11221_v32  ;;  %v11222_v23 = vunpack.i.l.bf16 %v11221_v32 }
0x14b7   : > { %v6314_v39 = vsel %vm1103_vm3, %v6306_v58, %v11222_v23  ;;  %v11236_v17 = vpop.permute.xlu1 %11235  ;;  %v6315_v29 = vsel %vm1103_vm3, %v6307_v14, %v11223_v31  ;;  %v11984_v31 = vld [vmem:[#allocation2 + $0x52] sm:$0xff] }
0x14b8   : > { %v11231_v57 = vpop.permute.xlu0 %11230  ;;  %v11237_v51 = vunpack.i.l.bf16 %v11236_v17  ;;  %v6322_v21 = vsel %vm1112_vm4, %v6314_v39, %v11227_v49  ;;  %v11238_v54 = vunpack.i.h.bf16 %v11236_v17  ;;  %v6323_v63 = vsel %vm1112_vm4, %v6315_v29, %v11228_v44  ;;  %v11985_v49 = vld [vmem:[#allocation2 + $0x42] sm:$0xff] }
0x14b9   : > { %v11233_v28 = vunpack.i.h.bf16 %v11231_v57  ;;  %v11232_v45 = vunpack.i.l.bf16 %v11231_v57 }
0x14bb   : > { %v6330_v15 = vsel %vm1121_vm5, %v6322_v21, %v11232_v45  ;;  %v11246_v40 = vpop.permute.xlu1 %11245  ;;  %v6331_v20 = vsel %vm1121_vm5, %v6323_v63, %v11233_v28 }
0x14bc   : > { %v11241_v13 = vpop.permute.xlu0 %11240  ;;  %v11248_v35 = vunpack.i.h.bf16 %v11246_v40  ;;  %v11247_v2 = vunpack.i.l.bf16 %v11246_v40  ;;  %v6338_v47 = vsel %vm1130_vm6, %v6330_v15, %v11237_v51  ;;  %v6339_v5 = vsel %vm1130_vm6, %v6331_v20, %v11238_v54 }
0x14bd   : > { %v11243_v46 = vunpack.i.h.bf16 %v11241_v13  ;;  %v11242_v27 = vunpack.i.l.bf16 %v11241_v13 }
0x14be   : > { %v6301_v23 = vsel %vm416_vm0, %v11984_v31, %v11248_v35  ;;  %v6300_v58 = vsel %vm416_vm0, %v11985_v49, %v11247_v2 }
0x14bf   : > { %v6346_v33 = vsel %vm1139_vm7, %v6338_v47, %v11242_v27  ;;  %v11256_v3 = vpop.permute.xlu1 %11255  ;;  %v6347_v55 = vsel %vm1139_vm7, %v6339_v5, %v11243_v46 }
0x14c0   : > { %v11251_v7 = vpop.permute.xlu0 %11250  ;;  %6525 = vmatprep.mubr.f32.mxu0 %v6346_v33  ;;  %v11258_v39 = vunpack.i.h.bf16 %v11256_v3  ;;  %v11257_v44 = vunpack.i.l.bf16 %v11256_v3 }
0x14c1   : > { %v11253_v32 = vunpack.i.h.bf16 %v11251_v7  ;;  %v11252_v25 = vunpack.i.l.bf16 %v11251_v7  ;;  %6526 = vmatmul.mubr.f32.vlgmr.msra.gmra.mxu0 %v14455_v10 }
0x14c2   : > { %6530 = vmatprep.mubr.f32.mxu0 %v6347_v55 }
0x14c3   : > { %v6309_v14 = vsel %vm1094_vm2, %v6301_v23, %v11253_v32  ;;  %v6308_v17 = vsel %vm1094_vm2, %v6300_v58, %v11252_v25  ;;  %v11266_v57 = vpop.permute.xlu1 %11265  ;;  %v11986_v23 = vld [vmem:[#allocation2 + $0x62] sm:$0xff] }
0x14c4   : > { %v11261_v29 = vpop.permute.xlu0 %11260  ;;  %v11268_v10 = vunpack.i.h.bf16 %v11266_v57  ;;  %v11267_v51 = vunpack.i.l.bf16 %v11266_v57  ;;  %v6316_v21 = vsel %vm1103_vm3, %v6308_v17, %v11257_v44  ;;  %v6317_v15 = vsel %vm1103_vm3, %v6309_v14, %v11258_v39  ;;  %v11987_v14 = vld [vmem:[#allocation2 + $0x72] sm:$0xff] }
0x14c5   : > { %v11263_v28 = vunpack.i.h.bf16 %v11261_v29  ;;  %v11262_v45 = vunpack.i.l.bf16 %v11261_v29  ;;  %6531 = vmatmul.mubr.f32.gmra.mxu0 %v14474_v0 }
0x14c7   : > { %v6324_v54 = vsel %vm1112_vm4, %v6316_v21, %v11262_v45  ;;  %v6325_v40 = vsel %vm1112_vm4, %v6317_v15, %v11263_v28  ;;  %v11276_v13 = vpop.permute.xlu1 %11275 }
0x14c8   : > { %v11271_v63 = vpop.permute.xlu0 %11270  ;;  %v11277_v46 = vunpack.i.l.bf16 %v11276_v13  ;;  %v11278_v35 = vunpack.i.h.bf16 %v11276_v13  ;;  %v6332_v2 = vsel %vm1121_vm5, %v6324_v54, %v11267_v51  ;;  %v6333_v0 = vsel %vm1121_vm5, %v6325_v40, %v11268_v10 }
0x14c9   : > { %v11273_v27 = vunpack.i.h.bf16 %v11271_v63  ;;  %v11272_v20 = vunpack.i.l.bf16 %v11271_v63 }
0x14cb   : > { %v6340_v47 = vsel %vm1130_vm6, %v6332_v2, %v11272_v20  ;;  %v6341_v33 = vsel %vm1130_vm6, %v6333_v0, %v11273_v27  ;;  %v11286_v3 = vpop.permute.xlu1 %11285 }
0x14cc   : > { %v11281_v7 = vpop.permute.xlu0 %11280  ;;  %v6348_v5 = vsel %vm1139_vm7, %v6340_v47, %v11277_v46  ;;  %v11287_v55 = vunpack.i.l.bf16 %v11286_v3  ;;  %v6349_v31 = vsel %vm1139_vm7, %v6341_v33, %v11278_v35  ;;  %v11288_v58 = vunpack.i.h.bf16 %v11286_v3 }
0x14cd   : > { %v11283_v32 = vunpack.i.h.bf16 %v11281_v7  ;;  %v11282_v25 = vunpack.i.l.bf16 %v11281_v7  ;;  %6535 = vmatprep.mubr.f32.mxu0 %v6348_v5 }
0x14ce   : > { %6536 = vmatmul.mubr.f32.gmra.mxu0 %v14493_v50 }
0x14cf   : > { %v6302_v49 = vsel %vm416_vm0, %v11986_v23, %v11282_v25  ;;  %6540 = vmatprep.mubr.f32.mxu0 %v6349_v31  ;;  %v11296_v39 = vpop.permute.xlu1 %11295  ;;  %v6303_v17 = vsel %vm416_vm0, %v11987_v14, %v11283_v32 }
0x14d0   : > { %v11291_v44 = vpop.permute.xlu0 %11290  ;;  %v11297_v28 = vunpack.i.l.bf16 %v11296_v39  ;;  %v6310_v45 = vsel %vm1094_vm2, %v6302_v49, %v11287_v55  ;;  %v11298_v10 = vunpack.i.h.bf16 %v11296_v39  ;;  %v6311_v51 = vsel %vm1094_vm2, %v6303_v17, %v11288_v58 }
0x14d1   : > { %v11293_v57 = vunpack.i.h.bf16 %v11291_v44  ;;  %v11292_v29 = vunpack.i.l.bf16 %v11291_v44 }
0x14d2   : > { %6541 = vmatmul.mubr.f32.gmra.mxu0 %v14512_v48 }
0x14d3   : > { %v6318_v50 = vsel %vm1103_vm3, %v6310_v45, %v11292_v29  ;;  %v11306_v21 = vpop.permute.xlu1 %11305  ;;  %v6319_v54 = vsel %vm1103_vm3, %v6311_v51, %v11293_v57 }
0x14d4   : > { %v11301_v15 = vpop.permute.xlu0 %11300  ;;  %v11307_v63 = vunpack.i.l.bf16 %v11306_v21  ;;  %v6326_v46 = vsel %vm1112_vm4, %v6318_v50, %v11297_v28  ;;  %v11308_v20 = vunpack.i.h.bf16 %v11306_v21  ;;  %v6327_v48 = vsel %vm1112_vm4, %v6319_v54, %v11298_v10 }
0x14d5   : > { %v11303_v40 = vunpack.i.h.bf16 %v11301_v15  ;;  %v11302_v13 = vunpack.i.l.bf16 %v11301_v15 }
0x14d7   : > { %v6334_v27 = vsel %vm1121_vm5, %v6326_v46, %v11302_v13  ;;  %v11316_v35 = vpop.permute.xlu1 %11315  ;;  %v6335_v33 = vsel %vm1121_vm5, %v6327_v48, %v11303_v40 }
0x14d8   : > { %v11311_v2 = vpop.permute.xlu0 %11310  ;;  %v6342_v3 = vsel %vm1130_vm6, %v6334_v27, %v11307_v63  ;;  %v6343_v25 = vsel %vm1130_vm6, %v6335_v33, %v11308_v20  ;;  %v11317_v23 = vunpack.i.l.bf16 %v11316_v35  ;;  %v11318_v21 = vunpack.i.h.bf16 %v11316_v35 }
0x14d9   : > { %v11313_v0 = vunpack.i.h.bf16 %v11311_v2  ;;  %v11312_v47 = vunpack.i.l.bf16 %v11311_v2  ;;  %v11989_v2 = vld [vmem:[#allocation2 + $0x92] sm:$0xff] }
0x14da   : > { %v6305_v48 = vsel %vm416_vm0, %v11989_v2, %v11318_v21 }
0x14db   : > { %v6350_v7 = vsel %vm1139_vm7, %v6342_v3, %v11312_v47  ;;  %v11321_v5 = vpop.permute.xlu1 %11320  ;;  %v6351_v31 = vsel %vm1139_vm7, %v6343_v25, %v11313_v0 }
0x14dc   : > { %v6363_v32 = vpop.permute.xlu0 %6362  ;;  %6545 = vmatprep.mubr.f32.mxu0 %v6350_v7  ;;  %v11322_v39 = vunpack.i.l.bf16 %v11321_v5  ;;  %v11323_v54 = vunpack.i.h.bf16 %v11321_v5 }
0x14dd   : > { %v6386_v55 = vsel %vm416_vm0, %v14792_v18, %v6363_v32  ;;  %6546 = vmatmul.mubr.f32.gmra.mxu0 %v14531_v61  ;;  %v11988_v18 = vld [vmem:[#allocation2 + $0x82] sm:$0xff] }
0x14de   : > { %6550 = vmatprep.mubr.f32.mxu0 %v6351_v31  ;;  %9945 = vmatprep.mubr.msk.f32.mxu1 %vm1094_vm2, %v6386_v55  ;;  %v6304_v61 = vsel %vm416_vm0, %v11988_v18, %v11317_v23 }
0x14df   : > { %v11326_v49 = vpop.permute.xlu1 %11325  ;;  %v6312_v29 = vsel %vm1094_vm2, %v6304_v61, %v11322_v39 }
0x14e0   : > { %v6365_v58 = vpop.permute.xlu0 %6364  ;;  %v11327_v14 = vunpack.i.l.bf16 %v11326_v49  ;;  %v11328_v13 = vunpack.i.h.bf16 %v11326_v49 }
0x14e1   : > { %v6387_v44 = vsel %vm416_vm0, %v14812_v52, %v6365_v58  ;;  %6551 = vmatmul.mubr.f32.gmra.mxu0 %v14560_v62 }
0x14e2   : > { %9946 = vmatmul.mubr.msk.f32.vlgmr.msra.gmra.mxu1 %vm1094_vm2, %v6387_v44  ;;  %v6320_v45 = vsel %vm1103_vm3, %v6312_v29, %v11327_v14 }
0x14e3   : > { %v11336_v17 = vpop.permute.xlu1 %11335 }
0x14e4   : > { %v11331_v57 = vpop.permute.xlu0 %11330  ;;  %v11337_v50 = vunpack.i.l.bf16 %v11336_v17  ;;  %v11338_v33 = vunpack.i.h.bf16 %v11336_v17 }
0x14e5   : > { %v11332_v28 = vunpack.i.l.bf16 %v11331_v57  ;;  %v11333_v46 = vunpack.i.h.bf16 %v11331_v57 }
0x14e7   : > { %v6328_v10 = vsel %vm1112_vm4, %v6320_v45, %v11332_v28  ;;  %v11341_v51 = vpop.permute.xlu1 %11340 }
0x14e8   : > { %v6367_v52 = vpop.permute.xlu0 %6366  ;;  %v11342_v62 = vunpack.i.l.bf16 %v11341_v51  ;;  %v6336_v40 = vsel %vm1121_vm5, %v6328_v10, %v11337_v50  ;;  %v11343_v7 = vunpack.i.h.bf16 %v11341_v51 }
0x14e9   : > { %v6388_v15 = vsel %vm416_vm0, %v14819_v53, %v6367_v52  ;;  %v6313_v53 = vsel %vm1094_vm2, %v6305_v48, %v11323_v54 }
0x14ea   : > { %9948 = vmatprep.mubr.msk.f32.mxu1 %vm1094_vm2, %v6388_v15  ;;  %v6344_v63 = vsel %vm1130_vm6, %v6336_v40, %v11342_v62  ;;  %v6321_v47 = vsel %vm1103_vm3, %v6313_v53, %v11328_v13 }
0x14eb   : > { %v6287_v27 = vpop.permute.xlu1 %6286  ;;  %v6329_v3 = vsel %vm1112_vm4, %v6321_v47, %v11333_v46 }
0x14ec   : > { %v6369_v20 = vpop.permute.xlu0 %6368  ;;  %v6352_v0 = vsel %vm1139_vm7, %v6344_v63, %v6287_v27  ;;  %v6337_v55 = vsel %vm1121_vm5, %v6329_v3, %v11338_v33 }
0x14ed   : > { %v6389_v35 = vsel %vm416_vm0, %v14827_v59, %v6369_v20  ;;  %6555 = vmatprep.mubr.f32.mxu0 %v6352_v0 }
0x14ee   : > { %9949 = vmatmul.mubr.msk.f32.gmra.mxu1 %vm1094_vm2, %v6389_v35  ;;  %6556 = vmatmul.mubr.f32.gmra.mxu0 %v14589_v26  ;;  %v6345_v26 = vsel %vm1130_vm6, %v6337_v55, %v11343_v7 }
0x14ef   : > { %v6373_v5 = vpop.permute.xlu1 %6372 }
0x14f0   : > { %v6371_v32 = vpop.permute.xlu0 %6370  ;;  %v6391_v59 = vsel %vm416_vm0, %v14855_v41, %v6373_v5  ;;  %v6065_v41 = vld [vmem:[#allocation3 + $0x91] sm:$0xff] }
0x14f1   : > { %v6390_v25 = vsel %vm416_vm0, %v14841_v56, %v6371_v32 }
0x14f2   : > { %9951 = vmatprep.mubr.msk.f32.mxu1 %vm1094_vm2, %v6390_v25 }
0x14f3   : > { %9952 = vmatmul.mubr.msk.f32.gmra.mxu1 %vm1094_vm2, %v6391_v59  ;;  %v6375_v31 = vpop.permute.xlu1 %6374 }
0x14f4   : > { %v6289_v23 = vpop.permute.xlu0 %6288  ;;  %v6392_v49 = vsel %vm416_vm0, %v14864_v6, %v6375_v31 }
0x14f5   : > { %v6353_v58 = vsel %vm1139_vm7, %v6345_v26, %v6289_v23  ;;  %9954 = vmatprep.mubr.msk.f32.mxu1 %vm1094_vm2, %v6392_v49 }
0x14f6   : > { %6560 = vmatprep.mubr.f32.mxu0 %v6353_v58 }
0x14f7   : > { %6561 = vmatmul.mubr.f32.gmra.mxu0 %v14615_v37  ;;  %v9216_v37 = vld [vmem:[%s16086_s7] ss:$0 sm:$0xff] }
0x14f8   : > { %v6377_v56 = vpop.permute.xlu0 %6376 }
0x14f9   : > { %v6393_v39 = vsel %vm416_vm0, %v6065_v41, %v6377_v56 }
0x14fa   : > { %9955 = vmatmul.mubr.msk.f32.gmra.mxu1 %vm1094_vm2, %v6393_v39 }
0x1581   : > { %v9665_v44 = vpop.f32.mrf.mxu0 }
0x1583   : > { %v9666_v14 = vpop.f32.mrf.mxu0 }
0x1584   : > { %v9667_v50 = vadd.f32 %v9666_v14, %v9665_v44 }
0x1585   : > { %v9668_v18 = vpop.f32.mrf.mxu0 }
0x1586   : > { %v6528_v21 = vadd.f32 %v9667_v50, %v9216_v37 }
0x1587   : > { %v9669_v61 = vpop.f32.mrf.mxu0 }
0x1588   : > { %v9670_v51 = vadd.f32 %v9669_v61, %v9668_v18 }
0x158a   : > { %v6533_v40 = vadd.f32 %v9670_v51, %v9216_v37 }
0x158e   : > { %v9671_v17 = vpop.f32.mrf.mxu0 }
0x1590   : > { %v9672_v57 = vpop.f32.mrf.mxu0 }
0x1591   : > { %v9673_v15 = vadd.f32 %v9672_v57, %v9671_v17 }
0x1592   : > { %v9674_v6 = vpop.f32.mrf.mxu0 }
0x1593   : > { %v6538_v48 = vadd.f32 %v9673_v15, %v9216_v37 }
0x1594   : > { %v9675_v29 = vpop.f32.mrf.mxu0 }
0x1595   : > { %v9676_v54 = vadd.f32 %v9675_v29, %v9674_v6 }
0x1597   : > { %v6543_v2 = vadd.f32 %v9676_v54, %v9216_v37 }
0x159d   : > { %v9677_v28 = vpop.f32.mrf.mxu0 }
0x159f   : > { %v9678_v10 = vpop.f32.mrf.mxu0 }
0x15a0   : > { %v9679_v35 = vadd.f32 %v9678_v10, %v9677_v28 }
0x15a1   : > { %v9680_v62 = vpop.f32.mrf.mxu0 }
0x15a2   : > { %v9947_v45 = vpop.f32.mrf.mxu1  ;;  %v6548_v31 = vadd.f32 %v9679_v35, %v9216_v37 }
0x15a3   : > { %v6638_v63 = vadd.f32 %v9947_v45, %v6533_v40  ;;  %v9681_v46 = vpop.f32.mrf.mxu0 }
0x15a4   : > { %v6632_v52 = vpop.f32.mrf.mxu1  ;;  %v9682_v5 = vadd.f32 %v9681_v46, %v9680_v62 }
0x15a5   : > { %v6633_v13 = vadd.f32 %v6632_v52, %v6528_v21  ;;  %v6674_v47 = vsel %vm416_vm0, %v6638_v63, 0.0 }
0x15a6   : > { %v6553_v56 = vadd.f32 %v9682_v5, %v9216_v37 }
0x15a7   : > { %v6673_v20 = vsel %vm416_vm0, %v6633_v13, 0.0 }
0x15a8   : > { %v6675_v7 = vadd.f32 %v6674_v47, %v6673_v20 }
0x15ae   : > { %v9950_v27 = vpop.f32.mrf.mxu1  ;;  %v9683_v0 = vpop.f32.mrf.mxu0 }
0x15af   : > { %v6648_v33 = vadd.f32 %v9950_v27, %v6543_v2 }
0x15b0   : > { %v6642_v53 = vpop.f32.mrf.mxu1  ;;  %v9684_v55 = vpop.f32.mrf.mxu0 }
0x15b1   : > { %v6643_v3 = vadd.f32 %v6642_v53, %v6538_v48  ;;  %v6678_v23 = vsel %vm416_vm0, %v6648_v33, 0.0  ;;  %v9685_v41 = vadd.f32 %v9684_v55, %v9683_v0 }
0x15b3   : > { %v6676_v32 = vsel %vm416_vm0, %v6643_v3, 0.0  ;;  %v9953_v59 = vpop.f32.mrf.mxu1  ;;  %v6558_v6 = vadd.f32 %v9685_v41, %v9216_v37 }
0x15b4   : > { %v6677_v25 = vadd.f32 %v6676_v32, %v6675_v7  ;;  %v6658_v14 = vadd.f32 %v9953_v59, %v6553_v56 }
0x15b5   : > { %v6652_v26 = vpop.f32.mrf.mxu1 }
0x15b6   : > { %v6653_v49 = vadd.f32 %v6652_v26, %v6548_v31  ;;  %v6679_v58 = vadd.f32 %v6678_v23, %v6677_v25  ;;  %v6682_v45 = vsel %vm416_vm0, %v6658_v14, 0.0 }
0x15b7   : > { %v9686_v39 = vpop.f32.mrf.mxu0 }
0x15b8   : > { %v6680_v44 = vsel %vm416_vm0, %v6653_v49, 0.0 }
0x15b9   : > { %v9687_v18 = vpop.f32.mrf.mxu0  ;;  %v6681_v61 = vadd.f32 %v6680_v44, %v6679_v58 }
0x15ba   : > { %v9688_v17 = vadd.f32 %v9687_v18, %v9686_v39  ;;  %v9956_v57 = vpop.f32.mrf.mxu1 }
0x15bb   : > { %v6683_v51 = vadd.f32 %v6682_v45, %v6681_v61 }
0x15bc   : > { %v6563_v29 = vadd.f32 %v9688_v17, %v9216_v37  ;;  %v6662_v28 = vpop.f32.mrf.mxu1 }
0x15bd   : > { %v6663_v50 = vadd.f32 %v6662_v28, %v6558_v6 }
0x15be   : > { %v6668_v10 = vadd.f32 %v9956_v57, %v6563_v29 }
0x15bf   : > { %v6684_v52 = vsel %vm416_vm0, %v6663_v50, 0.0 }
0x15c0   : > { %v6686_v21 = vsel %vm416_vm0, %v6668_v10, 0.0  ;;  %v6685_v62 = vadd.f32 %v6684_v52, %v6683_v51 }
0x15c2   : > { %v6687_v15 = vadd.f32 %v6686_v21, %v6685_v62 }
0x15c4   : > { %6688 = vadd.xlane.f32.xlu1 %v6687_v15  ;;  %v9235_v15 = vld [vmem:[%s12279_s19 + $0xc0] sm:$0xff] }
0x15c5   : > { %6843 = vst.msk [vmem:[#allocation2 + $0x11] sm:$0xff] %vm416_vm0, %v9235_v15  ;;  %v7617_v15 = vld [vmem:[%s16081_s2 + $0x70] sm:$0xff] }
0x164d   : > { %v6689_v54 = vpop.xlane.xlu1 %6688 }
0x164e   : > { %v6690_v40 = vrot.slane %v6689_v54, 4 }
0x1650   : > { %v6691_v46 = vadd.f32 %v6690_v40, %v6689_v54  ;;  %v6875_v54 = vld [vmem:[#allocation2 + $0x2] sm:$0xff] }
0x1651   : > { %v6939_v40 = vld [vmem:[#allocation3 + $0x1] sm:$0xff] }
0x1652   : > { %v6692_v27 = vrot.slane %v6691_v46, 2 }
0x1654   : > { %v6693_v20 = vadd.f32 %v6692_v27, %v6691_v46  ;;  %v11349_v46 = vpack.i.bf16 %v6875_v54, %v6939_v40  ;;  %v6867_v27 = vld [vmem:[#allocation2 + $0x1] sm:$0xff] }
0x1655   : > { %v7632_v54 = vld [vmem:[%s16081_s2 + $0xe8] sm:$0xff] }
0x1656   : > { %v6694_v2 = vrot.slane %v6693_v20, 1  ;;  %11350 = vrot.lane.b32.xlu1 %v11349_v46, %s16128_s13  ;;  %v7616_v46 = vld [vmem:[%s16081_s2 + $0x68] sm:$0xff] }
0x1658   : > { %v6695_v37 = vadd.f32 %v6694_v2, %v6693_v20  ;;  %v6931_v20 = vld [vmem:[#allocation3] sm:$0xff]  ;;  %v9236_v2 = vld [vmem:[%s12279_s19 + $0xc8] sm:$0xff] }
0x1659   : > { %6844 = vst.msk [vmem:[#allocation2 + $0x21] sm:$0xff] %vm416_vm0, %v9236_v2  ;;  %v7631_v2 = vld [vmem:[%s16081_s2 + $0xe0] sm:$0xff] }
0x165a   : > { %10027 = vpush %v6695_v37  ;;  %v11344_v37 = vpack.i.bf16 %v6867_v27, %v6931_v20 }
0x168b   : > { %s10028_s17 = spop %10027 }
0x168c   : > { %s6699_s16 = smul.f32 0.0009765625, %s10028_s17 }
0x168e   : > { %v6700_v48 = vstv %s6699_s16 }
0x168f   : > { %v14982_v35 = vsub.f32 %v6633_v13, %v6700_v48  ;;  %v14984_v0 = vsub.f32 %v6638_v63, %v6700_v48  ;;  %v14986_v53 = vsub.f32 %v6643_v3, %v6700_v48  ;;  %v14988_v47 = vsub.f32 %v6648_v33, %v6700_v48 }
0x1690   : > { %v14990_v7 = vsub.f32 %v6653_v49, %v6700_v48  ;;  %v14998_v25 = vsub.f32 %v6658_v14, %v6700_v48  ;;  %v15004_v55 = vsub.f32 %v6663_v50, %v6700_v48  ;;  %v15009_v49 = vsub.f32 %v6668_v10, %v6700_v48  ;;  %v6947_v48 = vld [vmem:[#allocation3 + $0x2] sm:$0xff] }
0x1691   : > { %v6709_v5 = vmul.f32 %v14982_v35, %v14982_v35  ;;  %v6710_v32 = vmul.f32 %v14984_v0, %v14984_v0  ;;  %v6711_v59 = vmul.f32 %v14986_v53, %v14986_v53  ;;  %v6712_v13 = vmul.f32 %v14988_v47, %v14988_v47 }
0x1692   : > { %v6713_v31 = vmul.f32 %v14990_v7, %v14990_v7  ;;  %v6714_v58 = vmul.f32 %v14998_v25, %v14998_v25  ;;  %v6715_v39 = vmul.f32 %v15004_v55, %v15004_v55  ;;  %v6716_v18 = vmul.f32 %v15009_v49, %v15009_v49 }
0x1693   : > { %v6717_v63 = vsel %vm416_vm0, %v6709_v5, 0.0  ;;  %v6718_v33 = vsel %vm416_vm0, %v6710_v32, 0.0  ;;  %v6720_v23 = vsel %vm416_vm0, %v6711_v59, 0.0  ;;  %v6722_v41 = vsel %vm416_vm0, %v6712_v13, 0.0  ;;  %v6922_v5 = vld [vmem:[#allocation2 + $0x91] sm:$0xff] }
0x1694   : > { %v6719_v3 = vadd.f32 %v6718_v33, %v6717_v63  ;;  %v6724_v44 = vsel %vm416_vm0, %v6713_v31, 0.0  ;;  %v6726_v61 = vsel %vm416_vm0, %v6714_v58, 0.0  ;;  %v6728_v57 = vsel %vm416_vm0, %v6715_v39, 0.0  ;;  %v9237_v32 = vld [vmem:[%s12279_s19 + $0xd0] sm:$0xff]  ;;  %v9238_v13 = vld [vmem:[%s12279_s19 + $0xd8] sm:$0xff]  ;;  %v9240_v31 = vld [vmem:[%s12279_s19 + $0xe8] sm:$0xff] }
0x1695   : > { %v6730_v29 = vsel %vm416_vm0, %v6716_v18, 0.0  ;;  %v15028_v59 = vld [vmem:[#allocation2 + $0x10] sm:$0xff]  ;;  %6845 = vst.msk [vmem:[#allocation2 + $0x31] sm:$0xff] %vm416_vm0, %v9237_v32  ;;  %v11359_v33 = vpack.i.bf16 %v6922_v5, %v14878_v12  ;;  %6846 = vst.msk [vmem:[#allocation2 + $0x41] sm:$0xff] %vm416_vm0, %v9238_v13  ;;  %v7614_v5 = vld [vmem:[%s16081_s2 + $0x58] sm:$0xff] }
0x1696   : > { %v6721_v26 = vadd.f32 %v6720_v23, %v6719_v3  ;;  %v11354_v63 = vpack.i.bf16 %v15028_v59, %v6947_v48  ;;  %v9239_v3 = vld [vmem:[%s12279_s19 + $0xe0] sm:$0xff]  ;;  %v9241_v23 = vld [vmem:[%s12279_s19 + $0xf0] sm:$0xff]  ;;  %6848 = vst.msk [vmem:[#allocation2 + $0x61] sm:$0xff] %vm416_vm0, %v9240_v31  ;;  %v7630_v48 = vld [vmem:[%s16081_s2 + $0xd8] sm:$0xff]  ;;  %v6794_v31 = vsub.f32 1.0, %v14666_v43 }
0x1697   : > { %6847 = vst.msk [vmem:[#allocation2 + $0x51] sm:$0xff] %vm416_vm0, %v9239_v3  ;;  %6849 = vst.msk [vmem:[#allocation2 + $0x71] sm:$0xff] %vm416_vm0, %v9241_v23  ;;  %v7629_v32 = vld [vmem:[%s16081_s2 + $0xd0] sm:$0xff]  ;;  %v6793_v3 = vsub.f32 1.0, %v14664_v36  ;;  %v6795_v23 = vsub.f32 1.0, %v14669_v42 }
0x1698   : > { %v6723_v56 = vadd.f32 %v6722_v41, %v6721_v26  ;;  %v9242_v26 = vld [vmem:[%s12279_s19 + $0xf8] sm:$0xff]  ;;  %11355 = vrot.lane.b32.xlu1 %v11354_v63, %s16129_s23  ;;  %v9225_v41 = vld [vmem:[%s16087_s8] ss:$0 sm:$0xff]  ;;  %v7613_v13 = vld [vmem:[%s16081_s2 + $0x50] sm:$0xff] }
0x1699   : > { %6850 = vst.msk [vmem:[#allocation2 + $0x81] sm:$0xff] %vm416_vm0, %v9242_v26  ;;  %v7628_v63 = vld [vmem:[%s16081_s2 + $0xc8] sm:$0xff]  ;;  %v7627_v26 = vld [vmem:[%s16081_s2 + $0xc0] sm:$0xff] }
0x169a   : > { %v6725_v14 = vadd.f32 %v6724_v44, %v6723_v56 }
0x169c   : > { %v6727_v17 = vadd.f32 %v6726_v61, %v6725_v14  ;;  %v9226_v61 = vld [vmem:[%s16088_s9] ss:$0 sm:$0xff] }
0x169e   : > { %v6729_v6 = vadd.f32 %v6728_v57, %v6727_v17 }
0x16a0   : > { %v6731_v28 = vadd.f32 %v6730_v29, %v6729_v6 }
0x16a2   : > { %6732 = vadd.xlane.f32.xlu0 %v6731_v28 }
0x16b8   : > { %11345 = vrot.lane.b32.xlu0 %v11344_v37, %s16133_s1  ;;  %v7615_v37 = vld [vmem:[%s16081_s2 + $0x60] sm:$0xff] }
0x16bc   : > { %11360 = vrot.lane.b32.xlu0 %v11359_v33, %s16132_s0  ;;  %v7612_v33 = vld [vmem:[%s16081_s2 + $0x48] sm:$0xff] }
0x172b   : > { %v6733_v45 = vpop.xlane.xlu0 %6732 }
0x172c   : > { %v6734_v50 = vrot.slane %v6733_v45, 4 }
0x172e   : > { %v6735_v10 = vadd.f32 %v6734_v50, %v6733_v45 }
0x1730   : > { %v6736_v51 = vrot.slane %v6735_v10, 2 }
0x1732   : > { %v6737_v52 = vadd.f32 %v6736_v51, %v6735_v10 }
0x1734   : > { %v6738_v21 = vrot.slane %v6737_v52, 1 }
0x1736   : > { %v6739_v62 = vadd.f32 %v6738_v21, %v6737_v52 }
0x1738   : > { %10029 = vpush %v6739_v62  ;;  %v7633_v62 = vld [vmem:[%s16081_s2 + $0xf0] sm:$0xff] }
0x1769   : > { %s10030_s28 = spop %10029 }
0x176a   : > { %s6743_s24 = smul.f32 0.0009765625, %s10030_s28  ;;  %s12098_s28 = smov [#allocation4]  }
0x176c   : > { %s6744_s15 = sadd.f32 1e-05, %s6743_s24  ;;  %s12002_s24 = sshll.u32 %s12098_s28, 4  ;;  %s12003_s24 = int_to_ptr.vmem [resolvable:$false] %s12002_s24 }
0x176e   : > { %v6745_v12 = vstv %s6744_s15  ;;  %s12004_s15 = scalar_lea.vmem %s12003_s24, 8192 }
0x176f   : > { %11897 = vrsqrt.f32 %v6745_v12  ;;  %v7611_v12 = vld [vmem:[%s16081_s2 + $0x40] sm:$0xff] }
0x177c   : > { %v11898_v58 = vpop.eup %11897 }
0x177d   : > { %10031 = vpush %v11898_v58 }
0x17ae   : > { %s10032_s29 = spop %10031 }
0x17af   : > { %v6748_v56 = vstv %s10032_s29 }
0x17b0   : > { %v6749_v39 = vmul.f32 %v6748_v56, %v14982_v35  ;;  %v6750_v44 = vmul.f32 %v6748_v56, %v14984_v0  ;;  %v6751_v14 = vmul.f32 %v6748_v56, %v14986_v53  ;;  %v6752_v18 = vmul.f32 %v6748_v56, %v14988_v47  ;;  %v7634_v53 = vld [vmem:[%s16081_s2 + $0xf8] sm:$0xff] }
0x17b1   : > { %v6753_v17 = vmul.f32 %v6748_v56, %v14990_v7  ;;  %v6754_v57 = vmul.f32 %v6748_v56, %v14998_v25  ;;  %v6755_v6 = vmul.f32 %v6748_v56, %v15004_v55  ;;  %v6756_v29 = vmul.f32 %v6748_v56, %v15009_v49  ;;  %v7618_v47 = vld [vmem:[%s16081_s2 + $0x78] sm:$0xff]  ;;  %9701 = vmatprep.subr.mxu1 %v7634_v53 }
0x17b2   : > { %v6763_v28 = vmul.f32 %v9225_v41, %v6749_v39  ;;  %v6764_v35 = vmul.f32 %v9225_v41, %v6750_v44  ;;  %v6765_v45 = vmul.f32 %v9225_v41, %v6751_v14  ;;  %v6766_v0 = vmul.f32 %v9225_v41, %v6752_v18  ;;  %9702 = vmatpush3.msra.mxu1 %v7618_v47 }
0x17b3   : > { %v6767_v50 = vmul.f32 %v9225_v41, %v6753_v17  ;;  %v6768_v7 = vmul.f32 %v9225_v41, %v6754_v57  ;;  %v6769_v25 = vmul.f32 %v9225_v41, %v6755_v6  ;;  %v6770_v49 = vmul.f32 %v9225_v41, %v6756_v29  ;;  %9703 = vmatprep.subr.mxu1 %v7633_v62  ;;  %v7607_v62 = vld [vmem:[%s16081_s2 + $0x20] sm:$0xff] }
0x17b4   : > { %v6777_v10 = vadd.f32 %v9226_v61, %v6763_v28  ;;  %v6778_v55 = vadd.f32 %v9226_v61, %v6764_v35  ;;  %v6779_v51 = vadd.f32 %v9226_v61, %v6765_v45  ;;  %v6780_v52 = vadd.f32 %v9226_v61, %v6766_v0  ;;  %9704 = vmatpush3.msra.mxu1 %v7617_v15 }
0x17b5   : > { %v6781_v21 = vadd.f32 %v9226_v61, %v6767_v50  ;;  %v6782_v40 = vadd.f32 %v9226_v61, %v6768_v7  ;;  %v6783_v27 = vadd.f32 %v9226_v61, %v6769_v25  ;;  %v6784_v20 = vadd.f32 %v9226_v61, %v6770_v49  ;;  %9705 = vmatprep.subr.mxu1 %v7632_v54  ;;  %v7609_v7 = vld [vmem:[%s16081_s2 + $0x30] sm:$0xff] }
0x17b6   : > { %11899 = vtanh.f32 %v6777_v10  ;;  %9706 = vmatpush3.msra.mxu1 %v7616_v46  ;;  %v6796_v41 = vsub.f32 1.0, %v14672_v11  ;;  %v6797_v39 = vsub.f32 1.0, %v14677_v30  ;;  %v6801_v44 = vmul.f32 %v6793_v3, %v14179_v8  ;;  %v6891_v54 = vld [vmem:[#allocation2 + $0x11] sm:$0xff] }
0x17b7   : > { %11901 = vtanh.f32 %v6778_v55  ;;  %9707 = vmatprep.subr.mxu1 %v7631_v2  ;;  %v6798_v61 = vsub.f32 1.0, %v14680_v16  ;;  %v6802_v17 = vmul.f32 %v6794_v31, %v14184_v22  ;;  %v6799_v29 = vsub.f32 1.0, %v14685_v4  ;;  %v7605_v31 = vld [vmem:[%s16081_s2 + $0x10] sm:$0xff] }
0x17b8   : > { %11903 = vtanh.f32 %v6779_v51  ;;  %9708 = vmatpush3.msra.mxu1 %v7615_v37  ;;  %v6803_v28 = vmul.f32 %v6795_v23, %v14197_v9  ;;  %v6804_v0 = vmul.f32 %v6796_v41, %v14209_v60  ;;  %v7610_v9 = vld [vmem:[%s16081_s2 + $0x38] sm:$0xff]  ;;  %v6805_v60 = vmul.f32 %v6797_v39, %v14218_v24  ;;  %v15214_v37 = vld [vmem:[#allocation2 + $0x20] sm:$0xff]  ;;  %v7620_v23 = vld [vmem:[%s16081_s2 + $0x88] sm:$0xff] }
0x17b9   : > { %11905 = vtanh.f32 %v6780_v52  ;;  %9709 = vmatprep.subr.mxu1 %v7630_v48  ;;  %v6806_v10 = vmul.f32 %v6798_v61, %v14227_v34  ;;  %v6807_v51 = vmul.f32 %v6799_v29, %v14243_v19  ;;  %v7624_v19 = vld [vmem:[%s16081_s2 + $0xa8] sm:$0xff]  ;;  %v7603_v39 = vld [vmem:[%s16081_s2] sm:$0xff]  ;;  %v15265_v29 = vld [vmem:[#allocation2 + $0x32] sm:$0xff] }
0x17ba   : > { %11907 = vtanh.f32 %v6781_v21  ;;  %9710 = vmatpush3.msra.mxu1 %v7614_v5  ;;  %v7622_v5 = vld [vmem:[%s16081_s2 + $0x98] sm:$0xff] }
0x17bb   : > { %11909 = vtanh.f32 %v6782_v40  ;;  %9711 = vmatprep.subr.mxu1 %v7629_v32  ;;  %v7606_v32 = vld [vmem:[%s16081_s2 + $0x18] sm:$0xff] }
0x17bc   : > { %11911 = vtanh.f32 %v6783_v27  ;;  %9712 = vmatpush3.msra.mxu1 %v7613_v13  ;;  %v6899_v27 = vld [vmem:[#allocation2 + $0x12] sm:$0xff] }
0x17bd   : > { %11913 = vtanh.f32 %v6784_v20  ;;  %9713 = vmatprep.subr.mxu1 %v7628_v63  ;;  %v7621_v63 = vld [vmem:[%s16081_s2 + $0x90] sm:$0xff] }
0x17be   : > { %9714 = vmatpush3.msra.mxu1 %v7612_v33  ;;  %v6915_v33 = vld [vmem:[#allocation2 + $0x21] sm:$0xff] }
0x17bf   : > { %9715 = vmatprep.subr.mxu1 %v7627_v26 }
0x17c0   : > { %9716 = vmatpush3.msra.mxu1 %v7611_v12  ;;  %v7604_v12 = vld [vmem:[%s16081_s2 + $0x8] sm:$0xff] }
0x17c3   : > { %v11900_v58 = vpop.eup %11899 }
0x17c4   : > { %v11902_v56 = vpop.eup %11901  ;;  %v6809_v14 = vmul.f32 %v11900_v58, %v14664_v36  ;;  %v6800_v36 = vsub.f32 1.0, %v14688_v1  ;;  %v15239_v58 = vld [vmem:[#allocation2 + $0x22] sm:$0xff] }
0x17c5   : > { %v11904_v18 = vpop.eup %11903  ;;  %v6810_v57 = vmul.f32 %v11902_v56, %v14666_v43  ;;  %v7626_v43 = vld [vmem:[%s16081_s2 + $0xb8] sm:$0xff]  ;;  %v7619_v56 = vld [vmem:[%s16081_s2 + $0x80] sm:$0xff] }
0x17c6   : > { %v11906_v6 = vpop.eup %11905  ;;  %v6811_v35 = vmul.f32 %v11904_v18, %v14669_v42  ;;  %v15121_v45 = vadd.f32 %v6809_v14, %v6801_v44  ;;  %v7625_v42 = vld [vmem:[%s16081_s2 + $0xb0] sm:$0xff]  ;;  %9717 = vmatprep.subr.mxu1 %v7626_v43  ;;  %v6808_v34 = vmul.f32 %v6800_v36, %v14253_v38  ;;  %v7608_v38 = vld [vmem:[%s16081_s2 + $0x28] sm:$0xff] }
0x17c7   : > { %v11908_v8 = vpop.eup %11907  ;;  %v6812_v53 = vmul.f32 %v11906_v6, %v14672_v11  ;;  %v15126_v22 = vadd.f32 %v6810_v57, %v6802_v17  ;;  %9718 = vmatpush3.msra.mxu1 %v7610_v9  ;;  %v15253_v14 = vld [vmem:[#allocation2 + $0x30] sm:$0xff] }
0x17c8   : > { %v11910_v47 = vpop.eup %11909  ;;  %v6813_v11 = vmul.f32 %v11908_v8, %v14677_v30  ;;  %v15139_v50 = vadd.f32 %v6811_v35, %v6803_v28  ;;  %9227 = vst.msk [vmem:[%s13255_s12 + $0x80] sm:$0xff] %vm416_vm0, %v15121_v45  ;;  %6851 = vst.msk [vmem:[#allocation3 + $0x11] sm:$0xff] %vm416_vm0, %v15121_v45  ;;  %9719 = vmatprep.subr.mxu1 %v7625_v42  ;;  %v6916_v17 = vld [vmem:[#allocation2 + $0x31] sm:$0xff]  ;;  %v15273_v8 = vld [vmem:[#allocation2 + $0x40] sm:$0xff] }
0x17c9   : > { %v11912_v25 = vpop.eup %11911  ;;  %v6814_v24 = vmul.f32 %v11910_v47, %v14680_v16  ;;  %v15151_v30 = vadd.f32 %v6812_v53, %v6804_v0  ;;  %9228 = vst.msk [vmem:[%s13255_s12 + $0x88] sm:$0xff] %vm416_vm0, %v15126_v22  ;;  %6852 = vst.msk [vmem:[#allocation3 + $0x21] sm:$0xff] %vm416_vm0, %v15126_v22  ;;  %9720 = vmatpush3.msra.mxu1 %v7609_v7  ;;  %v6917_v53 = vld [vmem:[#allocation2 + $0x41] sm:$0xff] }
0x17ca   : > { %v11914_v55 = vpop.eup %11913  ;;  %v6815_v49 = vmul.f32 %v11912_v25, %v14685_v4  ;;  %v15160_v52 = vadd.f32 %v6813_v11, %v6805_v60  ;;  %9229 = vst.msk [vmem:[%s13255_s12 + $0x90] sm:$0xff] %vm416_vm0, %v15139_v50  ;;  %6853 = vst.msk [vmem:[#allocation3 + $0x31] sm:$0xff] %vm416_vm0, %v15139_v50  ;;  %v7623_v4 = vld [vmem:[%s16081_s2 + $0xa0] sm:$0xff]  ;;  %9721 = vmatprep.subr.mxu1 %v7624_v19  ;;  %v15291_v11 = vld [vmem:[#allocation2 + $0x50] sm:$0xff] }
0x17cb   : > { %v6816_v16 = vmul.f32 %v11914_v55, %v14688_v1  ;;  %v15169_v21 = vadd.f32 %v6814_v24, %v6806_v10  ;;  %9230 = vst.msk [vmem:[%s13255_s12 + $0x98] sm:$0xff] %vm416_vm0, %v15151_v30  ;;  %6854 = vst.msk [vmem:[#allocation3 + $0x41] sm:$0xff] %vm416_vm0, %v15151_v30  ;;  %9722 = vmatpush3.msra.mxu1 %v7608_v38  ;;  %v15283_v42 = vld [vmem:[#allocation2 + $0x42] sm:$0xff]  ;;  %v6918_v10 = vld [vmem:[#allocation2 + $0x51] sm:$0xff] }
0x17cc   : > { %v15185_v1 = vadd.f32 %v6815_v49, %v6807_v51  ;;  %9231 = vst.msk [vmem:[%s13255_s12 + $0xa0] sm:$0xff] %vm416_vm0, %v15160_v52  ;;  %6855 = vst.msk [vmem:[#allocation3 + $0x51] sm:$0xff] %vm416_vm0, %v15160_v52  ;;  %9723 = vmatprep.subr.mxu1 %v7623_v4  ;;  %v15303_v51 = vld [vmem:[#allocation2 + $0x52] sm:$0xff] }
0x17cd   : > { %v15195_v15 = vadd.f32 %v6816_v16, %v6808_v34  ;;  %9232 = vst.msk [vmem:[%s13255_s12 + $0xa8] sm:$0xff] %vm416_vm0, %v15169_v21  ;;  %6856 = vst.msk [vmem:[#allocation3 + $0x61] sm:$0xff] %vm416_vm0, %v15169_v21  ;;  %9724 = vmatpush3.msra.mxu1 %v7607_v62  ;;  %v15311_v16 = vld [vmem:[#allocation2 + $0x60] sm:$0xff]  ;;  %v7638_v38 = vld [vmem:[%s16081_s2 + $0x118] sm:$0xff] }
0x17ce   : > { %9233 = vst.msk [vmem:[%s13255_s12 + $0xb0] sm:$0xff] %vm416_vm0, %v15185_v1  ;;  %6857 = vst.msk [vmem:[#allocation3 + $0x71] sm:$0xff] %vm416_vm0, %v15185_v1  ;;  %9725 = vmatprep.subr.mxu1 %v7622_v5  ;;  %9957 = vmatprep.subr.mxu0 %v7638_v38  ;;  %v7637_v62 = vld [vmem:[%s16081_s2 + $0x110] sm:$0xff] }
0x17cf   : > { %9234 = vst.msk [vmem:[%s13255_s12 + $0xb8] sm:$0xff] %vm416_vm0, %v15195_v15  ;;  %6858 = vst.msk [vmem:[#allocation3 + $0x81] sm:$0xff] %vm416_vm0, %v15195_v15  ;;  %v6955_v40 = vld [vmem:[#allocation3 + $0x10] sm:$0xff]  ;;  %9726 = vmatpush3.msra.mxu1 %v7606_v32  ;;  %9958 = vmatpush3.msra.mxu0 %v7638_v38 }
0x17d0   : > { %v11364_v46 = vpack.i.bf16 %v6891_v54, %v6955_v40  ;;  %v6963_v20 = vld [vmem:[#allocation3 + $0x11] sm:$0xff]  ;;  %v6979_v3 = vld [vmem:[#allocation3 + $0x20] sm:$0xff]  ;;  %9727 = vmatprep.subr.mxu1 %v7621_v63  ;;  %9959 = vmatprep.subr.mxu0 %v7637_v62 }
0x17d1   : > { %v11374_v2 = vpack.i.bf16 %v6899_v27, %v6963_v20  ;;  %v6971_v48 = vld [vmem:[#allocation3 + $0x12] sm:$0xff]  ;;  %v11394_v26 = vpack.i.bf16 %v6915_v33, %v6979_v3  ;;  %9728 = vmatpush3.msra.mxu1 %v7605_v31  ;;  %v15241_v41 = vld [vmem:[#allocation3 + $0x21] sm:$0xff]  ;;  %9960 = vmatpush3.msra.mxu0 %v7637_v62 }
0x17d2   : > { %11365 = vrot.lane.b32.xlu0 %v11364_v46, %s16130_s25  ;;  %11370 = vrot.lane.b32.xlu1 %v11364_v46, %s16133_s1  ;;  %v11384_v13 = vpack.i.bf16 %v15214_v37, %v6971_v48  ;;  %v11409_v44 = vpack.i.bf16 %v15239_v58, %v15241_v41  ;;  %v15255_v18 = vld [vmem:[#allocation3 + $0x22] sm:$0xff]  ;;  %v6980_v57 = vld [vmem:[#allocation3 + $0x30] sm:$0xff] }
0x17d3   : > { %9729 = vmatprep.subr.mxu1 %v7620_v23  ;;  %v11419_v61 = vpack.i.bf16 %v15253_v14, %v15255_v18  ;;  %v11429_v6 = vpack.i.bf16 %v6916_v17, %v6980_v57  ;;  %v15267_v28 = vld [vmem:[#allocation3 + $0x31] sm:$0xff]  ;;  %v6981_v43 = vld [vmem:[#allocation3 + $0x40] sm:$0xff]  ;;  %v7636_v46 = vld [vmem:[%s16081_s2 + $0x108] sm:$0xff]  ;;  %v11346_v57 = vpop.permute.xlu0 %11345 }
0x17d4   : > { %9730 = vmatpush3.msra.mxu1 %v7604_v12  ;;  %v11444_v35 = vpack.i.bf16 %v15265_v29, %v15267_v28  ;;  %v15275_v36 = vld [vmem:[#allocation3 + $0x32] sm:$0xff]  ;;  %v11464_v9 = vpack.i.bf16 %v6917_v53, %v6981_v43  ;;  %v15285_v47 = vld [vmem:[#allocation3 + $0x41] sm:$0xff]  ;;  %9961 = vmatprep.subr.mxu0 %v7636_v46 }
0x17d5   : > { %9731 = vmatprep.subr.mxu1 %v7619_v56  ;;  %v11454_v0 = vpack.i.bf16 %v15273_v8, %v15275_v36  ;;  %v11479_v60 = vpack.i.bf16 %v15283_v42, %v15285_v47  ;;  %v15293_v7 = vld [vmem:[#allocation3 + $0x42] sm:$0xff]  ;;  %v6982_v24 = vld [vmem:[#allocation3 + $0x50] sm:$0xff]  ;;  %9962 = vmatpush3.msra.mxu0 %v7636_v46 }
0x17d6   : > { %11375 = vrot.lane.b32.xlu0 %v11374_v2, %s16131_s30  ;;  %11380 = vrot.lane.b32.xlu1 %v11374_v2, %s16128_s13  ;;  %v11489_v25 = vpack.i.bf16 %v15291_v11, %v15293_v7  ;;  %v11499_v55 = vpack.i.bf16 %v6918_v10, %v6982_v24  ;;  %v15305_v49 = vld [vmem:[#allocation3 + $0x51] sm:$0xff]  ;;  %v6919_v54 = vld [vmem:[#allocation2 + $0x61] sm:$0xff] }
0x17d7   : > { %9732 = vmatpush3.msra.mxu1 %v7603_v39  ;;  %v11514_v34 = vpack.i.bf16 %v15303_v51, %v15305_v49  ;;  %v6975_v19 = vld [vmem:[#allocation3 + $0x52] sm:$0xff]  ;;  %v6983_v40 = vld [vmem:[#allocation3 + $0x60] sm:$0xff] }
0x17d8   : > { %v11524_v4 = vpack.i.bf16 %v15311_v16, %v6975_v19  ;;  %v11534_v27 = vpack.i.bf16 %v6919_v54, %v6983_v40  ;;  %v15327_v20 = vld [vmem:[#allocation2 + $0x62] sm:$0xff]  ;;  %v15340_v32 = vld [vmem:[#allocation2 + $0x70] sm:$0xff] }
0x17d9   : > { %v15329_v2 = vld [vmem:[#allocation3 + $0x61] sm:$0xff]  ;;  %v6920_v33 = vld [vmem:[#allocation2 + $0x71] sm:$0xff] }
0x17da   : > { %11385 = vrot.lane.b32.xlu0 %v11384_v13, %s16127_s26  ;;  %11390 = vrot.lane.b32.xlu1 %v11384_v13, %s16129_s23  ;;  %v7635_v48 = vld [vmem:[%s16081_s2 + $0x100] sm:$0xff]  ;;  %v11549_v5 = vpack.i.bf16 %v15327_v20, %v15329_v2  ;;  %v6984_v3 = vld [vmem:[#allocation3 + $0x70] sm:$0xff] }
0x17db   : > { %9963 = vmatprep.subr.mxu0 %v7635_v48  ;;  %v6976_v13 = vld [vmem:[#allocation3 + $0x62] sm:$0xff]  ;;  %v11569_v31 = vpack.i.bf16 %v6920_v33, %v6984_v3  ;;  %v15351_v23 = vld [vmem:[#allocation2 + $0x72] sm:$0xff] }
0x17dc   : > { %9964 = vmatpush3.msra.mxu0 %v7635_v48  ;;  %v11559_v63 = vpack.i.bf16 %v15340_v32, %v6976_v13  ;;  %v6913_v56 = vld [vmem:[#allocation2 + $0x80] sm:$0xff]  ;;  %v6977_v39 = vld [vmem:[#allocation3 + $0x72] sm:$0xff] }
0x17dd   : > { %v6914_v53 = vld [vmem:[#allocation2 + $0x90] sm:$0xff]  ;;  %v6978_v43 = vld [vmem:[#allocation3 + $0x82] sm:$0xff] }
0x17de   : > { %11395 = vrot.lane.b32.xlu0 %v11394_v26, %s16132_s0  ;;  %11400 = vrot.lane.b32.xlu1 %v11394_v26, %s16130_s25 }
0x17e2   : > { %11405 = vrot.lane.b32.xlu0 %v11394_v26, %s16133_s1  ;;  %11410 = vrot.lane.b32.xlu1 %v11409_v44, %s16131_s30  ;;  %v15353_v26 = vld [vmem:[#allocation3 + $0x71] sm:$0xff] }
0x17e3   : > { %v11584_v12 = vpack.i.bf16 %v15351_v23, %v15353_v26 }
0x17e6   : > { %11415 = vrot.lane.b32.xlu0 %v11409_v44, %s16128_s13  ;;  %11420 = vrot.lane.b32.xlu1 %v11419_v61, %s16127_s26  ;;  %v11594_v44 = vpack.i.bf16 %v6913_v56, %v6977_v39 }
0x17ea   : > { %11425 = vrot.lane.b32.xlu0 %v11419_v61, %s16129_s23  ;;  %11430 = vrot.lane.b32.xlu1 %v11429_v6, %s16132_s0  ;;  %v6985_v61 = vld [vmem:[#allocation3 + $0x80] sm:$0xff] }
0x17ee   : > { %11435 = vrot.lane.b32.xlu0 %v11429_v6, %s16130_s25  ;;  %11440 = vrot.lane.b32.xlu1 %v11429_v6, %s16133_s1  ;;  %v15366_v6 = vld [vmem:[#allocation2 + $0x82] sm:$0xff] }
0x17f2   : > { %11445 = vrot.lane.b32.xlu0 %v11444_v35, %s16131_s30  ;;  %11450 = vrot.lane.b32.xlu1 %v11444_v35, %s16128_s13  ;;  %v15368_v35 = vld [vmem:[#allocation3 + $0x81] sm:$0xff] }
0x17f6   : > { %11455 = vrot.lane.b32.xlu0 %v11454_v0, %s16127_s26  ;;  %11460 = vrot.lane.b32.xlu1 %v11454_v0, %s16129_s23  ;;  %v11614_v0 = vpack.i.bf16 %v15366_v6, %v15368_v35 }
0x17fa   : > { %11465 = vrot.lane.b32.xlu0 %v11464_v9, %s16132_s0  ;;  %11470 = vrot.lane.b32.xlu1 %v11464_v9, %s16130_s25 }
0x17fe   : > { %11475 = vrot.lane.b32.xlu0 %v11464_v9, %s16133_s1  ;;  %11480 = vrot.lane.b32.xlu1 %v11479_v60, %s16131_s30  ;;  %v15376_v9 = vpop.permute.xlu0 %11360 }
0x1802   : > { %11485 = vrot.lane.b32.xlu0 %v11479_v60, %s16128_s13  ;;  %11490 = vrot.lane.b32.xlu1 %v11489_v25, %s16127_s26 }
0x1806   : > { %11495 = vrot.lane.b32.xlu0 %v11489_v25, %s16129_s23  ;;  %11500 = vrot.lane.b32.xlu1 %v11499_v55, %s16132_s0  ;;  %v7002_v25 = vld [vmem:[#allocation3 + $0x92] sm:$0xff] }
0x180a   : > { %11505 = vrot.lane.b32.xlu0 %v11499_v55, %s16130_s25  ;;  %11510 = vrot.lane.b32.xlu1 %v11499_v55, %s16133_s1  ;;  %v11348_v55 = vunpack.i.h.bf16 %v11346_v57 }
0x180e   : > { %11515 = vrot.lane.b32.xlu0 %v11514_v34, %s16131_s30  ;;  %11520 = vrot.lane.b32.xlu1 %v11514_v34, %s16128_s13  ;;  %v11347_v34 = vunpack.i.l.bf16 %v11346_v57 }
0x1810   : > { %v7507_v46 = vsel %vm416_vm0, %v15239_v58, %v11347_v34 }
0x1812   : > { %11525 = vrot.lane.b32.xlu0 %v11524_v4, %s16127_s26  ;;  %11530 = vrot.lane.b32.xlu1 %v11524_v4, %s16129_s23 }
0x1816   : > { %11535 = vrot.lane.b32.xlu0 %v11534_v27, %s16132_s0  ;;  %11540 = vrot.lane.b32.xlu1 %v11534_v27, %s16130_s25 }
0x181a   : > { %11545 = vrot.lane.b32.xlu0 %v11534_v27, %s16133_s1  ;;  %11550 = vrot.lane.b32.xlu1 %v11549_v5, %s16131_s30 }
0x181e   : > { %7571 = vrot.lane.b32.xlu0 %v15255_v18, %s16133_s1  ;;  %11555 = vrot.lane.b32.xlu1 %v11549_v5, %s16128_s13  ;;  %v6921_v18 = vld [vmem:[#allocation2 + $0x81] sm:$0xff] }
0x181f   : > { %v11604_v17 = vpack.i.bf16 %v6921_v18, %v6985_v61 }
0x1822   : > { %11560 = vrot.lane.b32.xlu0 %v11559_v63, %s16127_s26  ;;  %7573 = vrot.lane.b32.xlu1 %v15275_v36, %s16133_s1  ;;  %v11351_v36 = vpop.permute.xlu1 %11350 }
0x1823   : > { %v11353_v38 = vunpack.i.h.bf16 %v11351_v36  ;;  %v11352_v4 = vunpack.i.l.bf16 %v11351_v36 }
0x1826   : > { %11565 = vrot.lane.b32.xlu0 %v11559_v63, %s16129_s23  ;;  %11570 = vrot.lane.b32.xlu1 %v11569_v31, %s16132_s0  ;;  %v11356_v60 = vpop.permute.xlu1 %11355 }
0x1827   : > { %v11358_v27 = vunpack.i.h.bf16 %v11356_v60  ;;  %v11357_v48 = vunpack.i.l.bf16 %v11356_v60 }
0x182a   : > { %11575 = vrot.lane.b32.xlu0 %v11569_v31, %s16130_s25  ;;  %11580 = vrot.lane.b32.xlu1 %v11569_v31, %s16133_s1 }
0x182e   : > { %11585 = vrot.lane.b32.xlu0 %v11584_v12, %s16131_s30  ;;  %7575 = vrot.lane.b32.xlu1 %v15293_v7, %s16133_s1  ;;  %v11619_v7 = vpack.i.bf16 %v6914_v53, %v6978_v43 }
0x1832   : > { %11590 = vrot.lane.b32.xlu0 %v11584_v12, %s16128_s13  ;;  %11595 = vrot.lane.b32.xlu1 %v11594_v44, %s16127_s26 }
0x1836   : > { %7577 = vrot.lane.b32.xlu0 %v6975_v19, %s16133_s1  ;;  %11600 = vrot.lane.b32.xlu1 %v11594_v44, %s16129_s23  ;;  %v6859_v19 = vld [vmem:[#allocation2] sm:$0xff] }
0x1837   : > { %v7451_v40 = vsel %vm416_vm0, %v6859_v19, %v11348_v55 }
0x1838   : > { %v7459_v5 = vsel %vm1094_vm2, %v7451_v40, %v11353_v38 }
0x1839   : > { %v7467_v18 = vsel %vm1103_vm3, %v7459_v5, %v11358_v27 }
0x183a   : > { %11605 = vrot.lane.b32.xlu0 %v11604_v17, %s16132_s0  ;;  %11610 = vrot.lane.b32.xlu1 %v11604_v17, %s16130_s25 }
0x183e   : > { %11615 = vrot.lane.b32.xlu0 %v11614_v0, %s16131_s30  ;;  %7579 = vrot.lane.b32.xlu1 %v6976_v13, %s16133_s1  ;;  %v7515_v13 = vsel %vm1094_vm2, %v7507_v46, %v11352_v4 }
0x183f   : > { %v7523_v61 = vsel %vm1103_vm3, %v7515_v13, %v11357_v48 }
0x1842   : > { %11620 = vrot.lane.b32.xlu0 %v11619_v7, %s16127_s26  ;;  %7581 = vrot.lane.b32.xlu1 %v6977_v39, %s16133_s1 }
0x1844   : > { %v11366_v10 = vpop.permute.xlu0 %11365  ;;  %v11371_v24 = vpop.permute.xlu1 %11370 }
0x1845   : > { %v11368_v63 = vunpack.i.h.bf16 %v11366_v10  ;;  %v11367_v33 = vunpack.i.l.bf16 %v11366_v10  ;;  %v11373_v38 = vunpack.i.h.bf16 %v11371_v24  ;;  %v11372_v4 = vunpack.i.l.bf16 %v11371_v24 }
0x1846   : > { %7583 = vrot.lane.b32.xlu1 %v6978_v43, %s16133_s1  ;;  %7585 = vrot.lane.b32.xlu0 %v7002_v25, %s16133_s1 }
0x1847   : > { %v7475_v58 = vsel %vm1112_vm4, %v7467_v18, %v11368_v63  ;;  %v7531_v17 = vsel %vm1112_vm4, %v7523_v61, %v11367_v33  ;;  %v7452_v33 = vsel %vm416_vm0, %v15028_v59, %v11373_v38 }
0x1848   : > { %v11376_v62 = vpop.permute.xlu0 %11375  ;;  %v11381_v54 = vpop.permute.xlu1 %11380 }
0x1849   : > { %v11378_v12 = vunpack.i.h.bf16 %v11376_v62  ;;  %v11377_v56 = vunpack.i.l.bf16 %v11376_v62  ;;  %v11383_v62 = vunpack.i.h.bf16 %v11381_v54  ;;  %v11382_v40 = vunpack.i.l.bf16 %v11381_v54 }
0x184b   : > { %v7483_v0 = vsel %vm1121_vm5, %v7475_v58, %v11378_v12  ;;  %v7539_v60 = vsel %vm1121_vm5, %v7531_v17, %v11377_v56  ;;  %v7460_v24 = vsel %vm1094_vm2, %v7452_v33, %v11383_v62 }
0x184c   : > { %v11386_v3 = vpop.permute.xlu0 %11385  ;;  %v11391_v31 = vpop.permute.xlu1 %11390 }
0x184d   : > { %v11388_v39 = vunpack.i.h.bf16 %v11386_v3  ;;  %v11387_v44 = vunpack.i.l.bf16 %v11386_v3  ;;  %v11393_v46 = vunpack.i.h.bf16 %v11391_v31  ;;  %v11392_v27 = vunpack.i.l.bf16 %v11391_v31 }
0x184e   : > { %v7508_v3 = vsel %vm416_vm0, %v15265_v29, %v11372_v4 }
0x184f   : > { %v7547_v7 = vsel %vm1130_vm6, %v7539_v60, %v11387_v44  ;;  %v7491_v25 = vsel %vm1130_vm6, %v7483_v0, %v11388_v39  ;;  %v7516_v39 = vsel %vm1094_vm2, %v7508_v3, %v11382_v40  ;;  %v7468_v31 = vsel %vm1103_vm3, %v7460_v24, %v11393_v46 }
0x1850   : > { %v11396_v57 = vpop.permute.xlu0 %11395  ;;  %v11401_v36 = vpop.permute.xlu1 %11400  ;;  %v7524_v18 = vsel %vm1103_vm3, %v7516_v39, %v11392_v27 }
0x1851   : > { %v11398_v53 = vunpack.i.h.bf16 %v11396_v57  ;;  %v11397_v43 = vunpack.i.l.bf16 %v11396_v57  ;;  %v11403_v48 = vunpack.i.h.bf16 %v11401_v36  ;;  %v11402_v5 = vunpack.i.l.bf16 %v11401_v36 }
0x1853   : > { %v7555_v10 = vsel %vm1139_vm7, %v7547_v7, %v11397_v43  ;;  %v15397_v55 = vsel %vm1139_vm7, %v7491_v25, %v11398_v53  ;;  %v7476_v61 = vsel %vm1112_vm4, %v7468_v31, %v11403_v48  ;;  %v7532_v58 = vsel %vm1112_vm4, %v7524_v18, %v11402_v5 }
0x1854   : > { %v11406_v34 = vpop.permute.xlu0 %11405  ;;  %v11411_v19 = vpop.permute.xlu1 %11410  ;;  %7734 = vmatprep.mubr.f32.mxu1 %v7555_v10 }
0x1855   : > { %7735 = vmatmul.mubr.f32.vlgmr.msra.gmra.mxu1 %v15397_v55  ;;  %v11413_v12 = vunpack.i.h.bf16 %v11411_v19  ;;  %v11412_v56 = vunpack.i.l.bf16 %v11411_v19  ;;  %v11408_v4 = vunpack.i.h.bf16 %v11406_v34  ;;  %v11407_v62 = vunpack.i.l.bf16 %v11406_v34 }
0x1857   : > { %v7540_v36 = vsel %vm1121_vm5, %v7532_v58, %v11412_v56  ;;  %v7484_v0 = vsel %vm1121_vm5, %v7476_v61, %v11413_v12  ;;  %v7453_v12 = vsel %vm416_vm0, %v15214_v37, %v11408_v4  ;;  %v7509_v56 = vsel %vm416_vm0, %v15283_v42, %v11407_v62 }
0x1858   : > { %v11416_v13 = vpop.permute.xlu0 %11415  ;;  %v11421_v63 = vpop.permute.xlu1 %11420 }
0x1859   : > { %v11423_v44 = vunpack.i.h.bf16 %v11421_v63  ;;  %v11422_v54 = vunpack.i.l.bf16 %v11421_v63  ;;  %v11418_v40 = vunpack.i.h.bf16 %v11416_v13  ;;  %v11417_v46 = vunpack.i.l.bf16 %v11416_v13 }
0x185b   : > { %v7548_v53 = vsel %vm1130_vm6, %v7540_v36, %v11422_v54  ;;  %v7492_v43 = vsel %vm1130_vm6, %v7484_v0, %v11423_v44  ;;  %v7461_v44 = vsel %vm1094_vm2, %v7453_v12, %v11418_v40  ;;  %v7517_v34 = vsel %vm1094_vm2, %v7509_v56, %v11417_v46 }
0x185c   : > { %v11426_v59 = vpop.permute.xlu0 %11425  ;;  %v11431_v17 = vpop.permute.xlu1 %11430 }
0x185d   : > { %v11433_v57 = vunpack.i.h.bf16 %v11431_v17  ;;  %v11432_v29 = vunpack.i.l.bf16 %v11431_v17  ;;  %v11428_v27 = vunpack.i.h.bf16 %v11426_v59  ;;  %v11427_v48 = vunpack.i.l.bf16 %v11426_v59 }
0x185f   : > { %v7556_v60 = vsel %vm1139_vm7, %v7548_v53, %v11432_v29  ;;  %v15416_v7 = vsel %vm1139_vm7, %v7492_v43, %v11433_v57  ;;  %v7469_v31 = vsel %vm1103_vm3, %v7461_v44, %v11428_v27  ;;  %v7525_v18 = vsel %vm1103_vm3, %v7517_v34, %v11427_v48 }
0x1860   : > { %v11436_v25 = vpop.permute.xlu0 %11435  ;;  %v11441_v10 = vpop.permute.xlu1 %11440  ;;  %7739 = vmatprep.mubr.f32.mxu1 %v7556_v60 }
0x1861   : > { %7740 = vmatmul.mubr.f32.gmra.mxu1 %v15416_v7  ;;  %v11438_v5 = vunpack.i.h.bf16 %v11436_v25  ;;  %v11437_v63 = vunpack.i.l.bf16 %v11436_v25  ;;  %v11442_v4 = vunpack.i.l.bf16 %v11441_v10 }
0x1863   : > { %v7477_v61 = vsel %vm1112_vm4, %v7469_v31, %v11438_v5  ;;  %v7533_v58 = vsel %vm1112_vm4, %v7525_v18, %v11437_v63  ;;  %v7510_v56 = vsel %vm416_vm0, %v15303_v51, %v11442_v4 }
0x1864   : > { %v11446_v19 = vpop.permute.xlu0 %11445  ;;  %v11451_v38 = vpop.permute.xlu1 %11450 }
0x1865   : > { %v11448_v24 = vunpack.i.h.bf16 %v11446_v19  ;;  %v11447_v39 = vunpack.i.l.bf16 %v11446_v19  ;;  %v11443_v19 = vunpack.i.h.bf16 %v11441_v10  ;;  %v11453_v62 = vunpack.i.h.bf16 %v11451_v38 }
0x1866   : > { %v11452_v40 = vunpack.i.l.bf16 %v11451_v38 }
0x1867   : > { %v7541_v57 = vsel %vm1121_vm5, %v7533_v58, %v11447_v39  ;;  %v7485_v29 = vsel %vm1121_vm5, %v7477_v61, %v11448_v24  ;;  %v7454_v12 = vsel %vm416_vm0, %v15253_v14, %v11443_v19 }
0x1868   : > { %v11456_v33 = vpop.permute.xlu0 %11455  ;;  %v11461_v3 = vpop.permute.xlu1 %11460  ;;  %v7462_v10 = vsel %vm1094_vm2, %v7454_v12, %v11453_v62  ;;  %v7518_v44 = vsel %vm1094_vm2, %v7510_v56, %v11452_v40 }
0x1869   : > { %v11458_v54 = vunpack.i.h.bf16 %v11456_v33  ;;  %v11457_v13 = vunpack.i.l.bf16 %v11456_v33  ;;  %v11463_v46 = vunpack.i.h.bf16 %v11461_v3  ;;  %v11462_v27 = vunpack.i.l.bf16 %v11461_v3 }
0x186b   : > { %v7549_v36 = vsel %vm1130_vm6, %v7541_v57, %v11457_v13  ;;  %v7493_v0 = vsel %vm1130_vm6, %v7485_v29, %v11458_v54  ;;  %v7470_v3 = vsel %vm1103_vm3, %v7462_v10, %v11463_v46  ;;  %v7526_v54 = vsel %vm1103_vm3, %v7518_v44, %v11462_v27 }
0x186c   : > { %v11466_v37 = vpop.permute.xlu0 %11465  ;;  %v11471_v59 = vpop.permute.xlu1 %11470 }
0x186d   : > { %v11468_v17 = vunpack.i.h.bf16 %v11466_v37  ;;  %v11467_v42 = vunpack.i.l.bf16 %v11466_v37  ;;  %v11473_v48 = vunpack.i.h.bf16 %v11471_v59  ;;  %v11472_v5 = vunpack.i.l.bf16 %v11471_v59 }
0x186f   : > { %v7557_v53 = vsel %vm1139_vm7, %v7549_v36, %v11467_v42  ;;  %v15435_v43 = vsel %vm1139_vm7, %v7493_v0, %v11468_v17  ;;  %v7478_v13 = vsel %vm1112_vm4, %v7470_v3, %v11473_v48  ;;  %v7534_v31 = vsel %vm1112_vm4, %v7526_v54, %v11472_v5 }
0x1870   : > { %v11476_v60 = vpop.permute.xlu0 %11475  ;;  %v11481_v25 = vpop.permute.xlu1 %11480  ;;  %7744 = vmatprep.mubr.f32.mxu1 %v7557_v53 }
0x1871   : > { %7745 = vmatmul.mubr.f32.gmra.mxu1 %v15435_v43  ;;  %v11483_v24 = vunpack.i.h.bf16 %v11481_v25  ;;  %v11482_v39 = vunpack.i.l.bf16 %v11481_v25  ;;  %v11478_v25 = vunpack.i.h.bf16 %v11476_v60  ;;  %v11477_v19 = vunpack.i.l.bf16 %v11476_v60 }
0x1873   : > { %v7542_v58 = vsel %vm1121_vm5, %v7534_v31, %v11482_v39  ;;  %v7486_v37 = vsel %vm1121_vm5, %v7478_v13, %v11483_v24  ;;  %v7455_v12 = vsel %vm416_vm0, %v15273_v8, %v11478_v25  ;;  %v7511_v56 = vsel %vm416_vm0, %v15327_v20, %v11477_v19 }
0x1874   : > { %v11486_v63 = vpop.permute.xlu0 %11485  ;;  %v11491_v33 = vpop.permute.xlu1 %11490 }
0x1875   : > { %v11493_v34 = vunpack.i.h.bf16 %v11491_v33  ;;  %v11492_v38 = vunpack.i.l.bf16 %v11491_v33  ;;  %v11488_v4 = vunpack.i.h.bf16 %v11486_v63  ;;  %v11487_v62 = vunpack.i.l.bf16 %v11486_v63 }
0x1877   : > { %v7550_v59 = vsel %vm1130_vm6, %v7542_v58, %v11492_v38  ;;  %v7494_v17 = vsel %vm1130_vm6, %v7486_v37, %v11493_v34  ;;  %v7463_v10 = vsel %vm1094_vm2, %v7455_v12, %v11488_v4  ;;  %v7519_v60 = vsel %vm1094_vm2, %v7511_v56, %v11487_v62 }
0x1878   : > { %v11496_v14 = vpop.permute.xlu0 %11495  ;;  %v11501_v18 = vpop.permute.xlu1 %11500 }
0x1879   : > { %v11503_v61 = vunpack.i.h.bf16 %v11501_v18  ;;  %v11502_v51 = vunpack.i.l.bf16 %v11501_v18  ;;  %v11498_v40 = vunpack.i.h.bf16 %v11496_v14  ;;  %v11497_v46 = vunpack.i.l.bf16 %v11496_v14 }
0x187b   : > { %v7558_v42 = vsel %vm1139_vm7, %v7550_v59, %v11502_v51  ;;  %v15454_v57 = vsel %vm1139_vm7, %v7494_v17, %v11503_v61  ;;  %v7471_v34 = vsel %vm1103_vm3, %v7463_v10, %v11498_v40  ;;  %v7527_v38 = vsel %vm1103_vm3, %v7519_v60, %v11497_v46 }
0x187c   : > { %v11506_v29 = vpop.permute.xlu0 %11505  ;;  %v11511_v36 = vpop.permute.xlu1 %11510  ;;  %7749 = vmatprep.mubr.f32.mxu1 %v7558_v42 }
0x187d   : > { %7750 = vmatmul.mubr.f32.gmra.mxu1 %v15454_v57  ;;  %v11508_v27 = vunpack.i.h.bf16 %v11506_v29  ;;  %v11507_v48 = vunpack.i.l.bf16 %v11506_v29  ;;  %v11513_v42 = vunpack.i.h.bf16 %v11511_v36  ;;  %v11512_v25 = vunpack.i.l.bf16 %v11511_v36 }
0x187f   : > { %v7479_v3 = vsel %vm1112_vm4, %v7471_v34, %v11508_v27  ;;  %v7535_v54 = vsel %vm1112_vm4, %v7527_v38, %v11507_v48  ;;  %v7456_v27 = vsel %vm416_vm0, %v15291_v11, %v11513_v42 }
0x1880   : > { %v11516_v0 = vpop.permute.xlu0 %11515  ;;  %v11521_v53 = vpop.permute.xlu1 %11520 }
0x1881   : > { %v11518_v24 = vunpack.i.h.bf16 %v11516_v0  ;;  %v11517_v39 = vunpack.i.l.bf16 %v11516_v0  ;;  %v11523_v4 = vunpack.i.h.bf16 %v11521_v53  ;;  %v11522_v62 = vunpack.i.l.bf16 %v11521_v53 }
0x1883   : > { %v7543_v14 = vsel %vm1121_vm5, %v7535_v54, %v11517_v39  ;;  %v7487_v18 = vsel %vm1121_vm5, %v7479_v3, %v11518_v24  ;;  %v7512_v24 = vsel %vm416_vm0, %v15351_v23, %v11512_v25  ;;  %v7464_v53 = vsel %vm1094_vm2, %v7456_v27, %v11523_v4 }
0x1884   : > { %v11526_v5 = vpop.permute.xlu0 %11525  ;;  %v11531_v33 = vpop.permute.xlu1 %11530  ;;  %v7520_v10 = vsel %vm1094_vm2, %v7512_v24, %v11522_v62 }
0x1885   : > { %v11528_v44 = vunpack.i.h.bf16 %v11526_v5  ;;  %v11527_v63 = vunpack.i.l.bf16 %v11526_v5  ;;  %v11533_v40 = vunpack.i.h.bf16 %v11531_v33  ;;  %v11532_v46 = vunpack.i.l.bf16 %v11531_v33 }
0x1887   : > { %v7551_v61 = vsel %vm1130_vm6, %v7543_v14, %v11527_v63  ;;  %v7495_v51 = vsel %vm1130_vm6, %v7487_v18, %v11528_v44  ;;  %v7472_v11 = vsel %vm1103_vm3, %v7464_v53, %v11533_v40  ;;  %v7528_v44 = vsel %vm1103_vm3, %v7520_v10, %v11532_v46 }
0x1888   : > { %v11536_v8 = vpop.permute.xlu0 %11535  ;;  %v11541_v13 = vpop.permute.xlu1 %11540 }
0x1889   : > { %v11538_v31 = vunpack.i.h.bf16 %v11536_v8  ;;  %v11537_v20 = vunpack.i.l.bf16 %v11536_v8  ;;  %v11543_v48 = vunpack.i.h.bf16 %v11541_v13  ;;  %v11542_v5 = vunpack.i.l.bf16 %v11541_v13 }
0x188b   : > { %v7559_v58 = vsel %vm1139_vm7, %v7551_v61, %v11537_v20  ;;  %v15473_v37 = vsel %vm1139_vm7, %v7495_v51, %v11538_v31  ;;  %v7480_v63 = vsel %vm1112_vm4, %v7472_v11, %v11543_v48  ;;  %v7536_v23 = vsel %vm1112_vm4, %v7528_v44, %v11542_v5 }
0x188c   : > { %v15475_v59 = vpop.permute.xlu0 %11545  ;;  %v11551_v17 = vpop.permute.xlu1 %11550  ;;  %7754 = vmatprep.mubr.f32.mxu1 %v7559_v58 }
0x188d   : > { %7755 = vmatmul.mubr.f32.gmra.mxu1 %v15473_v37  ;;  %v11553_v36 = vunpack.i.h.bf16 %v11551_v17  ;;  %v11552_v39 = vunpack.i.l.bf16 %v11551_v17  ;;  %v11548_v42 = vunpack.i.h.bf16 %v15475_v59 }
0x188f   : > { %v7544_v54 = vsel %vm1121_vm5, %v7536_v23, %v11552_v39  ;;  %v7488_v8 = vsel %vm1121_vm5, %v7480_v63, %v11553_v36  ;;  %v7457_v27 = vsel %vm416_vm0, %v15311_v16, %v11548_v42 }
0x1890   : > { %v7572_v29 = vpop.permute.xlu0 %7571  ;;  %v15478_v0 = vpop.permute.xlu1 %11555 }
0x1891   : > { %v7595_v19 = vsel %vm416_vm0, %v15241_v41, %v7572_v29  ;;  %v11558_v4 = vunpack.i.h.bf16 %v15478_v0  ;;  %v11557_v62 = vunpack.i.l.bf16 %v15478_v0 }
0x1892   : > { %9965 = vmatprep.mubr.msk.f32.mxu0 %vm1094_vm2, %v7595_v19  ;;  %v11547_v19 = vunpack.i.l.bf16 %v15475_v59 }
0x1893   : > { %v7465_v39 = vsel %vm1094_vm2, %v7457_v27, %v11558_v4 }
0x1894   : > { %v11561_v12 = vpop.permute.xlu0 %11560  ;;  %v7574_v56 = vpop.permute.xlu1 %7573 }
0x1895   : > { %v7596_v41 = vsel %vm416_vm0, %v15267_v28, %v7574_v56  ;;  %v11563_v33 = vunpack.i.h.bf16 %v11561_v12  ;;  %v11562_v60 = vunpack.i.l.bf16 %v11561_v12  ;;  %v7513_v56 = vsel %vm416_vm0, %v15366_v6, %v11547_v19 }
0x1896   : > { %9966 = vmatmul.mubr.msk.f32.vlgmr.msra.gmra.mxu0 %vm1094_vm2, %v7596_v41  ;;  %v7521_v0 = vsel %vm1094_vm2, %v7513_v56, %v11557_v62 }
0x1897   : > { %v7552_v13 = vsel %vm1130_vm6, %v7544_v54, %v11562_v60  ;;  %v7496_v31 = vsel %vm1130_vm6, %v7488_v8, %v11563_v33  ;;  %v6930_v8 = vld [vmem:[#allocation2 + $0x92] sm:$0xff] }
0x1898   : > { %v11566_v34 = vpop.permute.xlu0 %11565  ;;  %v11571_v38 = vpop.permute.xlu1 %11570 }
0x1899   : > { %v11573_v3 = vunpack.i.h.bf16 %v11571_v38  ;;  %v11572_v28 = vunpack.i.l.bf16 %v11571_v38  ;;  %v11568_v40 = vunpack.i.h.bf16 %v11566_v34  ;;  %v11567_v46 = vunpack.i.l.bf16 %v11566_v34 }
0x189b   : > { %v7560_v20 = vsel %vm1139_vm7, %v7552_v13, %v11572_v28  ;;  %v15502_v14 = vsel %vm1139_vm7, %v7496_v31, %v11573_v3  ;;  %v7473_v16 = vsel %vm1103_vm3, %v7465_v39, %v11568_v40  ;;  %v7529_v10 = vsel %vm1103_vm3, %v7521_v0, %v11567_v46  ;;  %v6994_v39 = vld [vmem:[#allocation3 + $0x91] sm:$0xff] }
0x189c   : > { %v11576_v18 = vpop.permute.xlu0 %11575  ;;  %v11581_v61 = vpop.permute.xlu1 %11580  ;;  %7759 = vmatprep.mubr.f32.mxu1 %v7560_v20 }
0x189d   : > { %7760 = vmatmul.mubr.f32.gmra.mxu1 %v15502_v14  ;;  %v11578_v48 = vunpack.i.h.bf16 %v11576_v18  ;;  %v11577_v5 = vunpack.i.l.bf16 %v11576_v18  ;;  %v11583_v60 = vunpack.i.h.bf16 %v11581_v61  ;;  %v11582_v38 = vunpack.i.l.bf16 %v11581_v61 }
0x189f   : > { %v7481_v33 = vsel %vm1112_vm4, %v7473_v16, %v11578_v48  ;;  %v7537_v6 = vsel %vm1112_vm4, %v7529_v10, %v11577_v5  ;;  %v7458_v61 = vsel %vm416_vm0, %v15340_v32, %v11583_v60 }
0x18a0   : > { %v11586_v51 = vpop.permute.xlu0 %11585  ;;  %v7576_v58 = vpop.permute.xlu1 %7575 }
0x18a1   : > { %v7597_v17 = vsel %vm416_vm0, %v15285_v47, %v7576_v58  ;;  %v11588_v24 = vunpack.i.h.bf16 %v11586_v51  ;;  %v11587_v36 = vunpack.i.l.bf16 %v11586_v51 }
0x18a2   : > { %9968 = vmatprep.mubr.msk.f32.mxu0 %vm1094_vm2, %v7597_v17 }
0x18a3   : > { %v7545_v23 = vsel %vm1121_vm5, %v7537_v6, %v11587_v36  ;;  %v7489_v34 = vsel %vm1121_vm5, %v7481_v33, %v11588_v24  ;;  %v11363_v36 = vunpack.i.h.bf16 %v15376_v9 }
0x18a4   : > { %v11591_v29 = vpop.permute.xlu0 %11590  ;;  %v11596_v25 = vpop.permute.xlu1 %11595 }
0x18a5   : > { %v11598_v41 = vunpack.i.h.bf16 %v11596_v25  ;;  %v11597_v53 = vunpack.i.l.bf16 %v11596_v25  ;;  %v11593_v3 = vunpack.i.h.bf16 %v11591_v29  ;;  %v11592_v13 = vunpack.i.l.bf16 %v11591_v29 }
0x18a6   : > { %v7514_v29 = vsel %vm416_vm0, %v6930_v8, %v11582_v38  ;;  %v9243_v8 = vld [vmem:[%s16082_s3] ss:$0 sm:$0xff] }
0x18a7   : > { %v7553_v28 = vsel %vm1130_vm6, %v7545_v23, %v11597_v53  ;;  %v7497_v54 = vsel %vm1130_vm6, %v7489_v34, %v11598_v41  ;;  %v7466_v4 = vsel %vm1094_vm2, %v7458_v61, %v11593_v3  ;;  %v7522_v46 = vsel %vm1094_vm2, %v7514_v29, %v11592_v13 }
0x18a8   : > { %v7578_v47 = vpop.permute.xlu0 %7577  ;;  %v11601_v12 = vpop.permute.xlu1 %11600 }
0x18a9   : > { %v7598_v59 = vsel %vm416_vm0, %v15305_v49, %v7578_v47  ;;  %v11603_v31 = vunpack.i.h.bf16 %v11601_v12  ;;  %v11602_v51 = vunpack.i.l.bf16 %v11601_v12 }
0x18aa   : > { %9969 = vmatmul.mubr.msk.f32.gmra.mxu0 %vm1094_vm2, %v7598_v59  ;;  %v11362_v59 = vunpack.i.l.bf16 %v15376_v9 }
0x18ab   : > { %v7474_v27 = vsel %vm1103_vm3, %v7466_v4, %v11603_v31  ;;  %v7530_v32 = vsel %vm1103_vm3, %v7522_v46, %v11602_v51 }
0x18ac   : > { %v11606_v11 = vpop.permute.xlu0 %11605  ;;  %v11611_v44 = vpop.permute.xlu1 %11610 }
0x18ad   : > { %v11608_v49 = vunpack.i.h.bf16 %v11606_v11  ;;  %v11607_v63 = vunpack.i.l.bf16 %v11606_v11  ;;  %v11613_v58 = vunpack.i.h.bf16 %v11611_v44  ;;  %v11612_v25 = vunpack.i.l.bf16 %v11611_v44 }
0x18af   : > { %v7561_v20 = vsel %vm1139_vm7, %v7553_v28, %v11607_v63  ;;  %v15531_v18 = vsel %vm1139_vm7, %v7497_v54, %v11608_v49  ;;  %v7482_v48 = vsel %vm1112_vm4, %v7474_v27, %v11613_v58  ;;  %v7538_v47 = vsel %vm1112_vm4, %v7530_v32, %v11612_v25 }
0x18b0   : > { %v11616_v17 = vpop.permute.xlu0 %11615  ;;  %v7580_v42 = vpop.permute.xlu1 %7579  ;;  %7764 = vmatprep.mubr.f32.mxu1 %v7561_v20 }
0x18b1   : > { %v7599_v19 = vsel %vm416_vm0, %v15329_v2, %v7580_v42  ;;  %7765 = vmatmul.mubr.f32.gmra.mxu1 %v15531_v18  ;;  %v11618_v62 = vunpack.i.h.bf16 %v11616_v17  ;;  %v11617_v40 = vunpack.i.l.bf16 %v11616_v17 }
0x18b2   : > { %9971 = vmatprep.mubr.msk.f32.mxu0 %vm1094_vm2, %v7599_v19 }
0x18b3   : > { %v7546_v0 = vsel %vm1121_vm5, %v7538_v47, %v11617_v40  ;;  %v7490_v41 = vsel %vm1121_vm5, %v7482_v48, %v11618_v62 }
0x18b4   : > { %v11621_v5 = vpop.permute.xlu0 %11620  ;;  %v7582_v2 = vpop.permute.xlu1 %7581 }
0x18b5   : > { %v11623_v12 = vunpack.i.h.bf16 %v11621_v5  ;;  %v11622_v56 = vunpack.i.l.bf16 %v11621_v5  ;;  %v7600_v24 = vsel %vm416_vm0, %v15353_v26, %v7582_v2 }
0x18b6   : > { %9972 = vmatmul.mubr.msk.f32.gmra.mxu0 %vm1094_vm2, %v7600_v24 }
0x18b7   : > { %v7554_v53 = vsel %vm1130_vm6, %v7546_v0, %v11622_v56  ;;  %v7498_v16 = vsel %vm1130_vm6, %v7490_v41, %v11623_v12 }
0x18b8   : > { %v7584_v10 = vpop.permute.xlu1 %7583  ;;  %v7586_v33 = vpop.permute.xlu0 %7585  ;;  %v7562_v6 = vsel %vm1139_vm7, %v7554_v53, %v11362_v59  ;;  %v15557_v26 = vsel %vm1139_vm7, %v7498_v16, %v11363_v36 }
0x18b9   : > { %v7601_v9 = vsel %vm416_vm0, %v15368_v35, %v7584_v10  ;;  %v7602_v60 = vsel %vm416_vm0, %v6994_v39, %v7586_v33  ;;  %7769 = vmatprep.mubr.f32.mxu1 %v7562_v6 }
0x18ba   : > { %7770 = vmatmul.mubr.f32.gmra.mxu1 %v15557_v26  ;;  %9974 = vmatprep.mubr.msk.f32.mxu0 %vm1094_vm2, %v7601_v9 }
0x18bb   : > { %9975 = vmatmul.mubr.msk.f32.gmra.mxu0 %vm1094_vm2, %v7602_v60 }
0x1915   : > { %v9733_v11 = vpop.f32.mrf.mxu1 }
0x1917   : > { %v9734_v44 = vpop.f32.mrf.mxu1 }
0x1918   : > { %v9735_v35 = vadd.f32 %v9734_v44, %v9733_v11 }
0x191a   : > { %v7737_v17 = vadd.f32 %v9735_v35, %v9243_v8 }
0x1921   : > { %v9736_v49 = vpop.f32.mrf.mxu1 }
0x1923   : > { %v9737_v63 = vpop.f32.mrf.mxu1 }
0x1924   : > { %v9738_v31 = vadd.f32 %v9737_v63, %v9736_v49 }
0x1926   : > { %v7742_v25 = vadd.f32 %v9738_v31, %v9243_v8 }
0x1931   : > { %v9739_v23 = vpop.f32.mrf.mxu1 }
0x1933   : > { %v9740_v34 = vpop.f32.mrf.mxu1 }
0x1934   : > { %v9741_v20 = vadd.f32 %v9740_v34, %v9739_v23 }
0x1936   : > { %v7747_v29 = vadd.f32 %v9741_v20, %v9243_v8 }
0x193d   : > { %v9742_v38 = vpop.f32.mrf.mxu1 }
0x193f   : > { %v9743_v3 = vpop.f32.mrf.mxu1 }
0x1940   : > { %v9744_v4 = vadd.f32 %v9743_v3, %v9742_v38 }
0x1942   : > { %v7752_v48 = vadd.f32 %v9744_v4, %v9243_v8 }
0x194d   : > { %v9745_v54 = vpop.f32.mrf.mxu1 }
0x194f   : > { %v9746_v51 = vpop.f32.mrf.mxu1 }
0x1950   : > { %v9747_v5 = vadd.f32 %v9746_v51, %v9745_v54 }
0x1952   : > { %v7757_v41 = vadd.f32 %v9747_v5, %v9243_v8 }
0x1956   : > { %v9967_v28 = vpop.f32.mrf.mxu0 }
0x1957   : > { %v7847_v62 = vadd.f32 %v9967_v28, %v7742_v25 }
0x1958   : > { %v7841_v13 = vpop.f32.mrf.mxu0 }
0x1959   : > { %v7842_v19 = vadd.f32 %v7841_v13, %v7737_v17  ;;  %v7883_v2 = vsel %vm1094_vm2, %v7847_v62, 0.0 }
0x195b   : > { %v7882_v27 = vsel %vm1094_vm2, %v7842_v19, 0.0 }
0x195c   : > { %v7884_v56 = vadd.f32 %v7883_v2, %v7882_v27 }
0x195d   : > { %v9748_v42 = vpop.f32.mrf.mxu1 }
0x195f   : > { %v9749_v40 = vpop.f32.mrf.mxu1 }
0x1960   : > { %v9750_v47 = vadd.f32 %v9749_v40, %v9748_v42 }
0x1962   : > { %v7762_v0 = vadd.f32 %v9750_v47, %v9243_v8 }
0x196a   : > { %v9970_v58 = vpop.f32.mrf.mxu0 }
0x196b   : > { %v7857_v24 = vadd.f32 %v9970_v58, %v7752_v48 }
0x196c   : > { %v7851_v61 = vpop.f32.mrf.mxu0 }
0x196d   : > { %v7852_v46 = vadd.f32 %v7851_v61, %v7747_v29  ;;  %v7887_v10 = vsel %vm1094_vm2, %v7857_v24, 0.0 }
0x196f   : > { %v7885_v12 = vsel %vm1094_vm2, %v7852_v46, 0.0 }
0x1970   : > { %v7886_v59 = vadd.f32 %v7885_v12, %v7884_v56 }
0x1971   : > { %v9751_v32 = vpop.f32.mrf.mxu1 }
0x1972   : > { %v7888_v9 = vadd.f32 %v7887_v10, %v7886_v59 }
0x1973   : > { %v9752_v36 = vpop.f32.mrf.mxu1 }
0x1974   : > { %v9753_v53 = vadd.f32 %v9752_v36, %v9751_v32 }
0x1976   : > { %v9973_v39 = vpop.f32.mrf.mxu0  ;;  %v7767_v23 = vadd.f32 %v9753_v53, %v9243_v8 }
0x1977   : > { %v7867_v33 = vadd.f32 %v9973_v39, %v7762_v0 }
0x1978   : > { %v7861_v16 = vpop.f32.mrf.mxu0 }
0x1979   : > { %v7862_v6 = vadd.f32 %v7861_v16, %v7757_v41  ;;  %v7891_v34 = vsel %vm1094_vm2, %v7867_v33, 0.0 }
0x197a   : > { %v9754_v60 = vpop.f32.mrf.mxu1 }
0x197b   : > { %v7889_v11 = vsel %vm1094_vm2, %v7862_v6, 0.0  ;;  %v9976_v44 = vpop.f32.mrf.mxu0 }
0x197c   : > { %v7890_v49 = vadd.f32 %v7889_v11, %v7888_v9  ;;  %v9755_v63 = vpop.f32.mrf.mxu1 }
0x197d   : > { %v9756_v38 = vadd.f32 %v9755_v63, %v9754_v60  ;;  %v7871_v3 = vpop.f32.mrf.mxu0 }
0x197e   : > { %v7872_v28 = vadd.f32 %v7871_v3, %v7767_v23  ;;  %v7892_v54 = vadd.f32 %v7891_v34, %v7890_v49 }
0x197f   : > { %v7772_v35 = vadd.f32 %v9756_v38, %v9243_v8 }
0x1980   : > { %v7893_v13 = vsel %vm1094_vm2, %v7872_v28, 0.0 }
0x1981   : > { %v7877_v31 = vadd.f32 %v9976_v44, %v7772_v35  ;;  %v7894_v20 = vadd.f32 %v7893_v13, %v7892_v54 }
0x1983   : > { %v7895_v51 = vsel %vm1094_vm2, %v7877_v31, 0.0 }
0x1984   : > { %v7896_v58 = vadd.f32 %v7895_v51, %v7894_v20 }
0x1986   : > { %7897 = vadd.xlane.f32.xlu1 %v7896_v58 }
0x1997   : > { %8052 = vrot.lane.b32.xlu1 %v15126_v22, %s16133_s1 }
0x199b   : > { %8054 = vrot.lane.b32.xlu1 %v15139_v50, %s16133_s1 }
0x199f   : > { %8058 = vrot.lane.b32.xlu1 %v15160_v52, %s16133_s1 }
0x19a3   : > { %8062 = vrot.lane.b32.xlu1 %v15185_v1, %s16133_s1 }
0x1a0f   : > { %v7898_v8 = vpop.xlane.xlu1 %7897 }
0x1a10   : > { %v7899_v17 = vrot.slane %v7898_v8, 4 }
0x1a12   : > { %v7900_v42 = vadd.f32 %v7899_v17, %v7898_v8  ;;  %v9252_v8 = vld [vmem:[%s16083_s4] ss:$0 sm:$0xff] }
0x1a14   : > { %v7901_v61 = vrot.slane %v7900_v42, 2 }
0x1a16   : > { %v7902_v25 = vadd.f32 %v7901_v61, %v7900_v42 }
0x1a18   : > { %v7903_v29 = vrot.slane %v7902_v25, 1 }
0x1a1a   : > { %v7904_v4 = vadd.f32 %v7903_v29, %v7902_v25 }
0x1a1c   : > { %10033 = vpush %v7904_v4  ;;  %v9253_v4 = vld [vmem:[%s16084_s5] ss:$0 sm:$0xff] }
0x1a4d   : > { %s10034_s20 = spop %10033 }
0x1a4e   : > { %s7908_s19 = smul.f32 0.00048828125, %s10034_s20  ;;  %s9291_s20 = sshll.u32 %s12183_s21, 12 }
0x1a50   : > { %v7909_v40 = vstv %s7908_s19  ;;  %s15957_s19 = scalar_lea.vmem [#allocation6], %s9108_s11 }
0x1a51   : > { %v7910_v27 = vsub.f32 %v7842_v19, %v7909_v40  ;;  %v7911_v32 = vsub.f32 %v7847_v62, %v7909_v40  ;;  %v7912_v48 = vsub.f32 %v7852_v46, %v7909_v40  ;;  %v7913_v5 = vsub.f32 %v7857_v24, %v7909_v40 }
0x1a52   : > { %v7914_v2 = vsub.f32 %v7862_v6, %v7909_v40  ;;  %v7915_v36 = vsub.f32 %v7867_v33, %v7909_v40  ;;  %v7916_v53 = vsub.f32 %v7872_v28, %v7909_v40  ;;  %v7917_v19 = vsub.f32 %v7877_v31, %v7909_v40 }
0x1a53   : > { %v7918_v47 = vmul.f32 %v7910_v27, %v7910_v27  ;;  %v7919_v12 = vmul.f32 %v7911_v32, %v7911_v32  ;;  %v7920_v56 = vmul.f32 %v7912_v48, %v7912_v48  ;;  %v7921_v59 = vmul.f32 %v7913_v5, %v7913_v5 }
0x1a54   : > { %v7922_v16 = vmul.f32 %v7914_v2, %v7914_v2  ;;  %v7923_v62 = vmul.f32 %v7915_v36, %v7915_v36  ;;  %v7924_v6 = vmul.f32 %v7916_v53, %v7916_v53  ;;  %v7925_v11 = vmul.f32 %v7917_v19, %v7917_v19 }
0x1a55   : > { %v7926_v39 = vsel %vm1094_vm2, %v7918_v47, 0.0  ;;  %v7927_v0 = vsel %vm1094_vm2, %v7919_v12, 0.0  ;;  %v7929_v10 = vsel %vm1094_vm2, %v7920_v56, 0.0  ;;  %v7931_v46 = vsel %vm1094_vm2, %v7921_v59, 0.0 }
0x1a56   : > { %v7928_v41 = vadd.f32 %v7927_v0, %v7926_v39  ;;  %v7933_v60 = vsel %vm1094_vm2, %v7922_v16, 0.0  ;;  %v7935_v44 = vsel %vm1094_vm2, %v7923_v62, 0.0  ;;  %v7937_v63 = vsel %vm1094_vm2, %v7924_v6, 0.0 }
0x1a57   : > { %v7939_v34 = vsel %vm1094_vm2, %v7925_v11, 0.0 }
0x1a58   : > { %v7930_v9 = vadd.f32 %v7929_v10, %v7928_v41 }
0x1a5a   : > { %v7932_v24 = vadd.f32 %v7931_v46, %v7930_v9 }
0x1a5c   : > { %v7934_v33 = vadd.f32 %v7933_v60, %v7932_v24 }
0x1a5e   : > { %v7936_v49 = vadd.f32 %v7935_v44, %v7934_v33 }
0x1a60   : > { %v7938_v23 = vadd.f32 %v7937_v63, %v7936_v49 }
0x1a62   : > { %v7940_v38 = vadd.f32 %v7939_v34, %v7938_v23 }
0x1a64   : > { %7941 = vadd.xlane.f32.xlu0 %v7940_v38 }
0x1a7a   : > { %8050 = vrot.lane.b32.xlu0 %v15121_v45, %s16133_s1 }
0x1a7e   : > { %8056 = vrot.lane.b32.xlu0 %v15151_v30, %s16133_s1 }
0x1a82   : > { %8060 = vrot.lane.b32.xlu0 %v15169_v21, %s16133_s1 }
0x1a86   : > { %8064 = vrot.lane.b32.xlu0 %v15195_v15, %s16133_s1 }
0x1aed   : > { %v7942_v3 = vpop.xlane.xlu0 %7941 }
0x1aee   : > { %v7943_v28 = vrot.slane %v7942_v3, 4 }
0x1af0   : > { %v7944_v54 = vadd.f32 %v7943_v28, %v7942_v3 }
0x1af2   : > { %v7945_v35 = vrot.slane %v7944_v54, 2 }
0x1af4   : > { %v7946_v13 = vadd.f32 %v7945_v35, %v7944_v54 }
0x1af6   : > { %v7947_v31 = vrot.slane %v7946_v13, 1 }
0x1af8   : > { %v7948_v20 = vadd.f32 %v7947_v31, %v7946_v13 }
0x1afa   : > { %10035 = vpush %v7948_v20 }
0x1b2b   : > { %s10036_s18 = spop %10035 }
0x1b2c   : > { %s7952_s14 = smul.f32 0.00048828125, %s10036_s18  ;;  %s8981_s18 = sshll.u32 %s13255_s12, 4  ;;  %s15991_s18 = int_to_ptr.vmem [resolvable:$true] %s8981_s18 }
0x1b2d   : > { %p12005_p0 = scmp.lt.s32.totalorder %s15991_s18, %s12003_s24 }
0x1b2e   : > { %s7953_s17 = sadd.f32 1e-05, %s7952_s14 }
0x1b30   : > { %v7954_v51 = vstv %s7953_s17 }
0x1b31   : > { %11915 = vrsqrt.f32 %v7954_v51 }
0x1b3e   : > { %v11916_v58 = vpop.eup %11915 }
0x1b3f   : > { %10037 = vpush %v11916_v58 }
0x1b70   : > { %s10038_s16 = spop %10037 }
0x1b71   : > { %v7957_v17 = vstv %s10038_s16 }
0x1b72   : > { %v7958_v42 = vmul.f32 %v7957_v17, %v7910_v27  ;;  %v7959_v61 = vmul.f32 %v7957_v17, %v7911_v32  ;;  %v7960_v25 = vmul.f32 %v7957_v17, %v7912_v48  ;;  %v7961_v29 = vmul.f32 %v7957_v17, %v7913_v5 }
0x1b73   : > { %v7962_v40 = vmul.f32 %v7957_v17, %v7914_v2  ;;  %v7963_v47 = vmul.f32 %v7957_v17, %v7915_v36  ;;  %v7964_v12 = vmul.f32 %v7957_v17, %v7916_v53  ;;  %v7965_v56 = vmul.f32 %v7957_v17, %v7917_v19 }
0x1b74   : > { %v7972_v59 = vmul.f32 %v9252_v8, %v7958_v42  ;;  %v7973_v39 = vmul.f32 %v9252_v8, %v7959_v61  ;;  %v7974_v0 = vmul.f32 %v9252_v8, %v7960_v25  ;;  %v7975_v41 = vmul.f32 %v9252_v8, %v7961_v29  ;;  %v8053_v42 = vpop.permute.xlu1 %8052  ;;  %v8051_v25 = vpop.permute.xlu0 %8050 }
0x1b75   : > { %v7976_v16 = vmul.f32 %v9252_v8, %v7962_v40  ;;  %v7977_v10 = vmul.f32 %v9252_v8, %v7963_v47  ;;  %v7978_v9 = vmul.f32 %v9252_v8, %v7964_v12  ;;  %v7979_v62 = vmul.f32 %v9252_v8, %v7965_v56 }
0x1b76   : > { %v7986_v27 = vadd.f32 %v9253_v4, %v7972_v59  ;;  %v7987_v32 = vadd.f32 %v9253_v4, %v7973_v39  ;;  %v7988_v48 = vadd.f32 %v9253_v4, %v7974_v0  ;;  %v7989_v5 = vadd.f32 %v9253_v4, %v7975_v41 }
0x1b77   : > { %v7990_v46 = vadd.f32 %v9253_v4, %v7976_v16  ;;  %v7991_v24 = vadd.f32 %v9253_v4, %v7977_v10  ;;  %v7992_v6 = vadd.f32 %v9253_v4, %v7978_v9  ;;  %v7993_v53 = vadd.f32 %v9253_v4, %v7979_v62 }
0x1b78   : > { %v9254_v60 = vmul.f32 -1.442695, %v7986_v27  ;;  %v9255_v2 = vmul.f32 -1.442695, %v7987_v32  ;;  %v9256_v36 = vmul.f32 -1.442695, %v7988_v48  ;;  %v8055_v4 = vpop.permute.xlu1 %8054  ;;  %v8057_v47 = vpop.permute.xlu0 %8056 }
0x1b79   : > { %v9257_v19 = vmul.f32 -1.442695, %v7989_v5  ;;  %v9258_v33 = vmul.f32 -1.442695, %v7990_v46  ;;  %v9259_v11 = vmul.f32 -1.442695, %v7991_v24 }
0x1b7a   : > { %11917 = vpow2.f32 %v9254_v60  ;;  %v9260_v44 = vmul.f32 -1.442695, %v7992_v6  ;;  %v9261_v49 = vmul.f32 -1.442695, %v7993_v53  ;;  %v8544_v53 = vld [vmem:[%s16085_s6 + $0xf0] sm:$0xff] }
0x1b7b   : > { %11919 = vpow2.f32 %v9255_v2  ;;  %v8545_v2 = vld [vmem:[%s16085_s6 + $0xf8] sm:$0xff] }
0x1b7c   : > { %11921 = vpow2.f32 %v9256_v36  ;;  %v8059_v16 = vpop.permute.xlu1 %8058  ;;  %v8061_v62 = vpop.permute.xlu0 %8060  ;;  %v8529_v36 = vld [vmem:[%s16085_s6 + $0x78] sm:$0xff]  ;;  %9769 = vmatprep.subr.mxu1 %v8545_v2 }
0x1b7d   : > { %11923 = vpow2.f32 %v9257_v19  ;;  %v8528_v19 = vld [vmem:[%s16085_s6 + $0x70] sm:$0xff]  ;;  %9770 = vmatpush3.msra.mxu1 %v8529_v36 }
0x1b7e   : > { %11925 = vpow2.f32 %v9258_v33  ;;  %v8543_v33 = vld [vmem:[%s16085_s6 + $0xe8] sm:$0xff]  ;;  %9771 = vmatprep.subr.mxu1 %v8544_v53  ;;  %v8516_v53 = vld [vmem:[%s16085_s6 + $0x10] sm:$0xff] }
0x1b7f   : > { %11927 = vpow2.f32 %v9259_v11  ;;  %v8527_v11 = vld [vmem:[%s16085_s6 + $0x68] sm:$0xff]  ;;  %9772 = vmatpush3.msra.mxu1 %v8528_v19 }
0x1b80   : > { %11929 = vpow2.f32 %v9260_v44  ;;  %v8063_v46 = vpop.permute.xlu1 %8062  ;;  %v8065_v24 = vpop.permute.xlu0 %8064  ;;  %v8542_v44 = vld [vmem:[%s16085_s6 + $0xe0] sm:$0xff]  ;;  %9773 = vmatprep.subr.mxu1 %v8543_v33 }
0x1b81   : > { %11931 = vpow2.f32 %v9261_v49  ;;  %v8526_v49 = vld [vmem:[%s16085_s6 + $0x60] sm:$0xff]  ;;  %9774 = vmatpush3.msra.mxu1 %v8527_v11 }
0x1b82   : > { %9775 = vmatprep.subr.mxu1 %v8542_v44 }
0x1b83   : > { %9776 = vmatpush3.msra.mxu1 %v8526_v49 }
0x1b87   : > { %v11918_v63 = vpop.eup %11917 }
0x1b88   : > { %v11920_v23 = vpop.eup %11919  ;;  %v8018_v34 = vadd.f32 1.0, %v11918_v63  ;;  %v8541_v63 = vld [vmem:[%s16085_s6 + $0xd8] sm:$0xff] }
0x1b89   : > { %v11922_v38 = vpop.eup %11921  ;;  %v8019_v3 = vadd.f32 1.0, %v11920_v23  ;;  %v8525_v23 = vld [vmem:[%s16085_s6 + $0x58] sm:$0xff]  ;;  %9777 = vmatprep.subr.mxu1 %v8541_v63 }
0x1b8a   : > { %v11924_v28 = vpop.eup %11923  ;;  %v8020_v54 = vadd.f32 1.0, %v11922_v38  ;;  %11933 = vrcp.f32 %v8018_v34  ;;  %v8540_v34 = vld [vmem:[%s16085_s6 + $0xd0] sm:$0xff]  ;;  %9778 = vmatpush3.msra.mxu1 %v8525_v23  ;;  %v8531_v23 = vld [vmem:[%s16085_s6 + $0x88] sm:$0xff] }
0x1b8b   : > { %v11926_v35 = vpop.eup %11925  ;;  %v8021_v13 = vadd.f32 1.0, %v11924_v28  ;;  %11935 = vrcp.f32 %v8019_v3  ;;  %v8524_v38 = vld [vmem:[%s16085_s6 + $0x50] sm:$0xff]  ;;  %v8539_v3 = vld [vmem:[%s16085_s6 + $0xc8] sm:$0xff]  ;;  %9779 = vmatprep.subr.mxu1 %v8540_v34 }
0x1b8c   : > { %v11928_v31 = vpop.eup %11927  ;;  %v8022_v20 = vadd.f32 1.0, %v11926_v35  ;;  %11937 = vrcp.f32 %v8020_v54  ;;  %v8523_v28 = vld [vmem:[%s16085_s6 + $0x48] sm:$0xff]  ;;  %9780 = vmatpush3.msra.mxu1 %v8524_v38  ;;  %v8538_v54 = vld [vmem:[%s16085_s6 + $0xc0] sm:$0xff] }
0x1b8d   : > { %v11930_v51 = vpop.eup %11929  ;;  %v8023_v58 = vadd.f32 1.0, %v11928_v31  ;;  %11939 = vrcp.f32 %v8021_v13  ;;  %9781 = vmatprep.subr.mxu1 %v8539_v3  ;;  %v8522_v35 = vld [vmem:[%s16085_s6 + $0x40] sm:$0xff]  ;;  %v8537_v31 = vld [vmem:[%s16085_s6 + $0xb8] sm:$0xff]  ;;  %v8515_v34 = vld [vmem:[%s16085_s6 + $0x8] sm:$0xff] }
0x1b8e   : > { %v11932_v8 = vpop.eup %11931  ;;  %v8024_v17 = vadd.f32 1.0, %v11930_v51  ;;  %11941 = vrcp.f32 %v8022_v20  ;;  %9782 = vmatpush3.msra.mxu1 %v8523_v28  ;;  %v8521_v20 = vld [vmem:[%s16085_s6 + $0x38] sm:$0xff]  ;;  %v8536_v51 = vld [vmem:[%s16085_s6 + $0xb0] sm:$0xff]  ;;  %v8530_v38 = vld [vmem:[%s16085_s6 + $0x80] sm:$0xff] }
0x1b8f   : > { %v8025_v61 = vadd.f32 1.0, %v11932_v8  ;;  %11943 = vrcp.f32 %v8023_v58  ;;  %9783 = vmatprep.subr.mxu1 %v8538_v54  ;;  %v8520_v8 = vld [vmem:[%s16085_s6 + $0x30] sm:$0xff]  ;;  %v8514_v54 = vld [vmem:[%s16085_s6] sm:$0xff] }
0x1b90   : > { %11945 = vrcp.f32 %v8024_v17  ;;  %9784 = vmatpush3.msra.mxu1 %v8522_v35 }
0x1b91   : > { %11947 = vrcp.f32 %v8025_v61  ;;  %9785 = vmatprep.subr.mxu1 %v8537_v31  ;;  %v8519_v61 = vld [vmem:[%s16085_s6 + $0x28] sm:$0xff] }
0x1b92   : > { %9786 = vmatpush3.msra.mxu1 %v8521_v20 }
0x1b93   : > { %9787 = vmatprep.subr.mxu1 %v8536_v51 }
0x1b94   : > { %9788 = vmatpush3.msra.mxu1 %v8520_v8 }
0x1b97   : > { %v15606_v29 = vpop.eup %11933 }
0x1b98   : > { %v15608_v40 = vpop.eup %11935  ;;  %v8074_v12 = vmul.f32 %v15606_v29, %v8051_v25  ;;  %v8534_v25 = vld [vmem:[%s16085_s6 + $0xa0] sm:$0xff] }
0x1b99   : > { %v15611_v56 = vpop.eup %11937  ;;  %v8075_v59 = vmul.f32 %v15608_v40, %v8053_v42  ;;  %v8535_v42 = vld [vmem:[%s16085_s6 + $0xa8] sm:$0xff] }
0x1b9a   : > { %v15614_v39 = vpop.eup %11939  ;;  %8090 = vrot.lane.b32.xlu1 %v8074_v12, %s16132_s0  ;;  %v8076_v0 = vmul.f32 %v15611_v56, %v8055_v4  ;;  %9789 = vmatprep.subr.mxu1 %v8535_v42  ;;  %v8130_v12 = vld [vmem:[#allocation3 + $0x1] sm:$0xff] }
0x1b9b   : > { %8092 = vrot.lane.b32.xlu0 %v8075_v59, %s16132_s0  ;;  %v15619_v41 = vpop.eup %11941  ;;  %v8077_v10 = vmul.f32 %v15614_v39, %v8057_v47  ;;  %v8518_v47 = vld [vmem:[%s16085_s6 + $0x20] sm:$0xff]  ;;  %9790 = vmatpush3.msra.mxu1 %v8519_v61 }
0x1b9c   : > { %v15622_v9 = vpop.eup %11943  ;;  %v8078_v27 = vmul.f32 %v15619_v41, %v8059_v16  ;;  %v8122_v59 = vld [vmem:[#allocation3] sm:$0xff]  ;;  %9791 = vmatprep.subr.mxu1 %v8534_v25  ;;  %v8517_v16 = vld [vmem:[%s16085_s6 + $0x18] sm:$0xff] }
0x1b9d   : > { %v15627_v32 = vpop.eup %11945  ;;  %v8079_v48 = vmul.f32 %v15622_v9, %v8061_v62  ;;  %9792 = vmatpush3.msra.mxu1 %v8518_v47 }
0x1b9e   : > { %8094 = vrot.lane.b32.xlu1 %v8076_v0, %s16132_s0  ;;  %v15630_v5 = vpop.eup %11947  ;;  %v8080_v6 = vmul.f32 %v15627_v32, %v8063_v46  ;;  %v8533_v0 = vld [vmem:[%s16085_s6 + $0x98] sm:$0xff] }
0x1b9f   : > { %8096 = vrot.lane.b32.xlu0 %v8077_v10, %s16132_s0  ;;  %v8081_v60 = vmul.f32 %v15630_v5, %v8065_v24  ;;  %9793 = vmatprep.subr.mxu1 %v8533_v0 }
0x1ba0   : > { %9794 = vmatpush3.msra.mxu1 %v8517_v16 }
0x1ba2   : > { %8098 = vrot.lane.b32.xlu1 %v8078_v27, %s16132_s0 }
0x1ba3   : > { %8100 = vrot.lane.b32.xlu0 %v8079_v48, %s16132_s0 }
0x1ba6   : > { %8102 = vrot.lane.b32.xlu1 %v8080_v6, %s16132_s0  ;;  %v8138_v6 = vld [vmem:[#allocation3 + $0x2] sm:$0xff] }
0x1ba7   : > { %8104 = vrot.lane.b32.xlu0 %v8081_v60, %s16132_s0  ;;  %v8532_v60 = vld [vmem:[%s16085_s6 + $0x90] sm:$0xff] }
0x1ba8   : > { %9795 = vmatprep.subr.mxu1 %v8532_v60  ;;  %v8547_v60 = vld [vmem:[%s16085_s6 + $0x108] sm:$0xff] }
0x1ba9   : > { %9796 = vmatpush3.msra.mxu1 %v8516_v53 }
0x1baa   : > { %9797 = vmatprep.subr.mxu1 %v8531_v23 }
0x1bab   : > { %9798 = vmatpush3.msra.mxu1 %v8515_v34 }
0x1bac   : > { %9799 = vmatprep.subr.mxu1 %v8530_v38 }
0x1bad   : > { %9800 = vmatpush3.msra.mxu1 %v8514_v54 }
0x1c0c   : > { %v8091_v13 = vpop.permute.xlu1 %8090 }
0x1c0d   : > { %v8093_v58 = vpop.permute.xlu0 %8092  ;;  %8114 = vst.msk [vmem:[#allocation3 + $0x11] sm:$0xff] %vm416_vm0, %v8091_v13 }
0x1c0e   : > { %8115 = vst.msk [vmem:[#allocation3 + $0x21] sm:$0xff] %vm416_vm0, %v8093_v58 }
0x1c10   : > { %v8095_v17 = vpop.permute.xlu1 %8094 }
0x1c11   : > { %v8097_v4 = vpop.permute.xlu0 %8096  ;;  %8116 = vst.msk [vmem:[#allocation3 + $0x31] sm:$0xff] %vm416_vm0, %v8095_v17 }
0x1c12   : > { %8117 = vst.msk [vmem:[#allocation3 + $0x41] sm:$0xff] %vm416_vm0, %v8097_v4 }
0x1c14   : > { %v8099_v10 = vpop.permute.xlu1 %8098  ;;  %v8131_v62 = vld [vmem:[#allocation3 + $0x11] sm:$0xff] }
0x1c15   : > { %v8123_v27 = vld [vmem:[#allocation3 + $0x10] sm:$0xff]  ;;  %v8101_v48 = vpop.permute.xlu0 %8100  ;;  %8118 = vst.msk [vmem:[#allocation3 + $0x51] sm:$0xff] %vm416_vm0, %v8099_v10  ;;  %v11629_v46 = vpack.i.bf16 %v8131_v62, %v8130_v12  ;;  %v8147_v2 = vld [vmem:[#allocation3 + $0x20] sm:$0xff] }
0x1c16   : > { %v11624_v24 = vpack.i.bf16 %v8123_v27, %v8122_v59  ;;  %8119 = vst.msk [vmem:[#allocation3 + $0x61] sm:$0xff] %vm416_vm0, %v8101_v48  ;;  %v8139_v36 = vld [vmem:[#allocation3 + $0x12] sm:$0xff]  ;;  %v11639_v11 = vpack.i.bf16 %v8147_v2, %v8123_v27  ;;  %v15731_v49 = vld [vmem:[#allocation3 + $0x22] sm:$0xff] }
0x1c17   : > { %11630 = vrot.lane.b32.xlu0 %v11629_v46, %s16128_s13  ;;  %v11634_v44 = vpack.i.bf16 %v8139_v36, %v8138_v6  ;;  %v15734_v63 = vld [vmem:[#allocation3 + $0x21] sm:$0xff]  ;;  %v11649_v3 = vpack.i.bf16 %v15731_v49, %v8139_v36  ;;  %v8548_v46 = vld [vmem:[%s16085_s6 + $0x110] sm:$0xff] }
0x1c18   : > { %11625 = vrot.lane.b32.xlu1 %v11624_v24, %s16133_s1  ;;  %v8103_v19 = vpop.permute.xlu1 %8102  ;;  %v11644_v28 = vpack.i.bf16 %v15734_v63, %v8131_v62  ;;  %v8171_v35 = vld [vmem:[#allocation3 + $0x30] sm:$0xff]  ;;  %v8549_v62 = vld [vmem:[%s16085_s6 + $0x118] sm:$0xff] }
0x1c19   : > { %v8105_v33 = vpop.permute.xlu0 %8104  ;;  %8120 = vst.msk [vmem:[#allocation3 + $0x71] sm:$0xff] %vm416_vm0, %v8103_v19  ;;  %v11654_v13 = vpack.i.bf16 %v8171_v35, %v8147_v2  ;;  %v15754_v31 = vld [vmem:[#allocation3 + $0x31] sm:$0xff]  ;;  %v8149_v8 = vld [vmem:[#allocation3 + $0x40] sm:$0xff]  ;;  %9977 = vmatprep.subr.mxu0 %v8549_v62 }
0x1c1a   : > { %8121 = vst.msk [vmem:[#allocation3 + $0x81] sm:$0xff] %vm416_vm0, %v8105_v33  ;;  %v8141_v20 = vld [vmem:[#allocation3 + $0x32] sm:$0xff]  ;;  %v11664_v51 = vpack.i.bf16 %v15754_v31, %v15734_v63  ;;  %v15761_v17 = vld [vmem:[#allocation3 + $0x41] sm:$0xff]  ;;  %v11674_v42 = vpack.i.bf16 %v8149_v8, %v8171_v35  ;;  %9978 = vmatpush3.msra.mxu0 %v8549_v62 }
0x1c1b   : > { %11640 = vrot.lane.b32.xlu0 %v11639_v11, %s16130_s25  ;;  %v11669_v58 = vpack.i.bf16 %v8141_v20, %v15731_v49  ;;  %v11679_v61 = vpack.i.bf16 %v15761_v17, %v15754_v31  ;;  %v8165_v25 = vld [vmem:[#allocation3 + $0x42] sm:$0xff]  ;;  %9979 = vmatprep.subr.mxu0 %v8548_v46 }
0x1c1c   : > { %11635 = vrot.lane.b32.xlu1 %v11634_v44, %s16129_s23  ;;  %v8173_v4 = vld [vmem:[#allocation3 + $0x50] sm:$0xff]  ;;  %v11684_v47 = vpack.i.bf16 %v8165_v25, %v8141_v20  ;;  %9980 = vmatpush3.msra.mxu0 %v8548_v46  ;;  %v8546_v19 = vld [vmem:[%s16085_s6 + $0x100] sm:$0xff] }
0x1c1d   : > { %v11689_v12 = vpack.i.bf16 %v8173_v4, %v8149_v8  ;;  %v15769_v59 = vld [vmem:[#allocation3 + $0x51] sm:$0xff]  ;;  %v8151_v16 = vld [vmem:[#allocation3 + $0x60] sm:$0xff]  ;;  %9981 = vmatprep.subr.mxu0 %v8547_v60 }
0x1c1e   : > { %v11699_v0 = vpack.i.bf16 %v15769_v59, %v15761_v17  ;;  %v8143_v10 = vld [vmem:[#allocation3 + $0x52] sm:$0xff]  ;;  %v11709_v27 = vpack.i.bf16 %v8151_v16, %v8173_v4  ;;  %v8167_v24 = vld [vmem:[#allocation3 + $0x62] sm:$0xff]  ;;  %9982 = vmatpush3.msra.mxu0 %v8547_v60 }
0x1c1f   : > { %11650 = vrot.lane.b32.xlu0 %v11649_v3, %s16127_s26  ;;  %v11704_v48 = vpack.i.bf16 %v8143_v10, %v8165_v25  ;;  %v15783_v6 = vld [vmem:[#allocation3 + $0x61] sm:$0xff]  ;;  %v11719_v2 = vpack.i.bf16 %v8167_v24, %v8143_v10  ;;  %9983 = vmatprep.subr.mxu0 %v8546_v19 }
0x1c20   : > { %11645 = vrot.lane.b32.xlu1 %v11644_v28, %s16131_s30  ;;  %v11714_v36 = vpack.i.bf16 %v15783_v6, %v15769_v59  ;;  %v8175_v53 = vld [vmem:[#allocation3 + $0x70] sm:$0xff]  ;;  %9984 = vmatpush3.msra.mxu0 %v8546_v19 }
0x1c21   : > { %v11724_v33 = vpack.i.bf16 %v8175_v53, %v8151_v16  ;;  %v15797_v11 = vld [vmem:[#allocation3 + $0x71] sm:$0xff]  ;;  %v8153_v38 = vld [vmem:[#allocation3 + $0x80] sm:$0xff] }
0x1c22   : > { %v11734_v44 = vpack.i.bf16 %v15797_v11, %v15783_v6  ;;  %v8145_v23 = vld [vmem:[#allocation3 + $0x72] sm:$0xff]  ;;  %v15806_v3 = vld [vmem:[#allocation3 + $0x81] sm:$0xff]  ;;  %v11744_v28 = vpack.i.bf16 %v8153_v38, %v8175_v53 }
0x1c23   : > { %11660 = vrot.lane.b32.xlu0 %v11654_v13, %s16133_s1  ;;  %v11739_v34 = vpack.i.bf16 %v8145_v23, %v8167_v24  ;;  %v11749_v54 = vpack.i.bf16 %v15806_v3, %v15797_v11  ;;  %v8169_v35 = vld [vmem:[#allocation3 + $0x82] sm:$0xff]  ;;  %v11991_v16 = vld [vmem:[#allocation2 + $0x32] sm:$0xff] }
0x1c24   : > { %11655 = vrot.lane.b32.xlu1 %v11654_v13, %s16132_s0  ;;  %v8177_v13 = vld [vmem:[#allocation3 + $0x90] sm:$0xff] }
0x1c27   : > { %11670 = vrot.lane.b32.xlu0 %v11669_v58, %s16129_s23 }
0x1c28   : > { %11665 = vrot.lane.b32.xlu1 %v11664_v51, %s16128_s13 }
0x1c2b   : > { %11680 = vrot.lane.b32.xlu0 %v11679_v61, %s16131_s30 }
0x1c2c   : > { %11675 = vrot.lane.b32.xlu1 %v11674_v42, %s16130_s25 }
0x1c2f   : > { %11690 = vrot.lane.b32.xlu0 %v11689_v12, %s16132_s0 }
0x1c30   : > { %11685 = vrot.lane.b32.xlu1 %v11684_v47, %s16127_s26 }
0x1c33   : > { %11700 = vrot.lane.b32.xlu0 %v11699_v0, %s16128_s13 }
0x1c34   : > { %11695 = vrot.lane.b32.xlu1 %v11689_v12, %s16133_s1 }
0x1c37   : > { %11710 = vrot.lane.b32.xlu0 %v11709_v27, %s16130_s25 }
0x1c38   : > { %11705 = vrot.lane.b32.xlu1 %v11704_v48, %s16129_s23 }
0x1c3b   : > { %11720 = vrot.lane.b32.xlu0 %v11719_v2, %s16127_s26 }
0x1c3c   : > { %11715 = vrot.lane.b32.xlu1 %v11714_v36, %s16131_s30 }
0x1c3f   : > { %11730 = vrot.lane.b32.xlu0 %v11724_v33, %s16133_s1 }
0x1c40   : > { %11725 = vrot.lane.b32.xlu1 %v11724_v33, %s16132_s0 }
0x1c43   : > { %11735 = vrot.lane.b32.xlu0 %v11734_v44, %s16128_s13  ;;  %s9292_s13 = sshll.u32 %s12183_s21, 10 }
0x1c44   : > { %8482 = vrot.lane.b32.xlu1 %v15731_v49, %s16133_s1  ;;  %v11754_v49 = vpack.i.bf16 %v8169_v35, %v8145_v23 }
0x1c47   : > { %11740 = vrot.lane.b32.xlu0 %v11739_v34, %s16129_s23 }
0x1c48   : > { %8484 = vrot.lane.b32.xlu1 %v8141_v20, %s16133_s1  ;;  %v8193_v20 = vld [vmem:[#allocation3 + $0x92] sm:$0xff] }
0x1c4b   : > { %11750 = vrot.lane.b32.xlu0 %v11749_v54, %s16131_s30 }
0x1c4c   : > { %11745 = vrot.lane.b32.xlu1 %v11744_v28, %s16130_s25 }
0x1c4f   : > { %11755 = vrot.lane.b32.xlu0 %v11754_v49, %s16127_s26  ;;  %s15977_s26 = scalar_lea.hbm %s16089_s10, %s9291_s20 }
0x1c50   : > { %8486 = vrot.lane.b32.xlu1 %v8165_v25, %s16133_s1  ;;  %v11990_v25 = vld [vmem:[#allocation2 + $0x22] sm:$0xff] }
0x1c53   : > { %8406 = vrot.lane.b32.xlu0 %v8153_v38, %s16132_s0 }
0x1c54   : > { %8488 = vrot.lane.b32.xlu1 %v8143_v10, %s16133_s1 }
0x1c57   : > { %8492 = vrot.lane.b32.xlu0 %v8145_v23, %s16133_s1 }
0x1c58   : > { %8490 = vrot.lane.b32.xlu1 %v8167_v24, %s16133_s1 }
0x1c5b   : > { %8494 = vrot.lane.b32.xlu0 %v8169_v35, %s16133_s1 }
0x1c5c   : > { %8408 = vrot.lane.b32.xlu1 %v8177_v13, %s16132_s0 }
0x1c60   : > { %8496 = vrot.lane.b32.xlu1 %v8193_v20, %s16133_s1 }
0x1c89   : > { %v11631_v51 = vpop.permute.xlu0 %11630 }
0x1c8a   : > { %v11626_v58 = vpop.permute.xlu1 %11625  ;;  %v11632_v61 = vunpack.i.l.bf16 %v11631_v51  ;;  %v11633_v47 = vunpack.i.h.bf16 %v11631_v51 }
0x1c8b   : > { %v11628_v8 = vunpack.i.h.bf16 %v11626_v58  ;;  %v11627_v42 = vunpack.i.l.bf16 %v11626_v58 }
0x1c8d   : > { %v8418_v4 = vsel %vm416_vm0, %v11990_v25, %v11627_v42  ;;  %v11641_v12 = vpop.permute.xlu0 %11640  ;;  %v8419_v10 = vsel %vm416_vm0, %v11991_v16, %v11628_v8 }
0x1c8e   : > { %v11636_v0 = vpop.permute.xlu1 %11635  ;;  %v11642_v48 = vunpack.i.l.bf16 %v11641_v12  ;;  %v8426_v46 = vsel %vm1094_vm2, %v8418_v4, %v11632_v61  ;;  %v11643_v60 = vunpack.i.h.bf16 %v11641_v12  ;;  %v8427_v2 = vsel %vm1094_vm2, %v8419_v10, %v11633_v47  ;;  %v11992_v10 = vld [vmem:[#allocation2 + $0x52] sm:$0xff] }
0x1c8f   : > { %v11638_v62 = vunpack.i.h.bf16 %v11636_v0  ;;  %v11637_v27 = vunpack.i.l.bf16 %v11636_v0 }
0x1c91   : > { %v8434_v24 = vsel %vm1103_vm3, %v8426_v46, %v11637_v27  ;;  %v11651_v36 = vpop.permute.xlu0 %11650  ;;  %v8435_v19 = vsel %vm1103_vm3, %v8427_v2, %v11638_v62  ;;  %v11993_v27 = vld [vmem:[#allocation2 + $0x42] sm:$0xff] }
0x1c92   : > { %v11646_v53 = vpop.permute.xlu1 %11645  ;;  %v11652_v23 = vunpack.i.l.bf16 %v11651_v36  ;;  %v8442_v34 = vsel %vm1112_vm4, %v8434_v24, %v11642_v48  ;;  %v11653_v28 = vunpack.i.h.bf16 %v11651_v36  ;;  %v8443_v49 = vsel %vm1112_vm4, %v8435_v19, %v11643_v60 }
0x1c93   : > { %v11648_v33 = vunpack.i.h.bf16 %v11646_v53  ;;  %v11647_v44 = vunpack.i.l.bf16 %v11646_v53 }
0x1c95   : > { %v8450_v38 = vsel %vm1121_vm5, %v8442_v34, %v11647_v44  ;;  %v11661_v54 = vpop.permute.xlu0 %11660  ;;  %v8451_v51 = vsel %vm1121_vm5, %v8443_v49, %v11648_v33 }
0x1c96   : > { %v11656_v35 = vpop.permute.xlu1 %11655  ;;  %v11663_v58 = vunpack.i.h.bf16 %v11661_v54  ;;  %v11662_v8 = vunpack.i.l.bf16 %v11661_v54  ;;  %v8458_v42 = vsel %vm1130_vm6, %v8450_v38, %v11652_v23  ;;  %v8459_v47 = vsel %vm1130_vm6, %v8451_v51, %v11653_v28 }
0x1c97   : > { %v11658_v13 = vunpack.i.h.bf16 %v11656_v35  ;;  %v11657_v20 = vunpack.i.l.bf16 %v11656_v35 }
0x1c98   : > { %v8421_v62 = vsel %vm416_vm0, %v11992_v10, %v11663_v58  ;;  %v8420_v48 = vsel %vm416_vm0, %v11993_v27, %v11662_v8  ;;  %v11994_v10 = vld [vmem:[#allocation2 + $0x62] sm:$0xff] }
0x1c99   : > { %v8466_v61 = vsel %vm1139_vm7, %v8458_v42, %v11657_v20  ;;  %v11671_v25 = vpop.permute.xlu0 %11670  ;;  %v8467_v16 = vsel %vm1139_vm7, %v8459_v47, %v11658_v13 }
0x1c9a   : > { %v11666_v4 = vpop.permute.xlu1 %11665  ;;  %8645 = vmatprep.mubr.f32.mxu1 %v8466_v61  ;;  %v11673_v46 = vunpack.i.h.bf16 %v11671_v25  ;;  %v11672_v24 = vunpack.i.l.bf16 %v11671_v25 }
0x1c9b   : > { %v11668_v12 = vunpack.i.h.bf16 %v11666_v4  ;;  %v11667_v0 = vunpack.i.l.bf16 %v11666_v4  ;;  %8646 = vmatmul.mubr.f32.vlgmr.msra.gmra.mxu1 %v15397_v55 }
0x1c9c   : > { %8650 = vmatprep.mubr.f32.mxu1 %v8467_v16 }
0x1c9d   : > { %v8429_v60 = vsel %vm1094_vm2, %v8421_v62, %v11668_v12  ;;  %v8428_v2 = vsel %vm1094_vm2, %v8420_v48, %v11667_v0  ;;  %v11681_v36 = vpop.permute.xlu0 %11680 }
0x1c9e   : > { %v11676_v53 = vpop.permute.xlu1 %11675  ;;  %v11683_v55 = vunpack.i.h.bf16 %v11681_v36  ;;  %v11682_v44 = vunpack.i.l.bf16 %v11681_v36  ;;  %v8436_v23 = vsel %vm1103_vm3, %v8428_v2, %v11672_v24  ;;  %v8437_v34 = vsel %vm1103_vm3, %v8429_v60, %v11673_v46  ;;  %v11995_v24 = vld [vmem:[#allocation2 + $0x72] sm:$0xff] }
0x1c9f   : > { %v11678_v19 = vunpack.i.h.bf16 %v11676_v53  ;;  %v11677_v33 = vunpack.i.l.bf16 %v11676_v53  ;;  %8651 = vmatmul.mubr.f32.gmra.mxu1 %v15416_v7 }
0x1ca1   : > { %v8444_v38 = vsel %vm1112_vm4, %v8436_v23, %v11677_v33  ;;  %v8445_v28 = vsel %vm1112_vm4, %v8437_v34, %v11678_v19  ;;  %v11691_v54 = vpop.permute.xlu0 %11690 }
0x1ca2   : > { %v11686_v35 = vpop.permute.xlu1 %11685  ;;  %v11692_v49 = vunpack.i.l.bf16 %v11691_v54  ;;  %v11693_v51 = vunpack.i.h.bf16 %v11691_v54  ;;  %v8452_v58 = vsel %vm1121_vm5, %v8444_v38, %v11682_v44  ;;  %v8453_v7 = vsel %vm1121_vm5, %v8445_v28, %v11683_v55 }
0x1ca3   : > { %v11688_v13 = vunpack.i.h.bf16 %v11686_v35  ;;  %v11687_v20 = vunpack.i.l.bf16 %v11686_v35 }
0x1ca5   : > { %v8460_v8 = vsel %vm1130_vm6, %v8452_v58, %v11687_v20  ;;  %v8461_v42 = vsel %vm1130_vm6, %v8453_v7, %v11688_v13  ;;  %v11701_v61 = vpop.permute.xlu0 %11700 }
0x1ca6   : > { %v11696_v25 = vpop.permute.xlu1 %11695  ;;  %v8468_v4 = vsel %vm1139_vm7, %v8460_v8, %v11692_v49  ;;  %v11702_v0 = vunpack.i.l.bf16 %v11701_v61  ;;  %v8469_v16 = vsel %vm1139_vm7, %v8461_v42, %v11693_v51  ;;  %v11703_v27 = vunpack.i.h.bf16 %v11701_v61 }
0x1ca7   : > { %v11698_v47 = vunpack.i.h.bf16 %v11696_v25  ;;  %v11697_v12 = vunpack.i.l.bf16 %v11696_v25  ;;  %8655 = vmatprep.mubr.f32.mxu1 %v8468_v4 }
0x1ca8   : > { %8656 = vmatmul.mubr.f32.gmra.mxu1 %v15435_v43 }
0x1ca9   : > { %v8422_v62 = vsel %vm416_vm0, %v11994_v10, %v11697_v12  ;;  %8660 = vmatprep.mubr.f32.mxu1 %v8469_v16  ;;  %v11711_v48 = vpop.permute.xlu0 %11710  ;;  %v8423_v60 = vsel %vm416_vm0, %v11995_v24, %v11698_v47 }
0x1caa   : > { %v11706_v46 = vpop.permute.xlu1 %11705  ;;  %v11712_v53 = vunpack.i.l.bf16 %v11711_v48  ;;  %v8430_v19 = vsel %vm1094_vm2, %v8422_v62, %v11702_v0  ;;  %v11713_v33 = vunpack.i.h.bf16 %v11711_v48  ;;  %v8431_v55 = vsel %vm1094_vm2, %v8423_v60, %v11703_v27 }
0x1cab   : > { %v11708_v2 = vunpack.i.h.bf16 %v11706_v46  ;;  %v11707_v36 = vunpack.i.l.bf16 %v11706_v46 }
0x1cac   : > { %8661 = vmatmul.mubr.f32.gmra.mxu1 %v15454_v57 }
0x1cad   : > { %v8438_v43 = vsel %vm1103_vm3, %v8430_v19, %v11707_v36  ;;  %v11721_v44 = vpop.permute.xlu0 %11720  ;;  %v8439_v34 = vsel %vm1103_vm3, %v8431_v55, %v11708_v2 }
0x1cae   : > { %v11716_v23 = vpop.permute.xlu1 %11715  ;;  %v11722_v54 = vunpack.i.l.bf16 %v11721_v44  ;;  %v8446_v35 = vsel %vm1112_vm4, %v8438_v43, %v11712_v53  ;;  %v11723_v13 = vunpack.i.h.bf16 %v11721_v44  ;;  %v8447_v57 = vsel %vm1112_vm4, %v8439_v34, %v11713_v33 }
0x1caf   : > { %v11718_v38 = vunpack.i.h.bf16 %v11716_v23  ;;  %v11717_v28 = vunpack.i.l.bf16 %v11716_v23 }
0x1cb1   : > { %v8454_v49 = vsel %vm1121_vm5, %v8446_v35, %v11717_v28  ;;  %v11731_v20 = vpop.permute.xlu0 %11730  ;;  %v8455_v8 = vsel %vm1121_vm5, %v8447_v57, %v11718_v38 }
0x1cb2   : > { %v11726_v51 = vpop.permute.xlu1 %11725  ;;  %v8462_v42 = vsel %vm1130_vm6, %v8454_v49, %v11722_v54  ;;  %v8463_v47 = vsel %vm1130_vm6, %v8455_v8, %v11723_v13  ;;  %v11732_v16 = vunpack.i.l.bf16 %v11731_v20  ;;  %v11733_v55 = vunpack.i.h.bf16 %v11731_v20  ;;  %v11997_v13 = vld [vmem:[#allocation2 + $0x92] sm:$0xff] }
0x1cb3   : > { %v11728_v58 = vunpack.i.h.bf16 %v11726_v51  ;;  %v11727_v7 = vunpack.i.l.bf16 %v11726_v51 }
0x1cb4   : > { %v8425_v51 = vsel %vm416_vm0, %v11997_v13, %v11733_v55 }
0x1cb5   : > { %v8470_v61 = vsel %vm1139_vm7, %v8462_v42, %v11727_v7  ;;  %v11736_v25 = vpop.permute.xlu0 %11735  ;;  %v8471_v0 = vsel %vm1139_vm7, %v8463_v47, %v11728_v58 }
0x1cb6   : > { %v8483_v4 = vpop.permute.xlu1 %8482  ;;  %8665 = vmatprep.mubr.f32.mxu1 %v8470_v61  ;;  %v11737_v27 = vunpack.i.l.bf16 %v11736_v25  ;;  %v11738_v23 = vunpack.i.h.bf16 %v11736_v25 }
0x1cb7   : > { %v8506_v12 = vsel %vm416_vm0, %v15734_v63, %v8483_v4  ;;  %8666 = vmatmul.mubr.f32.gmra.mxu1 %v15473_v37  ;;  %v11996_v63 = vld [vmem:[#allocation2 + $0x82] sm:$0xff] }
0x1cb8   : > { %8670 = vmatprep.mubr.f32.mxu1 %v8471_v0  ;;  %9985 = vmatprep.mubr.msk.f32.mxu0 %vm1094_vm2, %v8506_v12  ;;  %v8424_v37 = vsel %vm416_vm0, %v11996_v63, %v11732_v16 }
0x1cb9   : > { %v11741_v10 = vpop.permute.xlu0 %11740  ;;  %v8432_v2 = vsel %vm1094_vm2, %v8424_v37, %v11737_v27 }
0x1cba   : > { %v8485_v62 = vpop.permute.xlu1 %8484  ;;  %v11742_v46 = vunpack.i.l.bf16 %v11741_v10  ;;  %v11743_v38 = vunpack.i.h.bf16 %v11741_v10 }
0x1cbb   : > { %v8507_v48 = vsel %vm416_vm0, %v15754_v31, %v8485_v62  ;;  %8671 = vmatmul.mubr.f32.gmra.mxu1 %v15502_v14 }
0x1cbc   : > { %9986 = vmatmul.mubr.msk.f32.vlgmr.msra.gmra.mxu0 %vm1094_vm2, %v8507_v48  ;;  %v8440_v53 = vsel %vm1103_vm3, %v8432_v2, %v11742_v46 }
0x1cbd   : > { %v11751_v24 = vpop.permute.xlu0 %11750 }
0x1cbe   : > { %v11746_v60 = vpop.permute.xlu1 %11745  ;;  %v11752_v19 = vunpack.i.l.bf16 %v11751_v24  ;;  %v11753_v7 = vunpack.i.h.bf16 %v11751_v24 }
0x1cbf   : > { %v11747_v36 = vunpack.i.l.bf16 %v11746_v60  ;;  %v11748_v54 = vunpack.i.h.bf16 %v11746_v60 }
0x1cc1   : > { %v8448_v43 = vsel %vm1112_vm4, %v8440_v53, %v11747_v36  ;;  %v11756_v33 = vpop.permute.xlu0 %11755 }
0x1cc2   : > { %v8487_v31 = vpop.permute.xlu1 %8486  ;;  %v11757_v14 = vunpack.i.l.bf16 %v11756_v33  ;;  %v8456_v34 = vsel %vm1121_vm5, %v8448_v43, %v11752_v19  ;;  %v11758_v42 = vunpack.i.h.bf16 %v11756_v33 }
0x1cc3   : > { %v8508_v44 = vsel %vm416_vm0, %v15761_v17, %v8487_v31  ;;  %v8433_v17 = vsel %vm1094_vm2, %v8425_v51, %v11738_v23 }
0x1cc4   : > { %9988 = vmatprep.mubr.msk.f32.mxu0 %vm1094_vm2, %v8508_v44  ;;  %v8464_v28 = vsel %vm1130_vm6, %v8456_v34, %v11757_v14  ;;  %v8441_v58 = vsel %vm1103_vm3, %v8433_v17, %v11743_v38 }
0x1cc5   : > { %v8407_v35 = vpop.permute.xlu0 %8406  ;;  %v8449_v8 = vsel %vm1112_vm4, %v8441_v58, %v11748_v54 }
0x1cc6   : > { %v8489_v49 = vpop.permute.xlu1 %8488  ;;  %v8472_v57 = vsel %vm1139_vm7, %v8464_v28, %v8407_v35  ;;  %v8457_v47 = vsel %vm1121_vm5, %v8449_v8, %v11753_v7 }
0x1cc7   : > { %v8509_v20 = vsel %vm416_vm0, %v15769_v59, %v8489_v49  ;;  %8675 = vmatprep.mubr.f32.mxu1 %v8472_v57 }
0x1cc8   : > { %9989 = vmatmul.mubr.msk.f32.gmra.mxu0 %vm1094_vm2, %v8509_v20  ;;  %8676 = vmatmul.mubr.f32.gmra.mxu1 %v15531_v18  ;;  %v8465_v18 = vsel %vm1130_vm6, %v8457_v47, %v11758_v42 }
0x1cc9   : > { %v8493_v61 = vpop.permute.xlu0 %8492 }
0x1cca   : > { %v8491_v25 = vpop.permute.xlu1 %8490  ;;  %v8511_v59 = vsel %vm416_vm0, %v15797_v11, %v8493_v61  ;;  %v8185_v11 = vld [vmem:[#allocation3 + $0x91] sm:$0xff] }
0x1ccb   : > { %v8510_v4 = vsel %vm416_vm0, %v15783_v6, %v8491_v25 }
0x1ccc   : > { %9991 = vmatprep.mubr.msk.f32.mxu0 %vm1094_vm2, %v8510_v4 }
0x1ccd   : > { %9992 = vmatmul.mubr.msk.f32.gmra.mxu0 %vm1094_vm2, %v8511_v59  ;;  %v8495_v12 = vpop.permute.xlu0 %8494 }
0x1cce   : > { %v8409_v0 = vpop.permute.xlu1 %8408  ;;  %v8512_v16 = vsel %vm416_vm0, %v15806_v3, %v8495_v12 }
0x1ccf   : > { %v8473_v10 = vsel %vm1139_vm7, %v8465_v18, %v8409_v0  ;;  %9994 = vmatprep.mubr.msk.f32.mxu0 %vm1094_vm2, %v8512_v16 }
0x1cd0   : > { %8680 = vmatprep.mubr.f32.mxu1 %v8473_v10 }
0x1cd1   : > { %8681 = vmatmul.mubr.f32.gmra.mxu1 %v15557_v26  ;;  %v9262_v26 = vld [vmem:[%s16086_s7] ss:$0 sm:$0xff] }
0x1cd2   : > { %v8497_v6 = vpop.permute.xlu1 %8496 }
0x1cd3   : > { %v8513_v62 = vsel %vm416_vm0, %v8185_v11, %v8497_v6 }
0x1cd4   : > { %9995 = vmatmul.mubr.msk.f32.gmra.mxu0 %vm1094_vm2, %v8513_v62 }
0x1d5b   : > { %v9801_v27 = vpop.f32.mrf.mxu1 }
0x1d5d   : > { %v9802_v48 = vpop.f32.mrf.mxu1 }
0x1d5e   : > { %v9803_v53 = vadd.f32 %v9802_v48, %v9801_v27 }
0x1d5f   : > { %v9804_v46 = vpop.f32.mrf.mxu1 }
0x1d60   : > { %v8648_v31 = vadd.f32 %v9803_v53, %v9262_v26 }
0x1d61   : > { %v9805_v63 = vpop.f32.mrf.mxu1 }
0x1d62   : > { %v9806_v43 = vadd.f32 %v9805_v63, %v9804_v46 }
0x1d64   : > { %v8653_v23 = vadd.f32 %v9806_v43, %v9262_v26 }
0x1d68   : > { %v9807_v37 = vpop.f32.mrf.mxu1 }
0x1d6a   : > { %v9808_v24 = vpop.f32.mrf.mxu1 }
0x1d6b   : > { %v9809_v14 = vadd.f32 %v9808_v24, %v9807_v37 }
0x1d6c   : > { %v9810_v3 = vpop.f32.mrf.mxu1 }
0x1d6d   : > { %v8658_v13 = vadd.f32 %v9809_v14, %v9262_v26 }
0x1d6e   : > { %v9811_v60 = vpop.f32.mrf.mxu1 }
0x1d6f   : > { %v9812_v44 = vadd.f32 %v9811_v60, %v9810_v3 }
0x1d71   : > { %v8663_v49 = vadd.f32 %v9812_v44, %v9262_v26 }
0x1d77   : > { %v9813_v2 = vpop.f32.mrf.mxu1 }
0x1d79   : > { %v9814_v19 = vpop.f32.mrf.mxu1 }
0x1d7a   : > { %v9815_v51 = vadd.f32 %v9814_v19, %v9813_v2 }
0x1d7b   : > { %v9816_v55 = vpop.f32.mrf.mxu1 }
0x1d7c   : > { %v9987_v36 = vpop.f32.mrf.mxu0  ;;  %v8668_v47 = vadd.f32 %v9815_v51, %v9262_v26 }
0x1d7d   : > { %v8758_v38 = vadd.f32 %v9987_v36, %v8653_v23  ;;  %v9817_v28 = vpop.f32.mrf.mxu1 }
0x1d7e   : > { %v8752_v33 = vpop.f32.mrf.mxu0  ;;  %v9818_v42 = vadd.f32 %v9817_v28, %v9816_v55 }
0x1d7f   : > { %v8753_v34 = vadd.f32 %v8752_v33, %v8648_v31  ;;  %v8794_v17 = vsel %vm416_vm0, %v8758_v38, 0.0 }
0x1d80   : > { %v8673_v11 = vadd.f32 %v9818_v42, %v9262_v26 }
0x1d81   : > { %v8793_v35 = vsel %vm416_vm0, %v8753_v34, 0.0 }
0x1d82   : > { %v8795_v8 = vadd.f32 %v8794_v17, %v8793_v35 }
0x1d88   : > { %v9990_v54 = vpop.f32.mrf.mxu0  ;;  %v9819_v20 = vpop.f32.mrf.mxu1 }
0x1d89   : > { %v8768_v58 = vadd.f32 %v9990_v54, %v8663_v49 }
0x1d8a   : > { %v8762_v57 = vpop.f32.mrf.mxu0  ;;  %v9820_v4 = vpop.f32.mrf.mxu1 }
0x1d8b   : > { %v8763_v7 = vadd.f32 %v8762_v57, %v8658_v13  ;;  %v8798_v12 = vsel %vm416_vm0, %v8768_v58, 0.0  ;;  %v9821_v10 = vadd.f32 %v9820_v4, %v9819_v20 }
0x1d8d   : > { %v8796_v61 = vsel %vm416_vm0, %v8763_v7, 0.0  ;;  %v9993_v25 = vpop.f32.mrf.mxu0  ;;  %v8678_v24 = vadd.f32 %v9821_v10, %v9262_v26 }
0x1d8e   : > { %v8797_v59 = vadd.f32 %v8796_v61, %v8795_v8  ;;  %v8778_v27 = vadd.f32 %v9993_v25, %v8673_v11 }
0x1d8f   : > { %v8772_v0 = vpop.f32.mrf.mxu0 }
0x1d90   : > { %v8773_v18 = vadd.f32 %v8772_v0, %v8668_v47  ;;  %v8799_v16 = vadd.f32 %v8798_v12, %v8797_v59  ;;  %v8802_v2 = vsel %vm416_vm0, %v8778_v27, 0.0 }
0x1d91   : > { %v9822_v6 = vpop.f32.mrf.mxu1 }
0x1d92   : > { %v8800_v62 = vsel %vm416_vm0, %v8773_v18, 0.0 }
0x1d93   : > { %v9823_v48 = vpop.f32.mrf.mxu1  ;;  %v8801_v46 = vadd.f32 %v8800_v62, %v8799_v16 }
0x1d94   : > { %v9824_v63 = vadd.f32 %v9823_v48, %v9822_v6  ;;  %v9996_v37 = vpop.f32.mrf.mxu0 }
0x1d95   : > { %v8803_v19 = vadd.f32 %v8802_v2, %v8801_v46 }
0x1d96   : > { %v8683_v3 = vadd.f32 %v9824_v63, %v9262_v26  ;;  %v8782_v60 = vpop.f32.mrf.mxu0 }
0x1d97   : > { %v8783_v36 = vadd.f32 %v8782_v60, %v8678_v24 }
0x1d98   : > { %v8788_v53 = vadd.f32 %v9996_v37, %v8683_v3 }
0x1d99   : > { %v8804_v43 = vsel %vm416_vm0, %v8783_v36, 0.0 }
0x1d9a   : > { %v8806_v33 = vsel %vm416_vm0, %v8788_v53, 0.0  ;;  %v8805_v31 = vadd.f32 %v8804_v43, %v8803_v19 }
0x1d9c   : > { %v8807_v55 = vadd.f32 %v8806_v33, %v8805_v31 }
0x1d9e   : > { %8808 = vadd.xlane.f32.xlu0 %v8807_v55 }
0x1e27   : > { %v8809_v14 = vpop.xlane.xlu0 %8808 }
0x1e28   : > { %v8810_v44 = vrot.slane %v8809_v14, 4 }
0x1e2a   : > { %v8811_v23 = vadd.f32 %v8810_v44, %v8809_v14  ;;  %v9271_v14 = vld [vmem:[%s16087_s8] ss:$0 sm:$0xff] }
0x1e2c   : > { %v8812_v28 = vrot.slane %v8811_v23, 2 }
0x1e2e   : > { %v8813_v54 = vadd.f32 %v8812_v28, %v8811_v23 }
0x1e30   : > { %v8814_v35 = vrot.slane %v8813_v54, 1 }
0x1e32   : > { %v8815_v26 = vadd.f32 %v8814_v35, %v8813_v54 }
0x1e34   : > { %10039 = vpush %v8815_v26  ;;  %v9272_v26 = vld [vmem:[%s16088_s9] ss:$0 sm:$0xff] }
0x1e65   : > { %s10040_s23 = spop %10039 }
0x1e66   : > { %s8819_s25 = smul.f32 0.0009765625, %s10040_s23  ;;  %s8997_s23 = sshll.u32 %s15957_s19, 4  ;;  %s16006_s23 = int_to_ptr.vmem [resolvable:$true] %s8997_s23 }
0x1e68   : > { %v8820_v49 = vstv %s8819_s25 }
0x1e69   : > { %v8821_v13 = vsub.f32 %v8753_v34, %v8820_v49  ;;  %v8822_v51 = vsub.f32 %v8758_v38, %v8820_v49  ;;  %v8823_v20 = vsub.f32 %v8763_v7, %v8820_v49  ;;  %v8824_v57 = vsub.f32 %v8768_v58, %v8820_v49 }
0x1e6a   : > { %v8825_v17 = vsub.f32 %v8773_v18, %v8820_v49  ;;  %v8826_v25 = vsub.f32 %v8778_v27, %v8820_v49  ;;  %v8827_v0 = vsub.f32 %v8783_v36, %v8820_v49  ;;  %v8828_v34 = vsub.f32 %v8788_v53, %v8820_v49 }
0x1e6b   : > { %v8829_v8 = vmul.f32 %v8821_v13, %v8821_v13  ;;  %v8830_v42 = vmul.f32 %v8822_v51, %v8822_v51  ;;  %v8831_v61 = vmul.f32 %v8823_v20, %v8823_v20  ;;  %v8832_v59 = vmul.f32 %v8824_v57, %v8824_v57 }
0x1e6c   : > { %v8833_v16 = vmul.f32 %v8825_v17, %v8825_v17  ;;  %v8834_v38 = vmul.f32 %v8826_v25, %v8826_v25  ;;  %v8835_v18 = vmul.f32 %v8827_v0, %v8827_v0  ;;  %v8836_v27 = vmul.f32 %v8828_v34, %v8828_v34 }
0x1e6d   : > { %v8837_v4 = vsel %vm416_vm0, %v8829_v8, 0.0  ;;  %v8838_v47 = vsel %vm416_vm0, %v8830_v42, 0.0  ;;  %v8840_v10 = vsel %vm416_vm0, %v8831_v61, 0.0  ;;  %v8842_v58 = vsel %vm416_vm0, %v8832_v59, 0.0 }
0x1e6e   : > { %v8839_v12 = vadd.f32 %v8838_v47, %v8837_v4  ;;  %v8844_v6 = vsel %vm416_vm0, %v8833_v16, 0.0  ;;  %v8846_v48 = vsel %vm416_vm0, %v8834_v38, 0.0  ;;  %v8848_v63 = vsel %vm416_vm0, %v8835_v18, 0.0 }
0x1e6f   : > { %v8850_v24 = vsel %vm416_vm0, %v8836_v27, 0.0  ;;  %v8915_v18 = vsub.f32 1.0, %v15611_v56 }
0x1e70   : > { %v8841_v11 = vadd.f32 %v8840_v10, %v8839_v12 }
0x1e72   : > { %v8843_v7 = vadd.f32 %v8842_v58, %v8841_v11 }
0x1e74   : > { %v8845_v62 = vadd.f32 %v8844_v6, %v8843_v7 }
0x1e76   : > { %v8847_v46 = vadd.f32 %v8846_v48, %v8845_v62  ;;  %v8916_v62 = vsub.f32 1.0, %v15614_v39  ;;  %v8917_v48 = vsub.f32 1.0, %v15619_v41 }
0x1e78   : > { %v8849_v37 = vadd.f32 %v8848_v63, %v8847_v46 }
0x1e7a   : > { %v8851_v3 = vadd.f32 %v8850_v24, %v8849_v37  ;;  %v8918_v24 = vsub.f32 1.0, %v15622_v9 }
0x1e7c   : > { %8852 = vadd.xlane.f32.xlu1 %v8851_v3 }
0x1f05   : > { %v8853_v60 = vpop.xlane.xlu1 %8852 }
0x1f06   : > { %v8854_v2 = vrot.slane %v8853_v60, 4 }
0x1f08   : > { %v8855_v36 = vadd.f32 %v8854_v2, %v8853_v60 }
0x1f0a   : > { %v8856_v53 = vrot.slane %v8855_v36, 2 }
0x1f0c   : > { %v8857_v19 = vadd.f32 %v8856_v53, %v8855_v36  ;;  %v8919_v36 = vsub.f32 1.0, %v15627_v32  ;;  %v8923_v53 = vmul.f32 %v8915_v18, %v15139_v50 }
0x1f0e   : > { %v8858_v43 = vrot.slane %v8857_v19, 1 }
0x1f10   : > { %v8859_v33 = vadd.f32 %v8858_v43, %v8857_v19 }
0x1f12   : > { %10041 = vpush %v8859_v33  ;;  %v8920_v33 = vsub.f32 1.0, %v15630_v5 }
0x1f43   : > { %s10042_s30 = spop %10041 }
0x1f44   : > { %s8863_s0 = smul.f32 0.0009765625, %s10042_s30  ;;  %s16134_s30 = sld [smem:[#allocation19_spill]] }
0x1f46   : > { %s8864_s1 = sadd.f32 1e-05, %s8863_s0 }
0x1f48   : > { %v8865_v31 = vstv %s8864_s1  ;;  %s8963_s1 = scalar_lea.sflag [#allocation5], %s13208_s22 }
0x1f49   : > { %11949 = vrsqrt.f32 %v8865_v31 }
0x1f4a   : > { %s16004_s0 = scalar_lea.hbm %s16134_s30, %s9292_s13 }
0x1f56   : > { %v11950_v55 = vpop.eup %11949 }
0x1f57   : > { %10043 = vpush %v11950_v55  ;;  %v8925_v55 = vmul.f32 %v8917_v48, %v15160_v52 }
0x1f88   : > { %s10044_s16 = spop %10043 }
0x1f89   : > { %v8868_v44 = vstv %s10044_s16  ;;  %s11998_s16 = scalar_lea.vmem %s15991_s18, 4096 }
0x1f8a   : > { %v8869_v23 = vmul.f32 %v8868_v44, %v8821_v13  ;;  %v8870_v28 = vmul.f32 %v8868_v44, %v8822_v51  ;;  %v8871_v54 = vmul.f32 %v8868_v44, %v8823_v20  ;;  %v8872_v35 = vmul.f32 %v8868_v44, %v8824_v57  ;;  %p11999_p11 = scmp.ne.s32.totalorder %s15991_s18, %s11998_s16  ;;  %p12006_p1 = scmp.lt.s32.totalorder %s12004_s15, %s11998_s16 }
0x1f8b   : > { %v8873_v49 = vmul.f32 %v8868_v44, %v8825_v17  ;;  %v8874_v8 = vmul.f32 %v8868_v44, %v8826_v25  ;;  %v8875_v42 = vmul.f32 %v8868_v44, %v8827_v0  ;;  %v8876_v61 = vmul.f32 %v8868_v44, %v8828_v34 }
0x1f8c   : > { %v8883_v59 = vmul.f32 %v9271_v14, %v8869_v23  ;;  %v8884_v4 = vmul.f32 %v9271_v14, %v8870_v28  ;;  %v8885_v47 = vmul.f32 %v9271_v14, %v8871_v54  ;;  %v8886_v12 = vmul.f32 %v9271_v14, %v8872_v35  ;;  %p12000_p12 = pnand %p11999_p11, %p12200_p5  ;;  %p12007_p2 = por %p12006_p1, %p12005_p0 }
0x1f8d   : > { %v8887_v16 = vmul.f32 %v9271_v14, %v8873_v49  ;;  %v8888_v10 = vmul.f32 %v9271_v14, %v8874_v8  ;;  %v8889_v11 = vmul.f32 %v9271_v14, %v8875_v42  ;;  %v8890_v20 = vmul.f32 %v9271_v14, %v8876_v61 }
0x1f8e   : > { %v8897_v38 = vadd.f32 %v9272_v26, %v8883_v59  ;;  %v8898_v13 = vadd.f32 %v9272_v26, %v8884_v4  ;;  %v8899_v51 = vadd.f32 %v9272_v26, %v8885_v47  ;;  %v8900_v57 = vadd.f32 %v9272_v26, %v8886_v12  ;;  %p12001_p13 = pneg %p12000_p12 }
0x1f8f   : > { %v8901_v58 = vadd.f32 %v9272_v26, %v8887_v16  ;;  %v8902_v7 = vadd.f32 %v9272_v26, %v8888_v10  ;;  %v8903_v17 = vadd.f32 %v9272_v26, %v8889_v11  ;;  %v8904_v25 = vadd.f32 %v9272_v26, %v8890_v20 }
0x1f90   : > { %11951 = vtanh.f32 %v8897_v38  ;;  %v8913_v0 = vsub.f32 1.0, %v15606_v29  ;;  %v8914_v34 = vsub.f32 1.0, %v15608_v40  ;;  %v8927_v44 = vmul.f32 %v8919_v36, %v15185_v1  ;;  %p12008_p3 = pnand %p12007_p2, %p12001_p13 }
0x1f91   : > { %11953 = vtanh.f32 %v8898_v13 }
0x1f92   : > { %11955 = vtanh.f32 %v8899_v51  ;;  %v8921_v46 = vmul.f32 %v8913_v0, %v15121_v45  ;;  %v8922_v3 = vmul.f32 %v8914_v34, %v15126_v22 }
0x1f93   : > { %11957 = vtanh.f32 %v8900_v57 }
0x1f94   : > { %11959 = vtanh.f32 %v8901_v58 }
0x1f95   : > { %11961 = vtanh.f32 %v8902_v7 }
0x1f96   : > { %11963 = vtanh.f32 %v8903_v17 }
0x1f97   : > { %11965 = vtanh.f32 %v8904_v25 }
0x1f9d   : > { %v11952_v6 = vpop.eup %11951 }
0x1f9e   : > { %v11954_v27 = vpop.eup %11953  ;;  %v8929_v63 = vmul.f32 %v11952_v6, %v15606_v29  ;;  %v8924_v29 = vmul.f32 %v8916_v62, %v15151_v30 }
0x1f9f   : > { %v11956_v37 = vpop.eup %11955  ;;  %v8930_v60 = vmul.f32 %v11954_v27, %v15608_v40 }
0x1fa0   : > { %v11958_v2 = vpop.eup %11957  ;;  %v8931_v19 = vmul.f32 %v11956_v37, %v15611_v56  ;;  %v8937_v43 = vadd.f32 %v8929_v63, %v8921_v46  ;;  %v8926_v56 = vmul.f32 %v8918_v24, %v15169_v21 }
0x1fa1   : > { %v11960_v45 = vpop.eup %11959  ;;  %v8932_v31 = vmul.f32 %v11958_v2, %v15614_v39  ;;  %v8938_v22 = vadd.f32 %v8930_v60, %v8922_v3 }
0x1fa2   : > { %v11962_v40 = vpop.eup %11961  ;;  %v8933_v14 = vmul.f32 %v11960_v45, %v15619_v41  ;;  %v8939_v50 = vadd.f32 %v8931_v19, %v8923_v53  ;;  %9273 = vst.msk [vmem:[%s13255_s12 + $0xc0] sm:$0xff] %vm416_vm0, %v8937_v43  ;;  %8954 = vst.msk [vmem:[%s15957_s19] sm:$0xff] %vm416_vm0, %v8937_v43 }
0x1fa3   : > { %v11964_v30 = vpop.eup %11963  ;;  %v8934_v39 = vmul.f32 %v11962_v40, %v15622_v9  ;;  %v8940_v52 = vadd.f32 %v8932_v31, %v8924_v29  ;;  %9274 = vst.msk [vmem:[%s13255_s12 + $0xc8] sm:$0xff] %vm416_vm0, %v8938_v22  ;;  %8955 = vst.msk [vmem:[%s15957_s19 + $0x8] sm:$0xff] %vm416_vm0, %v8938_v22  ;;  %v8928_v9 = vmul.f32 %v8920_v33, %v15195_v15 }
0x1fa4   : > { %v11966_v41 = vpop.eup %11965  ;;  %v8935_v23 = vmul.f32 %v11964_v30, %v15627_v32  ;;  %v8941_v21 = vadd.f32 %v8933_v14, %v8925_v55  ;;  %9275 = vst.msk [vmem:[%s13255_s12 + $0xd0] sm:$0xff] %vm416_vm0, %v8939_v50  ;;  %8956 = vst.msk [vmem:[%s15957_s19 + $0x10] sm:$0xff] %vm416_vm0, %v8939_v50 }
0x1fa5   : > { %v8936_v1 = vmul.f32 %v11966_v41, %v15630_v5  ;;  %v8942_v28 = vadd.f32 %v8934_v39, %v8926_v56  ;;  %9276 = vst.msk [vmem:[%s13255_s12 + $0xd8] sm:$0xff] %vm416_vm0, %v8940_v52  ;;  %8957 = vst.msk [vmem:[%s15957_s19 + $0x18] sm:$0xff] %vm416_vm0, %v8940_v52 }
0x1fa6   : > { %v8943_v32 = vadd.f32 %v8935_v23, %v8927_v44  ;;  %9277 = vst.msk [vmem:[%s13255_s12 + $0xe0] sm:$0xff] %vm416_vm0, %v8941_v21  ;;  %8958 = vst.msk [vmem:[%s15957_s19 + $0x20] sm:$0xff] %vm416_vm0, %v8941_v21 }
0x1fa7   : > { %v8944_v15 = vadd.f32 %v8936_v1, %v8928_v9  ;;  %9278 = vst.msk [vmem:[%s13255_s12 + $0xe8] sm:$0xff] %vm416_vm0, %v8942_v28  ;;  %8959 = vst.msk [vmem:[%s15957_s19 + $0x28] sm:$0xff] %vm416_vm0, %v8942_v28 }
0x1fa8   : > { %9279 = vst.msk [vmem:[%s13255_s12 + $0xf0] sm:$0xff] %vm416_vm0, %v8943_v32  ;;  %8960 = vst.msk [vmem:[%s15957_s19 + $0x30] sm:$0xff] %vm416_vm0, %v8943_v32 }
0x1fa9   : > { %9280 = vst.msk [vmem:[%s13255_s12 + $0xf8] sm:$0xff] %vm416_vm0, %v8944_v15  ;;  %8961 = vst.msk [vmem:[%s15957_s19 + $0x38] sm:$0xff] %vm416_vm0, %v8944_v15 }
0x1faa   : > { %12011 = shalt.err (!%p12008_p3)
}
0x1fab   : > { %s12012_s12 = scalar_lea.hbm %s15977_s26, 4096  ;;  %s12016_s20 = scalar_lea.hbm %s16089_s10, 8192 }
0x1fac   : > { %p12013_p4 = scmp.ne.s32.totalorder %s15977_s26, %s12012_s12  ;;  %p12017_p9 = scmp.lt.s32.totalorder %s15977_s26, %s16089_s10 }
0x1fad   : > { %p12018_p10 = scmp.lt.s32.totalorder %s12016_s20, %s12012_s12 }
0x1fae   : > { %p12014_p7 = pnand %p12013_p4, %p12200_p5 }
0x1faf   : > { %p12019_p11 = por %p12018_p10, %p12017_p9 }
0x1fb0   : > { %p12015_p8 = pneg %p12014_p7 }
0x1fb2   : > { %p12020_p12 = pnand %p12019_p11, %p12015_p8 }
0x1fb4   : > { %12023 = shalt.err (!%p12020_p12)
}
0x1fb5   : > { %s12099_s17 = smov 128   ;;  %s12100_s13 = smov 8  }
0x1fb6   : > { %10045 = dma.vmem_to_hbm [thread:$0]  (%p12200_p5), %s15991_s18, 4096, %s15977_s26, %s8963_s1, %s12099_s17, %s12099_s17, %s12100_s13  }
0x1fb7   : > { %s8968_s21 = scalar_lea.sflag [#allocation7], %s13208_s22  ;;  %s12024_s25 = scalar_lea.vmem %s16006_s23, 1024 }
0x1fb8   : > { %p12025_p13 = scmp.ne.s32.totalorder %s16006_s23, %s12024_s25  ;;  %s12101_s16 = smov [#allocation6]  }
0x1fb9   : > { %s12028_s28 = sshll.u32 %s12101_s16, 4  ;;  %s12029_s28 = int_to_ptr.vmem [resolvable:$false] %s12028_s28 }
0x1fba   : > { %p12026_p0 = pnand %p12025_p13, %p12200_p5  ;;  %s12030_s24 = scalar_lea.vmem %s12029_s28, 2048 }
0x1fbb   : > { %p12031_p2 = scmp.lt.s32.totalorder %s16006_s23, %s12029_s28  ;;  %p12032_p3 = scmp.lt.s32.totalorder %s12030_s24, %s12024_s25 }
0x1fbc   : > { %p12027_p1 = pneg %p12026_p0 }
0x1fbd   : > { %p12033_p4 = por %p12032_p3, %p12031_p2 }
0x1fbf   : > { %p12034_p7 = pnand %p12033_p4, %p12027_p1 }
0x1fc1   : > { %12037 = shalt.err (!%p12034_p7)
}
0x1fc2   : > { %s12038_s18 = scalar_lea.hbm %s16004_s0, 1024  ;;  %s12042_s1 = scalar_lea.hbm %s16134_s30, 2048 }
0x1fc3   : > { %p12039_p8 = scmp.ne.s32.totalorder %s16004_s0, %s12038_s18  ;;  %p12043_p11 = scmp.lt.s32.totalorder %s16004_s0, %s16134_s30 }
0x1fc4   : > { %p12044_p12 = scmp.lt.s32.totalorder %s12042_s1, %s12038_s18 }
0x1fc5   : > { %p12040_p9 = pnand %p12039_p8, %p12200_p5 }
0x1fc6   : > { %p12045_p13 = por %p12044_p12, %p12043_p11 }
0x1fc7   : > { %p12041_p10 = pneg %p12040_p9 }
0x1fc9   : > { %p12046_p0 = pnand %p12045_p13, %p12041_p10 }
0x1fcb   : > { %12049 = shalt.err (!%p12046_p0)
}
0x1fcc   : > { %10046 = dma.vmem_to_hbm [thread:$0]  (%p12200_p5), %s16006_s23, 1024, %s16004_s0, %s8968_s21, %s12099_s17, %s12099_s17, %s12100_s13  }
0x1fcd PF: > { %s16135_s29 = sld [smem:[#allocation13_spill]] }
0x1fce   : > { %s16136_s11 = sld [smem:[#allocation10_spill]] }
0x1fd3   : > { %p10056_p1 = scmp.ge.s32.totalorder %s16135_s29, 2 }
0x1fd4   : > { %s9012_s19 = sand.u32 1, %s16136_s11  }
0x1fd5   : > { %p10050_p2 = pnand %p10056_p1, %p12204_p6  ;;  %s9013_s14 = scalar_lea.sflag [#allocation5], %s9012_s19 }
0x1fd7   : > { %p10051_p3 = pneg %p10050_p2 }
0x1fd9   : > { %12067 = dma.done.wait (%p10051_p3), %s9013_s14, 4096  }
0x1fda   : > { %12069 = vsyncadd (%p10051_p3), %s9013_s14, 4294963200  ;;  %s9022_s25 = scalar_lea.sflag [#allocation7], %s9012_s19 }
0x1fdb   : > { %12071 = dma.done.wait (%p10051_p3), %s9022_s25, 1024  }
0x1fdc   : > { %12073 = vsyncadd (%p10051_p3), %s9022_s25, 4294966272  ;;  %s16138_s20 = sld [smem:[#allocation14_spill]] }
0x1fdd   : > { %s16139_s17 = sld [smem:[#allocation11_spill]] }
0x1fde   : > { %s16140_s18 = sld [smem:[#allocation12_spill]] }
0x1fdf   : > { %s16141_s19 = sld [smem:[#allocation15_spill]] }
0x1fe2   : > { %p25_p5 = scmp.ge.s32.totalorder %s16138_s20, 4  }
0x1fe4   :  { %27 = sbr.rel (!%p25_p5) target bundleno = 9 (0x9), region = 125 }
0x1fe9   :  { %9027 = vsyncpa [#allocation5], 1 }
0x1fea   :  { %9029 = vsyncpa [#allocation5 + $0x1], 1 }
0x1feb   :  { %9030 = vsyncpa [#allocation7], 1 }
0x1fec   :  { %9032 = vsyncpa [#allocation7 + $0x1], 1 }

</bundles_post_ra>
